<compile_context>
chip_gen: v5e
topology: v5e:2x2
jax: 0.10.0
libtpu: 0.0.40
codegen_flags: <defaults>
</compile_context>

<pallas_src>
import functools

import jax
import jax.numpy as jnp
from jax import lax
from jax.experimental import pallas as pl
from jax.experimental.pallas import tpu as pltpu  # noqa: F401  (kept for TPU-specific tuning hooks)


def _round_up(n, m):
    return ((n + m - 1) // m) * m


# ----------------------------- Pallas kernel -------------------------------- #

def _make_fused_kernel(num_layers, hp, seq_len):
    """Whole-sequence multi-layer LSTM + fused FC; single invocation, no grid."""

    def _sigmoid(x):
        # sigmoid(x) = 0.5 * tanh(0.5 * x) + 0.5  -> single EUP op per gate.
        return 0.5 * jnp.tanh(0.5 * x) + 0.5

    def kernel(*args):
        if num_layers > 1:
            (gx_ref, whh0_ref, wcat_ref, brest_ref, wfc_ref, bfc_ref,
             out_ref) = args
        else:
            gx_ref, whh0_ref, wfc_ref, bfc_ref, out_ref = args
            wcat_ref = brest_ref = None

        bp = gx_ref.shape[1]

        def cell(gates, c_prev):
            # PyTorch gate order i, f, g, o; each gate is a lane-aligned hp chunk.
            i_g = _sigmoid(gates[:, 0 * hp:1 * hp])
            f_g = _sigmoid(gates[:, 1 * hp:2 * hp])
            g_g = jnp.tanh(gates[:, 2 * hp:3 * hp])
            o_g = _sigmoid(gates[:, 3 * hp:4 * hp])
            c_new = f_g * c_prev + i_g * g_g
            h_new = o_g * jnp.tanh(c_new)
            return h_new, c_new

        def step(t, carry):
            hs, cs = carry
            # layer 0: input projection (incl. bias) precomputed into gx
            gates0 = gx_ref[t] + jnp.dot(hs[0], whh0_ref[...],
                                         preferred_element_type=jnp.float32)
            h_l, c_l = cell(gates0, cs[0])
            new_hs, new_cs = [h_l], [c_l]
            # layers 1..L-1: one fused K=2*hp matmul per layer per step
            for l in range(1, num_layers):
                inp = jnp.concatenate([h_l, hs[l]], axis=-1)        # (bp, 2hp)
                gates = (jnp.dot(inp, wcat_ref[l - 1],
                                 preferred_element_type=jnp.float32)
                         + brest_ref[l - 1])
                h_l, c_l = cell(gates, cs[l])
                new_hs.append(h_l)
                new_cs.append(c_l)
            return (tuple(new_hs), tuple(new_cs))

        zeros = jnp.zeros((bp, hp), jnp.float32)
        carry = (tuple(zeros for _ in range(num_layers)),
                 tuple(zeros for _ in range(num_layers)))

        if seq_len <= 16:
            # Full static unroll: static gx indices, max scheduler visibility.
            for t in range(seq_len):
                carry = step(t, carry)
        else:
            carry = lax.fori_loop(0, seq_len, step, carry)

        # Fused FC on the final hidden state: single lane-dense (bp, cp) store.
        h_last = carry[0][num_layers - 1]
        out_ref[...] = (jnp.dot(h_last, wfc_ref[...],
                                preferred_element_type=jnp.float32)
                        + bfc_ref[...]).astype(out_ref.dtype)

    return kernel


# ------------------------------ JAX wrapper --------------------------------- #

@functools.partial(jax.jit, static_argnums=(2,))
def lstm_classifier_forward(x, padded_params, num_classes):
    """x: (B, T, input_size) -> logits (B, num_classes)."""
    (w_ih0_t, b0, w_hh0_t, w_cat_rest, b_rest, w_fc_t, b_fc_p) = padded_params
    B, T, F = x.shape
    bp = _round_up(B, 8)
    fp = w_ih0_t.shape[0]
    hp = w_hh0_t.shape[0]
    g = 4 * hp
    cp = w_fc_t.shape[1]
    num_layers = 1 if w_cat_rest is None else 1 + w_cat_rest.shape[0]

    # time-major + zero-pad batch (sublanes) and features (lanes)
    x_tbf = jnp.transpose(x, (1, 0, 2))
    x_pad = jnp.zeros((T, bp, fp), jnp.float32).at[:, :B, :F].set(x_tbf)

    # Hoisted layer-0 input projection (+ bias) as one plain XLA matmul; no
    # second Pallas launch (launch overhead dominated at this size).
    gx = (x_pad.reshape(T * bp, fp) @ w_ih0_t + b0).reshape(T, bp, g)

    in_arrays = [gx, w_hh0_t]
    if num_layers > 1:
        # Pre-broadcast biases so the unrolled body has zero broadcast_in_dim ops.
        b_rest_bc = jnp.broadcast_to(b_rest, (num_layers - 1, bp, g))
        in_arrays += [w_cat_rest, b_rest_bc]
    in_arrays += [w_fc_t, b_fc_p]

    kernel = _make_fused_kernel(num_layers, hp, T)
    # Single invocation: no grid, all operands resident in VMEM (~1 MiB here).
    logits_pad = pl.pallas_call(
        kernel,
        out_shape=jax.ShapeDtypeStruct((bp, cp), jnp.float32),
    )(*in_arrays)
    return logits_pad[:B, :num_classes]


def pad_params_for_tpu(layer_params_raw, w_fc, b_fc, input_size, hidden_size):
    """Pad torch-layout LSTM/Linear params to (8,128)-aligned, gate-blocked tiles."""
    H = hidden_size
    hp = _round_up(H, 128)
    fp = _round_up(input_size, 128)
    C = b_fc.shape[0]
    cp = _round_up(C, 128)
    g = 4 * hp

    def pad_gate_mat(w, in_dim, in_pad):
        # w: (4H, in_dim), rows = [i|f|g|o] blocks -> (in_pad, 4*hp) gate-aligned
        w4 = w.reshape(4, H, in_dim)
        w4 = jnp.pad(w4, ((0, 0), (0, hp - H), (0, in_pad - in_dim)))
        return w4.reshape(g, in_pad).T

    def pad_gate_bias(b):
        b4 = b.reshape(4, H)
        b4 = jnp.pad(b4, ((0, 0), (0, hp - H)))
        return b4.reshape(1, g)

    w_ih0, w_hh0, b_ih0, b_hh0 = layer_params_raw[0]
    w_ih0_t = pad_gate_mat(w_ih0, input_size, fp)          # (fp, 4hp)
    b0 = pad_gate_bias(b_ih0 + b_hh0)                      # (1, 4hp)
    w_hh0_t = pad_gate_mat(w_hh0, H, hp)                   # (hp, 4hp)

    # Layers >= 1: fuse [W_ih ; W_hh] into one (2hp, 4hp) matrix so the recurrent
    # step needs a single MXU pass with K = 2*hp.
    w_cat, b_rest = [], []
    for (w_ih, w_hh, b_ih, b_hh) in layer_params_raw[1:]:
        # rows 0..hp-1 multiply h from the layer below, rows hp..2hp-1 the own h.
        w_cat.append(jnp.concatenate(
            [pad_gate_mat(w_ih, H, hp), pad_gate_mat(w_hh, H, hp)], axis=0))
        b_rest.append(pad_gate_bias(b_ih + b_hh))
    w_cat_stack = jnp.stack(w_cat) if w_cat else None      # (L-1, 2hp, 4hp)
    b_rest_stack = jnp.stack(b_rest) if b_rest else None   # (L-1, 1, 4hp)

    w_fc_t = jnp.pad(w_fc, ((0, cp - C), (0, hp - H))).T   # (hp, cp)
    b_fc_p = jnp.pad(b_fc, (0, cp - C)).reshape(1, cp)     # (1, cp)

    return (w_ih0_t, b0, w_hh0_t, w_cat_stack, b_rest_stack, w_fc_t, b_fc_p)


# --------------------------- pure-JAX reference ----------------------------- #

def lstm_classifier_ref(x, layer_params_raw, w_fc, b_fc):
    B = x.shape[0]
    h_seq = jnp.transpose(x, (1, 0, 2))  # (T, B, F)
    for (w_ih, w_hh, b_ih, b_hh) in layer_params_raw:
        H = w_hh.shape[1]
        w_ih_t, w_hh_t, bias = w_ih.T, w_hh.T, b_ih + b_hh

        def step(carry, xt, w_ih_t=w_ih_t, w_hh_t=w_hh_t, bias=bias, H=H):
            h, c = carry
            gates = xt @ w_ih_t + h @ w_hh_t + bias
            i_g = jax.nn.sigmoid(gates[:, 0 * H:1 * H])
            f_g = jax.nn.sigmoid(gates[:, 1 * H:2 * H])
            g_g = jnp.tanh(gates[:, 2 * H:3 * H])
            o_g = jax.nn.sigmoid(gates[:, 3 * H:4 * H])
            c = f_g * c + i_g * g_g
            h = o_g * jnp.tanh(c)
            return (h, c), h

        init = (jnp.zeros((B, H), jnp.float32), jnp.zeros((B, H), jnp.float32))
        _, h_seq = lax.scan(step, init, h_seq)
    return h_seq[-1] @ w_fc.T + b_fc


# --------------------------------- main ------------------------------------- #

def init_params(key, input_size, hidden_size, num_layers, num_classes):
    """Deterministic init mirroring nn.LSTM / nn.Linear (U(-1/sqrt(H), 1/sqrt(H)))."""
    bound = 1.0 / (hidden_size ** 0.5)
    layers = []
    for layer in range(num_layers):
        in_dim = input_size if layer == 0 else hidden_size
        k1, k2, k3, k4, key = jax.random.split(key, 5)
        w_ih = jax.random.uniform(k1, (4 * hidden_size, in_dim), jnp.float32,
                                  -bound, bound)
        w_hh = jax.random.uniform(k2, (4 * hidden_size, hidden_size), jnp.float32,
                                  -bound, bound)
        b_ih = jax.random.uniform(k3, (4 * hidden_size,), jnp.float32, -bound, bound)
        b_hh = jax.random.uniform(k4, (4 * hidden_size,), jnp.float32, -bound, bound)
        layers.append((w_ih, w_hh, b_ih, b_hh))
    k5, k6, key = jax.random.split(key, 3)
    w_fc = jax.random.uniform(k5, (num_classes, hidden_size), jnp.float32,
                              -bound, bound)
    b_fc = jax.random.uniform(k6, (num_classes,), jnp.float32, -bound, bound)
    return tuple(layers), w_fc, b_fc


if __name__ == "__main__":
    input_size, hidden_size, num_layers, num_classes = 16, 32, 2, 4
    batch, seq_len = 2, 8

    key = jax.random.PRNGKey(0)
    kx, kp = jax.random.split(key)
    x = jax.random.normal(kx, (batch, seq_len, input_size), jnp.float32)
    layer_params_raw, w_fc, b_fc = init_params(
        kp, input_size, hidden_size, num_layers, num_classes)

    padded_params = pad_params_for_tpu(
        layer_params_raw, w_fc, b_fc, input_size, hidden_size)

    logits = lstm_classifier_forward(x, padded_params, num_classes)
    logits = jax.block_until_ready(logits)

    ref = lstm_classifier_ref(x, layer_params_raw, w_fc, b_fc)
    assert logits.shape == (batch, num_classes)
    assert jnp.allclose(logits, ref, atol=1e-4, rtol=1e-4), (logits, ref)

    print("KERNEL_OK")
</pallas_src>

<mosaic_0001>
module attributes {stable_mosaic.version = 11 : i64} {
  func.func @kernel(%arg0: memref<8x8x512xf32, #tpu.memory_space<vmem>>, %arg1: memref<128x512xf32, #tpu.memory_space<vmem>>, %arg2: memref<1x256x512xf32, #tpu.memory_space<vmem>>, %arg3: memref<1x8x512xf32, #tpu.memory_space<vmem>>, %arg4: memref<128x128xf32, #tpu.memory_space<vmem>>, %arg5: memref<1x128xf32, #tpu.memory_space<vmem>>, %arg6: memref<8x128xf32, #tpu.memory_space<vmem>>) attributes {dimension_semantics = [], scalar_prefetch = 0 : i64, scratch_operands = 0 : i64, tpu.core_type = #tpu.core_type<tc>} {
    %cst = arith.constant 0.000000e+00 : f32
    %0 = vector.broadcast %cst : f32 to vector<8x128xf32>
    %c0 = arith.constant 0 : index
    %c0_0 = arith.constant 0 : index
    %c0_1 = arith.constant 0 : index
    %1 = vector.load %arg0[%c0, %c0_0, %c0_1] : memref<8x8x512xf32, #tpu.memory_space<vmem>>, vector<1x8x512xf32>
    %2 = vector.shape_cast %1 : vector<1x8x512xf32> to vector<8x512xf32>
    %c0_2 = arith.constant 0 : index
    %c0_3 = arith.constant 0 : index
    %3 = vector.load %arg1[%c0_2, %c0_3] : memref<128x512xf32, #tpu.memory_space<vmem>>, vector<128x512xf32>
    %cst_4 = arith.constant dense<0.000000e+00> : vector<8x512xf32>
    %4 = tpu.matmul %0, %3, %cst_4 {dimension_numbers = #tpu.dot_dimension_numbers<[1], [0], [0], [1], [0, 0, 1, 1], [], []>} : vector<8x128xf32>, vector<128x512xf32>, vector<8x512xf32> -> vector<8x512xf32>
    %5 = arith.addf %2, %4 : vector<8x512xf32>
    %6 = vector.extract_strided_slice %5 {offsets = [0, 0], sizes = [8, 128], strides = [1, 1]} : vector<8x512xf32> to vector<8x128xf32>
    %cst_5 = arith.constant 5.000000e-01 : f32
    %7 = vector.broadcast %cst_5 : f32 to vector<8x128xf32>
    %8 = arith.mulf %7, %6 : vector<8x128xf32>
    %9 = math.tanh %8 : vector<8x128xf32>
    %cst_6 = arith.constant 5.000000e-01 : f32
    %10 = vector.broadcast %cst_6 : f32 to vector<8x128xf32>
    %11 = arith.mulf %10, %9 : vector<8x128xf32>
    %cst_7 = arith.constant 5.000000e-01 : f32
    %12 = vector.broadcast %cst_7 : f32 to vector<8x128xf32>
    %13 = arith.addf %11, %12 : vector<8x128xf32>
    %14 = vector.extract_strided_slice %5 {offsets = [0, 128], sizes = [8, 128], strides = [1, 1]} : vector<8x512xf32> to vector<8x128xf32>
    %cst_8 = arith.constant 5.000000e-01 : f32
    %15 = vector.broadcast %cst_8 : f32 to vector<8x128xf32>
    %16 = arith.mulf %15, %14 : vector<8x128xf32>
    %17 = math.tanh %16 : vector<8x128xf32>
    %cst_9 = arith.constant 5.000000e-01 : f32
    %18 = vector.broadcast %cst_9 : f32 to vector<8x128xf32>
    %19 = arith.mulf %18, %17 : vector<8x128xf32>
    %cst_10 = arith.constant 5.000000e-01 : f32
    %20 = vector.broadcast %cst_10 : f32 to vector<8x128xf32>
    %21 = arith.addf %19, %20 : vector<8x128xf32>
    %22 = vector.extract_strided_slice %5 {offsets = [0, 256], sizes = [8, 128], strides = [1, 1]} : vector<8x512xf32> to vector<8x128xf32>
    %23 = math.tanh %22 : vector<8x128xf32>
    %24 = vector.extract_strided_slice %5 {offsets = [0, 384], sizes = [8, 128], strides = [1, 1]} : vector<8x512xf32> to vector<8x128xf32>
    %cst_11 = arith.constant 5.000000e-01 : f32
    %25 = vector.broadcast %cst_11 : f32 to vector<8x128xf32>
    %26 = arith.mulf %25, %24 : vector<8x128xf32>
    %27 = math.tanh %26 : vector<8x128xf32>
    %cst_12 = arith.constant 5.000000e-01 : f32
    %28 = vector.broadcast %cst_12 : f32 to vector<8x128xf32>
    %29 = arith.mulf %28, %27 : vector<8x128xf32>
    %cst_13 = arith.constant 5.000000e-01 : f32
    %30 = vector.broadcast %cst_13 : f32 to vector<8x128xf32>
    %31 = arith.addf %29, %30 : vector<8x128xf32>
    %32 = arith.mulf %21, %0 : vector<8x128xf32>
    %33 = arith.mulf %13, %23 : vector<8x128xf32>
    %34 = arith.addf %32, %33 : vector<8x128xf32>
    %35 = math.tanh %34 : vector<8x128xf32>
    %36 = arith.mulf %31, %35 : vector<8x128xf32>
    %37 = tpu.concatenate %36, %0 in 1 : vector<8x128xf32>, vector<8x128xf32> -> vector<8x256xf32>
    %c0_14 = arith.constant 0 : index
    %c0_15 = arith.constant 0 : index
    %c0_16 = arith.constant 0 : index
    %38 = vector.load %arg2[%c0_14, %c0_15, %c0_16] : memref<1x256x512xf32, #tpu.memory_space<vmem>>, vector<1x256x512xf32>
    %39 = vector.shape_cast %38 : vector<1x256x512xf32> to vector<256x512xf32>
    %cst_17 = arith.constant dense<0.000000e+00> : vector<8x512xf32>
    %40 = tpu.matmul %37, %39, %cst_17 {dimension_numbers = #tpu.dot_dimension_numbers<[1], [0], [0], [1], [0, 0, 1, 1], [], []>} : vector<8x256xf32>, vector<256x512xf32>, vector<8x512xf32> -> vector<8x512xf32>
    %c0_18 = arith.constant 0 : index
    %c0_19 = arith.constant 0 : index
    %c0_20 = arith.constant 0 : index
    %41 = vector.load %arg3[%c0_18, %c0_19, %c0_20] : memref<1x8x512xf32, #tpu.memory_space<vmem>>, vector<1x8x512xf32>
    %42 = vector.shape_cast %41 : vector<1x8x512xf32> to vector<8x512xf32>
    %43 = arith.addf %40, %42 : vector<8x512xf32>
    %44 = vector.extract_strided_slice %43 {offsets = [0, 0], sizes = [8, 128], strides = [1, 1]} : vector<8x512xf32> to vector<8x128xf32>
    %cst_21 = arith.constant 5.000000e-01 : f32
    %45 = vector.broadcast %cst_21 : f32 to vector<8x128xf32>
    %46 = arith.mulf %45, %44 : vector<8x128xf32>
    %47 = math.tanh %46 : vector<8x128xf32>
    %cst_22 = arith.constant 5.000000e-01 : f32
    %48 = vector.broadcast %cst_22 : f32 to vector<8x128xf32>
    %49 = arith.mulf %48, %47 : vector<8x128xf32>
    %cst_23 = arith.constant 5.000000e-01 : f32
    %50 = vector.broadcast %cst_23 : f32 to vector<8x128xf32>
    %51 = arith.addf %49, %50 : vector<8x128xf32>
    %52 = vector.extract_strided_slice %43 {offsets = [0, 128], sizes = [8, 128], strides = [1, 1]} : vector<8x512xf32> to vector<8x128xf32>
    %cst_24 = arith.constant 5.000000e-01 : f32
    %53 = vector.broadcast %cst_24 : f32 to vector<8x128xf32>
    %54 = arith.mulf %53, %52 : vector<8x128xf32>
    %55 = math.tanh %54 : vector<8x128xf32>
    %cst_25 = arith.constant 5.000000e-01 : f32
    %56 = vector.broadcast %cst_25 : f32 to vector<8x128xf32>
    %57 = arith.mulf %56, %55 : vector<8x128xf32>
    %cst_26 = arith.constant 5.000000e-01 : f32
    %58 = vector.broadcast %cst_26 : f32 to vector<8x128xf32>
    %59 = arith.addf %57, %58 : vector<8x128xf32>
    %60 = vector.extract_strided_slice %43 {offsets = [0, 256], sizes = [8, 128], strides = [1, 1]} : vector<8x512xf32> to vector<8x128xf32>
    %61 = math.tanh %60 : vector<8x128xf32>
    %62 = vector.extract_strided_slice %43 {offsets = [0, 384], sizes = [8, 128], strides = [1, 1]} : vector<8x512xf32> to vector<8x128xf32>
    %cst_27 = arith.constant 5.000000e-01 : f32
    %63 = vector.broadcast %cst_27 : f32 to vector<8x128xf32>
    %64 = arith.mulf %63, %62 : vector<8x128xf32>
    %65 = math.tanh %64 : vector<8x128xf32>
    %cst_28 = arith.constant 5.000000e-01 : f32
    %66 = vector.broadcast %cst_28 : f32 to vector<8x128xf32>
    %67 = arith.mulf %66, %65 : vector<8x128xf32>
    %cst_29 = arith.constant 5.000000e-01 : f32
    %68 = vector.broadcast %cst_29 : f32 to vector<8x128xf32>
    %69 = arith.addf %67, %68 : vector<8x128xf32>
    %70 = arith.mulf %59, %0 : vector<8x128xf32>
    %71 = arith.mulf %51, %61 : vector<8x128xf32>
    %72 = arith.addf %70, %71 : vector<8x128xf32>
    %73 = math.tanh %72 : vector<8x128xf32>
    %74 = arith.mulf %69, %73 : vector<8x128xf32>
    %c1 = arith.constant 1 : index
    %c0_30 = arith.constant 0 : index
    %c0_31 = arith.constant 0 : index
    %75 = vector.load %arg0[%c1, %c0_30, %c0_31] : memref<8x8x512xf32, #tpu.memory_space<vmem>>, vector<1x8x512xf32>
    %76 = vector.shape_cast %75 : vector<1x8x512xf32> to vector<8x512xf32>
    %c0_32 = arith.constant 0 : index
    %c0_33 = arith.constant 0 : index
    %77 = vector.load %arg1[%c0_32, %c0_33] : memref<128x512xf32, #tpu.memory_space<vmem>>, vector<128x512xf32>
    %cst_34 = arith.constant dense<0.000000e+00> : vector<8x512xf32>
    %78 = tpu.matmul %36, %77, %cst_34 {dimension_numbers = #tpu.dot_dimension_numbers<[1], [0], [0], [1], [0, 0, 1, 1], [], []>} : vector<8x128xf32>, vector<128x512xf32>, vector<8x512xf32> -> vector<8x512xf32>
    %79 = arith.addf %76, %78 : vector<8x512xf32>
    %80 = vector.extract_strided_slice %79 {offsets = [0, 0], sizes = [8, 128], strides = [1, 1]} : vector<8x512xf32> to vector<8x128xf32>
    %cst_35 = arith.constant 5.000000e-01 : f32
    %81 = vector.broadcast %cst_35 : f32 to vector<8x128xf32>
    %82 = arith.mulf %81, %80 : vector<8x128xf32>
    %83 = math.tanh %82 : vector<8x128xf32>
    %cst_36 = arith.constant 5.000000e-01 : f32
    %84 = vector.broadcast %cst_36 : f32 to vector<8x128xf32>
    %85 = arith.mulf %84, %83 : vector<8x128xf32>
    %cst_37 = arith.constant 5.000000e-01 : f32
    %86 = vector.broadcast %cst_37 : f32 to vector<8x128xf32>
    %87 = arith.addf %85, %86 : vector<8x128xf32>
    %88 = vector.extract_strided_slice %79 {offsets = [0, 128], sizes = [8, 128], strides = [1, 1]} : vector<8x512xf32> to vector<8x128xf32>
    %cst_38 = arith.constant 5.000000e-01 : f32
    %89 = vector.broadcast %cst_38 : f32 to vector<8x128xf32>
    %90 = arith.mulf %89, %88 : vector<8x128xf32>
    %91 = math.tanh %90 : vector<8x128xf32>
    %cst_39 = arith.constant 5.000000e-01 : f32
    %92 = vector.broadcast %cst_39 : f32 to vector<8x128xf32>
    %93 = arith.mulf %92, %91 : vector<8x128xf32>
    %cst_40 = arith.constant 5.000000e-01 : f32
    %94 = vector.broadcast %cst_40 : f32 to vector<8x128xf32>
    %95 = arith.addf %93, %94 : vector<8x128xf32>
    %96 = vector.extract_strided_slice %79 {offsets = [0, 256], sizes = [8, 128], strides = [1, 1]} : vector<8x512xf32> to vector<8x128xf32>
    %97 = math.tanh %96 : vector<8x128xf32>
    %98 = vector.extract_strided_slice %79 {offsets = [0, 384], sizes = [8, 128], strides = [1, 1]} : vector<8x512xf32> to vector<8x128xf32>
    %cst_41 = arith.constant 5.000000e-01 : f32
    %99 = vector.broadcast %cst_41 : f32 to vector<8x128xf32>
    %100 = arith.mulf %99, %98 : vector<8x128xf32>
    %101 = math.tanh %100 : vector<8x128xf32>
    %cst_42 = arith.constant 5.000000e-01 : f32
    %102 = vector.broadcast %cst_42 : f32 to vector<8x128xf32>
    %103 = arith.mulf %102, %101 : vector<8x128xf32>
    %cst_43 = arith.constant 5.000000e-01 : f32
    %104 = vector.broadcast %cst_43 : f32 to vector<8x128xf32>
    %105 = arith.addf %103, %104 : vector<8x128xf32>
    %106 = arith.mulf %95, %34 : vector<8x128xf32>
    %107 = arith.mulf %87, %97 : vector<8x128xf32>
    %108 = arith.addf %106, %107 : vector<8x128xf32>
    %109 = math.tanh %108 : vector<8x128xf32>
    %110 = arith.mulf %105, %109 : vector<8x128xf32>
    %111 = tpu.concatenate %110, %74 in 1 : vector<8x128xf32>, vector<8x128xf32> -> vector<8x256xf32>
    %c0_44 = arith.constant 0 : index
    %c0_45 = arith.constant 0 : index
    %c0_46 = arith.constant 0 : index
    %112 = vector.load %arg2[%c0_44, %c0_45, %c0_46] : memref<1x256x512xf32, #tpu.memory_space<vmem>>, vector<1x256x512xf32>
    %113 = vector.shape_cast %112 : vector<1x256x512xf32> to vector<256x512xf32>
    %cst_47 = arith.constant dense<0.000000e+00> : vector<8x512xf32>
    %114 = tpu.matmul %111, %113, %cst_47 {dimension_numbers = #tpu.dot_dimension_numbers<[1], [0], [0], [1], [0, 0, 1, 1], [], []>} : vector<8x256xf32>, vector<256x512xf32>, vector<8x512xf32> -> vector<8x512xf32>
    %c0_48 = arith.constant 0 : index
    %c0_49 = arith.constant 0 : index
    %c0_50 = arith.constant 0 : index
    %115 = vector.load %arg3[%c0_48, %c0_49, %c0_50] : memref<1x8x512xf32, #tpu.memory_space<vmem>>, vector<1x8x512xf32>
    %116 = vector.shape_cast %115 : vector<1x8x512xf32> to vector<8x512xf32>
    %117 = arith.addf %114, %116 : vector<8x512xf32>
    %118 = vector.extract_strided_slice %117 {offsets = [0, 0], sizes = [8, 128], strides = [1, 1]} : vector<8x512xf32> to vector<8x128xf32>
    %cst_51 = arith.constant 5.000000e-01 : f32
    %119 = vector.broadcast %cst_51 : f32 to vector<8x128xf32>
    %120 = arith.mulf %119, %118 : vector<8x128xf32>
    %121 = math.tanh %120 : vector<8x128xf32>
    %cst_52 = arith.constant 5.000000e-01 : f32
    %122 = vector.broadcast %cst_52 : f32 to vector<8x128xf32>
    %123 = arith.mulf %122, %121 : vector<8x128xf32>
    %cst_53 = arith.constant 5.000000e-01 : f32
    %124 = vector.broadcast %cst_53 : f32 to vector<8x128xf32>
    %125 = arith.addf %123, %124 : vector<8x128xf32>
    %126 = vector.extract_strided_slice %117 {offsets = [0, 128], sizes = [8, 128], strides = [1, 1]} : vector<8x512xf32> to vector<8x128xf32>
    %cst_54 = arith.constant 5.000000e-01 : f32
    %127 = vector.broadcast %cst_54 : f32 to vector<8x128xf32>
    %128 = arith.mulf %127, %126 : vector<8x128xf32>
    %129 = math.tanh %128 : vector<8x128xf32>
    %cst_55 = arith.constant 5.000000e-01 : f32
    %130 = vector.broadcast %cst_55 : f32 to vector<8x128xf32>
    %131 = arith.mulf %130, %129 : vector<8x128xf32>
    %cst_56 = arith.constant 5.000000e-01 : f32
    %132 = vector.broadcast %cst_56 : f32 to vector<8x128xf32>
    %133 = arith.addf %131, %132 : vector<8x128xf32>
    %134 = vector.extract_strided_slice %117 {offsets = [0, 256], sizes = [8, 128], strides = [1, 1]} : vector<8x512xf32> to vector<8x128xf32>
    %135 = math.tanh %134 : vector<8x128xf32>
    %136 = vector.extract_strided_slice %117 {offsets = [0, 384], sizes = [8, 128], strides = [1, 1]} : vector<8x512xf32> to vector<8x128xf32>
    %cst_57 = arith.constant 5.000000e-01 : f32
    %137 = vector.broadcast %cst_57 : f32 to vector<8x128xf32>
    %138 = arith.mulf %137, %136 : vector<8x128xf32>
    %139 = math.tanh %138 : vector<8x128xf32>
    %cst_58 = arith.constant 5.000000e-01 : f32
    %140 = vector.broadcast %cst_58 : f32 to vector<8x128xf32>
    %141 = arith.mulf %140, %139 : vector<8x128xf32>
    %cst_59 = arith.constant 5.000000e-01 : f32
    %142 = vector.broadcast %cst_59 : f32 to vector<8x128xf32>
    %143 = arith.addf %141, %142 : vector<8x128xf32>
    %144 = arith.mulf %133, %72 : vector<8x128xf32>
    %145 = arith.mulf %125, %135 : vector<8x128xf32>
    %146 = arith.addf %144, %145 : vector<8x128xf32>
    %147 = math.tanh %146 : vector<8x128xf32>
    %148 = arith.mulf %143, %147 : vector<8x128xf32>
    %c2 = arith.constant 2 : index
    %c0_60 = arith.constant 0 : index
    %c0_61 = arith.constant 0 : index
    %149 = vector.load %arg0[%c2, %c0_60, %c0_61] : memref<8x8x512xf32, #tpu.memory_space<vmem>>, vector<1x8x512xf32>
    %150 = vector.shape_cast %149 : vector<1x8x512xf32> to vector<8x512xf32>
    %c0_62 = arith.constant 0 : index
    %c0_63 = arith.constant 0 : index
    %151 = vector.load %arg1[%c0_62, %c0_63] : memref<128x512xf32, #tpu.memory_space<vmem>>, vector<128x512xf32>
    %cst_64 = arith.constant dense<0.000000e+00> : vector<8x512xf32>
    %152 = tpu.matmul %110, %151, %cst_64 {dimension_numbers = #tpu.dot_dimension_numbers<[1], [0], [0], [1], [0, 0, 1, 1], [], []>} : vector<8x128xf32>, vector<128x512xf32>, vector<8x512xf32> -> vector<8x512xf32>
    %153 = arith.addf %150, %152 : vector<8x512xf32>
    %154 = vector.extract_strided_slice %153 {offsets = [0, 0], sizes = [8, 128], strides = [1, 1]} : vector<8x512xf32> to vector<8x128xf32>
    %cst_65 = arith.constant 5.000000e-01 : f32
    %155 = vector.broadcast %cst_65 : f32 to vector<8x128xf32>
    %156 = arith.mulf %155, %154 : vector<8x128xf32>
    %157 = math.tanh %156 : vector<8x128xf32>
    %cst_66 = arith.constant 5.000000e-01 : f32
    %158 = vector.broadcast %cst_66 : f32 to vector<8x128xf32>
    %159 = arith.mulf %158, %157 : vector<8x128xf32>
    %cst_67 = arith.constant 5.000000e-01 : f32
    %160 = vector.broadcast %cst_67 : f32 to vector<8x128xf32>
    %161 = arith.addf %159, %160 : vector<8x128xf32>
    %162 = vector.extract_strided_slice %153 {offsets = [0, 128], sizes = [8, 128], strides = [1, 1]} : vector<8x512xf32> to vector<8x128xf32>
    %cst_68 = arith.constant 5.000000e-01 : f32
    %163 = vector.broadcast %cst_68 : f32 to vector<8x128xf32>
    %164 = arith.mulf %163, %162 : vector<8x128xf32>
    %165 = math.tanh %164 : vector<8x128xf32>
    %cst_69 = arith.constant 5.000000e-01 : f32
    %166 = vector.broadcast %cst_69 : f32 to vector<8x128xf32>
    %167 = arith.mulf %166, %165 : vector<8x128xf32>
    %cst_70 = arith.constant 5.000000e-01 : f32
    %168 = vector.broadcast %cst_70 : f32 to vector<8x128xf32>
    %169 = arith.addf %167, %168 : vector<8x128xf32>
    %170 = vector.extract_strided_slice %153 {offsets = [0, 256], sizes = [8, 128], strides = [1, 1]} : vector<8x512xf32> to vector<8x128xf32>
    %171 = math.tanh %170 : vector<8x128xf32>
    %172 = vector.extract_strided_slice %153 {offsets = [0, 384], sizes = [8, 128], strides = [1, 1]} : vector<8x512xf32> to vector<8x128xf32>
    %cst_71 = arith.constant 5.000000e-01 : f32
    %173 = vector.broadcast %cst_71 : f32 to vector<8x128xf32>
    %174 = arith.mulf %173, %172 : vector<8x128xf32>
    %175 = math.tanh %174 : vector<8x128xf32>
    %cst_72 = arith.constant 5.000000e-01 : f32
    %176 = vector.broadcast %cst_72 : f32 to vector<8x128xf32>
    %177 = arith.mulf %176, %175 : vector<8x128xf32>
    %cst_73 = arith.constant 5.000000e-01 : f32
    %178 = vector.broadcast %cst_73 : f32 to vector<8x128xf32>
    %179 = arith.addf %177, %178 : vector<8x128xf32>
    %180 = arith.mulf %169, %108 : vector<8x128xf32>
    %181 = arith.mulf %161, %171 : vector<8x128xf32>
    %182 = arith.addf %180, %181 : vector<8x128xf32>
    %183 = math.tanh %182 : vector<8x128xf32>
    %184 = arith.mulf %179, %183 : vector<8x128xf32>
    %185 = tpu.concatenate %184, %148 in 1 : vector<8x128xf32>, vector<8x128xf32> -> vector<8x256xf32>
    %c0_74 = arith.constant 0 : index
    %c0_75 = arith.constant 0 : index
    %c0_76 = arith.constant 0 : index
    %186 = vector.load %arg2[%c0_74, %c0_75, %c0_76] : memref<1x256x512xf32, #tpu.memory_space<vmem>>, vector<1x256x512xf32>
    %187 = vector.shape_cast %186 : vector<1x256x512xf32> to vector<256x512xf32>
    %cst_77 = arith.constant dense<0.000000e+00> : vector<8x512xf32>
    %188 = tpu.matmul %185, %187, %cst_77 {dimension_numbers = #tpu.dot_dimension_numbers<[1], [0], [0], [1], [0, 0, 1, 1], [], []>} : vector<8x256xf32>, vector<256x512xf32>, vector<8x512xf32> -> vector<8x512xf32>
    %c0_78 = arith.constant 0 : index
    %c0_79 = arith.constant 0 : index
    %c0_80 = arith.constant 0 : index
    %189 = vector.load %arg3[%c0_78, %c0_79, %c0_80] : memref<1x8x512xf32, #tpu.memory_space<vmem>>, vector<1x8x512xf32>
    %190 = vector.shape_cast %189 : vector<1x8x512xf32> to vector<8x512xf32>
    %191 = arith.addf %188, %190 : vector<8x512xf32>
    %192 = vector.extract_strided_slice %191 {offsets = [0, 0], sizes = [8, 128], strides = [1, 1]} : vector<8x512xf32> to vector<8x128xf32>
    %cst_81 = arith.constant 5.000000e-01 : f32
    %193 = vector.broadcast %cst_81 : f32 to vector<8x128xf32>
    %194 = arith.mulf %193, %192 : vector<8x128xf32>
    %195 = math.tanh %194 : vector<8x128xf32>
    %cst_82 = arith.constant 5.000000e-01 : f32
    %196 = vector.broadcast %cst_82 : f32 to vector<8x128xf32>
    %197 = arith.mulf %196, %195 : vector<8x128xf32>
    %cst_83 = arith.constant 5.000000e-01 : f32
    %198 = vector.broadcast %cst_83 : f32 to vector<8x128xf32>
    %199 = arith.addf %197, %198 : vector<8x128xf32>
    %200 = vector.extract_strided_slice %191 {offsets = [0, 128], sizes = [8, 128], strides = [1, 1]} : vector<8x512xf32> to vector<8x128xf32>
    %cst_84 = arith.constant 5.000000e-01 : f32
    %201 = vector.broadcast %cst_84 : f32 to vector<8x128xf32>
    %202 = arith.mulf %201, %200 : vector<8x128xf32>
    %203 = math.tanh %202 : vector<8x128xf32>
    %cst_85 = arith.constant 5.000000e-01 : f32
    %204 = vector.broadcast %cst_85 : f32 to vector<8x128xf32>
    %205 = arith.mulf %204, %203 : vector<8x128xf32>
    %cst_86 = arith.constant 5.000000e-01 : f32
    %206 = vector.broadcast %cst_86 : f32 to vector<8x128xf32>
    %207 = arith.addf %205, %206 : vector<8x128xf32>
    %208 = vector.extract_strided_slice %191 {offsets = [0, 256], sizes = [8, 128], strides = [1, 1]} : vector<8x512xf32> to vector<8x128xf32>
    %209 = math.tanh %208 : vector<8x128xf32>
    %210 = vector.extract_strided_slice %191 {offsets = [0, 384], sizes = [8, 128], strides = [1, 1]} : vector<8x512xf32> to vector<8x128xf32>
    %cst_87 = arith.constant 5.000000e-01 : f32
    %211 = vector.broadcast %cst_87 : f32 to vector<8x128xf32>
    %212 = arith.mulf %211, %210 : vector<8x128xf32>
    %213 = math.tanh %212 : vector<8x128xf32>
    %cst_88 = arith.constant 5.000000e-01 : f32
    %214 = vector.broadcast %cst_88 : f32 to vector<8x128xf32>
    %215 = arith.mulf %214, %213 : vector<8x128xf32>
    %cst_89 = arith.constant 5.000000e-01 : f32
    %216 = vector.broadcast %cst_89 : f32 to vector<8x128xf32>
    %217 = arith.addf %215, %216 : vector<8x128xf32>
    %218 = arith.mulf %207, %146 : vector<8x128xf32>
    %219 = arith.mulf %199, %209 : vector<8x128xf32>
    %220 = arith.addf %218, %219 : vector<8x128xf32>
    %221 = math.tanh %220 : vector<8x128xf32>
    %222 = arith.mulf %217, %221 : vector<8x128xf32>
    %c3 = arith.constant 3 : index
    %c0_90 = arith.constant 0 : index
    %c0_91 = arith.constant 0 : index
    %223 = vector.load %arg0[%c3, %c0_90, %c0_91] : memref<8x8x512xf32, #tpu.memory_space<vmem>>, vector<1x8x512xf32>
    %224 = vector.shape_cast %223 : vector<1x8x512xf32> to vector<8x512xf32>
    %c0_92 = arith.constant 0 : index
    %c0_93 = arith.constant 0 : index
    %225 = vector.load %arg1[%c0_92, %c0_93] : memref<128x512xf32, #tpu.memory_space<vmem>>, vector<128x512xf32>
    %cst_94 = arith.constant dense<0.000000e+00> : vector<8x512xf32>
    %226 = tpu.matmul %184, %225, %cst_94 {dimension_numbers = #tpu.dot_dimension_numbers<[1], [0], [0], [1], [0, 0, 1, 1], [], []>} : vector<8x128xf32>, vector<128x512xf32>, vector<8x512xf32> -> vector<8x512xf32>
    %227 = arith.addf %224, %226 : vector<8x512xf32>
    %228 = vector.extract_strided_slice %227 {offsets = [0, 0], sizes = [8, 128], strides = [1, 1]} : vector<8x512xf32> to vector<8x128xf32>
    %cst_95 = arith.constant 5.000000e-01 : f32
    %229 = vector.broadcast %cst_95 : f32 to vector<8x128xf32>
    %230 = arith.mulf %229, %228 : vector<8x128xf32>
    %231 = math.tanh %230 : vector<8x128xf32>
    %cst_96 = arith.constant 5.000000e-01 : f32
    %232 = vector.broadcast %cst_96 : f32 to vector<8x128xf32>
    %233 = arith.mulf %232, %231 : vector<8x128xf32>
    %cst_97 = arith.constant 5.000000e-01 : f32
    %234 = vector.broadcast %cst_97 : f32 to vector<8x128xf32>
    %235 = arith.addf %233, %234 : vector<8x128xf32>
    %236 = vector.extract_strided_slice %227 {offsets = [0, 128], sizes = [8, 128], strides = [1, 1]} : vector<8x512xf32> to vector<8x128xf32>
    %cst_98 = arith.constant 5.000000e-01 : f32
    %237 = vector.broadcast %cst_98 : f32 to vector<8x128xf32>
    %238 = arith.mulf %237, %236 : vector<8x128xf32>
    %239 = math.tanh %238 : vector<8x128xf32>
    %cst_99 = arith.constant 5.000000e-01 : f32
    %240 = vector.broadcast %cst_99 : f32 to vector<8x128xf32>
    %241 = arith.mulf %240, %239 : vector<8x128xf32>
    %cst_100 = arith.constant 5.000000e-01 : f32
    %242 = vector.broadcast %cst_100 : f32 to vector<8x128xf32>
    %243 = arith.addf %241, %242 : vector<8x128xf32>
    %244 = vector.extract_strided_slice %227 {offsets = [0, 256], sizes = [8, 128], strides = [1, 1]} : vector<8x512xf32> to vector<8x128xf32>
    %245 = math.tanh %244 : vector<8x128xf32>
    %246 = vector.extract_strided_slice %227 {offsets = [0, 384], sizes = [8, 128], strides = [1, 1]} : vector<8x512xf32> to vector<8x128xf32>
    %cst_101 = arith.constant 5.000000e-01 : f32
    %247 = vector.broadcast %cst_101 : f32 to vector<8x128xf32>
    %248 = arith.mulf %247, %246 : vector<8x128xf32>
    %249 = math.tanh %248 : vector<8x128xf32>
    %cst_102 = arith.constant 5.000000e-01 : f32
    %250 = vector.broadcast %cst_102 : f32 to vector<8x128xf32>
    %251 = arith.mulf %250, %249 : vector<8x128xf32>
    %cst_103 = arith.constant 5.000000e-01 : f32
    %252 = vector.broadcast %cst_103 : f32 to vector<8x128xf32>
    %253 = arith.addf %251, %252 : vector<8x128xf32>
    %254 = arith.mulf %243, %182 : vector<8x128xf32>
    %255 = arith.mulf %235, %245 : vector<8x128xf32>
    %256 = arith.addf %254, %255 : vector<8x128xf32>
    %257 = math.tanh %256 : vector<8x128xf32>
    %258 = arith.mulf %253, %257 : vector<8x128xf32>
    %259 = tpu.concatenate %258, %222 in 1 : vector<8x128xf32>, vector<8x128xf32> -> vector<8x256xf32>
    %c0_104 = arith.constant 0 : index
    %c0_105 = arith.constant 0 : index
    %c0_106 = arith.constant 0 : index
    %260 = vector.load %arg2[%c0_104, %c0_105, %c0_106] : memref<1x256x512xf32, #tpu.memory_space<vmem>>, vector<1x256x512xf32>
    %261 = vector.shape_cast %260 : vector<1x256x512xf32> to vector<256x512xf32>
    %cst_107 = arith.constant dense<0.000000e+00> : vector<8x512xf32>
    %262 = tpu.matmul %259, %261, %cst_107 {dimension_numbers = #tpu.dot_dimension_numbers<[1], [0], [0], [1], [0, 0, 1, 1], [], []>} : vector<8x256xf32>, vector<256x512xf32>, vector<8x512xf32> -> vector<8x512xf32>
    %c0_108 = arith.constant 0 : index
    %c0_109 = arith.constant 0 : index
    %c0_110 = arith.constant 0 : index
    %263 = vector.load %arg3[%c0_108, %c0_109, %c0_110] : memref<1x8x512xf32, #tpu.memory_space<vmem>>, vector<1x8x512xf32>
    %264 = vector.shape_cast %263 : vector<1x8x512xf32> to vector<8x512xf32>
    %265 = arith.addf %262, %264 : vector<8x512xf32>
    %266 = vector.extract_strided_slice %265 {offsets = [0, 0], sizes = [8, 128], strides = [1, 1]} : vector<8x512xf32> to vector<8x128xf32>
    %cst_111 = arith.constant 5.000000e-01 : f32
    %267 = vector.broadcast %cst_111 : f32 to vector<8x128xf32>
    %268 = arith.mulf %267, %266 : vector<8x128xf32>
    %269 = math.tanh %268 : vector<8x128xf32>
    %cst_112 = arith.constant 5.000000e-01 : f32
    %270 = vector.broadcast %cst_112 : f32 to vector<8x128xf32>
    %271 = arith.mulf %270, %269 : vector<8x128xf32>
    %cst_113 = arith.constant 5.000000e-01 : f32
    %272 = vector.broadcast %cst_113 : f32 to vector<8x128xf32>
    %273 = arith.addf %271, %272 : vector<8x128xf32>
    %274 = vector.extract_strided_slice %265 {offsets = [0, 128], sizes = [8, 128], strides = [1, 1]} : vector<8x512xf32> to vector<8x128xf32>
    %cst_114 = arith.constant 5.000000e-01 : f32
    %275 = vector.broadcast %cst_114 : f32 to vector<8x128xf32>
    %276 = arith.mulf %275, %274 : vector<8x128xf32>
    %277 = math.tanh %276 : vector<8x128xf32>
    %cst_115 = arith.constant 5.000000e-01 : f32
    %278 = vector.broadcast %cst_115 : f32 to vector<8x128xf32>
    %279 = arith.mulf %278, %277 : vector<8x128xf32>
    %cst_116 = arith.constant 5.000000e-01 : f32
    %280 = vector.broadcast %cst_116 : f32 to vector<8x128xf32>
    %281 = arith.addf %279, %280 : vector<8x128xf32>
    %282 = vector.extract_strided_slice %265 {offsets = [0, 256], sizes = [8, 128], strides = [1, 1]} : vector<8x512xf32> to vector<8x128xf32>
    %283 = math.tanh %282 : vector<8x128xf32>
    %284 = vector.extract_strided_slice %265 {offsets = [0, 384], sizes = [8, 128], strides = [1, 1]} : vector<8x512xf32> to vector<8x128xf32>
    %cst_117 = arith.constant 5.000000e-01 : f32
    %285 = vector.broadcast %cst_117 : f32 to vector<8x128xf32>
    %286 = arith.mulf %285, %284 : vector<8x128xf32>
    %287 = math.tanh %286 : vector<8x128xf32>
    %cst_118 = arith.constant 5.000000e-01 : f32
    %288 = vector.broadcast %cst_118 : f32 to vector<8x128xf32>
    %289 = arith.mulf %288, %287 : vector<8x128xf32>
    %cst_119 = arith.constant 5.000000e-01 : f32
    %290 = vector.broadcast %cst_119 : f32 to vector<8x128xf32>
    %291 = arith.addf %289, %290 : vector<8x128xf32>
    %292 = arith.mulf %281, %220 : vector<8x128xf32>
    %293 = arith.mulf %273, %283 : vector<8x128xf32>
    %294 = arith.addf %292, %293 : vector<8x128xf32>
    %295 = math.tanh %294 : vector<8x128xf32>
    %296 = arith.mulf %291, %295 : vector<8x128xf32>
    %c4 = arith.constant 4 : index
    %c0_120 = arith.constant 0 : index
    %c0_121 = arith.constant 0 : index
    %297 = vector.load %arg0[%c4, %c0_120, %c0_121] : memref<8x8x512xf32, #tpu.memory_space<vmem>>, vector<1x8x512xf32>
    %298 = vector.shape_cast %297 : vector<1x8x512xf32> to vector<8x512xf32>
    %c0_122 = arith.constant 0 : index
    %c0_123 = arith.constant 0 : index
    %299 = vector.load %arg1[%c0_122, %c0_123] : memref<128x512xf32, #tpu.memory_space<vmem>>, vector<128x512xf32>
    %cst_124 = arith.constant dense<0.000000e+00> : vector<8x512xf32>
    %300 = tpu.matmul %258, %299, %cst_124 {dimension_numbers = #tpu.dot_dimension_numbers<[1], [0], [0], [1], [0, 0, 1, 1], [], []>} : vector<8x128xf32>, vector<128x512xf32>, vector<8x512xf32> -> vector<8x512xf32>
    %301 = arith.addf %298, %300 : vector<8x512xf32>
    %302 = vector.extract_strided_slice %301 {offsets = [0, 0], sizes = [8, 128], strides = [1, 1]} : vector<8x512xf32> to vector<8x128xf32>
    %cst_125 = arith.constant 5.000000e-01 : f32
    %303 = vector.broadcast %cst_125 : f32 to vector<8x128xf32>
    %304 = arith.mulf %303, %302 : vector<8x128xf32>
    %305 = math.tanh %304 : vector<8x128xf32>
    %cst_126 = arith.constant 5.000000e-01 : f32
    %306 = vector.broadcast %cst_126 : f32 to vector<8x128xf32>
    %307 = arith.mulf %306, %305 : vector<8x128xf32>
    %cst_127 = arith.constant 5.000000e-01 : f32
    %308 = vector.broadcast %cst_127 : f32 to vector<8x128xf32>
    %309 = arith.addf %307, %308 : vector<8x128xf32>
    %310 = vector.extract_strided_slice %301 {offsets = [0, 128], sizes = [8, 128], strides = [1, 1]} : vector<8x512xf32> to vector<8x128xf32>
    %cst_128 = arith.constant 5.000000e-01 : f32
    %311 = vector.broadcast %cst_128 : f32 to vector<8x128xf32>
    %312 = arith.mulf %311, %310 : vector<8x128xf32>
    %313 = math.tanh %312 : vector<8x128xf32>
    %cst_129 = arith.constant 5.000000e-01 : f32
    %314 = vector.broadcast %cst_129 : f32 to vector<8x128xf32>
    %315 = arith.mulf %314, %313 : vector<8x128xf32>
    %cst_130 = arith.constant 5.000000e-01 : f32
    %316 = vector.broadcast %cst_130 : f32 to vector<8x128xf32>
    %317 = arith.addf %315, %316 : vector<8x128xf32>
    %318 = vector.extract_strided_slice %301 {offsets = [0, 256], sizes = [8, 128], strides = [1, 1]} : vector<8x512xf32> to vector<8x128xf32>
    %319 = math.tanh %318 : vector<8x128xf32>
    %320 = vector.extract_strided_slice %301 {offsets = [0, 384], sizes = [8, 128], strides = [1, 1]} : vector<8x512xf32> to vector<8x128xf32>
    %cst_131 = arith.constant 5.000000e-01 : f32
    %321 = vector.broadcast %cst_131 : f32 to vector<8x128xf32>
    %322 = arith.mulf %321, %320 : vector<8x128xf32>
    %323 = math.tanh %322 : vector<8x128xf32>
    %cst_132 = arith.constant 5.000000e-01 : f32
    %324 = vector.broadcast %cst_132 : f32 to vector<8x128xf32>
    %325 = arith.mulf %324, %323 : vector<8x128xf32>
    %cst_133 = arith.constant 5.000000e-01 : f32
    %326 = vector.broadcast %cst_133 : f32 to vector<8x128xf32>
    %327 = arith.addf %325, %326 : vector<8x128xf32>
    %328 = arith.mulf %317, %256 : vector<8x128xf32>
    %329 = arith.mulf %309, %319 : vector<8x128xf32>
    %330 = arith.addf %328, %329 : vector<8x128xf32>
    %331 = math.tanh %330 : vector<8x128xf32>
    %332 = arith.mulf %327, %331 : vector<8x128xf32>
    %333 = tpu.concatenate %332, %296 in 1 : vector<8x128xf32>, vector<8x128xf32> -> vector<8x256xf32>
    %c0_134 = arith.constant 0 : index
    %c0_135 = arith.constant 0 : index
    %c0_136 = arith.constant 0 : index
    %334 = vector.load %arg2[%c0_134, %c0_135, %c0_136] : memref<1x256x512xf32, #tpu.memory_space<vmem>>, vector<1x256x512xf32>
    %335 = vector.shape_cast %334 : vector<1x256x512xf32> to vector<256x512xf32>
    %cst_137 = arith.constant dense<0.000000e+00> : vector<8x512xf32>
    %336 = tpu.matmul %333, %335, %cst_137 {dimension_numbers = #tpu.dot_dimension_numbers<[1], [0], [0], [1], [0, 0, 1, 1], [], []>} : vector<8x256xf32>, vector<256x512xf32>, vector<8x512xf32> -> vector<8x512xf32>
    %c0_138 = arith.constant 0 : index
    %c0_139 = arith.constant 0 : index
    %c0_140 = arith.constant 0 : index
    %337 = vector.load %arg3[%c0_138, %c0_139, %c0_140] : memref<1x8x512xf32, #tpu.memory_space<vmem>>, vector<1x8x512xf32>
    %338 = vector.shape_cast %337 : vector<1x8x512xf32> to vector<8x512xf32>
    %339 = arith.addf %336, %338 : vector<8x512xf32>
    %340 = vector.extract_strided_slice %339 {offsets = [0, 0], sizes = [8, 128], strides = [1, 1]} : vector<8x512xf32> to vector<8x128xf32>
    %cst_141 = arith.constant 5.000000e-01 : f32
    %341 = vector.broadcast %cst_141 : f32 to vector<8x128xf32>
    %342 = arith.mulf %341, %340 : vector<8x128xf32>
    %343 = math.tanh %342 : vector<8x128xf32>
    %cst_142 = arith.constant 5.000000e-01 : f32
    %344 = vector.broadcast %cst_142 : f32 to vector<8x128xf32>
    %345 = arith.mulf %344, %343 : vector<8x128xf32>
    %cst_143 = arith.constant 5.000000e-01 : f32
    %346 = vector.broadcast %cst_143 : f32 to vector<8x128xf32>
    %347 = arith.addf %345, %346 : vector<8x128xf32>
    %348 = vector.extract_strided_slice %339 {offsets = [0, 128], sizes = [8, 128], strides = [1, 1]} : vector<8x512xf32> to vector<8x128xf32>
    %cst_144 = arith.constant 5.000000e-01 : f32
    %349 = vector.broadcast %cst_144 : f32 to vector<8x128xf32>
    %350 = arith.mulf %349, %348 : vector<8x128xf32>
    %351 = math.tanh %350 : vector<8x128xf32>
    %cst_145 = arith.constant 5.000000e-01 : f32
    %352 = vector.broadcast %cst_145 : f32 to vector<8x128xf32>
    %353 = arith.mulf %352, %351 : vector<8x128xf32>
    %cst_146 = arith.constant 5.000000e-01 : f32
    %354 = vector.broadcast %cst_146 : f32 to vector<8x128xf32>
    %355 = arith.addf %353, %354 : vector<8x128xf32>
    %356 = vector.extract_strided_slice %339 {offsets = [0, 256], sizes = [8, 128], strides = [1, 1]} : vector<8x512xf32> to vector<8x128xf32>
    %357 = math.tanh %356 : vector<8x128xf32>
    %358 = vector.extract_strided_slice %339 {offsets = [0, 384], sizes = [8, 128], strides = [1, 1]} : vector<8x512xf32> to vector<8x128xf32>
    %cst_147 = arith.constant 5.000000e-01 : f32
    %359 = vector.broadcast %cst_147 : f32 to vector<8x128xf32>
    %360 = arith.mulf %359, %358 : vector<8x128xf32>
    %361 = math.tanh %360 : vector<8x128xf32>
    %cst_148 = arith.constant 5.000000e-01 : f32
    %362 = vector.broadcast %cst_148 : f32 to vector<8x128xf32>
    %363 = arith.mulf %362, %361 : vector<8x128xf32>
    %cst_149 = arith.constant 5.000000e-01 : f32
    %364 = vector.broadcast %cst_149 : f32 to vector<8x128xf32>
    %365 = arith.addf %363, %364 : vector<8x128xf32>
    %366 = arith.mulf %355, %294 : vector<8x128xf32>
    %367 = arith.mulf %347, %357 : vector<8x128xf32>
    %368 = arith.addf %366, %367 : vector<8x128xf32>
    %369 = math.tanh %368 : vector<8x128xf32>
    %370 = arith.mulf %365, %369 : vector<8x128xf32>
    %c5 = arith.constant 5 : index
    %c0_150 = arith.constant 0 : index
    %c0_151 = arith.constant 0 : index
    %371 = vector.load %arg0[%c5, %c0_150, %c0_151] : memref<8x8x512xf32, #tpu.memory_space<vmem>>, vector<1x8x512xf32>
    %372 = vector.shape_cast %371 : vector<1x8x512xf32> to vector<8x512xf32>
    %c0_152 = arith.constant 0 : index
    %c0_153 = arith.constant 0 : index
    %373 = vector.load %arg1[%c0_152, %c0_153] : memref<128x512xf32, #tpu.memory_space<vmem>>, vector<128x512xf32>
    %cst_154 = arith.constant dense<0.000000e+00> : vector<8x512xf32>
    %374 = tpu.matmul %332, %373, %cst_154 {dimension_numbers = #tpu.dot_dimension_numbers<[1], [0], [0], [1], [0, 0, 1, 1], [], []>} : vector<8x128xf32>, vector<128x512xf32>, vector<8x512xf32> -> vector<8x512xf32>
    %375 = arith.addf %372, %374 : vector<8x512xf32>
    %376 = vector.extract_strided_slice %375 {offsets = [0, 0], sizes = [8, 128], strides = [1, 1]} : vector<8x512xf32> to vector<8x128xf32>
    %cst_155 = arith.constant 5.000000e-01 : f32
    %377 = vector.broadcast %cst_155 : f32 to vector<8x128xf32>
    %378 = arith.mulf %377, %376 : vector<8x128xf32>
    %379 = math.tanh %378 : vector<8x128xf32>
    %cst_156 = arith.constant 5.000000e-01 : f32
    %380 = vector.broadcast %cst_156 : f32 to vector<8x128xf32>
    %381 = arith.mulf %380, %379 : vector<8x128xf32>
    %cst_157 = arith.constant 5.000000e-01 : f32
    %382 = vector.broadcast %cst_157 : f32 to vector<8x128xf32>
    %383 = arith.addf %381, %382 : vector<8x128xf32>
    %384 = vector.extract_strided_slice %375 {offsets = [0, 128], sizes = [8, 128], strides = [1, 1]} : vector<8x512xf32> to vector<8x128xf32>
    %cst_158 = arith.constant 5.000000e-01 : f32
    %385 = vector.broadcast %cst_158 : f32 to vector<8x128xf32>
    %386 = arith.mulf %385, %384 : vector<8x128xf32>
    %387 = math.tanh %386 : vector<8x128xf32>
    %cst_159 = arith.constant 5.000000e-01 : f32
    %388 = vector.broadcast %cst_159 : f32 to vector<8x128xf32>
    %389 = arith.mulf %388, %387 : vector<8x128xf32>
    %cst_160 = arith.constant 5.000000e-01 : f32
    %390 = vector.broadcast %cst_160 : f32 to vector<8x128xf32>
    %391 = arith.addf %389, %390 : vector<8x128xf32>
    %392 = vector.extract_strided_slice %375 {offsets = [0, 256], sizes = [8, 128], strides = [1, 1]} : vector<8x512xf32> to vector<8x128xf32>
    %393 = math.tanh %392 : vector<8x128xf32>
    %394 = vector.extract_strided_slice %375 {offsets = [0, 384], sizes = [8, 128], strides = [1, 1]} : vector<8x512xf32> to vector<8x128xf32>
    %cst_161 = arith.constant 5.000000e-01 : f32
    %395 = vector.broadcast %cst_161 : f32 to vector<8x128xf32>
    %396 = arith.mulf %395, %394 : vector<8x128xf32>
    %397 = math.tanh %396 : vector<8x128xf32>
    %cst_162 = arith.constant 5.000000e-01 : f32
    %398 = vector.broadcast %cst_162 : f32 to vector<8x128xf32>
    %399 = arith.mulf %398, %397 : vector<8x128xf32>
    %cst_163 = arith.constant 5.000000e-01 : f32
    %400 = vector.broadcast %cst_163 : f32 to vector<8x128xf32>
    %401 = arith.addf %399, %400 : vector<8x128xf32>
    %402 = arith.mulf %391, %330 : vector<8x128xf32>
    %403 = arith.mulf %383, %393 : vector<8x128xf32>
    %404 = arith.addf %402, %403 : vector<8x128xf32>
    %405 = math.tanh %404 : vector<8x128xf32>
    %406 = arith.mulf %401, %405 : vector<8x128xf32>
    %407 = tpu.concatenate %406, %370 in 1 : vector<8x128xf32>, vector<8x128xf32> -> vector<8x256xf32>
    %c0_164 = arith.constant 0 : index
    %c0_165 = arith.constant 0 : index
    %c0_166 = arith.constant 0 : index
    %408 = vector.load %arg2[%c0_164, %c0_165, %c0_166] : memref<1x256x512xf32, #tpu.memory_space<vmem>>, vector<1x256x512xf32>
    %409 = vector.shape_cast %408 : vector<1x256x512xf32> to vector<256x512xf32>
    %cst_167 = arith.constant dense<0.000000e+00> : vector<8x512xf32>
    %410 = tpu.matmul %407, %409, %cst_167 {dimension_numbers = #tpu.dot_dimension_numbers<[1], [0], [0], [1], [0, 0, 1, 1], [], []>} : vector<8x256xf32>, vector<256x512xf32>, vector<8x512xf32> -> vector<8x512xf32>
    %c0_168 = arith.constant 0 : index
    %c0_169 = arith.constant 0 : index
    %c0_170 = arith.constant 0 : index
    %411 = vector.load %arg3[%c0_168, %c0_169, %c0_170] : memref<1x8x512xf32, #tpu.memory_space<vmem>>, vector<1x8x512xf32>
    %412 = vector.shape_cast %411 : vector<1x8x512xf32> to vector<8x512xf32>
    %413 = arith.addf %410, %412 : vector<8x512xf32>
    %414 = vector.extract_strided_slice %413 {offsets = [0, 0], sizes = [8, 128], strides = [1, 1]} : vector<8x512xf32> to vector<8x128xf32>
    %cst_171 = arith.constant 5.000000e-01 : f32
    %415 = vector.broadcast %cst_171 : f32 to vector<8x128xf32>
    %416 = arith.mulf %415, %414 : vector<8x128xf32>
    %417 = math.tanh %416 : vector<8x128xf32>
    %cst_172 = arith.constant 5.000000e-01 : f32
    %418 = vector.broadcast %cst_172 : f32 to vector<8x128xf32>
    %419 = arith.mulf %418, %417 : vector<8x128xf32>
    %cst_173 = arith.constant 5.000000e-01 : f32
    %420 = vector.broadcast %cst_173 : f32 to vector<8x128xf32>
    %421 = arith.addf %419, %420 : vector<8x128xf32>
    %422 = vector.extract_strided_slice %413 {offsets = [0, 128], sizes = [8, 128], strides = [1, 1]} : vector<8x512xf32> to vector<8x128xf32>
    %cst_174 = arith.constant 5.000000e-01 : f32
    %423 = vector.broadcast %cst_174 : f32 to vector<8x128xf32>
    %424 = arith.mulf %423, %422 : vector<8x128xf32>
    %425 = math.tanh %424 : vector<8x128xf32>
    %cst_175 = arith.constant 5.000000e-01 : f32
    %426 = vector.broadcast %cst_175 : f32 to vector<8x128xf32>
    %427 = arith.mulf %426, %425 : vector<8x128xf32>
    %cst_176 = arith.constant 5.000000e-01 : f32
    %428 = vector.broadcast %cst_176 : f32 to vector<8x128xf32>
    %429 = arith.addf %427, %428 : vector<8x128xf32>
    %430 = vector.extract_strided_slice %413 {offsets = [0, 256], sizes = [8, 128], strides = [1, 1]} : vector<8x512xf32> to vector<8x128xf32>
    %431 = math.tanh %430 : vector<8x128xf32>
    %432 = vector.extract_strided_slice %413 {offsets = [0, 384], sizes = [8, 128], strides = [1, 1]} : vector<8x512xf32> to vector<8x128xf32>
    %cst_177 = arith.constant 5.000000e-01 : f32
    %433 = vector.broadcast %cst_177 : f32 to vector<8x128xf32>
    %434 = arith.mulf %433, %432 : vector<8x128xf32>
    %435 = math.tanh %434 : vector<8x128xf32>
    %cst_178 = arith.constant 5.000000e-01 : f32
    %436 = vector.broadcast %cst_178 : f32 to vector<8x128xf32>
    %437 = arith.mulf %436, %435 : vector<8x128xf32>
    %cst_179 = arith.constant 5.000000e-01 : f32
    %438 = vector.broadcast %cst_179 : f32 to vector<8x128xf32>
    %439 = arith.addf %437, %438 : vector<8x128xf32>
    %440 = arith.mulf %429, %368 : vector<8x128xf32>
    %441 = arith.mulf %421, %431 : vector<8x128xf32>
    %442 = arith.addf %440, %441 : vector<8x128xf32>
    %443 = math.tanh %442 : vector<8x128xf32>
    %444 = arith.mulf %439, %443 : vector<8x128xf32>
    %c6 = arith.constant 6 : index
    %c0_180 = arith.constant 0 : index
    %c0_181 = arith.constant 0 : index
    %445 = vector.load %arg0[%c6, %c0_180, %c0_181] : memref<8x8x512xf32, #tpu.memory_space<vmem>>, vector<1x8x512xf32>
    %446 = vector.shape_cast %445 : vector<1x8x512xf32> to vector<8x512xf32>
    %c0_182 = arith.constant 0 : index
    %c0_183 = arith.constant 0 : index
    %447 = vector.load %arg1[%c0_182, %c0_183] : memref<128x512xf32, #tpu.memory_space<vmem>>, vector<128x512xf32>
    %cst_184 = arith.constant dense<0.000000e+00> : vector<8x512xf32>
    %448 = tpu.matmul %406, %447, %cst_184 {dimension_numbers = #tpu.dot_dimension_numbers<[1], [0], [0], [1], [0, 0, 1, 1], [], []>} : vector<8x128xf32>, vector<128x512xf32>, vector<8x512xf32> -> vector<8x512xf32>
    %449 = arith.addf %446, %448 : vector<8x512xf32>
    %450 = vector.extract_strided_slice %449 {offsets = [0, 0], sizes = [8, 128], strides = [1, 1]} : vector<8x512xf32> to vector<8x128xf32>
    %cst_185 = arith.constant 5.000000e-01 : f32
    %451 = vector.broadcast %cst_185 : f32 to vector<8x128xf32>
    %452 = arith.mulf %451, %450 : vector<8x128xf32>
    %453 = math.tanh %452 : vector<8x128xf32>
    %cst_186 = arith.constant 5.000000e-01 : f32
    %454 = vector.broadcast %cst_186 : f32 to vector<8x128xf32>
    %455 = arith.mulf %454, %453 : vector<8x128xf32>
    %cst_187 = arith.constant 5.000000e-01 : f32
    %456 = vector.broadcast %cst_187 : f32 to vector<8x128xf32>
    %457 = arith.addf %455, %456 : vector<8x128xf32>
    %458 = vector.extract_strided_slice %449 {offsets = [0, 128], sizes = [8, 128], strides = [1, 1]} : vector<8x512xf32> to vector<8x128xf32>
    %cst_188 = arith.constant 5.000000e-01 : f32
    %459 = vector.broadcast %cst_188 : f32 to vector<8x128xf32>
    %460 = arith.mulf %459, %458 : vector<8x128xf32>
    %461 = math.tanh %460 : vector<8x128xf32>
    %cst_189 = arith.constant 5.000000e-01 : f32
    %462 = vector.broadcast %cst_189 : f32 to vector<8x128xf32>
    %463 = arith.mulf %462, %461 : vector<8x128xf32>
    %cst_190 = arith.constant 5.000000e-01 : f32
    %464 = vector.broadcast %cst_190 : f32 to vector<8x128xf32>
    %465 = arith.addf %463, %464 : vector<8x128xf32>
    %466 = vector.extract_strided_slice %449 {offsets = [0, 256], sizes = [8, 128], strides = [1, 1]} : vector<8x512xf32> to vector<8x128xf32>
    %467 = math.tanh %466 : vector<8x128xf32>
    %468 = vector.extract_strided_slice %449 {offsets = [0, 384], sizes = [8, 128], strides = [1, 1]} : vector<8x512xf32> to vector<8x128xf32>
    %cst_191 = arith.constant 5.000000e-01 : f32
    %469 = vector.broadcast %cst_191 : f32 to vector<8x128xf32>
    %470 = arith.mulf %469, %468 : vector<8x128xf32>
    %471 = math.tanh %470 : vector<8x128xf32>
    %cst_192 = arith.constant 5.000000e-01 : f32
    %472 = vector.broadcast %cst_192 : f32 to vector<8x128xf32>
    %473 = arith.mulf %472, %471 : vector<8x128xf32>
    %cst_193 = arith.constant 5.000000e-01 : f32
    %474 = vector.broadcast %cst_193 : f32 to vector<8x128xf32>
    %475 = arith.addf %473, %474 : vector<8x128xf32>
    %476 = arith.mulf %465, %404 : vector<8x128xf32>
    %477 = arith.mulf %457, %467 : vector<8x128xf32>
    %478 = arith.addf %476, %477 : vector<8x128xf32>
    %479 = math.tanh %478 : vector<8x128xf32>
    %480 = arith.mulf %475, %479 : vector<8x128xf32>
    %481 = tpu.concatenate %480, %444 in 1 : vector<8x128xf32>, vector<8x128xf32> -> vector<8x256xf32>
    %c0_194 = arith.constant 0 : index
    %c0_195 = arith.constant 0 : index
    %c0_196 = arith.constant 0 : index
    %482 = vector.load %arg2[%c0_194, %c0_195, %c0_196] : memref<1x256x512xf32, #tpu.memory_space<vmem>>, vector<1x256x512xf32>
    %483 = vector.shape_cast %482 : vector<1x256x512xf32> to vector<256x512xf32>
    %cst_197 = arith.constant dense<0.000000e+00> : vector<8x512xf32>
    %484 = tpu.matmul %481, %483, %cst_197 {dimension_numbers = #tpu.dot_dimension_numbers<[1], [0], [0], [1], [0, 0, 1, 1], [], []>} : vector<8x256xf32>, vector<256x512xf32>, vector<8x512xf32> -> vector<8x512xf32>
    %c0_198 = arith.constant 0 : index
    %c0_199 = arith.constant 0 : index
    %c0_200 = arith.constant 0 : index
    %485 = vector.load %arg3[%c0_198, %c0_199, %c0_200] : memref<1x8x512xf32, #tpu.memory_space<vmem>>, vector<1x8x512xf32>
    %486 = vector.shape_cast %485 : vector<1x8x512xf32> to vector<8x512xf32>
    %487 = arith.addf %484, %486 : vector<8x512xf32>
    %488 = vector.extract_strided_slice %487 {offsets = [0, 0], sizes = [8, 128], strides = [1, 1]} : vector<8x512xf32> to vector<8x128xf32>
    %cst_201 = arith.constant 5.000000e-01 : f32
    %489 = vector.broadcast %cst_201 : f32 to vector<8x128xf32>
    %490 = arith.mulf %489, %488 : vector<8x128xf32>
    %491 = math.tanh %490 : vector<8x128xf32>
    %cst_202 = arith.constant 5.000000e-01 : f32
    %492 = vector.broadcast %cst_202 : f32 to vector<8x128xf32>
    %493 = arith.mulf %492, %491 : vector<8x128xf32>
    %cst_203 = arith.constant 5.000000e-01 : f32
    %494 = vector.broadcast %cst_203 : f32 to vector<8x128xf32>
    %495 = arith.addf %493, %494 : vector<8x128xf32>
    %496 = vector.extract_strided_slice %487 {offsets = [0, 128], sizes = [8, 128], strides = [1, 1]} : vector<8x512xf32> to vector<8x128xf32>
    %cst_204 = arith.constant 5.000000e-01 : f32
    %497 = vector.broadcast %cst_204 : f32 to vector<8x128xf32>
    %498 = arith.mulf %497, %496 : vector<8x128xf32>
    %499 = math.tanh %498 : vector<8x128xf32>
    %cst_205 = arith.constant 5.000000e-01 : f32
    %500 = vector.broadcast %cst_205 : f32 to vector<8x128xf32>
    %501 = arith.mulf %500, %499 : vector<8x128xf32>
    %cst_206 = arith.constant 5.000000e-01 : f32
    %502 = vector.broadcast %cst_206 : f32 to vector<8x128xf32>
    %503 = arith.addf %501, %502 : vector<8x128xf32>
    %504 = vector.extract_strided_slice %487 {offsets = [0, 256], sizes = [8, 128], strides = [1, 1]} : vector<8x512xf32> to vector<8x128xf32>
    %505 = math.tanh %504 : vector<8x128xf32>
    %506 = vector.extract_strided_slice %487 {offsets = [0, 384], sizes = [8, 128], strides = [1, 1]} : vector<8x512xf32> to vector<8x128xf32>
    %cst_207 = arith.constant 5.000000e-01 : f32
    %507 = vector.broadcast %cst_207 : f32 to vector<8x128xf32>
    %508 = arith.mulf %507, %506 : vector<8x128xf32>
    %509 = math.tanh %508 : vector<8x128xf32>
    %cst_208 = arith.constant 5.000000e-01 : f32
    %510 = vector.broadcast %cst_208 : f32 to vector<8x128xf32>
    %511 = arith.mulf %510, %509 : vector<8x128xf32>
    %cst_209 = arith.constant 5.000000e-01 : f32
    %512 = vector.broadcast %cst_209 : f32 to vector<8x128xf32>
    %513 = arith.addf %511, %512 : vector<8x128xf32>
    %514 = arith.mulf %503, %442 : vector<8x128xf32>
    %515 = arith.mulf %495, %505 : vector<8x128xf32>
    %516 = arith.addf %514, %515 : vector<8x128xf32>
    %517 = math.tanh %516 : vector<8x128xf32>
    %518 = arith.mulf %513, %517 : vector<8x128xf32>
    %c7 = arith.constant 7 : index
    %c0_210 = arith.constant 0 : index
    %c0_211 = arith.constant 0 : index
    %519 = vector.load %arg0[%c7, %c0_210, %c0_211] : memref<8x8x512xf32, #tpu.memory_space<vmem>>, vector<1x8x512xf32>
    %520 = vector.shape_cast %519 : vector<1x8x512xf32> to vector<8x512xf32>
    %c0_212 = arith.constant 0 : index
    %c0_213 = arith.constant 0 : index
    %521 = vector.load %arg1[%c0_212, %c0_213] : memref<128x512xf32, #tpu.memory_space<vmem>>, vector<128x512xf32>
    %cst_214 = arith.constant dense<0.000000e+00> : vector<8x512xf32>
    %522 = tpu.matmul %480, %521, %cst_214 {dimension_numbers = #tpu.dot_dimension_numbers<[1], [0], [0], [1], [0, 0, 1, 1], [], []>} : vector<8x128xf32>, vector<128x512xf32>, vector<8x512xf32> -> vector<8x512xf32>
    %523 = arith.addf %520, %522 : vector<8x512xf32>
    %524 = vector.extract_strided_slice %523 {offsets = [0, 0], sizes = [8, 128], strides = [1, 1]} : vector<8x512xf32> to vector<8x128xf32>
    %cst_215 = arith.constant 5.000000e-01 : f32
    %525 = vector.broadcast %cst_215 : f32 to vector<8x128xf32>
    %526 = arith.mulf %525, %524 : vector<8x128xf32>
    %527 = math.tanh %526 : vector<8x128xf32>
    %cst_216 = arith.constant 5.000000e-01 : f32
    %528 = vector.broadcast %cst_216 : f32 to vector<8x128xf32>
    %529 = arith.mulf %528, %527 : vector<8x128xf32>
    %cst_217 = arith.constant 5.000000e-01 : f32
    %530 = vector.broadcast %cst_217 : f32 to vector<8x128xf32>
    %531 = arith.addf %529, %530 : vector<8x128xf32>
    %532 = vector.extract_strided_slice %523 {offsets = [0, 128], sizes = [8, 128], strides = [1, 1]} : vector<8x512xf32> to vector<8x128xf32>
    %cst_218 = arith.constant 5.000000e-01 : f32
    %533 = vector.broadcast %cst_218 : f32 to vector<8x128xf32>
    %534 = arith.mulf %533, %532 : vector<8x128xf32>
    %535 = math.tanh %534 : vector<8x128xf32>
    %cst_219 = arith.constant 5.000000e-01 : f32
    %536 = vector.broadcast %cst_219 : f32 to vector<8x128xf32>
    %537 = arith.mulf %536, %535 : vector<8x128xf32>
    %cst_220 = arith.constant 5.000000e-01 : f32
    %538 = vector.broadcast %cst_220 : f32 to vector<8x128xf32>
    %539 = arith.addf %537, %538 : vector<8x128xf32>
    %540 = vector.extract_strided_slice %523 {offsets = [0, 256], sizes = [8, 128], strides = [1, 1]} : vector<8x512xf32> to vector<8x128xf32>
    %541 = math.tanh %540 : vector<8x128xf32>
    %542 = vector.extract_strided_slice %523 {offsets = [0, 384], sizes = [8, 128], strides = [1, 1]} : vector<8x512xf32> to vector<8x128xf32>
    %cst_221 = arith.constant 5.000000e-01 : f32
    %543 = vector.broadcast %cst_221 : f32 to vector<8x128xf32>
    %544 = arith.mulf %543, %542 : vector<8x128xf32>
    %545 = math.tanh %544 : vector<8x128xf32>
    %cst_222 = arith.constant 5.000000e-01 : f32
    %546 = vector.broadcast %cst_222 : f32 to vector<8x128xf32>
    %547 = arith.mulf %546, %545 : vector<8x128xf32>
    %cst_223 = arith.constant 5.000000e-01 : f32
    %548 = vector.broadcast %cst_223 : f32 to vector<8x128xf32>
    %549 = arith.addf %547, %548 : vector<8x128xf32>
    %550 = arith.mulf %539, %478 : vector<8x128xf32>
    %551 = arith.mulf %531, %541 : vector<8x128xf32>
    %552 = arith.addf %550, %551 : vector<8x128xf32>
    %553 = math.tanh %552 : vector<8x128xf32>
    %554 = arith.mulf %549, %553 : vector<8x128xf32>
    %555 = tpu.concatenate %554, %518 in 1 : vector<8x128xf32>, vector<8x128xf32> -> vector<8x256xf32>
    %c0_224 = arith.constant 0 : index
    %c0_225 = arith.constant 0 : index
    %c0_226 = arith.constant 0 : index
    %556 = vector.load %arg2[%c0_224, %c0_225, %c0_226] : memref<1x256x512xf32, #tpu.memory_space<vmem>>, vector<1x256x512xf32>
    %557 = vector.shape_cast %556 : vector<1x256x512xf32> to vector<256x512xf32>
    %cst_227 = arith.constant dense<0.000000e+00> : vector<8x512xf32>
    %558 = tpu.matmul %555, %557, %cst_227 {dimension_numbers = #tpu.dot_dimension_numbers<[1], [0], [0], [1], [0, 0, 1, 1], [], []>} : vector<8x256xf32>, vector<256x512xf32>, vector<8x512xf32> -> vector<8x512xf32>
    %c0_228 = arith.constant 0 : index
    %c0_229 = arith.constant 0 : index
    %c0_230 = arith.constant 0 : index
    %559 = vector.load %arg3[%c0_228, %c0_229, %c0_230] : memref<1x8x512xf32, #tpu.memory_space<vmem>>, vector<1x8x512xf32>
    %560 = vector.shape_cast %559 : vector<1x8x512xf32> to vector<8x512xf32>
    %561 = arith.addf %558, %560 : vector<8x512xf32>
    %562 = vector.extract_strided_slice %561 {offsets = [0, 0], sizes = [8, 128], strides = [1, 1]} : vector<8x512xf32> to vector<8x128xf32>
    %cst_231 = arith.constant 5.000000e-01 : f32
    %563 = vector.broadcast %cst_231 : f32 to vector<8x128xf32>
    %564 = arith.mulf %563, %562 : vector<8x128xf32>
    %565 = math.tanh %564 : vector<8x128xf32>
    %cst_232 = arith.constant 5.000000e-01 : f32
    %566 = vector.broadcast %cst_232 : f32 to vector<8x128xf32>
    %567 = arith.mulf %566, %565 : vector<8x128xf32>
    %cst_233 = arith.constant 5.000000e-01 : f32
    %568 = vector.broadcast %cst_233 : f32 to vector<8x128xf32>
    %569 = arith.addf %567, %568 : vector<8x128xf32>
    %570 = vector.extract_strided_slice %561 {offsets = [0, 128], sizes = [8, 128], strides = [1, 1]} : vector<8x512xf32> to vector<8x128xf32>
    %cst_234 = arith.constant 5.000000e-01 : f32
    %571 = vector.broadcast %cst_234 : f32 to vector<8x128xf32>
    %572 = arith.mulf %571, %570 : vector<8x128xf32>
    %573 = math.tanh %572 : vector<8x128xf32>
    %cst_235 = arith.constant 5.000000e-01 : f32
    %574 = vector.broadcast %cst_235 : f32 to vector<8x128xf32>
    %575 = arith.mulf %574, %573 : vector<8x128xf32>
    %cst_236 = arith.constant 5.000000e-01 : f32
    %576 = vector.broadcast %cst_236 : f32 to vector<8x128xf32>
    %577 = arith.addf %575, %576 : vector<8x128xf32>
    %578 = vector.extract_strided_slice %561 {offsets = [0, 256], sizes = [8, 128], strides = [1, 1]} : vector<8x512xf32> to vector<8x128xf32>
    %579 = math.tanh %578 : vector<8x128xf32>
    %580 = vector.extract_strided_slice %561 {offsets = [0, 384], sizes = [8, 128], strides = [1, 1]} : vector<8x512xf32> to vector<8x128xf32>
    %cst_237 = arith.constant 5.000000e-01 : f32
    %581 = vector.broadcast %cst_237 : f32 to vector<8x128xf32>
    %582 = arith.mulf %581, %580 : vector<8x128xf32>
    %583 = math.tanh %582 : vector<8x128xf32>
    %cst_238 = arith.constant 5.000000e-01 : f32
    %584 = vector.broadcast %cst_238 : f32 to vector<8x128xf32>
    %585 = arith.mulf %584, %583 : vector<8x128xf32>
    %cst_239 = arith.constant 5.000000e-01 : f32
    %586 = vector.broadcast %cst_239 : f32 to vector<8x128xf32>
    %587 = arith.addf %585, %586 : vector<8x128xf32>
    %588 = arith.mulf %577, %516 : vector<8x128xf32>
    %589 = arith.mulf %569, %579 : vector<8x128xf32>
    %590 = arith.addf %588, %589 : vector<8x128xf32>
    %591 = math.tanh %590 : vector<8x128xf32>
    %592 = arith.mulf %587, %591 : vector<8x128xf32>
    %c0_240 = arith.constant 0 : index
    %c0_241 = arith.constant 0 : index
    %593 = vector.load %arg4[%c0_240, %c0_241] : memref<128x128xf32, #tpu.memory_space<vmem>>, vector<128x128xf32>
    %cst_242 = arith.constant dense<0.000000e+00> : vector<8x128xf32>
    %594 = tpu.matmul %592, %593, %cst_242 {dimension_numbers = #tpu.dot_dimension_numbers<[1], [0], [0], [1], [0, 0, 1, 1], [], []>} : vector<8x128xf32>, vector<128x128xf32>, vector<8x128xf32> -> vector<8x128xf32>
    %c0_243 = arith.constant 0 : index
    %c0_244 = arith.constant 0 : index
    %595 = vector.load %arg5[%c0_243, %c0_244] : memref<1x128xf32, #tpu.memory_space<vmem>>, vector<1x128xf32>
    %596 = vector.broadcast %595 : vector<1x128xf32> to vector<8x128xf32>
    %597 = arith.addf %594, %596 : vector<8x128xf32>
    %c0_245 = arith.constant 0 : index
    %c0_246 = arith.constant 0 : index
    %598 = vector.load %arg6[%c0_245, %c0_246] : memref<8x128xf32, #tpu.memory_space<vmem>>, vector<8x128xf32>
    tpu.vector_store %arg6[%c0_245, %c0_246], %597 {strides = array<i32>} : memref<8x128xf32, #tpu.memory_space<vmem>>, vector<8x128xf32>,
    return
  }
}

</mosaic_0001>

<bundles_post_ra>
// kernel: lstm_classifier_forward.1
= control target key start
LH: loop header
LB: loop body
LE: loop exit
PB: predicated region body
PF: predicated region fallthrough
CT: control target
= control target key end

     0   :  { %11 = vsyncpa [#allocation3], 0  ;;  %s3367_s24 = smov [#allocation2]   ;;  %s3368_s26 = smov 512   ;;  %s7567_s0 = inlined_call_operand.vmem [shape: f32[8,8,512], index: 0, kind: input, shape index: {}]   ;;  %s7568_s1 = inlined_call_operand.vmem [shape: f32[128,512], index: 1, kind: input, shape index: {}]   ;;  %s7569_s2 = inlined_call_operand.hbm [shape: f32[1,256,512], index: 2, kind: input, shape index: {}]   ;;  %s7570_s3 = inlined_call_operand.vmem [shape: f32[1,8,512], index: 3, kind: input, shape index: {}]   ;;  %s7571_s4 = inlined_call_operand.vmem [shape: f32[128,128], index: 4, kind: input, shape index: {}]   ;;  %s7572_s5 = inlined_call_operand.vmem [shape: f32[1,128], index: 5, kind: input, shape index: {}]   ;;  %s7573_s6 = inlined_call_operand.vmem [shape: f32[8,128], index: 6, kind: output, shape index: {}]  }
   0x1   :  { %s20_s23 = sshll.u32 %s7569_s2, 4  ;;  %s22_s25 = sshll.u32 %s3367_s24, 4  ;;  %s21_s23 = int_to_ptr.hbm [resolvable:$true] %s20_s23  ;;  %s23_s25 = int_to_ptr.vmem [resolvable:$true] %s22_s25 }
   0x2   :  { %s3369_s27 = smov 32  }
   0x3   :  { %28 = dma.hbm_to_vmem [thread:$0]  %s21_s23, 16384, %s23_s25, [#allocation3], %s3368_s26, %s3368_s26, %s3369_s27  }
   0x4   :  { %3365 = dma.done.wait [#allocation3], 16384  }
   0x5   :  { %3366 = vsyncadd [#allocation3], 4294950912  ;;  %v3412_v0 = vld [vmem:[%s7568_s1 + $0x1e0] sm:$0xff]  ;;  %v3417_v1 = vld [vmem:[%s7568_s1 + $0x1e8] sm:$0xff] }
   0x6   :  { %8077 = vst [vmem:[#allocation5_spill] sm:$0xff] %v3412_v0  ;;  %v3422_v2 = vld [vmem:[%s7568_s1 + $0x1f0] sm:$0xff]  ;;  %107 = vmatpush.msra.mxu0 %v3412_v0  ;;  %127 = vmatpush.msra.mxu1 %v3417_v1  ;;  %v3429_v3 = vld [vmem:[%s7568_s1 + $0x1c0] sm:$0xff]  ;;  %v3434_v4 = vld [vmem:[%s7568_s1 + $0x1c8] sm:$0xff] }
   0x7   :  { %8078 = vst [vmem:[#allocation6_spill] sm:$0xff] %v3422_v2  ;;  %v3439_v5 = vld [vmem:[%s7568_s1 + $0x1d0] sm:$0xff]  ;;  %147 = vmatpush.msra.mxu2 %v3422_v2  ;;  %v3445_v6 = vld [vmem:[%s7568_s1 + $0x1a0] sm:$0xff]  ;;  %v3450_v7 = vld [vmem:[%s7568_s1 + $0x1a8] sm:$0xff] }
   0x8   :  { %8079 = vst [vmem:[#allocation7_spill] sm:$0xff] %v3429_v3  ;;  %108 = vmatpush.msra.mxu0 %v3429_v3  ;;  %128 = vmatpush.msra.mxu1 %v3434_v4  ;;  %v3457_v8 = vld [vmem:[%s7568_s1 + $0x1b0] sm:$0xff]  ;;  %v3462_v9 = vld [vmem:[%s7568_s1 + $0x1f8] sm:$0xff]  ;;  %v3469_v10 = vld [vmem:[%s7568_s1 + $0x180] sm:$0xff] }
   0x9   :  { %8080 = vst [vmem:[#allocation8_spill] sm:$0xff] %v3439_v5  ;;  %148 = vmatpush.msra.mxu2 %v3439_v5  ;;  %167 = vmatpush.msra.mxu3 %v3462_v9  ;;  %v3474_v11 = vld [vmem:[%s7568_s1 + $0x188] sm:$0xff]  ;;  %v3479_v12 = vld [vmem:[%s7568_s1 + $0x1d8] sm:$0xff]  ;;  %v3486_v13 = vld [vmem:[%s7568_s1 + $0x190] sm:$0xff] }
   0xa   :  { %8081 = vst [vmem:[#allocation9_spill] sm:$0xff] %v3445_v6  ;;  %109 = vmatpush.msra.mxu0 %v3445_v6  ;;  %129 = vmatpush.msra.mxu1 %v3450_v7  ;;  %v3491_v14 = vld [vmem:[%s7568_s1 + $0x1b8] sm:$0xff]  ;;  %v3498_v15 = vld [vmem:[%s7568_s1 + $0x160] sm:$0xff]  ;;  %v3503_v16 = vld [vmem:[%s7568_s1 + $0x168] sm:$0xff] }
   0xb   :  { %8082 = vst [vmem:[#allocation10_spill] sm:$0xff] %v3457_v8  ;;  %149 = vmatpush.msra.mxu2 %v3457_v8  ;;  %168 = vmatpush.msra.mxu3 %v3479_v12  ;;  %v3510_v17 = vld [vmem:[%s7568_s1 + $0x170] sm:$0xff]  ;;  %v3515_v18 = vld [vmem:[%s7568_s1 + $0x198] sm:$0xff]  ;;  %v3522_v19 = vld [vmem:[%s7568_s1 + $0x140] sm:$0xff] }
   0xc   :  { %8083 = vst [vmem:[#allocation11_spill] sm:$0xff] %v3469_v10  ;;  %110 = vmatpush.msra.mxu0 %v3469_v10  ;;  %130 = vmatpush.msra.mxu1 %v3474_v11  ;;  %v3527_v20 = vld [vmem:[%s7568_s1 + $0x148] sm:$0xff]  ;;  %v3534_v21 = vld [vmem:[%s7568_s1 + $0x150] sm:$0xff]  ;;  %v3539_v22 = vld [vmem:[%s7568_s1 + $0x178] sm:$0xff] }
   0xd   :  { %8084 = vst [vmem:[#allocation12_spill] sm:$0xff] %v3486_v13  ;;  %150 = vmatpush.msra.mxu2 %v3486_v13  ;;  %169 = vmatpush.msra.mxu3 %v3491_v14  ;;  %v3546_v23 = vld [vmem:[%s7568_s1 + $0x120] sm:$0xff]  ;;  %v3551_v24 = vld [vmem:[%s7568_s1 + $0x128] sm:$0xff]  ;;  %v3558_v25 = vld [vmem:[%s7568_s1 + $0x130] sm:$0xff] }
   0xe   :  { %8085 = vst [vmem:[#allocation13_spill] sm:$0xff] %v3498_v15  ;;  %111 = vmatpush.msra.mxu0 %v3498_v15  ;;  %131 = vmatpush.msra.mxu1 %v3503_v16  ;;  %v3563_v26 = vld [vmem:[%s7568_s1 + $0x158] sm:$0xff]  ;;  %v3570_v27 = vld [vmem:[%s7568_s1 + $0x100] sm:$0xff]  ;;  %v3575_v28 = vld [vmem:[%s7568_s1 + $0x108] sm:$0xff] }
   0xf   :  { %8086 = vst [vmem:[#allocation14_spill] sm:$0xff] %v3510_v17  ;;  %151 = vmatpush.msra.mxu2 %v3510_v17  ;;  %170 = vmatpush.msra.mxu3 %v3515_v18  ;;  %v3582_v29 = vld [vmem:[%s7568_s1 + $0x110] sm:$0xff]  ;;  %v3587_v30 = vld [vmem:[%s7568_s1 + $0x138] sm:$0xff]  ;;  %v3594_v31 = vld [vmem:[%s7568_s1 + $0xe0] sm:$0xff] }
  0x10   :  { %8087 = vst [vmem:[#allocation15_spill] sm:$0xff] %v3522_v19  ;;  %112 = vmatpush.msra.mxu0 %v3522_v19  ;;  %132 = vmatpush.msra.mxu1 %v3527_v20  ;;  %v3599_v32 = vld [vmem:[%s7568_s1 + $0xe8] sm:$0xff]  ;;  %v3606_v33 = vld [vmem:[%s7568_s1 + $0xf0] sm:$0xff]  ;;  %v3611_v34 = vld [vmem:[%s7568_s1 + $0x118] sm:$0xff] }
  0x11   :  { %8088 = vst [vmem:[#allocation16_spill] sm:$0xff] %v3534_v21  ;;  %152 = vmatpush.msra.mxu2 %v3534_v21  ;;  %171 = vmatpush.msra.mxu3 %v3539_v22  ;;  %v3618_v35 = vld [vmem:[%s7568_s1 + $0xc0] sm:$0xff]  ;;  %v3623_v36 = vld [vmem:[%s7568_s1 + $0xc8] sm:$0xff]  ;;  %v3630_v37 = vld [vmem:[%s7568_s1 + $0xd0] sm:$0xff] }
  0x12   :  { %8089 = vst [vmem:[#allocation17_spill] sm:$0xff] %v3546_v23  ;;  %113 = vmatpush.msra.mxu0 %v3546_v23  ;;  %133 = vmatpush.msra.mxu1 %v3551_v24  ;;  %v3635_v38 = vld [vmem:[%s7568_s1 + $0xf8] sm:$0xff]  ;;  %v3642_v39 = vld [vmem:[%s7568_s1 + $0xa0] sm:$0xff]  ;;  %v3647_v40 = vld [vmem:[%s7568_s1 + $0xa8] sm:$0xff] }
  0x13   :  { %8090 = vst [vmem:[#allocation18_spill] sm:$0xff] %v3558_v25  ;;  %153 = vmatpush.msra.mxu2 %v3558_v25  ;;  %172 = vmatpush.msra.mxu3 %v3563_v26  ;;  %v3654_v41 = vld [vmem:[%s7568_s1 + $0xb0] sm:$0xff]  ;;  %v3659_v42 = vld [vmem:[%s7568_s1 + $0xd8] sm:$0xff]  ;;  %v3666_v43 = vld [vmem:[%s7568_s1 + $0x80] sm:$0xff] }
  0x14   :  { %8091 = vst [vmem:[#allocation19_spill] sm:$0xff] %v3570_v27  ;;  %114 = vmatpush.msra.mxu0 %v3570_v27  ;;  %134 = vmatpush.msra.mxu1 %v3575_v28  ;;  %v3671_v44 = vld [vmem:[%s7568_s1 + $0x88] sm:$0xff]  ;;  %v3678_v45 = vld [vmem:[%s7568_s1 + $0x90] sm:$0xff]  ;;  %v3683_v46 = vld [vmem:[%s7568_s1 + $0xb8] sm:$0xff] }
  0x15   :  { %8092 = vst [vmem:[#allocation20_spill] sm:$0xff] %v3582_v29  ;;  %154 = vmatpush.msra.mxu2 %v3582_v29  ;;  %173 = vmatpush.msra.mxu3 %v3587_v30  ;;  %v3690_v47 = vld [vmem:[%s7568_s1 + $0x60] sm:$0xff]  ;;  %v3695_v48 = vld [vmem:[%s7568_s1 + $0x68] sm:$0xff]  ;;  %v3702_v49 = vld [vmem:[%s7568_s1 + $0x70] sm:$0xff] }
  0x16   :  { %8093 = vst [vmem:[#allocation21_spill] sm:$0xff] %v3594_v31  ;;  %115 = vmatpush.msra.mxu0 %v3594_v31  ;;  %135 = vmatpush.msra.mxu1 %v3599_v32  ;;  %v3707_v50 = vld [vmem:[%s7568_s1 + $0x98] sm:$0xff]  ;;  %v3714_v51 = vld [vmem:[%s7568_s1 + $0x40] sm:$0xff]  ;;  %v3719_v52 = vld [vmem:[%s7568_s1 + $0x48] sm:$0xff] }
  0x17   :  { %8094 = vst [vmem:[#allocation22_spill] sm:$0xff] %v3606_v33  ;;  %155 = vmatpush.msra.mxu2 %v3606_v33  ;;  %174 = vmatpush.msra.mxu3 %v3611_v34  ;;  %v3726_v53 = vld [vmem:[%s7568_s1 + $0x50] sm:$0xff]  ;;  %v3731_v54 = vld [vmem:[%s7568_s1 + $0x78] sm:$0xff]  ;;  %v3738_v55 = vld [vmem:[%s7568_s1 + $0x20] sm:$0xff] }
  0x18   :  { %8095 = vst [vmem:[#allocation23_spill] sm:$0xff] %v3618_v35  ;;  %116 = vmatpush.msra.mxu0 %v3618_v35  ;;  %136 = vmatpush.msra.mxu1 %v3623_v36  ;;  %v3743_v56 = vld [vmem:[%s7568_s1 + $0x28] sm:$0xff]  ;;  %v3750_v57 = vld [vmem:[%s7568_s1 + $0x30] sm:$0xff]  ;;  %v3755_v58 = vld [vmem:[%s7568_s1 + $0x58] sm:$0xff] }
  0x19   :  { %8096 = vst [vmem:[#allocation24_spill] sm:$0xff] %v3630_v37  ;;  %156 = vmatpush.msra.mxu2 %v3630_v37  ;;  %175 = vmatpush.msra.mxu3 %v3635_v38  ;;  %v3762_v59 = vld [vmem:[%s7568_s1] sm:$0xff]  ;;  %v3767_v60 = vld [vmem:[%s7568_s1 + $0x8] sm:$0xff]  ;;  %v3774_v61 = vld [vmem:[%s7568_s1 + $0x10] sm:$0xff] }
  0x1a   :  { %8097 = vst [vmem:[#allocation25_spill] sm:$0xff] %v3642_v39  ;;  %117 = vmatpush.msra.mxu0 %v3642_v39  ;;  %137 = vmatpush.msra.mxu1 %v3647_v40  ;;  %v3783_v62 = vld [vmem:[%s7568_s1 + $0x38] sm:$0xff]  ;;  %v3785_v63 = vld [vmem:[#allocation2 + $0x3e0] sm:$0xff]  ;;  %v3822_v39 = vld [vmem:[#allocation2 + $0x3a8] sm:$0xff] }
  0x1b   :  { %8098 = vst [vmem:[#allocation26_spill] sm:$0xff] %v3654_v41  ;;  %157 = vmatpush.msra.mxu2 %v3654_v41  ;;  %176 = vmatpush.msra.mxu3 %v3659_v42  ;;  %v3820_v41 = vld [vmem:[#allocation2 + $0x1c8] sm:$0xff]  ;;  %v3824_v37 = vld [vmem:[#allocation2 + $0x360] sm:$0xff] }
  0x1c   :  { %8099 = vst [vmem:[#allocation27_spill] sm:$0xff] %v3666_v43  ;;  %118 = vmatpush.msra.mxu0 %v3666_v43  ;;  %138 = vmatpush.msra.mxu1 %v3671_v44  ;;  %v3816_v43 = vld [vmem:[#allocation2 + $0x1c0] sm:$0xff]  ;;  %v3834_v33 = vld [vmem:[#allocation2 + $0x388] sm:$0xff] }
  0x1d   :  { %8100 = vst [vmem:[#allocation28_spill] sm:$0xff] %v3678_v45  ;;  %158 = vmatpush.msra.mxu2 %v3678_v45  ;;  %177 = vmatpush.msra.mxu3 %v3683_v46  ;;  %v3813_v45 = vld [vmem:[#allocation2 + $0x380] sm:$0xff] }
  0x1e   :  { %8101 = vst [vmem:[#allocation29_spill] sm:$0xff] %v3690_v47  ;;  %119 = vmatpush.msra.mxu0 %v3690_v47  ;;  %139 = vmatpush.msra.mxu1 %v3695_v48  ;;  %v3811_v47 = vld [vmem:[#allocation2 + $0x3c8] sm:$0xff]  ;;  %v3828_v35 = vld [vmem:[#allocation2 + $0x1a0] sm:$0xff] }
  0x1f   :  { %8102 = vst [vmem:[#allocation30_spill] sm:$0xff] %v3702_v49  ;;  %159 = vmatpush.msra.mxu2 %v3702_v49  ;;  %178 = vmatpush.msra.mxu3 %v3707_v50  ;;  %v8111_v49 = vmov 0.0   ;;  %v3836_v31 = vld [vmem:[#allocation2 + $0x340] sm:$0xff] }
  0x20   :  { %8103 = vst [vmem:[#allocation31_spill] sm:$0xff] %v3714_v51  ;;  %120 = vmatpush.msra.mxu0 %v3714_v51  ;;  %140 = vmatpush.msra.mxu1 %v3719_v52  ;;  %v3808_v51 = vld [vmem:[#allocation2 + $0x1e8] sm:$0xff]  ;;  %v3840_v29 = vld [vmem:[#allocation2 + $0x180] sm:$0xff] }
  0x21   :  { %8104 = vst [vmem:[#allocation32_spill] sm:$0xff] %v3726_v53  ;;  %160 = vmatpush.msra.mxu2 %v3726_v53  ;;  %179 = vmatpush.msra.mxu3 %v3731_v54  ;;  %v3800_v53 = vld [vmem:[#allocation2 + $0x3e8] sm:$0xff]  ;;  %v3848_v27 = vld [vmem:[#allocation2 + $0x320] sm:$0xff] }
  0x22   :  { %8105 = vst [vmem:[#allocation33_spill] sm:$0xff] %v3738_v55  ;;  %121 = vmatpush.msra.mxu0 %v3738_v55  ;;  %141 = vmatpush.msra.mxu1 %v3743_v56  ;;  %v7579_v55 = vmov 0.0   ;;  %v3852_v25 = vld [vmem:[#allocation2 + $0x160] sm:$0xff] }
  0x23   :  { %8106 = vst [vmem:[#allocation34_spill] sm:$0xff] %v3750_v57  ;;  %161 = vmatpush.msra.mxu2 %v3750_v57  ;;  %180 = vmatpush.msra.mxu3 %v3755_v58  ;;  %v3796_v57 = vld [vmem:[#allocation2 + $0x3c0] sm:$0xff] }
  0x24   :  { %8107 = vst [vmem:[#allocation35_spill] sm:$0xff] %v3762_v59  ;;  %122 = vmatpush.msra.mxu0 %v3762_v59  ;;  %142 = vmatpush.msra.mxu1 %v3767_v60  ;;  %v3794_v59 = vld [vmem:[%s7568_s1 + $0x18] sm:$0xff]  ;;  %v3860_v23 = vld [vmem:[#allocation2 + $0x300] sm:$0xff] }
  0x25   :  { %8108 = vst [vmem:[#allocation36_spill] sm:$0xff] %v3774_v61  ;;  %162 = vmatpush.msra.mxu2 %v3774_v61  ;;  %123 = vmatmul.f32.vlgmr.msra.gmra.mxu0 %v7579_v55  ;;  %v3802_v61 = vld [vmem:[#allocation2 + $0x3a0] sm:$0xff] }
  0x26   :  { %143 = vmatmul.f32.vlgmr.msra.gmra.mxu1 %v7579_v55  ;;  %163 = vmatmul.f32.vlgmr.msra.gmra.mxu2 %v7579_v55  ;;  %v3806_v55 = vld [vmem:[#allocation2 + $0x1e0] sm:$0xff]  ;;  %8110 = vst [vmem:[#allocation38_spill] sm:$0xff] %v3808_v51 }
  0x27   :  { %181 = vmatpush.msra.mxu3 %v3783_v62  ;;  %361 = vmatpush.msrb.mxu1 %v3785_v63  ;;  %8109 = vst [vmem:[#allocation37_spill] sm:$0xff] %v3806_v55  ;;  %v3864_v21 = vld [vmem:[#allocation2 + $0x140] sm:$0xff] }
  0x28   :  { %341 = vmatpush.msrb.mxu0 %v3806_v55  ;;  %8112 = vst [vmem:[#allocation39_spill] sm:$0xff] %v3816_v43  ;;  %381 = vmatpush.msrb.mxu2 %v3808_v51  ;;  %v3832_v55 = vld [vmem:[#allocation2 + $0x1a8] sm:$0xff]  ;;  %v3872_v19 = vld [vmem:[#allocation2 + $0x2e0] sm:$0xff] }
  0x29   :  { %182 = vmatpush.msra.mxu3 %v3794_v59  ;;  %362 = vmatpush.msrb.mxu1 %v3796_v57  ;;  %8113 = vst [vmem:[#allocation40_spill] sm:$0xff] %v3820_v41  ;;  %v3846_v51 = vld [vmem:[#allocation2 + $0x368] sm:$0xff]  ;;  %v3876_v17 = vld [vmem:[#allocation2 + $0x120] sm:$0xff] }
  0x2a   :  { %183 = vmatmul.f32.vlgmr.msra.gmra.mxu3 %v8111_v49  ;;  %342 = vmatpush.msrb.mxu0 %v3816_v43  ;;  %8114 = vst [vmem:[#allocation41_spill] sm:$0xff] %v3828_v35  ;;  %v3844_v43 = vld [vmem:[#allocation2 + $0x188] sm:$0xff]  ;;  %v3884_v15 = vld [vmem:[#allocation2 + $0x2c0] sm:$0xff] }
  0x2b   :  { %401 = vmatpush.msrb.mxu3 %v3800_v53  ;;  %363 = vmatpush.msrb.mxu1 %v3802_v61  ;;  %8115 = vst [vmem:[#allocation42_spill] sm:$0xff] %v3832_v55  ;;  %v3888_v13 = vld [vmem:[#allocation2 + $0x100] sm:$0xff] }
  0x2c   :  { %382 = vmatpush.msrb.mxu2 %v3820_v41  ;;  %343 = vmatpush.msrb.mxu0 %v3828_v35  ;;  %8116 = vst [vmem:[#allocation43_spill] sm:$0xff] %v3840_v29  ;;  %v3856_v35 = vld [vmem:[#allocation2 + $0x168] sm:$0xff]  ;;  %v3896_v10 = vld [vmem:[#allocation2 + $0x2a0] sm:$0xff] }
  0x2d   :  { %402 = vmatpush.msrb.mxu3 %v3811_v47  ;;  %364 = vmatpush.msrb.mxu1 %v3813_v45  ;;  %8117 = vst [vmem:[#allocation44_spill] sm:$0xff] %v3844_v43  ;;  %v3858_v41 = vld [vmem:[#allocation2 + $0x348] sm:$0xff]  ;;  %v3900_v8 = vld [vmem:[#allocation2 + $0xe0] sm:$0xff] }
  0x2e   :  { %383 = vmatpush.msrb.mxu2 %v3832_v55  ;;  %344 = vmatpush.msrb.mxu0 %v3840_v29  ;;  %8118 = vst [vmem:[#allocation45_spill] sm:$0xff] %v3852_v25  ;;  %v3868_v29 = vld [vmem:[#allocation2 + $0x148] sm:$0xff]  ;;  %v3908_v6 = vld [vmem:[#allocation2 + $0x280] sm:$0xff] }
  0x2f   :  { %403 = vmatpush.msrb.mxu3 %v3822_v39  ;;  %365 = vmatpush.msrb.mxu1 %v3824_v37  ;;  %8119 = vst [vmem:[#allocation46_spill] sm:$0xff] %v3856_v35  ;;  %v3870_v55 = vld [vmem:[#allocation2 + $0x328] sm:$0xff]  ;;  %v3912_v5 = vld [vmem:[#allocation2 + $0xc0] sm:$0xff] }
  0x30   :  { %384 = vmatpush.msrb.mxu2 %v3844_v43  ;;  %345 = vmatpush.msrb.mxu0 %v3852_v25  ;;  %8120 = vst [vmem:[#allocation47_spill] sm:$0xff] %v3864_v21  ;;  %v3880_v25 = vld [vmem:[#allocation2 + $0x128] sm:$0xff]  ;;  %v3920_v3 = vld [vmem:[#allocation2 + $0x260] sm:$0xff] }
  0x31   :  { %404 = vmatpush.msrb.mxu3 %v3834_v33  ;;  %366 = vmatpush.msrb.mxu1 %v3836_v31  ;;  %8121 = vst [vmem:[#allocation48_spill] sm:$0xff] %v3868_v29  ;;  %v3882_v43 = vld [vmem:[#allocation2 + $0x308] sm:$0xff]  ;;  %v3924_v2 = vld [vmem:[#allocation2 + $0xa0] sm:$0xff] }
  0x32   :  { %385 = vmatpush.msrb.mxu2 %v3856_v35  ;;  %346 = vmatpush.msrb.mxu0 %v3864_v21  ;;  %8122 = vst [vmem:[#allocation49_spill] sm:$0xff] %v3876_v17  ;;  %v3892_v21 = vld [vmem:[#allocation2 + $0x108] sm:$0xff]  ;;  %v3932_v0 = vld [vmem:[#allocation2 + $0x240] sm:$0xff] }
  0x33   :  { %405 = vmatpush.msrb.mxu3 %v3846_v51  ;;  %367 = vmatpush.msrb.mxu1 %v3848_v27  ;;  %8123 = vst [vmem:[#allocation50_spill] sm:$0xff] %v3880_v25  ;;  %v3894_v35 = vld [vmem:[#allocation2 + $0x2e8] sm:$0xff] }
  0x34   :  { %386 = vmatpush.msrb.mxu2 %v3868_v29  ;;  %347 = vmatpush.msrb.mxu0 %v3876_v17  ;;  %8124 = vst [vmem:[#allocation51_spill] sm:$0xff] %v3888_v13  ;;  %v3904_v17 = vld [vmem:[#allocation2 + $0xe8] sm:$0xff] }
  0x35   :  { %406 = vmatpush.msrb.mxu3 %v3858_v41  ;;  %368 = vmatpush.msrb.mxu1 %v3860_v23  ;;  %8125 = vst [vmem:[#allocation52_spill] sm:$0xff] %v3892_v21  ;;  %v3906_v29 = vld [vmem:[#allocation2 + $0x2c8] sm:$0xff] }
  0x36   :  { %8126 = vst [vmem:[#allocation53_spill] sm:$0xff] %v3896_v10  ;;  %387 = vmatpush.msrb.mxu2 %v3880_v25  ;;  %348 = vmatpush.msrb.mxu0 %v3888_v13  ;;  %v3916_v13 = vld [vmem:[#allocation2 + $0xc8] sm:$0xff] }
  0x37   :  { %407 = vmatpush.msrb.mxu3 %v3870_v55  ;;  %369 = vmatpush.msrb.mxu1 %v3872_v19  ;;  %8127 = vst [vmem:[#allocation54_spill] sm:$0xff] %v3900_v8  ;;  %v3918_v25 = vld [vmem:[#allocation2 + $0x2a8] sm:$0xff] }
  0x38   :  { %8128 = vst [vmem:[#allocation55_spill] sm:$0xff] %v3904_v17  ;;  %388 = vmatpush.msrb.mxu2 %v3892_v21  ;;  %349 = vmatpush.msrb.mxu0 %v3900_v8  ;;  %v3928_v8 = vld [vmem:[#allocation2 + $0xa8] sm:$0xff] }
  0x39   :  { %408 = vmatpush.msrb.mxu3 %v3882_v43  ;;  %370 = vmatpush.msrb.mxu1 %v3884_v15  ;;  %8129 = vst [vmem:[#allocation56_spill] sm:$0xff] %v3906_v29  ;;  %v3930_v21 = vld [vmem:[#allocation2 + $0x288] sm:$0xff] }
  0x3a   :  { %8130 = vst [vmem:[#allocation57_spill] sm:$0xff] %v3908_v6  ;;  %389 = vmatpush.msrb.mxu2 %v3904_v17  ;;  %350 = vmatpush.msrb.mxu0 %v3912_v5  ;;  %v3942_v17 = vld [vmem:[#allocation2 + $0x268] sm:$0xff] }
  0x3b   :  { %8131 = vst [vmem:[#allocation58_spill] sm:$0xff] %v3912_v5  ;;  %409 = vmatpush.msrb.mxu3 %v3894_v35  ;;  %371 = vmatpush.msrb.mxu1 %v3896_v10  ;;  %v3936_v10 = vld [vmem:[#allocation2 + $0x80] sm:$0xff]  ;;  %v3940_v5 = vld [vmem:[#allocation2 + $0x88] sm:$0xff] }
  0x3c   :  { %8132 = vst [vmem:[#allocation59_spill] sm:$0xff] %v3916_v13  ;;  %390 = vmatpush.msrb.mxu2 %v3916_v13  ;;  %351 = vmatpush.msrb.mxu0 %v3924_v2  ;;  %v3954_v13 = vld [vmem:[#allocation2 + $0x248] sm:$0xff] }
  0x3d   :  { %8133 = vst [vmem:[#allocation60_spill] sm:$0xff] %v3918_v25  ;;  %410 = vmatpush.msrb.mxu3 %v3906_v29  ;;  %372 = vmatpush.msrb.mxu1 %v3908_v6  ;;  %v3944_v6 = vld [vmem:[#allocation2 + $0x220] sm:$0xff] }
  0x3e   :  { %8134 = vst [vmem:[#allocation61_spill] sm:$0xff] %v3920_v3  ;;  %391 = vmatpush.msrb.mxu2 %v3928_v8  ;;  %352 = vmatpush.msrb.mxu0 %v3936_v10  ;;  %v3948_v29 = vld [vmem:[#allocation2 + $0x60] sm:$0xff] }
  0x3f   :  { %8135 = vst [vmem:[#allocation62_spill] sm:$0xff] %v3924_v2  ;;  %411 = vmatpush.msrb.mxu3 %v3918_v25  ;;  %373 = vmatpush.msrb.mxu1 %v3920_v3  ;;  %v3952_v2 = vld [vmem:[#allocation2 + $0x68] sm:$0xff]  ;;  %v3956_v3 = vld [vmem:[#allocation2 + $0x200] sm:$0xff] }
  0x40   :  { %8136 = vst [vmem:[#allocation63_spill] sm:$0xff] %v3928_v8  ;;  %392 = vmatpush.msrb.mxu2 %v3940_v5  ;;  %353 = vmatpush.msrb.mxu0 %v3948_v29  ;;  %v3960_v25 = vld [vmem:[#allocation2 + $0x40] sm:$0xff]  ;;  %v3966_v8 = vld [vmem:[#allocation2 + $0x48] sm:$0xff] }
  0x41   :  { %8137 = vst [vmem:[#allocation64_spill] sm:$0xff] %v3930_v21  ;;  %412 = vmatpush.msrb.mxu3 %v3930_v21  ;;  %374 = vmatpush.msrb.mxu1 %v3932_v0  ;;  %v3972_v21 = vld [vmem:[#allocation2 + $0x20] sm:$0xff] }
  0x42   :  { %8138 = vst [vmem:[#allocation65_spill] sm:$0xff] %v3932_v0  ;;  %v3968_v0 = vld [vmem:[#allocation2 + $0x228] sm:$0xff]  ;;  %393 = vmatpush.msrb.mxu2 %v3952_v2  ;;  %354 = vmatpush.msrb.mxu0 %v3960_v25 }
  0x43   :  { %8139 = vst [vmem:[#allocation66_spill] sm:$0xff] %v3936_v10  ;;  %413 = vmatpush.msrb.mxu3 %v3942_v17  ;;  %375 = vmatpush.msrb.mxu1 %v3944_v6  ;;  %v3964_v10 = vld [vmem:[#allocation2 + $0x3f0] sm:$0xff] }
  0x44   :  { %8140 = vst [vmem:[#allocation67_spill] sm:$0xff] %v3940_v5  ;;  %v3978_v5 = vld [vmem:[#allocation2 + $0x28] sm:$0xff]  ;;  %394 = vmatpush.msrb.mxu2 %v3966_v8  ;;  %355 = vmatpush.msrb.mxu0 %v3972_v21 }
  0x45   :  { %8141 = vst [vmem:[#allocation68_spill] sm:$0xff] %v3942_v17  ;;  %414 = vmatpush.msrb.mxu3 %v3954_v13  ;;  %376 = vmatpush.msrb.mxu1 %v3956_v3  ;;  %v3984_v17 = vld [vmem:[#allocation2] sm:$0xff] }
  0x46   :  { %8142 = vst [vmem:[#allocation69_spill] sm:$0xff] %v3944_v6  ;;  %v3980_v6 = vld [vmem:[#allocation2 + $0x208] sm:$0xff]  ;;  %395 = vmatpush.msrb.mxu2 %v3978_v5  ;;  %356 = vmatpush.msrb.mxu0 %v3984_v17 }
  0x47   :  { %8143 = vst [vmem:[#allocation70_spill] sm:$0xff] %v3948_v29  ;;  %v3976_v29 = vld [vmem:[#allocation2 + $0x3d0] sm:$0xff]  ;;  %441 = vmatpush.msra.mxu1 %v3964_v10  ;;  %415 = vmatpush.msrb.mxu3 %v3968_v0 }
  0x48   :  { %8144 = vst [vmem:[#allocation71_spill] sm:$0xff] %v3952_v2  ;;  %v3989_v2 = vld [vmem:[#allocation2 + $0x3b0] sm:$0xff]  ;;  %377 = vmatmul.f32.vlgmr.msrb.gmra.mxu1 %v8111_v49 }
  0x49   :  { %8145 = vst [vmem:[#allocation72_spill] sm:$0xff] %v3956_v3  ;;  %442 = vmatpush.msra.mxu1 %v3976_v29  ;;  %v3994_v3 = vld [vmem:[#allocation2 + $0x8] sm:$0xff]  ;;  %416 = vmatpush.msrb.mxu3 %v3980_v6 }
  0x4a   :  { %8146 = vst [vmem:[#allocation73_spill] sm:$0xff] %v3960_v25  ;;  %v3987_v25 = vld [vmem:[#allocation2 + $0x3f8] sm:$0xff]  ;;  %396 = vmatpush.msrb.mxu2 %v3994_v3  ;;  %417 = vmatmul.f32.vlgmr.msrb.gmra.mxu3 %v8111_v49 }
  0x4b   :  { %8147 = vst [vmem:[#allocation74_spill] sm:$0xff] %v3964_v10  ;;  %v3997_v10 = vld [vmem:[#allocation2 + $0x3d8] sm:$0xff]  ;;  %481 = vmatpush.msra.mxu3 %v3987_v25  ;;  %443 = vmatpush.msra.mxu1 %v3989_v2 }
  0x4c   :  { %8148 = vst [vmem:[#allocation75_spill] sm:$0xff] %v3966_v8  ;;  %v3999_v8 = vld [vmem:[#allocation2 + $0x390] sm:$0xff] }
  0x4d   :  { %8149 = vst [vmem:[#allocation76_spill] sm:$0xff] %v3968_v0  ;;  %v4004_v0 = vld [vmem:[#allocation2 + $0x1f0] sm:$0xff]  ;;  %482 = vmatpush.msra.mxu3 %v3997_v10  ;;  %444 = vmatpush.msra.mxu1 %v3999_v8 }
  0x4e   :  { %8150 = vst [vmem:[#allocation77_spill] sm:$0xff] %v3972_v21  ;;  %v4006_v21 = vld [vmem:[#allocation2 + $0x3b8] sm:$0xff]  ;;  %421 = vmatpush.msra.mxu0 %v4004_v0 }
  0x4f   :  { %8151 = vst [vmem:[#allocation78_spill] sm:$0xff] %v3976_v29  ;;  %v4008_v29 = vld [vmem:[#allocation2 + $0x370] sm:$0xff]  ;;  %483 = vmatpush.msra.mxu3 %v4006_v21 }
  0x50   :  { %8152 = vst [vmem:[#allocation79_spill] sm:$0xff] %v3978_v5  ;;  %v4014_v5 = vld [vmem:[#allocation2 + $0x1f8] sm:$0xff]  ;;  %445 = vmatpush.msra.mxu1 %v4008_v29 }
  0x51   :  { %8153 = vst [vmem:[#allocation80_spill] sm:$0xff] %v3984_v17  ;;  %v4016_v17 = vld [vmem:[#allocation2 + $0x398] sm:$0xff]  ;;  %461 = vmatpush.msra.mxu2 %v4014_v5 }
  0x52   :  { %8154 = vst [vmem:[#allocation81_spill] sm:$0xff] %v3987_v25  ;;  %v4018_v25 = vld [vmem:[#allocation2 + $0x350] sm:$0xff]  ;;  %484 = vmatpush.msra.mxu3 %v4016_v17 }
  0x53   :  { %8155 = vst [vmem:[#allocation82_spill] sm:$0xff] %v3989_v2  ;;  %v4026_v2 = vld [vmem:[#allocation2 + $0x330] sm:$0xff]  ;;  %446 = vmatpush.msra.mxu1 %v4018_v25 }
  0x54   :  { %8156 = vst [vmem:[#allocation83_spill] sm:$0xff] %v3994_v3  ;;  %v4024_v3 = vld [vmem:[#allocation2 + $0x378] sm:$0xff] }
  0x55   :  { %8157 = vst [vmem:[#allocation84_spill] sm:$0xff] %v3997_v10  ;;  %v4033_v10 = vld [vmem:[#allocation2 + $0x310] sm:$0xff]  ;;  %485 = vmatpush.msra.mxu3 %v4024_v3  ;;  %447 = vmatpush.msra.mxu1 %v4026_v2 }
  0x56   :  { %8158 = vst [vmem:[#allocation85_spill] sm:$0xff] %v3999_v8  ;;  %v4031_v8 = vld [vmem:[#allocation2 + $0x358] sm:$0xff] }
  0x57   :  { %8159 = vst [vmem:[#allocation86_spill] sm:$0xff] %v4004_v0  ;;  %v4037_v0 = vld [vmem:[#allocation2 + $0x338] sm:$0xff]  ;;  %486 = vmatpush.msra.mxu3 %v4031_v8  ;;  %448 = vmatpush.msra.mxu1 %v4033_v10 }
  0x58   :  { %8160 = vst [vmem:[#allocation87_spill] sm:$0xff] %v4008_v29  ;;  %v4039_v29 = vld [vmem:[#allocation2 + $0x2f0] sm:$0xff] }
  0x59   :  { %8161 = vst [vmem:[#allocation88_spill] sm:$0xff] %v4014_v5  ;;  %v4043_v5 = vld [vmem:[#allocation2 + $0x318] sm:$0xff]  ;;  %487 = vmatpush.msra.mxu3 %v4037_v0  ;;  %449 = vmatpush.msra.mxu1 %v4039_v29 }
  0x5a   :  { %8162 = vst [vmem:[#allocation89_spill] sm:$0xff] %v4016_v17  ;;  %v4045_v17 = vld [vmem:[#allocation2 + $0x2d0] sm:$0xff] }
  0x5b   :  { %8163 = vst [vmem:[#allocation90_spill] sm:$0xff] %v4018_v25  ;;  %v4049_v25 = vld [vmem:[#allocation2 + $0x2f8] sm:$0xff]  ;;  %488 = vmatpush.msra.mxu3 %v4043_v5  ;;  %450 = vmatpush.msra.mxu1 %v4045_v17 }
  0x5c   :  { %8164 = vst [vmem:[#allocation91_spill] sm:$0xff] %v4024_v3  ;;  %v4051_v3 = vld [vmem:[#allocation2 + $0x2b0] sm:$0xff] }
  0x5d   :  { %8165 = vst [vmem:[#allocation92_spill] sm:$0xff] %v4026_v2  ;;  %v4055_v2 = vld [vmem:[#allocation2 + $0x2d8] sm:$0xff]  ;;  %489 = vmatpush.msra.mxu3 %v4049_v25  ;;  %451 = vmatpush.msra.mxu1 %v4051_v3 }
  0x5e   :  { %8166 = vst [vmem:[#allocation93_spill] sm:$0xff] %v4031_v8  ;;  %v4057_v8 = vld [vmem:[#allocation2 + $0x290] sm:$0xff] }
  0x5f   :  { %8167 = vst [vmem:[#allocation94_spill] sm:$0xff] %v4033_v10  ;;  %v4061_v10 = vld [vmem:[#allocation2 + $0x2b8] sm:$0xff]  ;;  %490 = vmatpush.msra.mxu3 %v4055_v2  ;;  %452 = vmatpush.msra.mxu1 %v4057_v8 }
  0x60   :  { %8168 = vst [vmem:[#allocation95_spill] sm:$0xff] %v4037_v0  ;;  %v4063_v0 = vld [vmem:[#allocation2 + $0x270] sm:$0xff] }
  0x61   :  { %8169 = vst [vmem:[#allocation96_spill] sm:$0xff] %v4039_v29  ;;  %v4067_v29 = vld [vmem:[#allocation2 + $0x298] sm:$0xff]  ;;  %491 = vmatpush.msra.mxu3 %v4061_v10  ;;  %453 = vmatpush.msra.mxu1 %v4063_v0 }
  0x62   :  { %8170 = vst [vmem:[#allocation97_spill] sm:$0xff] %v4043_v5  ;;  %v4069_v5 = vld [vmem:[#allocation2 + $0x250] sm:$0xff] }
  0x63   :  { %8171 = vst [vmem:[#allocation98_spill] sm:$0xff] %v4045_v17  ;;  %v4073_v17 = vld [vmem:[#allocation2 + $0x278] sm:$0xff]  ;;  %492 = vmatpush.msra.mxu3 %v4067_v29  ;;  %454 = vmatpush.msra.mxu1 %v4069_v5 }
  0x64   :  { %8172 = vst [vmem:[#allocation99_spill] sm:$0xff] %v4049_v25  ;;  %v4075_v25 = vld [vmem:[#allocation2 + $0x230] sm:$0xff] }
  0x65   :  { %8173 = vst [vmem:[#allocation100_spill] sm:$0xff] %v4051_v3  ;;  %v4079_v3 = vld [vmem:[#allocation2 + $0x258] sm:$0xff]  ;;  %493 = vmatpush.msra.mxu3 %v4073_v17  ;;  %455 = vmatpush.msra.mxu1 %v4075_v25 }
  0x66   :  { %8174 = vst [vmem:[#allocation101_spill] sm:$0xff] %v4055_v2  ;;  %v4081_v2 = vld [vmem:[#allocation2 + $0x210] sm:$0xff] }
  0x67   :  { %8175 = vst [vmem:[#allocation102_spill] sm:$0xff] %v4057_v8  ;;  %v4085_v8 = vld [vmem:[#allocation2 + $0x238] sm:$0xff]  ;;  %494 = vmatpush.msra.mxu3 %v4079_v3  ;;  %456 = vmatpush.msra.mxu1 %v4081_v2 }
  0x68   :  { %8176 = vst [vmem:[#allocation103_spill] sm:$0xff] %v4063_v0  ;;  %v4089_v0 = vld [vmem:[#allocation2 + $0x218] sm:$0xff]  ;;  %457 = vmatmul.f32.vlgmr.msra.gmra.mxu1 %v8111_v49 }
  0x69   :  { %544 = vmatpush.msrb.mxu1 %v3417_v1  ;;  %495 = vmatpush.msra.mxu3 %v4085_v8  ;;  %v4123_v1 = vld [vmem:[#allocation2 + $0x1d0] sm:$0xff] }
  0x6a   :  { %422 = vmatpush.msra.mxu0 %v4123_v1 }
  0x6b   :  { %545 = vmatpush.msrb.mxu1 %v3434_v4  ;;  %496 = vmatpush.msra.mxu3 %v4089_v0  ;;  %v4125_v4 = vld [vmem:[#allocation2 + $0x1d8] sm:$0xff] }
  0x6c   :  { %497 = vmatmul.f32.vlgmr.msra.gmra.mxu3 %v8111_v49  ;;  %462 = vmatpush.msra.mxu2 %v4125_v4  ;;  %v8183_v49 = vld [vmem:[#allocation65_spill] sm:$0xff] }
  0x6d   :  { %584 = vmatpush.msrb.mxu3 %v3462_v9  ;;  %546 = vmatpush.msrb.mxu1 %v3450_v7  ;;  %v4129_v7 = vld [vmem:[#allocation2 + $0x1b0] sm:$0xff]  ;;  %v4131_v9 = vld [vmem:[#allocation2 + $0x1b8] sm:$0xff] }
  0x6e   :  { %423 = vmatpush.msra.mxu0 %v4129_v7  ;;  %463 = vmatpush.msra.mxu2 %v4131_v9 }
  0x6f   :  { %585 = vmatpush.msrb.mxu3 %v3479_v12  ;;  %547 = vmatpush.msrb.mxu1 %v3474_v11  ;;  %v4137_v11 = vld [vmem:[#allocation2 + $0x190] sm:$0xff]  ;;  %v4139_v12 = vld [vmem:[#allocation2 + $0x198] sm:$0xff] }
  0x70   :  { %424 = vmatpush.msra.mxu0 %v4137_v11  ;;  %464 = vmatpush.msra.mxu2 %v4139_v12 }
  0x71   :  { %586 = vmatpush.msrb.mxu3 %v3491_v14  ;;  %548 = vmatpush.msrb.mxu1 %v3503_v16  ;;  %v4145_v14 = vld [vmem:[#allocation2 + $0x170] sm:$0xff]  ;;  %v4147_v16 = vld [vmem:[#allocation2 + $0x178] sm:$0xff] }
  0x72   :  { %425 = vmatpush.msra.mxu0 %v4145_v14  ;;  %465 = vmatpush.msra.mxu2 %v4147_v16 }
  0x73   :  { %587 = vmatpush.msrb.mxu3 %v3515_v18  ;;  %549 = vmatpush.msrb.mxu1 %v3527_v20  ;;  %v4153_v18 = vld [vmem:[#allocation2 + $0x150] sm:$0xff]  ;;  %v4155_v20 = vld [vmem:[#allocation2 + $0x158] sm:$0xff] }
  0x74   :  { %426 = vmatpush.msra.mxu0 %v4153_v18  ;;  %466 = vmatpush.msra.mxu2 %v4155_v20 }
  0x75   :  { %588 = vmatpush.msrb.mxu3 %v3539_v22  ;;  %550 = vmatpush.msrb.mxu1 %v3551_v24  ;;  %v4161_v22 = vld [vmem:[#allocation2 + $0x130] sm:$0xff]  ;;  %v4163_v24 = vld [vmem:[#allocation2 + $0x138] sm:$0xff] }
  0x76   :  { %427 = vmatpush.msra.mxu0 %v4161_v22  ;;  %467 = vmatpush.msra.mxu2 %v4163_v24 }
  0x77   :  { %589 = vmatpush.msrb.mxu3 %v3563_v26  ;;  %551 = vmatpush.msrb.mxu1 %v3575_v28  ;;  %v4169_v26 = vld [vmem:[#allocation2 + $0x110] sm:$0xff]  ;;  %v4171_v28 = vld [vmem:[#allocation2 + $0x118] sm:$0xff] }
  0x78   :  { %428 = vmatpush.msra.mxu0 %v4169_v26  ;;  %468 = vmatpush.msra.mxu2 %v4171_v28 }
  0x79   :  { %590 = vmatpush.msrb.mxu3 %v3587_v30  ;;  %552 = vmatpush.msrb.mxu1 %v3599_v32  ;;  %v4177_v30 = vld [vmem:[#allocation2 + $0xf0] sm:$0xff]  ;;  %v4179_v32 = vld [vmem:[#allocation2 + $0xf8] sm:$0xff] }
  0x7a   :  { %429 = vmatpush.msra.mxu0 %v4177_v30  ;;  %469 = vmatpush.msra.mxu2 %v4179_v32 }
  0x7b   :  { %591 = vmatpush.msrb.mxu3 %v3611_v34  ;;  %553 = vmatpush.msrb.mxu1 %v3623_v36  ;;  %v4185_v34 = vld [vmem:[#allocation2 + $0xd0] sm:$0xff]  ;;  %v4187_v36 = vld [vmem:[#allocation2 + $0xd8] sm:$0xff] }
  0x7c   :  { %430 = vmatpush.msra.mxu0 %v4185_v34  ;;  %470 = vmatpush.msra.mxu2 %v4187_v36 }
  0x7d   :  { %592 = vmatpush.msrb.mxu3 %v3635_v38  ;;  %554 = vmatpush.msrb.mxu1 %v3647_v40  ;;  %v4203_v38 = vld [vmem:[#allocation2 + $0x98] sm:$0xff] }
  0x7e   :  { %v4219_v40 = vld [vmem:[#allocation2 + $0x58] sm:$0xff] }
  0x7f   :  { %593 = vmatpush.msrb.mxu3 %v3659_v42  ;;  %555 = vmatpush.msrb.mxu1 %v3671_v44  ;;  %v4227_v42 = vld [vmem:[#allocation2 + $0x38] sm:$0xff]  ;;  %v4233_v44 = vld [vmem:[#allocation2 + $0x10] sm:$0xff] }
  0x81   :  { %594 = vmatpush.msrb.mxu3 %v3683_v46  ;;  %556 = vmatpush.msrb.mxu1 %v3695_v48  ;;  %v8181_v46 = vld [vmem:[#allocation61_spill] sm:$0xff]  ;;  %v8182_v48 = vld [vmem:[#allocation64_spill] sm:$0xff] }
  0x83   :  { %595 = vmatpush.msrb.mxu3 %v3707_v50  ;;  %557 = vmatpush.msrb.mxu1 %v3719_v52  ;;  %v40_v50 = vld [vmem:[%s7567_s0 + $0x8] sm:$0xff]  ;;  %v8184_v52 = vld [vmem:[#allocation68_spill] sm:$0xff] }
  0x85   :  { %596 = vmatpush.msrb.mxu3 %v3731_v54  ;;  %558 = vmatpush.msrb.mxu1 %v3743_v56 }
  0x87   :  { %597 = vmatpush.msrb.mxu3 %v3755_v58  ;;  %559 = vmatpush.msrb.mxu1 %v3767_v60  ;;  %v8187_v60 = vld [vmem:[#allocation76_spill] sm:$0xff] }
  0x89   :  { %598 = vmatpush.msrb.mxu3 %v3783_v62  ;;  %646 = vmatpush.msra.mxu1 %v3785_v63 }
  0x8b   :  { %599 = vmatpush.msrb.mxu3 %v3794_v59  ;;  %647 = vmatpush.msra.mxu1 %v3796_v57  ;;  %v8186_v57 = vld [vmem:[#allocation72_spill] sm:$0xff] }
  0x8d   :  { %686 = vmatpush.msra.mxu3 %v3800_v53  ;;  %648 = vmatpush.msra.mxu1 %v3802_v61  ;;  %v8185_v53 = vld [vmem:[#allocation69_spill] sm:$0xff]  ;;  %v41_v61 = vld [vmem:[%s7567_s0 + $0x10] sm:$0xff] }
  0x8f   :  { %687 = vmatpush.msra.mxu3 %v3811_v47  ;;  %649 = vmatpush.msra.mxu1 %v3813_v45  ;;  %v8180_v45 = vld [vmem:[#allocation60_spill] sm:$0xff]  ;;  %v39_v47 = vld [vmem:[%s7567_s0] sm:$0xff] }
  0x91   :  { %688 = vmatpush.msra.mxu3 %v3822_v39  ;;  %650 = vmatpush.msra.mxu1 %v3824_v37  ;;  %v4193_v37 = vld [vmem:[#allocation2 + $0xb0] sm:$0xff]  ;;  %v4211_v39 = vld [vmem:[#allocation2 + $0x78] sm:$0xff] }
  0x92   :  { %431 = vmatpush.msra.mxu0 %v4193_v37 }
  0x93   :  { %689 = vmatpush.msra.mxu3 %v3834_v33  ;;  %651 = vmatpush.msra.mxu1 %v3836_v31  ;;  %v4195_v33 = vld [vmem:[#allocation2 + $0xb8] sm:$0xff]  ;;  %v4201_v31 = vld [vmem:[#allocation2 + $0x90] sm:$0xff] }
  0x94   :  { %471 = vmatpush.msra.mxu2 %v4195_v33  ;;  %432 = vmatpush.msra.mxu0 %v4201_v31 }
  0x95   :  { %690 = vmatpush.msra.mxu3 %v3846_v51  ;;  %652 = vmatpush.msra.mxu1 %v3848_v27  ;;  %v4209_v27 = vld [vmem:[#allocation2 + $0x70] sm:$0xff] }
  0x96   :  { %472 = vmatpush.msra.mxu2 %v4203_v38  ;;  %433 = vmatpush.msra.mxu0 %v4209_v27 }
  0x97   :  { %691 = vmatpush.msra.mxu3 %v3858_v41  ;;  %653 = vmatpush.msra.mxu1 %v3860_v23  ;;  %v4217_v23 = vld [vmem:[#allocation2 + $0x50] sm:$0xff] }
  0x98   :  { %473 = vmatpush.msra.mxu2 %v4211_v39  ;;  %434 = vmatpush.msra.mxu0 %v4217_v23  ;;  %v4225_v41 = vld [vmem:[#allocation2 + $0x30] sm:$0xff] }
  0x99   :  { %692 = vmatpush.msra.mxu3 %v3870_v55  ;;  %654 = vmatpush.msra.mxu1 %v3872_v19  ;;  %v8177_v19 = vld [vmem:[#allocation53_spill] sm:$0xff] }
  0x9a   :  { %474 = vmatpush.msra.mxu2 %v4219_v40  ;;  %435 = vmatpush.msra.mxu0 %v4225_v41 }
  0x9b   :  { %693 = vmatpush.msra.mxu3 %v3882_v43  ;;  %655 = vmatpush.msra.mxu1 %v3884_v15  ;;  %v8178_v15 = vld [vmem:[#allocation56_spill] sm:$0xff]  ;;  %v8179_v43 = vld [vmem:[#allocation57_spill] sm:$0xff] }
  0x9c   :  { %475 = vmatpush.msra.mxu2 %v4227_v42  ;;  %436 = vmatpush.msra.mxu0 %v4233_v44 }
  0x9d   :  { %694 = vmatpush.msra.mxu3 %v3894_v35  ;;  %656 = vmatpush.msra.mxu1 %v8177_v19  ;;  %v4235_v35 = vld [vmem:[#allocation2 + $0x18] sm:$0xff] }
  0x9e   :  { %476 = vmatpush.msra.mxu2 %v4235_v35 }
  0x9f   :  { %695 = vmatpush.msra.mxu3 %v8178_v15  ;;  %657 = vmatpush.msra.mxu1 %v8179_v43 }
  0xa1   :  { %696 = vmatpush.msra.mxu3 %v8180_v45  ;;  %658 = vmatpush.msra.mxu1 %v8181_v46 }
  0xa2   :  { %v124_v51 = vpop.f32.mrf.mxu0 }
  0xa3   :  { %697 = vmatpush.msra.mxu3 %v8182_v48  ;;  %659 = vmatpush.msra.mxu1 %v8183_v49  ;;  %v187_v54 = vadd.f32 %v124_v51, %v39_v47  ;;  %v144_v55 = vpop.f32.mrf.mxu1 }
  0xa4   :  { %v188_v56 = vadd.f32 %v144_v55, %v40_v50 }
  0xa5   :  { %698 = vmatpush.msra.mxu3 %v8184_v52  ;;  %660 = vmatpush.msra.mxu1 %v8185_v53  ;;  %v191_v58 = vmul.f32 0.5, %v187_v54 }
  0xa6   :  { %v195_v59 = vmul.f32 0.5, %v188_v56 }
  0xa7   :  { %699 = vmatpush.msra.mxu3 %v3954_v13  ;;  %661 = vmatpush.msra.mxu1 %v8186_v57  ;;  %2593 = vtanh.f32 %v191_v58  ;;  %v42_v13 = vld [vmem:[%s7567_s0 + $0x18] sm:$0xff] }
  0xa8   :  { %2595 = vtanh.f32 %v195_v59  ;;  %v8188_v59 = vld [vmem:[#allocation5_spill] sm:$0xff] }
  0xa9   :  { %700 = vmatpush.msra.mxu3 %v8187_v60  ;;  %v164_v62 = vpop.f32.mrf.mxu2  ;;  %v8189_v60 = vld [vmem:[#allocation6_spill] sm:$0xff] }
  0xaa   :  { %v189_v63 = vadd.f32 %v164_v62, %v41_v61  ;;  %v8190_v61 = vld [vmem:[#allocation7_spill] sm:$0xff]  ;;  %v8191_v62 = vld [vmem:[#allocation74_spill] sm:$0xff] }
  0xab   :  { %701 = vmatpush.msra.mxu3 %v3980_v6 }
  0xac   :  { %2597 = vtanh.f32 %v189_v63  ;;  %v8192_v63 = vld [vmem:[#allocation8_spill] sm:$0xff] }
  0xad   :  { %v2594_v19 = vpop.eup %2593  ;;  %v184_v15 = vpop.f32.mrf.mxu3 }
  0xae   :  { %v2596_v43 = vpop.eup %2595  ;;  %v193_v45 = vmul.f32 0.5, %v2594_v19  ;;  %v190_v46 = vadd.f32 %v184_v15, %v42_v13  ;;  %v8193_v13 = vld [vmem:[#allocation81_spill] sm:$0xff]  ;;  %v8195_v15 = vld [vmem:[#allocation78_spill] sm:$0xff] }
  0xaf   :  { %v197_v47 = vmul.f32 0.5, %v2596_v43  ;;  %v8194_v19 = vld [vmem:[#allocation9_spill] sm:$0xff]  ;;  %v8196_v43 = vld [vmem:[#allocation10_spill] sm:$0xff] }
  0xb0   :  { %v194_v48 = vadd.f32 0.5, %v193_v45  ;;  %v200_v49 = vmul.f32 0.5, %v190_v46  ;;  %v8197_v45 = vld [vmem:[#allocation84_spill] sm:$0xff]  ;;  %v8198_v46 = vld [vmem:[#allocation11_spill] sm:$0xff] }
  0xb1   :  { %v198_v50 = vadd.f32 0.5, %v197_v47  ;;  %v8199_v47 = vld [vmem:[#allocation82_spill] sm:$0xff] }
  0xb2   :  { %v2598_v51 = vpop.eup %2597  ;;  %2599 = vtanh.f32 %v200_v49  ;;  %v8201_v49 = vld [vmem:[#allocation13_spill] sm:$0xff] }
  0xb3   :  { %v204_v52 = vmul.f32 0.0, %v198_v50  ;;  %v205_v6 = vmul.f32 %v2598_v51, %v194_v48  ;;  %v8200_v48 = vld [vmem:[#allocation12_spill] sm:$0xff]  ;;  %v8202_v50 = vld [vmem:[#allocation14_spill] sm:$0xff]  ;;  %v8203_v51 = vld [vmem:[#allocation15_spill] sm:$0xff] }
  0xb5   :  { %v4261_v53 = vadd.f32 %v205_v6, %v204_v52  ;;  %v8204_v52 = vld [vmem:[#allocation85_spill] sm:$0xff]  ;;  %v8205_v6 = vld [vmem:[#allocation16_spill] sm:$0xff] }
  0xb7   :  { %2601 = vtanh.f32 %v4261_v53 }
  0xb8   :  { %v2600_v54 = vpop.eup %2599 }
  0xb9   :  { %v202_v55 = vmul.f32 0.5, %v2600_v54  ;;  %v8206_v54 = vld [vmem:[#allocation89_spill] sm:$0xff] }
  0xbb   :  { %v203_v56 = vadd.f32 0.5, %v202_v55  ;;  %v8207_v55 = vld [vmem:[#allocation17_spill] sm:$0xff] }
  0xbd   :  { %v2602_v57 = vpop.eup %2601 }
  0xbe   :  { %v4264_v58 = vmul.f32 %v2602_v57, %v203_v56  ;;  %v8208_v56 = vld [vmem:[#allocation87_spill] sm:$0xff]  ;;  %v8209_v57 = vld [vmem:[#allocation18_spill] sm:$0xff] }
  0xc0   :  { %357 = vmatmul.f32.vlgmr.msrb.gmra.mxu0 %v4264_v58  ;;  %397 = vmatmul.f32.vlgmr.msrb.gmra.mxu2 %v4264_v58 }
  0xc1   :  { %524 = vmatpush.msrb.mxu0 %v8188_v59  ;;  %560 = vmatmul.f32.vlgmr.msrb.gmra.mxu1 %v4264_v58  ;;  %v8210_v59 = vld [vmem:[#allocation91_spill] sm:$0xff] }
  0xc2   :  { %564 = vmatpush.msrb.mxu2 %v8189_v60  ;;  %600 = vmatmul.f32.vlgmr.msrb.gmra.mxu3 %v4264_v58  ;;  %v8211_v60 = vld [vmem:[#allocation19_spill] sm:$0xff] }
  0xc3   :  { %525 = vmatpush.msrb.mxu0 %v8190_v61  ;;  %726 = vmatpush.msrb.mxu1 %v8191_v62  ;;  %v8212_v61 = vld [vmem:[#allocation90_spill] sm:$0xff]  ;;  %v8214_v62 = vld [vmem:[#allocation93_spill] sm:$0xff] }
  0xc4   :  { %565 = vmatpush.msrb.mxu2 %v8192_v63  ;;  %766 = vmatpush.msrb.mxu3 %v8193_v13  ;;  %v8215_v63 = vld [vmem:[#allocation21_spill] sm:$0xff]  ;;  %v8216_v13 = vld [vmem:[#allocation92_spill] sm:$0xff] }
  0xc5   :  { %526 = vmatpush.msrb.mxu0 %v8194_v19  ;;  %727 = vmatpush.msrb.mxu1 %v8195_v15  ;;  %v8217_v19 = vld [vmem:[#allocation22_spill] sm:$0xff]  ;;  %v8218_v15 = vld [vmem:[#allocation95_spill] sm:$0xff] }
  0xc6   :  { %566 = vmatpush.msrb.mxu2 %v8196_v43  ;;  %767 = vmatpush.msrb.mxu3 %v8197_v45  ;;  %v8219_v43 = vld [vmem:[#allocation23_spill] sm:$0xff]  ;;  %v8220_v45 = vld [vmem:[#allocation94_spill] sm:$0xff] }
  0xc7   :  { %527 = vmatpush.msrb.mxu0 %v8198_v46  ;;  %728 = vmatpush.msrb.mxu1 %v8199_v47  ;;  %v8221_v46 = vld [vmem:[#allocation24_spill] sm:$0xff]  ;;  %v8222_v47 = vld [vmem:[#allocation97_spill] sm:$0xff] }
  0xc8   :  { %567 = vmatpush.msrb.mxu2 %v8200_v48  ;;  %437 = vmatmul.f32.vlgmr.msra.gmra.mxu0 %v4264_v58  ;;  %v8223_v48 = vld [vmem:[#allocation25_spill] sm:$0xff] }
  0xc9   :  { %477 = vmatmul.f32.vlgmr.msra.gmra.mxu2 %v4264_v58  ;;  %528 = vmatpush.msrb.mxu0 %v8201_v49  ;;  %v8224_v49 = vld [vmem:[#allocation96_spill] sm:$0xff] }
  0xca   :  { %568 = vmatpush.msrb.mxu2 %v8202_v50  ;;  %768 = vmatpush.msrb.mxu3 %v4006_v21  ;;  %v8213_v21 = vld [vmem:[#allocation20_spill] sm:$0xff]  ;;  %v8225_v50 = vld [vmem:[#allocation26_spill] sm:$0xff] }
  0xcb   :  { %529 = vmatpush.msrb.mxu0 %v8203_v51  ;;  %729 = vmatpush.msrb.mxu1 %v8204_v52  ;;  %v8226_v51 = vld [vmem:[#allocation99_spill] sm:$0xff] }
  0xcc   :  { %569 = vmatpush.msrb.mxu2 %v8205_v6  ;;  %769 = vmatpush.msrb.mxu3 %v8206_v54  ;;  %v8227_v52 = vld [vmem:[#allocation27_spill] sm:$0xff]  ;;  %v8228_v6 = vld [vmem:[#allocation98_spill] sm:$0xff]  ;;  %v8229_v54 = vld [vmem:[#allocation28_spill] sm:$0xff] }
  0xcd   :  { %530 = vmatpush.msrb.mxu0 %v8207_v55  ;;  %730 = vmatpush.msrb.mxu1 %v8208_v56  ;;  %v8230_v55 = vld [vmem:[#allocation101_spill] sm:$0xff] }
  0xce   :  { %570 = vmatpush.msrb.mxu2 %v8209_v57  ;;  %770 = vmatpush.msrb.mxu3 %v8210_v59  ;;  %v8231_v56 = vld [vmem:[#allocation29_spill] sm:$0xff]  ;;  %v8232_v57 = vld [vmem:[#allocation100_spill] sm:$0xff]  ;;  %v8233_v59 = vld [vmem:[#allocation30_spill] sm:$0xff] }
  0xcf   :  { %531 = vmatpush.msrb.mxu0 %v8211_v60  ;;  %731 = vmatpush.msrb.mxu1 %v8212_v61  ;;  %v8234_v60 = vld [vmem:[#allocation31_spill] sm:$0xff]  ;;  %v8235_v61 = vld [vmem:[#allocation102_spill] sm:$0xff] }
  0xd0   :  { %571 = vmatpush.msrb.mxu2 %v8213_v21  ;;  %771 = vmatpush.msrb.mxu3 %v8214_v62  ;;  %v8236_v21 = vld [vmem:[#allocation32_spill] sm:$0xff]  ;;  %v8237_v62 = vld [vmem:[#allocation33_spill] sm:$0xff] }
  0xd1   :  { %532 = vmatpush.msrb.mxu0 %v8215_v63  ;;  %732 = vmatpush.msrb.mxu1 %v8216_v13  ;;  %v8238_v63 = vld [vmem:[#allocation103_spill] sm:$0xff]  ;;  %v8239_v13 = vld [vmem:[#allocation34_spill] sm:$0xff] }
  0xd2   :  { %572 = vmatpush.msrb.mxu2 %v8217_v19  ;;  %772 = vmatpush.msrb.mxu3 %v8218_v15  ;;  %v8240_v19 = vld [vmem:[#allocation35_spill] sm:$0xff]  ;;  %v8242_v15 = vld [vmem:[#allocation37_spill] sm:$0xff] }
  0xd3   :  { %533 = vmatpush.msrb.mxu0 %v8219_v43  ;;  %733 = vmatpush.msrb.mxu1 %v8220_v45  ;;  %v8244_v43 = vld [vmem:[#allocation39_spill] sm:$0xff]  ;;  %v8247_v45 = vld [vmem:[#allocation42_spill] sm:$0xff] }
  0xd4   :  { %573 = vmatpush.msrb.mxu2 %v8221_v46  ;;  %773 = vmatpush.msrb.mxu3 %v8222_v47  ;;  %v8249_v46 = vld [vmem:[#allocation44_spill] sm:$0xff]  ;;  %v8251_v47 = vld [vmem:[#allocation46_spill] sm:$0xff] }
  0xd5   :  { %534 = vmatpush.msrb.mxu0 %v8223_v48  ;;  %734 = vmatpush.msrb.mxu1 %v8224_v49  ;;  %v8253_v48 = vld [vmem:[#allocation48_spill] sm:$0xff]  ;;  %v8255_v49 = vld [vmem:[#allocation50_spill] sm:$0xff] }
  0xd6   :  { %574 = vmatpush.msrb.mxu2 %v8225_v50  ;;  %774 = vmatpush.msrb.mxu3 %v8226_v51  ;;  %v8257_v50 = vld [vmem:[#allocation52_spill] sm:$0xff]  ;;  %v8259_v51 = vld [vmem:[#allocation55_spill] sm:$0xff] }
  0xd7   :  { %535 = vmatpush.msrb.mxu0 %v8227_v52  ;;  %735 = vmatpush.msrb.mxu1 %v8228_v6  ;;  %v8260_v52 = vld [vmem:[#allocation58_spill] sm:$0xff]  ;;  %v8261_v6 = vld [vmem:[#allocation59_spill] sm:$0xff] }
  0xd8   :  { %575 = vmatpush.msrb.mxu2 %v8229_v54  ;;  %775 = vmatpush.msrb.mxu3 %v8230_v55  ;;  %v8262_v54 = vld [vmem:[#allocation62_spill] sm:$0xff]  ;;  %v8263_v55 = vld [vmem:[#allocation63_spill] sm:$0xff] }
  0xd9   :  { %536 = vmatpush.msrb.mxu0 %v8231_v56  ;;  %736 = vmatpush.msrb.mxu1 %v8232_v57  ;;  %v8264_v56 = vld [vmem:[#allocation66_spill] sm:$0xff]  ;;  %v8265_v57 = vld [vmem:[#allocation67_spill] sm:$0xff] }
  0xda   :  { %576 = vmatpush.msrb.mxu2 %v8233_v59  ;;  %776 = vmatpush.msrb.mxu3 %v4061_v10  ;;  %v8241_v10 = vld [vmem:[#allocation36_spill] sm:$0xff]  ;;  %v8266_v59 = vld [vmem:[#allocation70_spill] sm:$0xff] }
  0xdb   :  { %537 = vmatpush.msrb.mxu0 %v8234_v60  ;;  %737 = vmatpush.msrb.mxu1 %v8235_v61  ;;  %v8267_v60 = vld [vmem:[#allocation71_spill] sm:$0xff]  ;;  %v8268_v61 = vld [vmem:[#allocation73_spill] sm:$0xff] }
  0xdc   :  { %577 = vmatpush.msrb.mxu2 %v8236_v21  ;;  %777 = vmatpush.msrb.mxu3 %v4067_v29  ;;  %v8243_v29 = vld [vmem:[#allocation38_spill] sm:$0xff]  ;;  %v8269_v21 = vld [vmem:[#allocation75_spill] sm:$0xff] }
  0xdd   :  { %538 = vmatpush.msrb.mxu0 %v8237_v62  ;;  %738 = vmatpush.msrb.mxu1 %v8238_v63  ;;  %v8270_v62 = vld [vmem:[#allocation77_spill] sm:$0xff]  ;;  %v8271_v63 = vld [vmem:[#allocation79_spill] sm:$0xff] }
  0xde   :  { %578 = vmatpush.msrb.mxu2 %v8239_v13  ;;  %778 = vmatpush.msrb.mxu3 %v4073_v17  ;;  %v8245_v17 = vld [vmem:[#allocation40_spill] sm:$0xff] }
  0xdf   :  { %539 = vmatpush.msrb.mxu0 %v8240_v19  ;;  %739 = vmatpush.msrb.mxu1 %v4069_v5  ;;  %v8246_v5 = vld [vmem:[#allocation41_spill] sm:$0xff]  ;;  %v8272_v13 = vld [vmem:[#allocation80_spill] sm:$0xff]  ;;  %v8273_v19 = vld [vmem:[#allocation83_spill] sm:$0xff] }
  0xe0   :  { %579 = vmatpush.msrb.mxu2 %v8241_v10  ;;  %540 = vmatmul.f32.vlgmr.msrb.gmra.mxu0 %v4264_v58  ;;  %v8274_v10 = vld [vmem:[#allocation86_spill] sm:$0xff] }
  0xe1   :  { %580 = vmatmul.f32.vlgmr.msrb.gmra.mxu2 %v4264_v58  ;;  %626 = vmatpush.msra.mxu0 %v8242_v15  ;;  %v8248_v58 = vld [vmem:[#allocation43_spill] sm:$0xff]  ;;  %v8275_v15 = vld [vmem:[#allocation88_spill] sm:$0xff] }
  0xe2   :  { %666 = vmatpush.msra.mxu2 %v8243_v29  ;;  %779 = vmatpush.msrb.mxu3 %v4079_v3  ;;  %v8250_v3 = vld [vmem:[#allocation45_spill] sm:$0xff] }
  0xe3   :  { %627 = vmatpush.msra.mxu0 %v8244_v43  ;;  %740 = vmatpush.msrb.mxu1 %v4075_v25  ;;  %v8252_v25 = vld [vmem:[#allocation47_spill] sm:$0xff]  ;;  %v4411_v43 = vld [vmem:[%s7570_s3 + $0x8] sm:$0xff] }
  0xe4   :  { %667 = vmatpush.msra.mxu2 %v8245_v17  ;;  %780 = vmatpush.msrb.mxu3 %v4085_v8  ;;  %v8254_v8 = vld [vmem:[#allocation49_spill] sm:$0xff] }
  0xe5   :  { %628 = vmatpush.msra.mxu0 %v8246_v5  ;;  %741 = vmatpush.msrb.mxu1 %v4081_v2  ;;  %v8256_v2 = vld [vmem:[#allocation51_spill] sm:$0xff] }
  0xe6   :  { %668 = vmatpush.msra.mxu2 %v8247_v45  ;;  %781 = vmatpush.msrb.mxu3 %v4089_v0  ;;  %v8258_v0 = vld [vmem:[#allocation54_spill] sm:$0xff]  ;;  %v4416_v45 = vld [vmem:[%s7570_s3 + $0x10] sm:$0xff] }
  0xe7   :  { %629 = vmatpush.msra.mxu0 %v8248_v58  ;;  %v418_v58 = vpop.f32.mrf.mxu3 }
  0xe8   :  { %669 = vmatpush.msra.mxu2 %v8249_v46 }
  0xe9   :  { %630 = vmatpush.msra.mxu0 %v8250_v3 }
  0xea   :  { %670 = vmatpush.msra.mxu2 %v8251_v47 }
  0xeb   :  { %631 = vmatpush.msra.mxu0 %v8252_v25 }
  0xec   :  { %671 = vmatpush.msra.mxu2 %v8253_v48 }
  0xed   :  { %632 = vmatpush.msra.mxu0 %v8254_v8 }
  0xee   :  { %672 = vmatpush.msra.mxu2 %v8255_v49 }
  0xef   :  { %633 = vmatpush.msra.mxu0 %v8256_v2  ;;  %v4423_v2 = vld [vmem:[%s7570_s3 + $0x18] sm:$0xff] }
  0xf0   :  { %673 = vmatpush.msra.mxu2 %v8257_v50 }
  0xf1   :  { %634 = vmatpush.msra.mxu0 %v8258_v0 }
  0xf2   :  { %674 = vmatpush.msra.mxu2 %v8259_v51 }
  0xf3   :  { %635 = vmatpush.msra.mxu0 %v8260_v52  ;;  %v498_v52 = vpop.f32.mrf.mxu3 }
  0xf4   :  { %675 = vmatpush.msra.mxu2 %v8261_v6 }
  0xf5   :  { %636 = vmatpush.msra.mxu0 %v8262_v54 }
  0xf6   :  { %676 = vmatpush.msra.mxu2 %v8263_v55 }
  0xf7   :  { %637 = vmatpush.msra.mxu0 %v8264_v56 }
  0xf8   :  { %677 = vmatpush.msra.mxu2 %v8265_v57 }
  0xf9   :  { %638 = vmatpush.msra.mxu0 %v8266_v59 }
  0xfa   :  { %678 = vmatpush.msra.mxu2 %v8267_v60  ;;  %v2561_v60 = vld [vmem:[%s7567_s0 + $0x28] sm:$0xff] }
  0xfb   :  { %639 = vmatpush.msra.mxu0 %v8268_v61 }
  0xfc   :  { %679 = vmatpush.msra.mxu2 %v8269_v21 }
  0xfd   :  { %640 = vmatpush.msra.mxu0 %v8270_v62 }
  0xfe   :  { %680 = vmatpush.msra.mxu2 %v8271_v63 }
  0xff   :  { %641 = vmatpush.msra.mxu0 %v8272_v13 }
 0x100   :  { %681 = vmatpush.msra.mxu2 %v8273_v19 }
 0x101   :  { %706 = vmatpush.msrb.mxu0 %v8274_v10 }
 0x102   :  { %746 = vmatpush.msrb.mxu2 %v8275_v15 }
 0x103   :  { %707 = vmatpush.msrb.mxu0 %v4123_v1  ;;  %v4405_v1 = vld [vmem:[%s7570_s3] sm:$0xff] }
 0x104   :  { %747 = vmatpush.msrb.mxu2 %v4125_v4  ;;  %v378_v4 = vpop.f32.mrf.mxu1 }
 0x105   :  { %708 = vmatpush.msrb.mxu0 %v4129_v7 }
 0x106   :  { %748 = vmatpush.msrb.mxu2 %v4131_v9 }
 0x107   :  { %709 = vmatpush.msrb.mxu0 %v4137_v11 }
 0x108   :  { %749 = vmatpush.msrb.mxu2 %v4139_v12 }
 0x109   :  { %710 = vmatpush.msrb.mxu0 %v4145_v14 }
 0x10a   :  { %750 = vmatpush.msrb.mxu2 %v4147_v16 }
 0x10b   :  { %711 = vmatpush.msrb.mxu0 %v4153_v18 }
 0x10c   :  { %751 = vmatpush.msrb.mxu2 %v4155_v20  ;;  %v458_v48 = vpop.f32.mrf.mxu1 }
 0x10d   :  { %712 = vmatpush.msrb.mxu0 %v4161_v22 }
 0x10e   :  { %752 = vmatpush.msrb.mxu2 %v4163_v24 }
 0x10f   :  { %713 = vmatpush.msrb.mxu0 %v4169_v26 }
 0x110   :  { %753 = vmatpush.msrb.mxu2 %v4171_v28 }
 0x111   :  { %714 = vmatpush.msrb.mxu0 %v4177_v30 }
 0x112   :  { %754 = vmatpush.msrb.mxu2 %v4179_v32 }
 0x113   :  { %715 = vmatpush.msrb.mxu0 %v4185_v34 }
 0x114   :  { %755 = vmatpush.msrb.mxu2 %v4187_v36 }
 0x115   :  { %716 = vmatpush.msrb.mxu0 %v4193_v37 }
 0x116   :  { %756 = vmatpush.msrb.mxu2 %v4195_v33 }
 0x117   :  { %717 = vmatpush.msrb.mxu0 %v4201_v31 }
 0x118   :  { %757 = vmatpush.msrb.mxu2 %v4203_v38 }
 0x119   :  { %718 = vmatpush.msrb.mxu0 %v4209_v27 }
 0x11a   :  { %758 = vmatpush.msrb.mxu2 %v4211_v39 }
 0x11b   :  { %719 = vmatpush.msrb.mxu0 %v4217_v23 }
 0x11c   :  { %759 = vmatpush.msrb.mxu2 %v4219_v40 }
 0x11d   :  { %720 = vmatpush.msrb.mxu0 %v4225_v41 }
 0x11e   :  { %760 = vmatpush.msrb.mxu2 %v4227_v42 }
 0x11f   :  { %721 = vmatpush.msrb.mxu0 %v4233_v44 }
 0x120   :  { %761 = vmatpush.msrb.mxu2 %v4235_v35 }
 0x13d   :  { %v358_v7 = vpop.f32.mrf.mxu0 }
 0x13e   :  { %v359_v9 = vadd.f32 %v358_v7, %v4405_v1  ;;  %v561_v61 = vpop.f32.mrf.mxu1 }
 0x13f   :  { %v605_v63 = vadd.f32 %v2561_v60, %v561_v61 }
 0x140   :  { %v379_v29 = vadd.f32 %v378_v4, %v359_v9  ;;  %v2560_v9 = vld [vmem:[%s7567_s0 + $0x20] sm:$0xff] }
 0x141   :  { %v612_v4 = vmul.f32 0.5, %v605_v63 }
 0x142   :  { %v501_v17 = vmul.f32 0.5, %v379_v29 }
 0x143   :  { %v398_v5 = vpop.f32.mrf.mxu2 }
 0x144   :  { %v399_v46 = vadd.f32 %v398_v5, %v4411_v43  ;;  %2603 = vtanh.f32 %v501_v17 }
 0x145   :  { %v438_v3 = vpop.f32.mrf.mxu0 }
 0x146   :  { %v419_v47 = vadd.f32 %v418_v58, %v399_v46  ;;  %v439_v25 = vadd.f32 %v438_v3, %v4416_v45  ;;  %v2563_v46 = vld [vmem:[%s7567_s0 + $0x38] sm:$0xff]  ;;  %v601_v3 = vpop.f32.mrf.mxu3 }
 0x148   :  { %v505_v8 = vmul.f32 0.5, %v419_v47  ;;  %v459_v49 = vadd.f32 %v458_v48, %v439_v25  ;;  %v607_v48 = vadd.f32 %v2563_v46, %v601_v3 }
 0x14a   :  { %2605 = vtanh.f32 %v505_v8  ;;  %v2604_v50 = vpop.eup %2603  ;;  %v2562_v8 = vld [vmem:[%s7567_s0 + $0x30] sm:$0xff] }
 0x14b   :  { %2607 = vtanh.f32 %v459_v49  ;;  %v503_v6 = vmul.f32 0.5, %v2604_v50  ;;  %v4444_v50 = vld [vmem:[%s7568_s1 + $0x1e8] sm:$0xff] }
 0x14c   :  { %v478_v0 = vpop.f32.mrf.mxu2 }
 0x14d   :  { %v479_v51 = vadd.f32 %v478_v0, %v4423_v2  ;;  %v504_v21 = vadd.f32 0.5, %v503_v6  ;;  %v4450_v0 = vld [vmem:[%s7568_s1 + $0x1f8] sm:$0xff]  ;;  %v4456_v6 = vld [vmem:[%s7568_s1 + $0x1c8] sm:$0xff] }
 0x14f   :  { %v499_v54 = vadd.f32 %v498_v52, %v479_v51 }
 0x150   :  { %v2606_v55 = vpop.eup %2605 }
 0x151   :  { %v507_v56 = vmul.f32 0.5, %v2606_v55  ;;  %v510_v57 = vmul.f32 0.5, %v499_v54  ;;  %v2608_v59 = vpop.eup %2607  ;;  %v4462_v54 = vld [vmem:[%s7568_s1 + $0x1d8] sm:$0xff] }
 0x152   :  { %v515_v19 = vmul.f32 %v2608_v59, %v504_v21  ;;  %v4474_v59 = vld [vmem:[%s7568_s1 + $0x1b8] sm:$0xff]  ;;  %v4480_v21 = vld [vmem:[%s7568_s1 + $0x188] sm:$0xff] }
 0x153   :  { %v508_v62 = vadd.f32 0.5, %v507_v56  ;;  %2609 = vtanh.f32 %v510_v57  ;;  %v617_v56 = vmul.f32 0.5, %v607_v48  ;;  %v4468_v57 = vld [vmem:[%s7568_s1 + $0x1a8] sm:$0xff] }
 0x154   :  { %v4544_v48 = vld [vmem:[%s7568_s1 + $0xe8] sm:$0xff] }
 0x155   :  { %v514_v13 = vmul.f32 0.0, %v508_v62  ;;  %v4486_v62 = vld [vmem:[%s7568_s1 + $0x198] sm:$0xff] }
 0x157   :  { %v4429_v10 = vadd.f32 %v515_v19, %v514_v13  ;;  %v4492_v19 = vld [vmem:[%s7568_s1 + $0x168] sm:$0xff] }
 0x159   :  { %v2610_v15 = vpop.eup %2609  ;;  %2611 = vtanh.f32 %v4429_v10 }
 0x15a   :  { %v512_v7 = vmul.f32 0.5, %v2610_v15  ;;  %2613 = vtanh.f32 %v612_v4  ;;  %v4498_v15 = vld [vmem:[%s7568_s1 + $0x178] sm:$0xff] }
 0x15c   :  { %v513_v17 = vadd.f32 0.5, %v512_v7  ;;  %v4504_v7 = vld [vmem:[%s7568_s1 + $0x148] sm:$0xff] }
 0x15d   :  { %v541_v29 = vpop.f32.mrf.mxu0 }
 0x15e   :  { %v604_v5 = vadd.f32 %v2560_v9, %v541_v29  ;;  %v4510_v9 = vld [vmem:[%s7568_s1 + $0x158] sm:$0xff] }
 0x15f   :  { %v2612_v58 = vpop.eup %2611 }
 0x160   :  { %v608_v47 = vmul.f32 0.5, %v604_v5  ;;  %v518_v25 = vmul.f32 %v2612_v58, %v513_v17  ;;  %v2614_v49 = vpop.eup %2613  ;;  %v4517_v5 = vld [vmem:[%s7568_s1 + $0x128] sm:$0xff]  ;;  %v4523_v58 = vld [vmem:[%s7568_s1 + $0x138] sm:$0xff] }
 0x161   :  { %v614_v55 = vmul.f32 0.5, %v2614_v49  ;;  %v4556_v49 = vld [vmem:[%s7568_s1 + $0xc8] sm:$0xff] }
 0x162   :  { %2615 = vtanh.f32 %v608_v47  ;;  %662 = vmatmul.f32.vlgmr.msra.gmra.mxu1 %v518_v25  ;;  %702 = vmatmul.f32.vlgmr.msra.gmra.mxu3 %v518_v25  ;;  %v4537_v47 = vld [vmem:[%s7568_s1 + $0x118] sm:$0xff] }
 0x163   :  { %829 = vmatpush.msra.mxu1 %v4444_v50  ;;  %869 = vmatpush.msra.mxu3 %v4450_v0  ;;  %v615_v63 = vadd.f32 0.5, %v614_v55  ;;  %v4568_v55 = vld [vmem:[%s7568_s1 + $0xa8] sm:$0xff] }
 0x164   :  { %v581_v51 = vpop.f32.mrf.mxu2 }
 0x165   :  { %v606_v52 = vadd.f32 %v2562_v8, %v581_v51  ;;  %830 = vmatpush.msra.mxu1 %v4456_v6  ;;  %870 = vmatpush.msra.mxu3 %v4462_v54  ;;  %v621_v29 = vmul.f32 %v615_v63, %v4261_v53  ;;  %v4531_v53 = vld [vmem:[%s7568_s1 + $0x108] sm:$0xff]  ;;  %v4550_v8 = vld [vmem:[%s7568_s1 + $0xf8] sm:$0xff] }
 0x166   :  { %v4562_v51 = vld [vmem:[%s7568_s1 + $0xd8] sm:$0xff]  ;;  %v4582_v63 = vld [vmem:[%s7568_s1 + $0x88] sm:$0xff] }
 0x167   :  { %2617 = vtanh.f32 %v606_v52  ;;  %831 = vmatpush.msra.mxu1 %v4468_v57  ;;  %871 = vmatpush.msra.mxu3 %v4474_v59 }
 0x168   :  { %v2616_v60 = vpop.eup %2615  ;;  %2619 = vtanh.f32 %v617_v56  ;;  %v4574_v56 = vld [vmem:[%s7568_s1 + $0xb8] sm:$0xff] }
 0x169   :  { %v610_v61 = vmul.f32 0.5, %v2616_v60  ;;  %832 = vmatpush.msra.mxu1 %v4480_v21  ;;  %872 = vmatpush.msra.mxu3 %v4486_v62 }
 0x16a   :  { %742 = vmatmul.f32.vlgmr.msrb.gmra.mxu1 %v518_v25  ;;  %782 = vmatmul.f32.vlgmr.msrb.gmra.mxu3 %v518_v25 }
 0x16b   :  { %v611_v13 = vadd.f32 0.5, %v610_v61  ;;  %833 = vmatpush.msra.mxu1 %v4492_v19  ;;  %873 = vmatpush.msra.mxu3 %v4498_v15 }
 0x16d   :  { %v2618_v4 = vpop.eup %2617  ;;  %834 = vmatpush.msra.mxu1 %v4504_v7  ;;  %874 = vmatpush.msra.mxu3 %v4510_v9 }
 0x16e   :  { %v622_v17 = vmul.f32 %v2618_v4, %v611_v13  ;;  %v2620_v46 = vpop.eup %2619  ;;  %v4588_v13 = vld [vmem:[%s7568_s1 + $0x98] sm:$0xff]  ;;  %v4596_v4 = vld [vmem:[%s7568_s1 + $0x1e0] sm:$0xff] }
 0x16f   :  { %835 = vmatpush.msra.mxu1 %v4517_v5  ;;  %875 = vmatpush.msra.mxu3 %v4523_v58  ;;  %v619_v25 = vmul.f32 0.5, %v2620_v46  ;;  %8276 = vst [vmem:[#allocation53_spill] sm:$0xff] %v4596_v4  ;;  %v4614_v46 = vld [vmem:[%s7568_s1 + $0x78] sm:$0xff] }
 0x170   :  { %v4526_v3 = vadd.f32 %v622_v17, %v621_v29  ;;  %v4602_v29 = vld [vmem:[%s7568_s1 + $0x1f0] sm:$0xff]  ;;  %v4608_v17 = vld [vmem:[%s7568_s1 + $0x68] sm:$0xff] }
 0x171   :  { %836 = vmatpush.msra.mxu1 %v4531_v53  ;;  %876 = vmatpush.msra.mxu3 %v4537_v47  ;;  %v620_v52 = vadd.f32 0.5, %v619_v25  ;;  %8277 = vst [vmem:[#allocation56_spill] sm:$0xff] %v4602_v29  ;;  %v4620_v25 = vld [vmem:[%s7568_s1 + $0x1c0] sm:$0xff] }
 0x172   :  { %2621 = vtanh.f32 %v4526_v3  ;;  %8278 = vst [vmem:[#allocation57_spill] sm:$0xff] %v4620_v25 }
 0x173   :  { %837 = vmatpush.msra.mxu1 %v4544_v48  ;;  %877 = vmatpush.msra.mxu3 %v4550_v8 }
 0x175   :  { %838 = vmatpush.msra.mxu1 %v4556_v49  ;;  %878 = vmatpush.msra.mxu3 %v4562_v51 }
 0x177   :  { %839 = vmatpush.msra.mxu1 %v4568_v55  ;;  %879 = vmatpush.msra.mxu3 %v4574_v56 }
 0x178   :  { %v2622_v60 = vpop.eup %2621 }
 0x179   :  { %v4577_v61 = vmul.f32 %v2622_v60, %v620_v52  ;;  %840 = vmatpush.msra.mxu1 %v4582_v63  ;;  %880 = vmatpush.msra.mxu3 %v4588_v13  ;;  %v4626_v52 = vld [vmem:[%s7568_s1 + $0x1d0] sm:$0xff]  ;;  %v4632_v60 = vld [vmem:[%s7568_s1 + $0x48] sm:$0xff] }
 0x17a   :  { %8279 = vst [vmem:[#allocation60_spill] sm:$0xff] %v4626_v52 }
 0x17b   :  { %642 = vmatmul.f32.vlgmr.msra.gmra.mxu0 %v4577_v61  ;;  %682 = vmatmul.f32.vlgmr.msra.gmra.mxu2 %v4577_v61  ;;  %8280 = vst [vmem:[#allocation61_spill] sm:$0xff] %v4632_v60 }
 0x17c   :  { %809 = vmatpush.msra.mxu0 %v4596_v4  ;;  %849 = vmatpush.msra.mxu2 %v4602_v29  ;;  %v4638_v29 = vld [vmem:[%s7568_s1 + $0x58] sm:$0xff]  ;;  %v4726_v4 = vld [vmem:[%s7568_s1 + $0x120] sm:$0xff] }
 0x17d   :  { %841 = vmatpush.msra.mxu1 %v4608_v17  ;;  %881 = vmatpush.msra.mxu3 %v4614_v46  ;;  %8281 = vst [vmem:[#allocation64_spill] sm:$0xff] %v4638_v29 }
 0x17e   :  { %810 = vmatpush.msra.mxu0 %v4620_v25  ;;  %850 = vmatpush.msra.mxu2 %v4626_v52  ;;  %v4644_v25 = vld [vmem:[%s7568_s1 + $0x1a0] sm:$0xff]  ;;  %v4650_v52 = vld [vmem:[%s7568_s1 + $0x1b0] sm:$0xff]  ;;  %8296 = vst [vmem:[#allocation84_spill] sm:$0xff] %v4726_v4 }
 0x17f   :  { %842 = vmatpush.msra.mxu1 %v4632_v60  ;;  %882 = vmatpush.msra.mxu3 %v4638_v29  ;;  %8282 = vst [vmem:[#allocation65_spill] sm:$0xff] %v4644_v25  ;;  %v4656_v60 = vld [vmem:[%s7568_s1 + $0x28] sm:$0xff]  ;;  %v4662_v29 = vld [vmem:[%s7568_s1 + $0x38] sm:$0xff] }
 0x180   :  { %811 = vmatpush.msra.mxu0 %v4644_v25  ;;  %8283 = vst [vmem:[#allocation68_spill] sm:$0xff] %v4650_v52  ;;  %851 = vmatpush.msra.mxu2 %v4650_v52  ;;  %v4668_v25 = vld [vmem:[%s7568_s1 + $0x180] sm:$0xff]  ;;  %v4674_v52 = vld [vmem:[%s7568_s1 + $0x190] sm:$0xff] }
 0x181   :  { %8284 = vst [vmem:[#allocation69_spill] sm:$0xff] %v4656_v60  ;;  %843 = vmatpush.msra.mxu1 %v4656_v60  ;;  %883 = vmatpush.msra.mxu3 %v4662_v29  ;;  %v4680_v60 = vld [vmem:[%s7568_s1 + $0x8] sm:$0xff] }
 0x182   :  { %8285 = vst [vmem:[#allocation72_spill] sm:$0xff] %v4662_v29  ;;  %812 = vmatpush.msra.mxu0 %v4668_v25  ;;  %852 = vmatpush.msra.mxu2 %v4674_v52  ;;  %v4686_v29 = vld [vmem:[%s7568_s1 + $0x18] sm:$0xff] }
 0x183   :  { %8286 = vst [vmem:[#allocation76_spill] sm:$0xff] %v4668_v25  ;;  %844 = vmatpush.msra.mxu1 %v4680_v60  ;;  %884 = vmatpush.msra.mxu3 %v4686_v29  ;;  %v4701_v25 = vld [vmem:[%s7568_s1 + $0x170] sm:$0xff] }
 0x184   :  { %8287 = vst [vmem:[#allocation5_spill] sm:$0xff] %v4674_v52  ;;  %722 = vmatmul.f32.vlgmr.msrb.gmra.mxu0 %v4577_v61  ;;  %762 = vmatmul.f32.vlgmr.msrb.gmra.mxu2 %v4577_v61  ;;  %v4694_v52 = vld [vmem:[%s7568_s1 + $0x160] sm:$0xff] }
 0x185   :  { %8288 = vst [vmem:[#allocation6_spill] sm:$0xff] %v4680_v60  ;;  %813 = vmatpush.msra.mxu0 %v4694_v52  ;;  %845 = vmatmul.f32.vlgmr.msra.gmra.mxu1 %v4577_v61  ;;  %v4711_v60 = vld [vmem:[#allocation2 + $0x3e0] sm:$0xff] }
 0x186   :  { %8289 = vst [vmem:[#allocation7_spill] sm:$0xff] %v4686_v29  ;;  %853 = vmatpush.msra.mxu2 %v4701_v25  ;;  %885 = vmatmul.f32.vlgmr.msra.gmra.mxu3 %v4577_v61  ;;  %v4708_v29 = vld [vmem:[%s7568_s1 + $0x140] sm:$0xff] }
 0x187   :  { %8290 = vst [vmem:[#allocation74_spill] sm:$0xff] %v4694_v52  ;;  %814 = vmatpush.msra.mxu0 %v4708_v29  ;;  %931 = vmatpush.msrb.mxu1 %v4711_v60  ;;  %v4717_v52 = vld [vmem:[%s7568_s1 + $0x150] sm:$0xff] }
 0x188   :  { %8291 = vst [vmem:[#allocation8_spill] sm:$0xff] %v4701_v25  ;;  %854 = vmatpush.msra.mxu2 %v4717_v52  ;;  %v4720_v25 = vld [vmem:[#allocation2 + $0x3e8] sm:$0xff] }
 0x189   :  { %8292 = vst [vmem:[#allocation81_spill] sm:$0xff] %v4708_v29  ;;  %971 = vmatpush.msrb.mxu3 %v4720_v25  ;;  %815 = vmatpush.msra.mxu0 %v4726_v4  ;;  %v4729_v29 = vld [vmem:[#allocation2 + $0x3c0] sm:$0xff] }
 0x18a   :  { %8293 = vst [vmem:[#allocation9_spill] sm:$0xff] %v4711_v60  ;;  %932 = vmatpush.msrb.mxu1 %v4729_v29  ;;  %v4735_v60 = vld [vmem:[%s7568_s1 + $0x130] sm:$0xff]  ;;  %v4747_v4 = vld [vmem:[#allocation2 + $0x3a0] sm:$0xff] }
 0x18b   :  { %8294 = vst [vmem:[#allocation78_spill] sm:$0xff] %v4717_v52  ;;  %855 = vmatpush.msra.mxu2 %v4735_v60  ;;  %v4738_v52 = vld [vmem:[#allocation2 + $0x3c8] sm:$0xff] }
 0x18c   :  { %8295 = vst [vmem:[#allocation10_spill] sm:$0xff] %v4720_v25  ;;  %972 = vmatpush.msrb.mxu3 %v4738_v52  ;;  %v4744_v25 = vld [vmem:[%s7568_s1 + $0x100] sm:$0xff]  ;;  %933 = vmatpush.msrb.mxu1 %v4747_v4 }
 0x18d   :  { %8297 = vst [vmem:[#allocation11_spill] sm:$0xff] %v4729_v29  ;;  %816 = vmatpush.msra.mxu0 %v4744_v25  ;;  %v4753_v29 = vld [vmem:[%s7568_s1 + $0x110] sm:$0xff] }
 0x18e   :  { %8298 = vst [vmem:[#allocation82_spill] sm:$0xff] %v4735_v60  ;;  %856 = vmatpush.msra.mxu2 %v4753_v29  ;;  %v4756_v60 = vld [vmem:[#allocation2 + $0x3a8] sm:$0xff] }
 0x18f   :  { %8299 = vst [vmem:[#allocation12_spill] sm:$0xff] %v4738_v52  ;;  %973 = vmatpush.msrb.mxu3 %v4756_v60  ;;  %v4762_v52 = vld [vmem:[%s7568_s1 + $0xe0] sm:$0xff] }
 0x190   :  { %8300 = vst [vmem:[#allocation13_spill] sm:$0xff] %v4744_v25  ;;  %817 = vmatpush.msra.mxu0 %v4762_v52  ;;  %v4765_v25 = vld [vmem:[#allocation2 + $0x380] sm:$0xff] }
 0x191   :  { %8301 = vst [vmem:[#allocation14_spill] sm:$0xff] %v4747_v4  ;;  %934 = vmatpush.msrb.mxu1 %v4765_v25  ;;  %v4771_v4 = vld [vmem:[%s7568_s1 + $0xf0] sm:$0xff] }
 0x192   :  { %8302 = vst [vmem:[#allocation15_spill] sm:$0xff] %v4753_v29  ;;  %857 = vmatpush.msra.mxu2 %v4771_v4  ;;  %v4774_v29 = vld [vmem:[#allocation2 + $0x388] sm:$0xff] }
 0x193   :  { %8303 = vst [vmem:[#allocation85_spill] sm:$0xff] %v4756_v60  ;;  %974 = vmatpush.msrb.mxu3 %v4774_v29  ;;  %v4780_v60 = vld [vmem:[%s7568_s1 + $0xc0] sm:$0xff] }
 0x194   :  { %8304 = vst [vmem:[#allocation16_spill] sm:$0xff] %v4762_v52  ;;  %818 = vmatpush.msra.mxu0 %v4780_v60  ;;  %v4783_v52 = vld [vmem:[#allocation2 + $0x360] sm:$0xff] }
 0x195   :  { %8305 = vst [vmem:[#allocation89_spill] sm:$0xff] %v4765_v25  ;;  %935 = vmatpush.msrb.mxu1 %v4783_v52  ;;  %v4789_v25 = vld [vmem:[%s7568_s1 + $0xd0] sm:$0xff] }
 0x196   :  { %8306 = vst [vmem:[#allocation17_spill] sm:$0xff] %v4771_v4  ;;  %858 = vmatpush.msra.mxu2 %v4789_v25  ;;  %v4792_v4 = vld [vmem:[#allocation2 + $0x368] sm:$0xff] }
 0x197   :  { %8307 = vst [vmem:[#allocation87_spill] sm:$0xff] %v4774_v29  ;;  %975 = vmatpush.msrb.mxu3 %v4792_v4  ;;  %v4798_v29 = vld [vmem:[%s7568_s1 + $0xa0] sm:$0xff] }
 0x198   :  { %8308 = vst [vmem:[#allocation18_spill] sm:$0xff] %v4780_v60  ;;  %819 = vmatpush.msra.mxu0 %v4798_v29  ;;  %v4801_v60 = vld [vmem:[#allocation2 + $0x340] sm:$0xff] }
 0x199   :  { %8309 = vst [vmem:[#allocation91_spill] sm:$0xff] %v4783_v52  ;;  %936 = vmatpush.msrb.mxu1 %v4801_v60  ;;  %v4807_v52 = vld [vmem:[%s7568_s1 + $0xb0] sm:$0xff] }
 0x19a   :  { %8310 = vst [vmem:[#allocation19_spill] sm:$0xff] %v4789_v25  ;;  %859 = vmatpush.msra.mxu2 %v4807_v52  ;;  %v4810_v25 = vld [vmem:[#allocation2 + $0x348] sm:$0xff] }
 0x19b   :  { %8311 = vst [vmem:[#allocation90_spill] sm:$0xff] %v4792_v4  ;;  %976 = vmatpush.msrb.mxu3 %v4810_v25  ;;  %v4816_v4 = vld [vmem:[%s7568_s1 + $0x80] sm:$0xff] }
 0x19c   :  { %8312 = vst [vmem:[#allocation20_spill] sm:$0xff] %v4798_v29  ;;  %820 = vmatpush.msra.mxu0 %v4816_v4  ;;  %v4819_v29 = vld [vmem:[#allocation2 + $0x320] sm:$0xff] }
 0x19d   :  { %8313 = vst [vmem:[#allocation93_spill] sm:$0xff] %v4801_v60  ;;  %937 = vmatpush.msrb.mxu1 %v4819_v29  ;;  %v4825_v60 = vld [vmem:[%s7568_s1 + $0x90] sm:$0xff] }
 0x19e   :  { %8314 = vst [vmem:[#allocation21_spill] sm:$0xff] %v4807_v52  ;;  %860 = vmatpush.msra.mxu2 %v4825_v60  ;;  %v4828_v52 = vld [vmem:[#allocation2 + $0x328] sm:$0xff] }
 0x19f   :  { %8315 = vst [vmem:[#allocation92_spill] sm:$0xff] %v4810_v25  ;;  %977 = vmatpush.msrb.mxu3 %v4828_v52  ;;  %v4834_v25 = vld [vmem:[%s7568_s1 + $0x60] sm:$0xff] }
 0x1a0   :  { %8316 = vst [vmem:[#allocation22_spill] sm:$0xff] %v4816_v4  ;;  %821 = vmatpush.msra.mxu0 %v4834_v25  ;;  %v4837_v4 = vld [vmem:[#allocation2 + $0x300] sm:$0xff] }
 0x1a1   :  { %8317 = vst [vmem:[#allocation95_spill] sm:$0xff] %v4819_v29  ;;  %938 = vmatpush.msrb.mxu1 %v4837_v4  ;;  %v4843_v29 = vld [vmem:[%s7568_s1 + $0x70] sm:$0xff] }
 0x1a2   :  { %8318 = vst [vmem:[#allocation23_spill] sm:$0xff] %v4825_v60  ;;  %861 = vmatpush.msra.mxu2 %v4843_v29  ;;  %v4846_v60 = vld [vmem:[#allocation2 + $0x308] sm:$0xff] }
 0x1a3   :  { %8319 = vst [vmem:[#allocation94_spill] sm:$0xff] %v4828_v52  ;;  %978 = vmatpush.msrb.mxu3 %v4846_v60  ;;  %v4852_v52 = vld [vmem:[%s7568_s1 + $0x40] sm:$0xff] }
 0x1a4   :  { %8320 = vst [vmem:[#allocation24_spill] sm:$0xff] %v4834_v25  ;;  %822 = vmatpush.msra.mxu0 %v4852_v52  ;;  %v4855_v25 = vld [vmem:[#allocation2 + $0x2e0] sm:$0xff] }
 0x1a5   :  { %8321 = vst [vmem:[#allocation97_spill] sm:$0xff] %v4837_v4  ;;  %939 = vmatpush.msrb.mxu1 %v4855_v25  ;;  %v4861_v4 = vld [vmem:[%s7568_s1 + $0x50] sm:$0xff] }
 0x1a6   :  { %8322 = vst [vmem:[#allocation25_spill] sm:$0xff] %v4843_v29  ;;  %862 = vmatpush.msra.mxu2 %v4861_v4  ;;  %v4864_v29 = vld [vmem:[#allocation2 + $0x2e8] sm:$0xff] }
 0x1a7   :  { %8323 = vst [vmem:[#allocation96_spill] sm:$0xff] %v4846_v60  ;;  %979 = vmatpush.msrb.mxu3 %v4864_v29  ;;  %v4870_v60 = vld [vmem:[%s7568_s1 + $0x20] sm:$0xff] }
 0x1a8   :  { %8324 = vst [vmem:[#allocation26_spill] sm:$0xff] %v4852_v52  ;;  %823 = vmatpush.msra.mxu0 %v4870_v60  ;;  %v4873_v52 = vld [vmem:[#allocation2 + $0x2c0] sm:$0xff] }
 0x1a9   :  { %8325 = vst [vmem:[#allocation99_spill] sm:$0xff] %v4855_v25  ;;  %940 = vmatpush.msrb.mxu1 %v4873_v52  ;;  %v4879_v25 = vld [vmem:[%s7568_s1 + $0x30] sm:$0xff] }
 0x1aa   :  { %8326 = vst [vmem:[#allocation27_spill] sm:$0xff] %v4861_v4  ;;  %863 = vmatpush.msra.mxu2 %v4879_v25  ;;  %v4882_v4 = vld [vmem:[#allocation2 + $0x2c8] sm:$0xff] }
 0x1ab   :  { %8327 = vst [vmem:[#allocation98_spill] sm:$0xff] %v4864_v29  ;;  %980 = vmatpush.msrb.mxu3 %v4882_v4  ;;  %v4888_v29 = vld [vmem:[%s7568_s1] sm:$0xff] }
 0x1ac   :  { %8328 = vst [vmem:[#allocation28_spill] sm:$0xff] %v4870_v60  ;;  %824 = vmatpush.msra.mxu0 %v4888_v29  ;;  %v4891_v60 = vld [vmem:[#allocation2 + $0x2a0] sm:$0xff] }
 0x1ad   :  { %8329 = vst [vmem:[#allocation101_spill] sm:$0xff] %v4873_v52  ;;  %941 = vmatpush.msrb.mxu1 %v4891_v60  ;;  %v4897_v52 = vld [vmem:[%s7568_s1 + $0x10] sm:$0xff]  ;;  %825 = vmatmul.f32.vlgmr.msra.gmra.mxu0 %v4577_v61 }
 0x1ae   :  { %8330 = vst [vmem:[#allocation29_spill] sm:$0xff] %v4879_v25  ;;  %864 = vmatpush.msra.mxu2 %v4897_v52  ;;  %v4911_v25 = vld [vmem:[#allocation2 + $0x288] sm:$0xff] }
 0x1af   :  { %8331 = vst [vmem:[#allocation100_spill] sm:$0xff] %v4882_v4  ;;  %865 = vmatmul.f32.vlgmr.msra.gmra.mxu2 %v4577_v61  ;;  %v4902_v4 = vld [vmem:[#allocation2 + $0x2a8] sm:$0xff]  ;;  %v4917_v61 = vld [vmem:[#allocation2 + $0x260] sm:$0xff] }
 0x1b0   :  { %8332 = vst [vmem:[#allocation30_spill] sm:$0xff] %v4888_v29  ;;  %981 = vmatpush.msrb.mxu3 %v4902_v4  ;;  %v4905_v29 = vld [vmem:[#allocation2 + $0x280] sm:$0xff] }
 0x1b1   :  { %8333 = vst [vmem:[#allocation31_spill] sm:$0xff] %v4891_v60  ;;  %942 = vmatpush.msrb.mxu1 %v4905_v29  ;;  %v4908_v60 = vld [vmem:[#allocation2 + $0x1e0] sm:$0xff] }
 0x1b2   :  { %8334 = vst [vmem:[#allocation102_spill] sm:$0xff] %v4897_v52  ;;  %911 = vmatpush.msrb.mxu0 %v4908_v60  ;;  %982 = vmatpush.msrb.mxu3 %v4911_v25  ;;  %v4914_v52 = vld [vmem:[#allocation2 + $0x1e8] sm:$0xff] }
 0x1b3   :  { %8335 = vst [vmem:[#allocation32_spill] sm:$0xff] %v4902_v4  ;;  %951 = vmatpush.msrb.mxu2 %v4914_v52  ;;  %943 = vmatpush.msrb.mxu1 %v4917_v61  ;;  %v4920_v4 = vld [vmem:[#allocation2 + $0x1c0] sm:$0xff] }
 0x1b4   :  { %8336 = vst [vmem:[#allocation33_spill] sm:$0xff] %v4905_v29  ;;  %912 = vmatpush.msrb.mxu0 %v4920_v4  ;;  %v4923_v29 = vld [vmem:[#allocation2 + $0x268] sm:$0xff] }
 0x1b5   :  { %8337 = vst [vmem:[#allocation103_spill] sm:$0xff] %v4908_v60  ;;  %983 = vmatpush.msrb.mxu3 %v4923_v29  ;;  %v4926_v60 = vld [vmem:[#allocation2 + $0x1c8] sm:$0xff] }
 0x1b6   :  { %8338 = vst [vmem:[#allocation34_spill] sm:$0xff] %v4911_v25  ;;  %952 = vmatpush.msrb.mxu2 %v4926_v60  ;;  %v4929_v25 = vld [vmem:[#allocation2 + $0x240] sm:$0xff] }
 0x1b7   :  { %8339 = vst [vmem:[#allocation35_spill] sm:$0xff] %v4914_v52  ;;  %944 = vmatpush.msrb.mxu1 %v4929_v25  ;;  %v4932_v52 = vld [vmem:[#allocation2 + $0x1a0] sm:$0xff] }
 0x1b8   :  { %8340 = vst [vmem:[#allocation36_spill] sm:$0xff] %v4917_v61  ;;  %913 = vmatpush.msrb.mxu0 %v4932_v52  ;;  %v4935_v61 = vld [vmem:[#allocation2 + $0x248] sm:$0xff] }
 0x1b9   :  { %8341 = vst [vmem:[#allocation37_spill] sm:$0xff] %v4920_v4  ;;  %984 = vmatpush.msrb.mxu3 %v4935_v61  ;;  %v4938_v4 = vld [vmem:[#allocation2 + $0x1a8] sm:$0xff] }
 0x1ba   :  { %8342 = vst [vmem:[#allocation38_spill] sm:$0xff] %v4923_v29  ;;  %953 = vmatpush.msrb.mxu2 %v4938_v4  ;;  %v4941_v29 = vld [vmem:[#allocation2 + $0x220] sm:$0xff] }
 0x1bb   :  { %8343 = vst [vmem:[#allocation39_spill] sm:$0xff] %v4926_v60  ;;  %945 = vmatpush.msrb.mxu1 %v4941_v29  ;;  %v4944_v60 = vld [vmem:[#allocation2 + $0x180] sm:$0xff] }
 0x1bc   :  { %8344 = vst [vmem:[#allocation40_spill] sm:$0xff] %v4929_v25  ;;  %914 = vmatpush.msrb.mxu0 %v4944_v60  ;;  %v4947_v25 = vld [vmem:[#allocation2 + $0x228] sm:$0xff] }
 0x1bd   :  { %8345 = vst [vmem:[#allocation41_spill] sm:$0xff] %v4932_v52  ;;  %985 = vmatpush.msrb.mxu3 %v4947_v25  ;;  %v4950_v52 = vld [vmem:[#allocation2 + $0x188] sm:$0xff] }
 0x1be   :  { %8346 = vst [vmem:[#allocation42_spill] sm:$0xff] %v4935_v61  ;;  %954 = vmatpush.msrb.mxu2 %v4950_v52  ;;  %v4953_v61 = vld [vmem:[#allocation2 + $0x200] sm:$0xff] }
 0x1bf   :  { %8347 = vst [vmem:[#allocation43_spill] sm:$0xff] %v4938_v4  ;;  %946 = vmatpush.msrb.mxu1 %v4953_v61  ;;  %v4956_v4 = vld [vmem:[#allocation2 + $0x160] sm:$0xff] }
 0x1c0   :  { %8348 = vst [vmem:[#allocation44_spill] sm:$0xff] %v4941_v29  ;;  %915 = vmatpush.msrb.mxu0 %v4956_v4  ;;  %v4959_v29 = vld [vmem:[#allocation2 + $0x208] sm:$0xff] }
 0x1c1   :  { %8349 = vst [vmem:[#allocation45_spill] sm:$0xff] %v4944_v60  ;;  %986 = vmatpush.msrb.mxu3 %v4959_v29  ;;  %v4962_v60 = vld [vmem:[#allocation2 + $0x168] sm:$0xff] }
 0x1c2   :  { %8350 = vst [vmem:[#allocation46_spill] sm:$0xff] %v4947_v25  ;;  %955 = vmatpush.msrb.mxu2 %v4962_v60  ;;  %v4965_v25 = vld [vmem:[#allocation2 + $0x3f0] sm:$0xff] }
 0x1c3   :  { %8351 = vst [vmem:[#allocation47_spill] sm:$0xff] %v4950_v52  ;;  %1011 = vmatpush.msra.mxu1 %v4965_v25  ;;  %v4968_v52 = vld [vmem:[#allocation2 + $0x3f8] sm:$0xff] }
 0x1c4   :  { %8352 = vst [vmem:[#allocation48_spill] sm:$0xff] %v4953_v61  ;;  %1051 = vmatpush.msra.mxu3 %v4968_v52  ;;  %v4971_v61 = vld [vmem:[#allocation2 + $0x140] sm:$0xff] }
 0x1c5   :  { %8353 = vst [vmem:[#allocation49_spill] sm:$0xff] %v4956_v4  ;;  %916 = vmatpush.msrb.mxu0 %v4971_v61  ;;  %v4974_v4 = vld [vmem:[#allocation2 + $0x148] sm:$0xff] }
 0x1c6   :  { %8354 = vst [vmem:[#allocation50_spill] sm:$0xff] %v4959_v29  ;;  %956 = vmatpush.msrb.mxu2 %v4974_v4  ;;  %v4977_v29 = vld [vmem:[#allocation2 + $0x3d0] sm:$0xff] }
 0x1c7   :  { %8355 = vst [vmem:[#allocation51_spill] sm:$0xff] %v4962_v60  ;;  %1012 = vmatpush.msra.mxu1 %v4977_v29  ;;  %v4980_v60 = vld [vmem:[#allocation2 + $0x3d8] sm:$0xff] }
 0x1c8   :  { %8356 = vst [vmem:[#allocation52_spill] sm:$0xff] %v4965_v25  ;;  %1052 = vmatpush.msra.mxu3 %v4980_v60  ;;  %v4983_v25 = vld [vmem:[#allocation2 + $0x120] sm:$0xff] }
 0x1c9   :  { %8357 = vst [vmem:[#allocation54_spill] sm:$0xff] %v4968_v52  ;;  %917 = vmatpush.msrb.mxu0 %v4983_v25  ;;  %v4986_v52 = vld [vmem:[#allocation2 + $0x128] sm:$0xff] }
 0x1ca   :  { %8358 = vst [vmem:[#allocation55_spill] sm:$0xff] %v4971_v61  ;;  %957 = vmatpush.msrb.mxu2 %v4986_v52  ;;  %v4989_v61 = vld [vmem:[#allocation2 + $0x3b0] sm:$0xff] }
 0x1cb   :  { %8359 = vst [vmem:[#allocation58_spill] sm:$0xff] %v4974_v4  ;;  %1013 = vmatpush.msra.mxu1 %v4989_v61  ;;  %v4992_v4 = vld [vmem:[#allocation2 + $0x3b8] sm:$0xff] }
 0x1cc   :  { %8360 = vst [vmem:[#allocation59_spill] sm:$0xff] %v4977_v29  ;;  %1053 = vmatpush.msra.mxu3 %v4992_v4  ;;  %v4995_v29 = vld [vmem:[#allocation2 + $0x100] sm:$0xff] }
 0x1cd   :  { %8361 = vst [vmem:[#allocation62_spill] sm:$0xff] %v4980_v60  ;;  %918 = vmatpush.msrb.mxu0 %v4995_v29  ;;  %v4998_v60 = vld [vmem:[#allocation2 + $0x108] sm:$0xff] }
 0x1ce   :  { %8362 = vst [vmem:[#allocation63_spill] sm:$0xff] %v4983_v25  ;;  %958 = vmatpush.msrb.mxu2 %v4998_v60  ;;  %v5001_v25 = vld [vmem:[#allocation2 + $0x390] sm:$0xff] }
 0x1cf   :  { %8363 = vst [vmem:[#allocation66_spill] sm:$0xff] %v4986_v52  ;;  %1014 = vmatpush.msra.mxu1 %v5001_v25  ;;  %v5004_v52 = vld [vmem:[#allocation2 + $0x398] sm:$0xff] }
 0x1d0   :  { %8364 = vst [vmem:[#allocation67_spill] sm:$0xff] %v4989_v61  ;;  %1054 = vmatpush.msra.mxu3 %v5004_v52  ;;  %v5007_v61 = vld [vmem:[#allocation2 + $0xe0] sm:$0xff] }
 0x1d1   :  { %8365 = vst [vmem:[#allocation70_spill] sm:$0xff] %v4992_v4  ;;  %919 = vmatpush.msrb.mxu0 %v5007_v61  ;;  %v5010_v4 = vld [vmem:[#allocation2 + $0xe8] sm:$0xff] }
 0x1d2   :  { %8366 = vst [vmem:[#allocation71_spill] sm:$0xff] %v4995_v29  ;;  %959 = vmatpush.msrb.mxu2 %v5010_v4  ;;  %v5013_v29 = vld [vmem:[#allocation2 + $0x370] sm:$0xff] }
 0x1d3   :  { %8367 = vst [vmem:[#allocation73_spill] sm:$0xff] %v4998_v60  ;;  %1015 = vmatpush.msra.mxu1 %v5013_v29  ;;  %v5016_v60 = vld [vmem:[#allocation2 + $0x378] sm:$0xff] }
 0x1d4   :  { %8368 = vst [vmem:[#allocation75_spill] sm:$0xff] %v5001_v25  ;;  %1055 = vmatpush.msra.mxu3 %v5016_v60  ;;  %v5019_v25 = vld [vmem:[#allocation2 + $0xc0] sm:$0xff] }
 0x1d5   :  { %8369 = vst [vmem:[#allocation77_spill] sm:$0xff] %v5004_v52  ;;  %920 = vmatpush.msrb.mxu0 %v5019_v25  ;;  %v5022_v52 = vld [vmem:[#allocation2 + $0xc8] sm:$0xff] }
 0x1d6   :  { %8370 = vst [vmem:[#allocation79_spill] sm:$0xff] %v5007_v61  ;;  %960 = vmatpush.msrb.mxu2 %v5022_v52  ;;  %v5025_v61 = vld [vmem:[#allocation2 + $0x350] sm:$0xff] }
 0x1d7   :  { %8371 = vst [vmem:[#allocation80_spill] sm:$0xff] %v5010_v4  ;;  %1016 = vmatpush.msra.mxu1 %v5025_v61  ;;  %v5028_v4 = vld [vmem:[#allocation2 + $0x358] sm:$0xff] }
 0x1d8   :  { %8372 = vst [vmem:[#allocation83_spill] sm:$0xff] %v5013_v29  ;;  %1056 = vmatpush.msra.mxu3 %v5028_v4  ;;  %v5031_v29 = vld [vmem:[#allocation2 + $0xa0] sm:$0xff] }
 0x1d9   :  { %8373 = vst [vmem:[#allocation86_spill] sm:$0xff] %v5016_v60  ;;  %921 = vmatpush.msrb.mxu0 %v5031_v29  ;;  %v5034_v60 = vld [vmem:[#allocation2 + $0xa8] sm:$0xff] }
 0x1da   :  { %8374 = vst [vmem:[#allocation88_spill] sm:$0xff] %v5019_v25  ;;  %961 = vmatpush.msrb.mxu2 %v5034_v60  ;;  %v5037_v25 = vld [vmem:[#allocation2 + $0x330] sm:$0xff] }
 0x1db   :  { %8375 = vst [vmem:[#allocation104_spill] sm:$0xff] %v5022_v52  ;;  %1017 = vmatpush.msra.mxu1 %v5037_v25  ;;  %v5040_v52 = vld [vmem:[#allocation2 + $0x338] sm:$0xff] }
 0x1dc   :  { %8376 = vst [vmem:[#allocation105_spill] sm:$0xff] %v5025_v61  ;;  %1057 = vmatpush.msra.mxu3 %v5040_v52  ;;  %v5043_v61 = vld [vmem:[#allocation2 + $0x80] sm:$0xff] }
 0x1dd   :  { %8377 = vst [vmem:[#allocation106_spill] sm:$0xff] %v5028_v4  ;;  %922 = vmatpush.msrb.mxu0 %v5043_v61  ;;  %v5046_v4 = vld [vmem:[#allocation2 + $0x88] sm:$0xff] }
 0x1de   :  { %8378 = vst [vmem:[#allocation107_spill] sm:$0xff] %v5031_v29  ;;  %962 = vmatpush.msrb.mxu2 %v5046_v4  ;;  %v5049_v29 = vld [vmem:[#allocation2 + $0x310] sm:$0xff] }
 0x1df   :  { %8379 = vst [vmem:[#allocation108_spill] sm:$0xff] %v5034_v60  ;;  %1018 = vmatpush.msra.mxu1 %v5049_v29  ;;  %v5052_v60 = vld [vmem:[#allocation2 + $0x318] sm:$0xff] }
 0x1e0   :  { %8380 = vst [vmem:[#allocation109_spill] sm:$0xff] %v5037_v25  ;;  %1058 = vmatpush.msra.mxu3 %v5052_v60  ;;  %v5055_v25 = vld [vmem:[#allocation2 + $0x60] sm:$0xff] }
 0x1e1   :  { %8381 = vst [vmem:[#allocation110_spill] sm:$0xff] %v5040_v52  ;;  %923 = vmatpush.msrb.mxu0 %v5055_v25  ;;  %v5058_v52 = vld [vmem:[#allocation2 + $0x68] sm:$0xff] }
 0x1e2   :  { %8382 = vst [vmem:[#allocation111_spill] sm:$0xff] %v5043_v61  ;;  %963 = vmatpush.msrb.mxu2 %v5058_v52  ;;  %v5061_v61 = vld [vmem:[#allocation2 + $0x2f0] sm:$0xff] }
 0x1e3   :  { %8383 = vst [vmem:[#allocation112_spill] sm:$0xff] %v5046_v4  ;;  %1019 = vmatpush.msra.mxu1 %v5061_v61  ;;  %v5064_v4 = vld [vmem:[#allocation2 + $0x2f8] sm:$0xff] }
 0x1e4   :  { %8384 = vst [vmem:[#allocation113_spill] sm:$0xff] %v5049_v29  ;;  %1059 = vmatpush.msra.mxu3 %v5064_v4  ;;  %v5067_v29 = vld [vmem:[#allocation2 + $0x40] sm:$0xff] }
 0x1e5   :  { %8385 = vst [vmem:[#allocation114_spill] sm:$0xff] %v5052_v60  ;;  %924 = vmatpush.msrb.mxu0 %v5067_v29  ;;  %v5070_v60 = vld [vmem:[#allocation2 + $0x48] sm:$0xff] }
 0x1e6   :  { %8386 = vst [vmem:[#allocation115_spill] sm:$0xff] %v5055_v25  ;;  %964 = vmatpush.msrb.mxu2 %v5070_v60  ;;  %v5073_v25 = vld [vmem:[#allocation2 + $0x2d0] sm:$0xff] }
 0x1e7   :  { %8387 = vst [vmem:[#allocation116_spill] sm:$0xff] %v5058_v52  ;;  %1020 = vmatpush.msra.mxu1 %v5073_v25  ;;  %v5076_v52 = vld [vmem:[#allocation2 + $0x2d8] sm:$0xff] }
 0x1e8   :  { %8388 = vst [vmem:[#allocation117_spill] sm:$0xff] %v5061_v61  ;;  %1060 = vmatpush.msra.mxu3 %v5076_v52  ;;  %v5079_v61 = vld [vmem:[#allocation2 + $0x20] sm:$0xff] }
 0x1e9   :  { %8389 = vst [vmem:[#allocation118_spill] sm:$0xff] %v5064_v4  ;;  %925 = vmatpush.msrb.mxu0 %v5079_v61  ;;  %v5082_v4 = vld [vmem:[#allocation2 + $0x28] sm:$0xff] }
 0x1ea   :  { %8390 = vst [vmem:[#allocation119_spill] sm:$0xff] %v5067_v29  ;;  %965 = vmatpush.msrb.mxu2 %v5082_v4  ;;  %v5085_v29 = vld [vmem:[#allocation2 + $0x2b0] sm:$0xff] }
 0x1eb   :  { %8391 = vst [vmem:[#allocation120_spill] sm:$0xff] %v5070_v60  ;;  %1021 = vmatpush.msra.mxu1 %v5085_v29  ;;  %v5088_v60 = vld [vmem:[#allocation2 + $0x2b8] sm:$0xff] }
 0x1ec   :  { %8392 = vst [vmem:[#allocation121_spill] sm:$0xff] %v5073_v25  ;;  %1061 = vmatpush.msra.mxu3 %v5088_v60  ;;  %v5091_v25 = vld [vmem:[#allocation2] sm:$0xff] }
 0x1ed   :  { %8393 = vst [vmem:[#allocation122_spill] sm:$0xff] %v5076_v52  ;;  %926 = vmatpush.msrb.mxu0 %v5091_v25  ;;  %v5094_v52 = vld [vmem:[#allocation2 + $0x8] sm:$0xff] }
 0x1ee   :  { %8394 = vst [vmem:[#allocation123_spill] sm:$0xff] %v5079_v61  ;;  %966 = vmatpush.msrb.mxu2 %v5094_v52  ;;  %v5097_v61 = vld [vmem:[#allocation2 + $0x290] sm:$0xff] }
 0x1ef   :  { %8395 = vst [vmem:[#allocation124_spill] sm:$0xff] %v5082_v4  ;;  %1022 = vmatpush.msra.mxu1 %v5097_v61  ;;  %v5100_v4 = vld [vmem:[#allocation2 + $0x298] sm:$0xff] }
 0x1f0   :  { %8396 = vst [vmem:[#allocation125_spill] sm:$0xff] %v5085_v29  ;;  %1062 = vmatpush.msra.mxu3 %v5100_v4  ;;  %v5103_v29 = vld [vmem:[#allocation2 + $0x1f0] sm:$0xff] }
 0x1f1   :  { %8397 = vst [vmem:[#allocation126_spill] sm:$0xff] %v5088_v60  ;;  %991 = vmatpush.msra.mxu0 %v5103_v29  ;;  %v5106_v60 = vld [vmem:[#allocation2 + $0x1f8] sm:$0xff] }
 0x1f2   :  { %8398 = vst [vmem:[#allocation127_spill] sm:$0xff] %v5091_v25  ;;  %1031 = vmatpush.msra.mxu2 %v5106_v60  ;;  %v5109_v25 = vld [vmem:[#allocation2 + $0x270] sm:$0xff] }
 0x1f3   :  { %8399 = vst [vmem:[#allocation128_spill] sm:$0xff] %v5094_v52  ;;  %1023 = vmatpush.msra.mxu1 %v5109_v25  ;;  %v5112_v52 = vld [vmem:[#allocation2 + $0x278] sm:$0xff] }
 0x1f4   :  { %8400 = vst [vmem:[#allocation129_spill] sm:$0xff] %v5097_v61  ;;  %1063 = vmatpush.msra.mxu3 %v5112_v52  ;;  %v5115_v61 = vld [vmem:[#allocation2 + $0x1d0] sm:$0xff] }
 0x1f5   :  { %8401 = vst [vmem:[#allocation130_spill] sm:$0xff] %v5100_v4  ;;  %992 = vmatpush.msra.mxu0 %v5115_v61  ;;  %v5118_v4 = vld [vmem:[#allocation2 + $0x1d8] sm:$0xff] }
 0x1f6   :  { %8402 = vst [vmem:[#allocation131_spill] sm:$0xff] %v5103_v29  ;;  %1032 = vmatpush.msra.mxu2 %v5118_v4  ;;  %v5121_v29 = vld [vmem:[#allocation2 + $0x250] sm:$0xff] }
 0x1f7   :  { %8403 = vst [vmem:[#allocation132_spill] sm:$0xff] %v5106_v60  ;;  %1024 = vmatpush.msra.mxu1 %v5121_v29  ;;  %v5124_v60 = vld [vmem:[#allocation2 + $0x258] sm:$0xff] }
 0x1f8   :  { %8404 = vst [vmem:[#allocation133_spill] sm:$0xff] %v5109_v25  ;;  %1064 = vmatpush.msra.mxu3 %v5124_v60  ;;  %v5127_v25 = vld [vmem:[#allocation2 + $0x1b0] sm:$0xff] }
 0x1f9   :  { %8405 = vst [vmem:[#allocation134_spill] sm:$0xff] %v5112_v52  ;;  %993 = vmatpush.msra.mxu0 %v5127_v25  ;;  %v5130_v52 = vld [vmem:[#allocation2 + $0x1b8] sm:$0xff] }
 0x1fa   :  { %8406 = vst [vmem:[#allocation135_spill] sm:$0xff] %v5115_v61  ;;  %1033 = vmatpush.msra.mxu2 %v5130_v52  ;;  %v5133_v61 = vld [vmem:[#allocation2 + $0x230] sm:$0xff] }
 0x1fb   :  { %8407 = vst [vmem:[#allocation136_spill] sm:$0xff] %v5118_v4  ;;  %1025 = vmatpush.msra.mxu1 %v5133_v61  ;;  %v5136_v4 = vld [vmem:[#allocation2 + $0x238] sm:$0xff]  ;;  %994 = vmatpush.msra.mxu0 %v4137_v11  ;;  %v643_v11 = vpop.f32.mrf.mxu0 }
 0x1fc   :  { %8408 = vst [vmem:[#allocation137_spill] sm:$0xff] %v5124_v60  ;;  %1065 = vmatpush.msra.mxu3 %v5136_v4  ;;  %1034 = vmatpush.msra.mxu2 %v4139_v12  ;;  %v5141_v60 = vld [vmem:[#allocation2 + $0x210] sm:$0xff]  ;;  %v663_v12 = vpop.f32.mrf.mxu1 }
 0x1fd   :  { %8409 = vst [vmem:[#allocation138_spill] sm:$0xff] %v5127_v25  ;;  %1026 = vmatpush.msra.mxu1 %v5141_v60  ;;  %v5144_v25 = vld [vmem:[#allocation2 + $0x218] sm:$0xff]  ;;  %995 = vmatpush.msra.mxu0 %v4145_v14  ;;  %v644_v14 = vadd.f32 %v643_v11, %v4405_v1  ;;  %v2565_v1 = vld [vmem:[%s7567_s0 + $0x48] sm:$0xff] }
 0x1fe   :  { %1066 = vmatpush.msra.mxu3 %v5144_v25  ;;  %1035 = vmatpush.msra.mxu2 %v4147_v16 }
 0x1ff   :  { %996 = vmatpush.msra.mxu0 %v4153_v18  ;;  %v664_v16 = vadd.f32 %v663_v12, %v644_v14 }
 0x200   :  { %1036 = vmatpush.msra.mxu2 %v4155_v20  ;;  %v683_v20 = vpop.f32.mrf.mxu2 }
 0x201   :  { %997 = vmatpush.msra.mxu0 %v4161_v22  ;;  %v786_v18 = vmul.f32 0.5, %v664_v16  ;;  %v703_v22 = vpop.f32.mrf.mxu3 }
 0x202   :  { %1037 = vmatpush.msra.mxu2 %v4163_v24  ;;  %v684_v24 = vadd.f32 %v683_v20, %v4411_v43  ;;  %v2564_v20 = vld [vmem:[%s7567_s0 + $0x40] sm:$0xff] }
 0x203   :  { %998 = vmatpush.msra.mxu0 %v4169_v26  ;;  %2623 = vtanh.f32 %v786_v18 }
 0x204   :  { %1038 = vmatpush.msra.mxu2 %v4171_v28  ;;  %v704_v26 = vadd.f32 %v703_v22, %v684_v24  ;;  %v723_v28 = vpop.f32.mrf.mxu0 }
 0x205   :  { %999 = vmatpush.msra.mxu0 %v4177_v30  ;;  %v724_v30 = vadd.f32 %v723_v28, %v4416_v45 }
 0x206   :  { %1039 = vmatpush.msra.mxu2 %v4179_v32  ;;  %v743_v32 = vpop.f32.mrf.mxu1 }
 0x207   :  { %1000 = vmatpush.msra.mxu0 %v4185_v34  ;;  %v790_v34 = vmul.f32 0.5, %v704_v26 }
 0x208   :  { %1040 = vmatpush.msra.mxu2 %v4187_v36  ;;  %v744_v36 = vadd.f32 %v743_v32, %v724_v30 }
 0x209   :  { %1001 = vmatpush.msra.mxu0 %v4193_v37  ;;  %2625 = vtanh.f32 %v790_v34  ;;  %v2624_v37 = vpop.eup %2623 }
 0x20a   :  { %1041 = vmatpush.msra.mxu2 %v4195_v33  ;;  %2627 = vtanh.f32 %v744_v36  ;;  %v763_v33 = vpop.f32.mrf.mxu2 }
 0x20b   :  { %1002 = vmatpush.msra.mxu0 %v4201_v31  ;;  %v764_v31 = vadd.f32 %v763_v33, %v4423_v2 }
 0x20c   :  { %1042 = vmatpush.msra.mxu2 %v4203_v38  ;;  %v783_v38 = vpop.f32.mrf.mxu3 }
 0x20d   :  { %1003 = vmatpush.msra.mxu0 %v4209_v27  ;;  %v788_v27 = vmul.f32 0.5, %v2624_v37  ;;  %v2566_v37 = vld [vmem:[%s7567_s0 + $0x50] sm:$0xff] }
 0x20e   :  { %1043 = vmatpush.msra.mxu2 %v4211_v39  ;;  %v784_v39 = vadd.f32 %v783_v38, %v764_v31  ;;  %v846_v43 = vpop.f32.mrf.mxu1 }
 0x20f   :  { %1004 = vmatpush.msra.mxu0 %v4217_v23  ;;  %v2626_v23 = vpop.eup %2625  ;;  %v890_v12 = vadd.f32 %v2565_v1, %v846_v43  ;;  %v8430_v1 = vld [vmem:[#allocation84_spill] sm:$0xff]  ;;  %v8431_v43 = vld [vmem:[#allocation11_spill] sm:$0xff] }
 0x210   :  { %1044 = vmatpush.msra.mxu2 %v4219_v40  ;;  %v792_v40 = vmul.f32 0.5, %v2626_v23 }
 0x211   :  { %1005 = vmatpush.msra.mxu0 %v4225_v41  ;;  %v795_v41 = vmul.f32 0.5, %v784_v39  ;;  %v897_v16 = vmul.f32 0.5, %v890_v12  ;;  %v8434_v12 = vld [vmem:[#allocation13_spill] sm:$0xff] }
 0x212   :  { %1045 = vmatpush.msra.mxu2 %v4227_v42  ;;  %v2628_v42 = vpop.eup %2627 }
 0x213   :  { %1006 = vmatpush.msra.mxu0 %v4233_v44  ;;  %v789_v44 = vadd.f32 0.5, %v788_v27  ;;  %2629 = vtanh.f32 %v795_v41  ;;  %v8426_v41 = vld [vmem:[#allocation81_spill] sm:$0xff] }
 0x214   :  { %1046 = vmatpush.msra.mxu2 %v4235_v35  ;;  %v793_v35 = vadd.f32 0.5, %v792_v40  ;;  %v886_v30 = vpop.f32.mrf.mxu3  ;;  %v8425_v40 = vld [vmem:[#allocation8_spill] sm:$0xff] }
 0x215   :  { %v800_v11 = vmul.f32 %v2628_v42, %v789_v44  ;;  %v8427_v42 = vld [vmem:[#allocation9_spill] sm:$0xff]  ;;  %v8428_v44 = vld [vmem:[#allocation78_spill] sm:$0xff] }
 0x216   :  { %v799_v45 = vmul.f32 %v793_v35, %v4429_v10  ;;  %v2567_v10 = vld [vmem:[%s7567_s0 + $0x58] sm:$0xff]  ;;  %v8429_v35 = vld [vmem:[#allocation10_spill] sm:$0xff] }
 0x217   :  { %v892_v36 = vadd.f32 %v2567_v10, %v886_v30  ;;  %v8443_v10 = vld [vmem:[#allocation91_spill] sm:$0xff] }
 0x218   :  { %v5179_v2 = vadd.f32 %v800_v11, %v799_v45  ;;  %v8432_v45 = vld [vmem:[#allocation82_spill] sm:$0xff]  ;;  %v8433_v11 = vld [vmem:[#allocation12_spill] sm:$0xff]  ;;  %v8444_v30 = vld [vmem:[#allocation19_spill] sm:$0xff] }
 0x219   :  { %v2630_v14 = vpop.eup %2629  ;;  %v902_v39 = vmul.f32 0.5, %v892_v36  ;;  %v8447_v36 = vld [vmem:[#allocation93_spill] sm:$0xff] }
 0x21a   :  { %2631 = vtanh.f32 %v5179_v2  ;;  %v797_v18 = vmul.f32 0.5, %v2630_v14  ;;  %v8435_v14 = vld [vmem:[#allocation14_spill] sm:$0xff] }
 0x21b   :  { %2633 = vtanh.f32 %v897_v16  ;;  %v8436_v16 = vld [vmem:[#allocation15_spill] sm:$0xff] }
 0x21c   :  { %v798_v22 = vadd.f32 0.5, %v797_v18  ;;  %v8437_v18 = vld [vmem:[#allocation85_spill] sm:$0xff] }
 0x220   :  { %v2632_v26 = vpop.eup %2631 }
 0x221   :  { %v803_v32 = vmul.f32 %v2632_v26, %v798_v22  ;;  %v2634_v33 = vpop.eup %2633  ;;  %v8439_v22 = vld [vmem:[#allocation89_spill] sm:$0xff]  ;;  %v8441_v26 = vld [vmem:[#allocation87_spill] sm:$0xff] }
 0x222   :  { %v899_v27 = vmul.f32 0.5, %v2634_v33  ;;  %v8449_v33 = vld [vmem:[#allocation92_spill] sm:$0xff] }
 0x223   :  { %947 = vmatmul.f32.vlgmr.msrb.gmra.mxu1 %v803_v32  ;;  %987 = vmatmul.f32.vlgmr.msrb.gmra.mxu3 %v803_v32 }
 0x224   :  { %1114 = vmatpush.msrb.mxu1 %v4444_v50  ;;  %1154 = vmatpush.msrb.mxu3 %v4450_v0  ;;  %v900_v0 = vadd.f32 0.5, %v899_v27  ;;  %v8452_v27 = vld [vmem:[#allocation23_spill] sm:$0xff] }
 0x226   :  { %1115 = vmatpush.msrb.mxu1 %v4456_v6  ;;  %1155 = vmatpush.msrb.mxu3 %v4462_v54 }
 0x228   :  { %1116 = vmatpush.msrb.mxu1 %v4468_v57  ;;  %1156 = vmatpush.msrb.mxu3 %v4474_v59  ;;  %v906_v57 = vmul.f32 %v900_v0, %v4526_v3  ;;  %v8412_v3 = vld [vmem:[#allocation61_spill] sm:$0xff] }
 0x229   :  { %v8456_v0 = vld [vmem:[#allocation25_spill] sm:$0xff] }
 0x22a   :  { %v826_v24 = vpop.f32.mrf.mxu0  ;;  %1117 = vmatpush.msrb.mxu1 %v4480_v21  ;;  %1157 = vmatpush.msrb.mxu3 %v4486_v62 }
 0x22b   :  { %v889_v28 = vadd.f32 %v2564_v20, %v826_v24  ;;  %1027 = vmatmul.f32.vlgmr.msra.gmra.mxu1 %v803_v32  ;;  %1067 = vmatmul.f32.vlgmr.msra.gmra.mxu3 %v803_v32  ;;  %v8438_v20 = vld [vmem:[#allocation16_spill] sm:$0xff]  ;;  %v8440_v24 = vld [vmem:[#allocation17_spill] sm:$0xff]  ;;  %v8445_v32 = vld [vmem:[#allocation90_spill] sm:$0xff] }
 0x22c   :  { %1118 = vmatpush.msrb.mxu1 %v4492_v19  ;;  %1158 = vmatpush.msrb.mxu3 %v4498_v15 }
 0x22d   :  { %v893_v34 = vmul.f32 0.5, %v889_v28  ;;  %v8442_v28 = vld [vmem:[#allocation18_spill] sm:$0xff] }
 0x22e   :  { %1119 = vmatpush.msrb.mxu1 %v4504_v7  ;;  %1159 = vmatpush.msrb.mxu3 %v4510_v9 }
 0x22f   :  { %2635 = vtanh.f32 %v893_v34  ;;  %v8446_v34 = vld [vmem:[#allocation20_spill] sm:$0xff] }
 0x230   :  { %1120 = vmatpush.msrb.mxu1 %v4517_v5  ;;  %1160 = vmatpush.msrb.mxu3 %v4523_v58  ;;  %v8410_v5 = vld [vmem:[#allocation53_spill] sm:$0xff]  ;;  %v8411_v58 = vld [vmem:[#allocation56_spill] sm:$0xff] }
 0x232   :  { %v866_v31 = vpop.f32.mrf.mxu2  ;;  %1121 = vmatpush.msrb.mxu1 %v4531_v53  ;;  %1161 = vmatpush.msrb.mxu3 %v4537_v47  ;;  %v8413_v53 = vld [vmem:[#allocation64_spill] sm:$0xff]  ;;  %v8414_v47 = vld [vmem:[#allocation57_spill] sm:$0xff] }
 0x233   :  { %v891_v38 = vadd.f32 %v2566_v37, %v866_v31  ;;  %v8448_v37 = vld [vmem:[#allocation21_spill] sm:$0xff]  ;;  %v8450_v31 = vld [vmem:[#allocation22_spill] sm:$0xff] }
 0x234   :  { %1122 = vmatpush.msrb.mxu1 %v4544_v48  ;;  %1162 = vmatpush.msrb.mxu3 %v4550_v8  ;;  %v8415_v48 = vld [vmem:[#allocation60_spill] sm:$0xff]  ;;  %v8416_v8 = vld [vmem:[#allocation69_spill] sm:$0xff] }
 0x235   :  { %2637 = vtanh.f32 %v891_v38  ;;  %v2636_v23 = vpop.eup %2635  ;;  %v8451_v38 = vld [vmem:[#allocation95_spill] sm:$0xff] }
 0x236   :  { %v895_v50 = vmul.f32 0.5, %v2636_v23  ;;  %2639 = vtanh.f32 %v902_v39  ;;  %1123 = vmatpush.msrb.mxu1 %v4556_v49  ;;  %1163 = vmatpush.msrb.mxu3 %v4562_v51  ;;  %v8417_v49 = vld [vmem:[#allocation72_spill] sm:$0xff]  ;;  %v8418_v51 = vld [vmem:[#allocation65_spill] sm:$0xff]  ;;  %v8453_v39 = vld [vmem:[#allocation94_spill] sm:$0xff] }
 0x237   :  { %v8454_v23 = vld [vmem:[#allocation24_spill] sm:$0xff] }
 0x238   :  { %v896_v6 = vadd.f32 0.5, %v895_v50  ;;  %1124 = vmatpush.msrb.mxu1 %v4568_v55  ;;  %1164 = vmatpush.msrb.mxu3 %v4574_v56  ;;  %v8419_v55 = vld [vmem:[#allocation68_spill] sm:$0xff]  ;;  %v8420_v56 = vld [vmem:[#allocation6_spill] sm:$0xff]  ;;  %v8455_v50 = vld [vmem:[#allocation97_spill] sm:$0xff] }
 0x23a   :  { %1125 = vmatpush.msrb.mxu1 %v4582_v63  ;;  %1165 = vmatpush.msrb.mxu3 %v4588_v13  ;;  %v8421_v63 = vld [vmem:[#allocation7_spill] sm:$0xff]  ;;  %v8422_v13 = vld [vmem:[#allocation76_spill] sm:$0xff] }
 0x23b   :  { %v2638_v54 = vpop.eup %2637 }
 0x23c   :  { %v907_v59 = vmul.f32 %v2638_v54, %v896_v6  ;;  %v2640_v21 = vpop.eup %2639  ;;  %1126 = vmatpush.msrb.mxu1 %v4608_v17  ;;  %1166 = vmatpush.msrb.mxu3 %v4614_v46  ;;  %v8423_v17 = vld [vmem:[#allocation5_spill] sm:$0xff]  ;;  %v8424_v46 = vld [vmem:[#allocation74_spill] sm:$0xff]  ;;  %v8457_v6 = vld [vmem:[#allocation96_spill] sm:$0xff] }
 0x23d   :  { %v904_v19 = vmul.f32 0.5, %v2640_v21  ;;  %v8458_v54 = vld [vmem:[#allocation26_spill] sm:$0xff] }
 0x23e   :  { %v5206_v62 = vadd.f32 %v907_v59, %v906_v57  ;;  %1127 = vmatpush.msrb.mxu1 %v8412_v3  ;;  %1167 = vmatpush.msrb.mxu3 %v8413_v53  ;;  %v8459_v57 = vld [vmem:[#allocation99_spill] sm:$0xff]  ;;  %v8461_v21 = vld [vmem:[#allocation98_spill] sm:$0xff] }
 0x23f   :  { %v905_v15 = vadd.f32 0.5, %v904_v19  ;;  %v8460_v59 = vld [vmem:[#allocation27_spill] sm:$0xff]  ;;  %v8462_v19 = vld [vmem:[#allocation28_spill] sm:$0xff]  ;;  %v8468_v53 = vld [vmem:[#allocation102_spill] sm:$0xff] }
 0x240   :  { %2641 = vtanh.f32 %v5206_v62  ;;  %1128 = vmatpush.msrb.mxu1 %v8416_v8  ;;  %1168 = vmatpush.msrb.mxu3 %v8417_v49  ;;  %v8467_v3 = vld [vmem:[#allocation31_spill] sm:$0xff]  ;;  %v8472_v49 = vld [vmem:[#allocation34_spill] sm:$0xff] }
 0x241   :  { %v8471_v8 = vld [vmem:[#allocation103_spill] sm:$0xff] }
 0x242   :  { %1129 = vmatpush.msrb.mxu1 %v8420_v56  ;;  %1169 = vmatpush.msrb.mxu3 %v8421_v63  ;;  %v8475_v56 = vld [vmem:[#allocation37_spill] sm:$0xff]  ;;  %v8476_v63 = vld [vmem:[#allocation38_spill] sm:$0xff] }
 0x244   :  { %1216 = vmatpush.msra.mxu1 %v8427_v42  ;;  %1256 = vmatpush.msra.mxu3 %v8429_v35  ;;  %v8483_v42 = vld [vmem:[#allocation45_spill] sm:$0xff]  ;;  %v8485_v35 = vld [vmem:[#allocation47_spill] sm:$0xff] }
 0x246   :  { %v2642_v7 = vpop.eup %2641  ;;  %1217 = vmatpush.msra.mxu1 %v8431_v43  ;;  %1257 = vmatpush.msra.mxu3 %v8433_v11  ;;  %v8487_v43 = vld [vmem:[#allocation49_spill] sm:$0xff]  ;;  %v8489_v11 = vld [vmem:[#allocation51_spill] sm:$0xff] }
 0x247   :  { %v5219_v9 = vmul.f32 %v2642_v7, %v905_v15  ;;  %v8463_v15 = vld [vmem:[#allocation101_spill] sm:$0xff] }
 0x248   :  { %1218 = vmatpush.msra.mxu1 %v8435_v14  ;;  %1258 = vmatpush.msra.mxu3 %v8437_v18  ;;  %v8464_v7 = vld [vmem:[#allocation29_spill] sm:$0xff]  ;;  %v8491_v14 = vld [vmem:[#allocation54_spill] sm:$0xff] }
 0x249   :  { %927 = vmatmul.f32.vlgmr.msrb.gmra.mxu0 %v5219_v9  ;;  %967 = vmatmul.f32.vlgmr.msrb.gmra.mxu2 %v5219_v9  ;;  %v8493_v18 = vld [vmem:[#allocation58_spill] sm:$0xff] }
 0x24a   :  { %1094 = vmatpush.msrb.mxu0 %v8410_v5  ;;  %1134 = vmatpush.msrb.mxu2 %v8411_v58  ;;  %v8465_v5 = vld [vmem:[#allocation100_spill] sm:$0xff]  ;;  %v8466_v58 = vld [vmem:[#allocation30_spill] sm:$0xff] }
 0x24b   :  { %1130 = vmatmul.f32.vlgmr.msrb.gmra.mxu1 %v5219_v9  ;;  %1170 = vmatmul.f32.vlgmr.msrb.gmra.mxu3 %v5219_v9 }
 0x24c   :  { %1095 = vmatpush.msrb.mxu0 %v8414_v47  ;;  %1135 = vmatpush.msrb.mxu2 %v8415_v48  ;;  %v8469_v47 = vld [vmem:[#allocation32_spill] sm:$0xff]  ;;  %v8470_v48 = vld [vmem:[#allocation33_spill] sm:$0xff] }
 0x24d   :  { %1219 = vmatpush.msra.mxu1 %v8439_v22  ;;  %1259 = vmatpush.msra.mxu3 %v8441_v26  ;;  %v8495_v22 = vld [vmem:[#allocation62_spill] sm:$0xff] }
 0x24e   :  { %1096 = vmatpush.msrb.mxu0 %v8418_v51  ;;  %1136 = vmatpush.msrb.mxu2 %v8419_v55  ;;  %v8473_v51 = vld [vmem:[#allocation35_spill] sm:$0xff]  ;;  %v8474_v55 = vld [vmem:[#allocation36_spill] sm:$0xff]  ;;  %v8497_v26 = vld [vmem:[#allocation66_spill] sm:$0xff] }
 0x24f   :  { %1220 = vmatpush.msra.mxu1 %v8443_v10  ;;  %1260 = vmatpush.msra.mxu3 %v8445_v32  ;;  %v8499_v10 = vld [vmem:[#allocation70_spill] sm:$0xff]  ;;  %v8501_v32 = vld [vmem:[#allocation73_spill] sm:$0xff] }
 0x250   :  { %1097 = vmatpush.msrb.mxu0 %v8422_v13  ;;  %1137 = vmatpush.msrb.mxu2 %v8423_v17  ;;  %v8477_v13 = vld [vmem:[#allocation39_spill] sm:$0xff]  ;;  %v8478_v17 = vld [vmem:[#allocation40_spill] sm:$0xff] }
 0x251   :  { %1007 = vmatmul.f32.vlgmr.msra.gmra.mxu0 %v5219_v9  ;;  %1047 = vmatmul.f32.vlgmr.msra.gmra.mxu2 %v5219_v9 }
 0x252   :  { %1098 = vmatpush.msrb.mxu0 %v8424_v46  ;;  %1138 = vmatpush.msrb.mxu2 %v8425_v40  ;;  %v8480_v46 = vld [vmem:[#allocation42_spill] sm:$0xff]  ;;  %v8481_v40 = vld [vmem:[#allocation43_spill] sm:$0xff] }
 0x253   :  { %1221 = vmatpush.msra.mxu1 %v8447_v36  ;;  %1261 = vmatpush.msra.mxu3 %v8449_v33  ;;  %v8503_v36 = vld [vmem:[#allocation77_spill] sm:$0xff]  ;;  %v8505_v33 = vld [vmem:[#allocation80_spill] sm:$0xff] }
 0x254   :  { %1099 = vmatpush.msrb.mxu0 %v8426_v41  ;;  %1139 = vmatpush.msrb.mxu2 %v8428_v44  ;;  %v8482_v41 = vld [vmem:[#allocation44_spill] sm:$0xff]  ;;  %v8484_v44 = vld [vmem:[#allocation46_spill] sm:$0xff] }
 0x255   :  { %1222 = vmatpush.msra.mxu1 %v8451_v38  ;;  %1262 = vmatpush.msra.mxu3 %v8453_v39  ;;  %v8507_v38 = vld [vmem:[#allocation86_spill] sm:$0xff]  ;;  %v8509_v39 = vld [vmem:[#allocation104_spill] sm:$0xff] }
 0x256   :  { %1100 = vmatpush.msrb.mxu0 %v8430_v1  ;;  %1140 = vmatpush.msrb.mxu2 %v8432_v45  ;;  %v8486_v1 = vld [vmem:[#allocation48_spill] sm:$0xff]  ;;  %v8488_v45 = vld [vmem:[#allocation50_spill] sm:$0xff] }
 0x257   :  { %1223 = vmatpush.msra.mxu1 %v8455_v50  ;;  %1263 = vmatpush.msra.mxu3 %v8457_v6  ;;  %v8511_v50 = vld [vmem:[#allocation106_spill] sm:$0xff]  ;;  %v8513_v6 = vld [vmem:[#allocation108_spill] sm:$0xff] }
 0x258   :  { %1101 = vmatpush.msrb.mxu0 %v8434_v12  ;;  %1141 = vmatpush.msrb.mxu2 %v8436_v16  ;;  %v8490_v12 = vld [vmem:[#allocation52_spill] sm:$0xff]  ;;  %v8492_v16 = vld [vmem:[#allocation55_spill] sm:$0xff] }
 0x259   :  { %1224 = vmatpush.msra.mxu1 %v8459_v57  ;;  %1264 = vmatpush.msra.mxu3 %v8461_v21  ;;  %v8515_v57 = vld [vmem:[#allocation110_spill] sm:$0xff]  ;;  %v8517_v21 = vld [vmem:[#allocation112_spill] sm:$0xff] }
 0x25a   :  { %1102 = vmatpush.msrb.mxu0 %v8438_v20  ;;  %1142 = vmatpush.msrb.mxu2 %v8440_v24  ;;  %v8494_v20 = vld [vmem:[#allocation59_spill] sm:$0xff] }
 0x25b   :  { %1225 = vmatpush.msra.mxu1 %v8463_v15  ;;  %1265 = vmatpush.msra.mxu3 %v8465_v5  ;;  %v8496_v24 = vld [vmem:[#allocation63_spill] sm:$0xff]  ;;  %v8519_v15 = vld [vmem:[#allocation114_spill] sm:$0xff]  ;;  %v8521_v5 = vld [vmem:[#allocation116_spill] sm:$0xff] }
 0x25c   :  { %1103 = vmatpush.msrb.mxu0 %v8442_v28  ;;  %1143 = vmatpush.msrb.mxu2 %v8444_v30  ;;  %v8498_v28 = vld [vmem:[#allocation67_spill] sm:$0xff] }
 0x25d   :  { %1226 = vmatpush.msra.mxu1 %v8467_v3  ;;  %1266 = vmatpush.msra.mxu3 %v8469_v47  ;;  %v8500_v30 = vld [vmem:[#allocation71_spill] sm:$0xff]  ;;  %v8523_v3 = vld [vmem:[#allocation118_spill] sm:$0xff]  ;;  %v8525_v47 = vld [vmem:[#allocation120_spill] sm:$0xff] }
 0x25e   :  { %1104 = vmatpush.msrb.mxu0 %v8446_v34  ;;  %1144 = vmatpush.msrb.mxu2 %v8448_v37  ;;  %v8502_v34 = vld [vmem:[#allocation75_spill] sm:$0xff] }
 0x25f   :  { %1227 = vmatpush.msra.mxu1 %v8470_v48  ;;  %1267 = vmatpush.msra.mxu3 %v8472_v49  ;;  %v8504_v37 = vld [vmem:[#allocation79_spill] sm:$0xff]  ;;  %v8526_v48 = vld [vmem:[#allocation121_spill] sm:$0xff] }
 0x260   :  { %1105 = vmatpush.msrb.mxu0 %v8450_v31  ;;  %1145 = vmatpush.msrb.mxu2 %v8452_v27  ;;  %v8506_v31 = vld [vmem:[#allocation83_spill] sm:$0xff]  ;;  %v8508_v27 = vld [vmem:[#allocation88_spill] sm:$0xff] }
 0x261   :  { %1228 = vmatpush.msra.mxu1 %v8474_v55  ;;  %1268 = vmatpush.msra.mxu3 %v8476_v63  ;;  %v8528_v49 = vld [vmem:[#allocation123_spill] sm:$0xff]  ;;  %v8530_v55 = vld [vmem:[#allocation125_spill] sm:$0xff] }
 0x262   :  { %1106 = vmatpush.msrb.mxu0 %v8454_v23  ;;  %1146 = vmatpush.msrb.mxu2 %v8456_v0  ;;  %v8510_v23 = vld [vmem:[#allocation105_spill] sm:$0xff]  ;;  %v8512_v0 = vld [vmem:[#allocation107_spill] sm:$0xff] }
 0x263   :  { %1229 = vmatpush.msra.mxu1 %v8478_v17  ;;  %1269 = vmatpush.msra.mxu3 %v8480_v46  ;;  %v8532_v63 = vld [vmem:[#allocation127_spill] sm:$0xff]  ;;  %v8534_v17 = vld [vmem:[#allocation129_spill] sm:$0xff] }
 0x264   :  { %1107 = vmatpush.msrb.mxu0 %v8458_v54  ;;  %1147 = vmatpush.msrb.mxu2 %v8460_v59  ;;  %v8514_v54 = vld [vmem:[#allocation109_spill] sm:$0xff]  ;;  %v8516_v59 = vld [vmem:[#allocation111_spill] sm:$0xff] }
 0x265   :  { %1230 = vmatpush.msra.mxu1 %v8482_v41  ;;  %1270 = vmatpush.msra.mxu3 %v8484_v44  ;;  %v8536_v46 = vld [vmem:[#allocation131_spill] sm:$0xff]  ;;  %v8538_v41 = vld [vmem:[#allocation133_spill] sm:$0xff] }
 0x266   :  { %1108 = vmatpush.msrb.mxu0 %v8462_v19  ;;  %1148 = vmatpush.msrb.mxu2 %v8464_v7  ;;  %v8518_v19 = vld [vmem:[#allocation113_spill] sm:$0xff]  ;;  %v8520_v7 = vld [vmem:[#allocation115_spill] sm:$0xff] }
 0x267   :  { %1231 = vmatpush.msra.mxu1 %v8486_v1  ;;  %1271 = vmatpush.msra.mxu3 %v8488_v45  ;;  %v8540_v44 = vld [vmem:[#allocation135_spill] sm:$0xff]  ;;  %v8542_v1 = vld [vmem:[#allocation137_spill] sm:$0xff] }
 0x268   :  { %1109 = vmatpush.msrb.mxu0 %v8466_v58  ;;  %1149 = vmatpush.msrb.mxu2 %v8468_v53  ;;  %v8522_v58 = vld [vmem:[#allocation117_spill] sm:$0xff]  ;;  %v8524_v53 = vld [vmem:[#allocation119_spill] sm:$0xff] }
 0x269   :  { %1110 = vmatmul.f32.vlgmr.msrb.gmra.mxu0 %v5219_v9  ;;  %1150 = vmatmul.f32.vlgmr.msrb.gmra.mxu2 %v5219_v9  ;;  %v8479_v9 = vld [vmem:[#allocation41_spill] sm:$0xff]  ;;  %v5369_v45 = vld [vmem:[#allocation2 + $0x190] sm:$0xff] }
 0x26a   :  { %1196 = vmatpush.msra.mxu0 %v8471_v8  ;;  %1236 = vmatpush.msra.mxu2 %v8473_v51  ;;  %v8527_v8 = vld [vmem:[#allocation122_spill] sm:$0xff]  ;;  %v8529_v51 = vld [vmem:[#allocation124_spill] sm:$0xff] }
 0x26b   :  { %1296 = vmatpush.msrb.mxu1 %v8490_v12  ;;  %1336 = vmatpush.msrb.mxu3 %v8491_v14  ;;  %v5389_v12 = vld [vmem:[#allocation2 + $0x130] sm:$0xff]  ;;  %v5398_v14 = vld [vmem:[#allocation2 + $0x118] sm:$0xff] }
 0x26c   :  { %1197 = vmatpush.msra.mxu0 %v8475_v56  ;;  %1237 = vmatpush.msra.mxu2 %v8477_v13  ;;  %v8531_v56 = vld [vmem:[#allocation126_spill] sm:$0xff]  ;;  %v8533_v13 = vld [vmem:[#allocation128_spill] sm:$0xff] }
 0x26d   :  { %1297 = vmatpush.msrb.mxu1 %v8494_v20  ;;  %1337 = vmatpush.msrb.mxu3 %v8495_v22  ;;  %v5407_v20 = vld [vmem:[#allocation2 + $0xd0] sm:$0xff]  ;;  %v5410_v22 = vld [vmem:[#allocation2 + $0xd8] sm:$0xff] }
 0x26e   :  { %1198 = vmatpush.msra.mxu0 %v8479_v9  ;;  %1238 = vmatpush.msra.mxu2 %v8481_v40  ;;  %v8535_v9 = vld [vmem:[#allocation130_spill] sm:$0xff]  ;;  %v8537_v40 = vld [vmem:[#allocation132_spill] sm:$0xff] }
 0x26f   :  { %1298 = vmatpush.msrb.mxu1 %v8498_v28  ;;  %1338 = vmatpush.msrb.mxu3 %v8499_v10  ;;  %v5419_v28 = vld [vmem:[#allocation2 + $0x90] sm:$0xff]  ;;  %v5422_v10 = vld [vmem:[#allocation2 + $0x98] sm:$0xff] }
 0x270   :  { %1199 = vmatpush.msra.mxu0 %v8483_v42  ;;  %1239 = vmatpush.msra.mxu2 %v8485_v35  ;;  %v8539_v42 = vld [vmem:[#allocation134_spill] sm:$0xff]  ;;  %v8541_v35 = vld [vmem:[#allocation136_spill] sm:$0xff] }
 0x271   :  { %1299 = vmatpush.msrb.mxu1 %v8502_v34  ;;  %1339 = vmatpush.msrb.mxu3 %v8503_v36  ;;  %v5431_v34 = vld [vmem:[#allocation2 + $0x50] sm:$0xff]  ;;  %v5434_v36 = vld [vmem:[#allocation2 + $0x58] sm:$0xff] }
 0x272   :  { %1200 = vmatpush.msra.mxu0 %v8487_v43  ;;  %1240 = vmatpush.msra.mxu2 %v8489_v11  ;;  %v8543_v43 = vld [vmem:[#allocation138_spill] sm:$0xff]  ;;  %v5372_v11 = vld [vmem:[#allocation2 + $0x198] sm:$0xff] }
 0x273   :  { %1300 = vmatpush.msrb.mxu1 %v8506_v31  ;;  %1340 = vmatpush.msrb.mxu3 %v8507_v38  ;;  %v5443_v31 = vld [vmem:[#allocation2 + $0x10] sm:$0xff]  ;;  %v5446_v38 = vld [vmem:[#allocation2 + $0x18] sm:$0xff] }
 0x274   :  { %1201 = vmatpush.msra.mxu0 %v8492_v16  ;;  %1241 = vmatpush.msra.mxu2 %v8493_v18  ;;  %v5401_v16 = vld [vmem:[#allocation2 + $0xf0] sm:$0xff]  ;;  %v5404_v18 = vld [vmem:[#allocation2 + $0xf8] sm:$0xff] }
 0x275   :  { %1301 = vmatpush.msrb.mxu1 %v8510_v23  ;;  %1341 = vmatpush.msrb.mxu3 %v8511_v50  ;;  %v5452_v23 = vld [vmem:[%s7570_s3] sm:$0xff] }
 0x276   :  { %1202 = vmatpush.msra.mxu0 %v8496_v24  ;;  %1242 = vmatpush.msra.mxu2 %v8497_v26  ;;  %v5413_v24 = vld [vmem:[#allocation2 + $0xb0] sm:$0xff]  ;;  %v5416_v26 = vld [vmem:[#allocation2 + $0xb8] sm:$0xff] }
 0x277   :  { %1302 = vmatpush.msrb.mxu1 %v8514_v54  ;;  %1342 = vmatpush.msrb.mxu3 %v8515_v57 }
 0x278   :  { %1203 = vmatpush.msra.mxu0 %v8500_v30  ;;  %1243 = vmatpush.msra.mxu2 %v8501_v32  ;;  %v5425_v30 = vld [vmem:[#allocation2 + $0x70] sm:$0xff]  ;;  %v5428_v32 = vld [vmem:[#allocation2 + $0x78] sm:$0xff] }
 0x279   :  { %1303 = vmatpush.msrb.mxu1 %v8518_v19  ;;  %1343 = vmatpush.msrb.mxu3 %v8519_v15 }
 0x27a   :  { %1204 = vmatpush.msra.mxu0 %v8504_v37  ;;  %1244 = vmatpush.msra.mxu2 %v8505_v33  ;;  %v5437_v37 = vld [vmem:[#allocation2 + $0x30] sm:$0xff]  ;;  %v5440_v33 = vld [vmem:[#allocation2 + $0x38] sm:$0xff] }
 0x27b   :  { %1304 = vmatpush.msrb.mxu1 %v8522_v58  ;;  %1344 = vmatpush.msrb.mxu3 %v8523_v3 }
 0x27c   :  { %1205 = vmatpush.msra.mxu0 %v8508_v27  ;;  %1245 = vmatpush.msra.mxu2 %v8509_v39 }
 0x27d   :  { %1305 = vmatpush.msrb.mxu1 %v8526_v48  ;;  %1345 = vmatpush.msrb.mxu3 %v8527_v8  ;;  %v5470_v8 = vld [vmem:[%s7570_s3 + $0x18] sm:$0xff] }
 0x27e   :  { %1206 = vmatpush.msra.mxu0 %v8512_v0  ;;  %1246 = vmatpush.msra.mxu2 %v8513_v6 }
 0x27f   :  { %1306 = vmatpush.msrb.mxu1 %v8530_v55  ;;  %1346 = vmatpush.msrb.mxu3 %v8531_v56 }
 0x280   :  { %1207 = vmatpush.msra.mxu0 %v8516_v59  ;;  %1247 = vmatpush.msra.mxu2 %v8517_v21  ;;  %v5458_v59 = vld [vmem:[%s7570_s3 + $0x8] sm:$0xff] }
 0x281   :  { %1307 = vmatpush.msrb.mxu1 %v8534_v17  ;;  %1347 = vmatpush.msrb.mxu3 %v8535_v9 }
 0x282   :  { %1208 = vmatpush.msra.mxu0 %v8520_v7  ;;  %1248 = vmatpush.msra.mxu2 %v8521_v5  ;;  %v5464_v7 = vld [vmem:[%s7570_s3 + $0x10] sm:$0xff] }
 0x283   :  { %1308 = vmatpush.msrb.mxu1 %v8538_v41  ;;  %1348 = vmatpush.msrb.mxu3 %v8539_v42 }
 0x284   :  { %1209 = vmatpush.msra.mxu0 %v8524_v53  ;;  %1249 = vmatpush.msra.mxu2 %v8525_v47 }
 0x285   :  { %1309 = vmatpush.msrb.mxu1 %v5121_v29  ;;  %1349 = vmatpush.msrb.mxu3 %v8542_v1  ;;  %v5377_v29 = vld [vmem:[#allocation2 + $0x170] sm:$0xff] }
 0x286   :  { %1210 = vmatpush.msra.mxu0 %v8528_v49  ;;  %1250 = vmatpush.msra.mxu2 %v8529_v51 }
 0x287   :  { %1310 = vmatpush.msrb.mxu1 %v5133_v61  ;;  %1350 = vmatpush.msrb.mxu3 %v5136_v4  ;;  %v5383_v4 = vld [vmem:[#allocation2 + $0x150] sm:$0xff]  ;;  %v5386_v61 = vld [vmem:[#allocation2 + $0x158] sm:$0xff] }
 0x288   :  { %1211 = vmatpush.msra.mxu0 %v8532_v63  ;;  %1251 = vmatpush.msra.mxu2 %v8533_v13 }
 0x289   :  { %1311 = vmatpush.msrb.mxu1 %v5141_v60  ;;  %1351 = vmatpush.msrb.mxu3 %v5144_v25  ;;  %v5392_v25 = vld [vmem:[#allocation2 + $0x138] sm:$0xff]  ;;  %v5395_v60 = vld [vmem:[#allocation2 + $0x110] sm:$0xff] }
 0x28a   :  { %1276 = vmatpush.msrb.mxu0 %v8536_v46  ;;  %1316 = vmatpush.msrb.mxu2 %v8537_v40  ;;  %v2569_v46 = vld [vmem:[%s7567_s0 + $0x68] sm:$0xff] }
 0x28c   :  { %1277 = vmatpush.msrb.mxu0 %v8540_v44  ;;  %1317 = vmatpush.msrb.mxu2 %v8541_v35 }
 0x28e   :  { %1278 = vmatpush.msrb.mxu0 %v8543_v43  ;;  %1318 = vmatpush.msrb.mxu2 %v5130_v52  ;;  %v5380_v52 = vld [vmem:[#allocation2 + $0x178] sm:$0xff] }
 0x290   :  { %1279 = vmatpush.msrb.mxu0 %v5369_v45  ;;  %1319 = vmatpush.msrb.mxu2 %v5372_v11 }
 0x292   :  { %1280 = vmatpush.msrb.mxu0 %v5377_v29  ;;  %1320 = vmatpush.msrb.mxu2 %v5380_v52 }
 0x294   :  { %1281 = vmatpush.msrb.mxu0 %v5383_v4  ;;  %1321 = vmatpush.msrb.mxu2 %v5386_v61 }
 0x296   :  { %1282 = vmatpush.msrb.mxu0 %v5389_v12  ;;  %1322 = vmatpush.msrb.mxu2 %v5392_v25 }
 0x298   :  { %1283 = vmatpush.msrb.mxu0 %v5395_v60  ;;  %1323 = vmatpush.msrb.mxu2 %v5398_v14 }
 0x29a   :  { %1284 = vmatpush.msrb.mxu0 %v5401_v16  ;;  %1324 = vmatpush.msrb.mxu2 %v5404_v18 }
 0x29c   :  { %1285 = vmatpush.msrb.mxu0 %v5407_v20  ;;  %1325 = vmatpush.msrb.mxu2 %v5410_v22 }
 0x29e   :  { %1286 = vmatpush.msrb.mxu0 %v5413_v24  ;;  %1326 = vmatpush.msrb.mxu2 %v5416_v26 }
 0x2a0   :  { %1287 = vmatpush.msrb.mxu0 %v5419_v28  ;;  %1327 = vmatpush.msrb.mxu2 %v5422_v10  ;;  %v948_v27 = vpop.f32.mrf.mxu1 }
 0x2a2   :  { %1288 = vmatpush.msrb.mxu0 %v5425_v30  ;;  %1328 = vmatpush.msrb.mxu2 %v5428_v32 }
 0x2a4   :  { %1289 = vmatpush.msrb.mxu0 %v5431_v34  ;;  %1329 = vmatpush.msrb.mxu2 %v5434_v36 }
 0x2a6   :  { %1290 = vmatpush.msrb.mxu0 %v5437_v37  ;;  %1330 = vmatpush.msrb.mxu2 %v5440_v33  ;;  %v988_v54 = vpop.f32.mrf.mxu3 }
 0x2a8   :  { %1291 = vmatpush.msrb.mxu0 %v5443_v31  ;;  %1331 = vmatpush.msrb.mxu2 %v5446_v38  ;;  %v1028_v58 = vpop.f32.mrf.mxu1 }
 0x2ae   :  { %v1068_v51 = vpop.f32.mrf.mxu3 }
 0x2c6   :  { %v928_v39 = vpop.f32.mrf.mxu0 }
 0x2c7   :  { %v929_v50 = vadd.f32 %v5452_v23, %v928_v39 }
 0x2c8   :  { %v1131_v40 = vpop.f32.mrf.mxu1 }
 0x2c9   :  { %v949_v0 = vadd.f32 %v948_v27, %v929_v50  ;;  %v1175_v1 = vadd.f32 %v2569_v46, %v1131_v40 }
 0x2cb   :  { %v1071_v6 = vmul.f32 0.5, %v949_v0  ;;  %v1182_v39 = vmul.f32 0.5, %v1175_v1  ;;  %v2568_v0 = vld [vmem:[%s7567_s0 + $0x60] sm:$0xff]  ;;  %v5540_v1 = vld [vmem:[%s7568_s1 + $0x168] sm:$0xff] }
 0x2cc   :  { %v968_v57 = vpop.f32.mrf.mxu2 }
 0x2cd   :  { %v969_v21 = vadd.f32 %v5458_v59, %v968_v57  ;;  %2643 = vtanh.f32 %v1071_v6 }
 0x2ce   :  { %v1008_v19 = vpop.f32.mrf.mxu0 }
 0x2cf   :  { %v989_v15 = vadd.f32 %v988_v54, %v969_v21  ;;  %v1009_v5 = vadd.f32 %v5464_v7, %v1008_v19  ;;  %v1171_v19 = vpop.f32.mrf.mxu3 }
 0x2d1   :  { %v1075_v3 = vmul.f32 0.5, %v989_v15  ;;  %v1029_v53 = vadd.f32 %v1028_v58, %v1009_v5 }
 0x2d3   :  { %2645 = vtanh.f32 %v1075_v3  ;;  %v2644_v48 = vpop.eup %2643  ;;  %v2570_v3 = vld [vmem:[%s7567_s0 + $0x70] sm:$0xff] }
 0x2d4   :  { %v1048_v47 = vpop.f32.mrf.mxu2  ;;  %2647 = vtanh.f32 %v1029_v53  ;;  %v1073_v56 = vmul.f32 0.5, %v2644_v48  ;;  %v5498_v48 = vld [vmem:[%s7568_s1 + $0x1f8] sm:$0xff] }
 0x2d5   :  { %v1049_v49 = vadd.f32 %v5470_v8, %v1048_v47  ;;  %v5492_v47 = vld [vmem:[%s7568_s1 + $0x1e8] sm:$0xff] }
 0x2d6   :  { %v1074_v41 = vadd.f32 0.5, %v1073_v56  ;;  %v5510_v56 = vld [vmem:[%s7568_s1 + $0x1d8] sm:$0xff] }
 0x2d7   :  { %v1069_v55 = vadd.f32 %v1068_v51, %v1049_v49 }
 0x2d9   :  { %v2646_v63 = vpop.eup %2645  ;;  %v1080_v13 = vmul.f32 0.5, %v1069_v55  ;;  %v5504_v55 = vld [vmem:[%s7568_s1 + $0x1c8] sm:$0xff] }
 0x2da   :  { %v1077_v17 = vmul.f32 0.5, %v2646_v63  ;;  %v2648_v9 = vpop.eup %2647 }
 0x2db   :  { %2649 = vtanh.f32 %v1080_v13  ;;  %v1085_v35 = vmul.f32 %v2648_v9, %v1074_v41  ;;  %v5522_v9 = vld [vmem:[%s7568_s1 + $0x1b8] sm:$0xff]  ;;  %v5528_v41 = vld [vmem:[%s7568_s1 + $0x188] sm:$0xff] }
 0x2dc   :  { %v1078_v42 = vadd.f32 0.5, %v1077_v17  ;;  %v5516_v17 = vld [vmem:[%s7568_s1 + $0x1a8] sm:$0xff] }
 0x2de   :  { %v1084_v44 = vmul.f32 %v1078_v42, %v5179_v2  ;;  %v2571_v2 = vld [vmem:[%s7567_s0 + $0x78] sm:$0xff] }
 0x2df   :  { %v1177_v58 = vadd.f32 %v2571_v2, %v1171_v19  ;;  %v5534_v42 = vld [vmem:[%s7568_s1 + $0x198] sm:$0xff] }
 0x2e0   :  { %v5477_v43 = vadd.f32 %v1085_v35, %v1084_v44 }
 0x2e1   :  { %v2650_v27 = vpop.eup %2649  ;;  %v1187_v13 = vmul.f32 0.5, %v1177_v58  ;;  %v5592_v58 = vld [vmem:[%s7568_s1 + $0xe8] sm:$0xff] }
 0x2e2   :  { %2651 = vtanh.f32 %v5477_v43  ;;  %v1082_v50 = vmul.f32 0.5, %v2650_v27  ;;  %v5546_v27 = vld [vmem:[%s7568_s1 + $0x178] sm:$0xff] }
 0x2e3   :  { %2653 = vtanh.f32 %v1182_v39 }
 0x2e4   :  { %v1083_v54 = vadd.f32 0.5, %v1082_v50  ;;  %v5552_v50 = vld [vmem:[%s7568_s1 + $0x148] sm:$0xff] }
 0x2e6   :  { %v1111_v6 = vpop.f32.mrf.mxu0 }
 0x2e7   :  { %v1174_v57 = vadd.f32 %v2568_v0, %v1111_v6  ;;  %v5558_v0 = vld [vmem:[%s7568_s1 + $0x158] sm:$0xff] }
 0x2e8   :  { %v2652_v21 = vpop.eup %2651 }
 0x2e9   :  { %v1178_v15 = vmul.f32 0.5, %v1174_v57  ;;  %v1088_v5 = vmul.f32 %v2652_v21, %v1083_v54  ;;  %v2654_v53 = vpop.eup %2653  ;;  %v5565_v57 = vld [vmem:[%s7568_s1 + $0x128] sm:$0xff]  ;;  %v5571_v21 = vld [vmem:[%s7568_s1 + $0x138] sm:$0xff] }
 0x2ea   :  { %v1184_v63 = vmul.f32 0.5, %v2654_v53  ;;  %v5604_v53 = vld [vmem:[%s7568_s1 + $0xc8] sm:$0xff] }
 0x2eb   :  { %2655 = vtanh.f32 %v1178_v15  ;;  %1232 = vmatmul.f32.vlgmr.msra.gmra.mxu1 %v1088_v5  ;;  %1272 = vmatmul.f32.vlgmr.msra.gmra.mxu3 %v1088_v5  ;;  %v5585_v15 = vld [vmem:[%s7568_s1 + $0x118] sm:$0xff] }
 0x2ec   :  { %1399 = vmatpush.msra.mxu1 %v5492_v47  ;;  %1439 = vmatpush.msra.mxu3 %v5498_v48  ;;  %v1151_v49 = vpop.f32.mrf.mxu2  ;;  %v1185_v44 = vadd.f32 0.5, %v1184_v63  ;;  %v5616_v63 = vld [vmem:[%s7568_s1 + $0xa8] sm:$0xff] }
 0x2ed   :  { %v1176_v51 = vadd.f32 %v2570_v3, %v1151_v49  ;;  %v5598_v3 = vld [vmem:[%s7568_s1 + $0xf8] sm:$0xff] }
 0x2ee   :  { %1400 = vmatpush.msra.mxu1 %v5504_v55  ;;  %1440 = vmatpush.msra.mxu3 %v5510_v56  ;;  %v1191_v6 = vmul.f32 %v1185_v44, %v5206_v62  ;;  %v5579_v62 = vld [vmem:[%s7568_s1 + $0x108] sm:$0xff]  ;;  %v5610_v49 = vld [vmem:[%s7568_s1 + $0xd8] sm:$0xff] }
 0x2ef   :  { %2657 = vtanh.f32 %v1176_v51  ;;  %v5630_v44 = vld [vmem:[%s7568_s1 + $0x88] sm:$0xff] }
 0x2f0   :  { %1401 = vmatpush.msra.mxu1 %v5516_v17  ;;  %1441 = vmatpush.msra.mxu3 %v5522_v9  ;;  %2659 = vtanh.f32 %v1187_v13  ;;  %v5622_v13 = vld [vmem:[%s7568_s1 + $0xb8] sm:$0xff] }
 0x2f1   :  { %v2656_v46 = vpop.eup %2655 }
 0x2f2   :  { %v1180_v40 = vmul.f32 0.5, %v2656_v46  ;;  %1402 = vmatpush.msra.mxu1 %v5528_v41  ;;  %1442 = vmatpush.msra.mxu3 %v5534_v42 }
 0x2f3   :  { %1312 = vmatmul.f32.vlgmr.msrb.gmra.mxu1 %v1088_v5  ;;  %1352 = vmatmul.f32.vlgmr.msrb.gmra.mxu3 %v1088_v5 }
 0x2f4   :  { %v1181_v35 = vadd.f32 0.5, %v1180_v40  ;;  %1403 = vmatpush.msra.mxu1 %v5540_v1  ;;  %1443 = vmatpush.msra.mxu3 %v5546_v27 }
 0x2f5   :  { %v2658_v39 = vpop.eup %2657 }
 0x2f6   :  { %1404 = vmatpush.msra.mxu1 %v5552_v50  ;;  %1444 = vmatpush.msra.mxu3 %v5558_v0  ;;  %v1192_v54 = vmul.f32 %v2658_v39, %v1181_v35  ;;  %v2660_v2 = vpop.eup %2659  ;;  %v5636_v35 = vld [vmem:[%s7568_s1 + $0x98] sm:$0xff]  ;;  %v5644_v39 = vld [vmem:[%s7568_s1 + $0x1e0] sm:$0xff] }
 0x2f7   :  { %v1189_v5 = vmul.f32 0.5, %v2660_v2  ;;  %8544 = vst [vmem:[#allocation53_spill] sm:$0xff] %v5644_v39  ;;  %v5662_v2 = vld [vmem:[%s7568_s1 + $0x78] sm:$0xff] }
 0x2f8   :  { %1405 = vmatpush.msra.mxu1 %v5565_v57  ;;  %1445 = vmatpush.msra.mxu3 %v5571_v21  ;;  %v5574_v19 = vadd.f32 %v1192_v54, %v1191_v6  ;;  %v5650_v6 = vld [vmem:[%s7568_s1 + $0x1f0] sm:$0xff]  ;;  %v5656_v54 = vld [vmem:[%s7568_s1 + $0x68] sm:$0xff] }
 0x2f9   :  { %v1190_v51 = vadd.f32 0.5, %v1189_v5  ;;  %8545 = vst [vmem:[#allocation56_spill] sm:$0xff] %v5650_v6  ;;  %v5668_v5 = vld [vmem:[%s7568_s1 + $0x1c0] sm:$0xff] }
 0x2fa   :  { %1406 = vmatpush.msra.mxu1 %v5579_v62  ;;  %1446 = vmatpush.msra.mxu3 %v5585_v15  ;;  %2661 = vtanh.f32 %v5574_v19  ;;  %8546 = vst [vmem:[#allocation61_spill] sm:$0xff] %v5668_v5 }
 0x2fc   :  { %1407 = vmatpush.msra.mxu1 %v5592_v58  ;;  %1447 = vmatpush.msra.mxu3 %v5598_v3 }
 0x2fe   :  { %1408 = vmatpush.msra.mxu1 %v5604_v53  ;;  %1448 = vmatpush.msra.mxu3 %v5610_v49 }
 0x300   :  { %1409 = vmatpush.msra.mxu1 %v5616_v63  ;;  %1449 = vmatpush.msra.mxu3 %v5622_v13  ;;  %v2662_v46 = vpop.eup %2661 }
 0x301   :  { %v5625_v40 = vmul.f32 %v2662_v46, %v1190_v51  ;;  %v5674_v51 = vld [vmem:[%s7568_s1 + $0x1d0] sm:$0xff]  ;;  %v5680_v46 = vld [vmem:[%s7568_s1 + $0x48] sm:$0xff] }
 0x302   :  { %1410 = vmatpush.msra.mxu1 %v5630_v44  ;;  %1450 = vmatpush.msra.mxu3 %v5636_v35  ;;  %8547 = vst [vmem:[#allocation64_spill] sm:$0xff] %v5674_v51 }
 0x303   :  { %1212 = vmatmul.f32.vlgmr.msra.gmra.mxu0 %v5625_v40  ;;  %1252 = vmatmul.f32.vlgmr.msra.gmra.mxu2 %v5625_v40  ;;  %8548 = vst [vmem:[#allocation57_spill] sm:$0xff] %v5680_v46 }
 0x304   :  { %1379 = vmatpush.msra.mxu0 %v5644_v39  ;;  %1419 = vmatpush.msra.mxu2 %v5650_v6  ;;  %v5686_v6 = vld [vmem:[%s7568_s1 + $0x58] sm:$0xff]  ;;  %v5774_v39 = vld [vmem:[%s7568_s1 + $0x120] sm:$0xff] }
 0x305   :  { %1411 = vmatpush.msra.mxu1 %v5656_v54  ;;  %1451 = vmatpush.msra.mxu3 %v5662_v2  ;;  %8549 = vst [vmem:[#allocation60_spill] sm:$0xff] %v5686_v6 }
 0x306   :  { %1380 = vmatpush.msra.mxu0 %v5668_v5  ;;  %1420 = vmatpush.msra.mxu2 %v5674_v51  ;;  %v5692_v5 = vld [vmem:[%s7568_s1 + $0x1a0] sm:$0xff]  ;;  %v5698_v51 = vld [vmem:[%s7568_s1 + $0x1b0] sm:$0xff]  ;;  %8564 = vst [vmem:[#allocation84_spill] sm:$0xff] %v5774_v39 }
 0x307   :  { %1412 = vmatpush.msra.mxu1 %v5680_v46  ;;  %1452 = vmatpush.msra.mxu3 %v5686_v6  ;;  %8550 = vst [vmem:[#allocation69_spill] sm:$0xff] %v5692_v5  ;;  %v5704_v46 = vld [vmem:[%s7568_s1 + $0x28] sm:$0xff]  ;;  %v5710_v6 = vld [vmem:[%s7568_s1 + $0x38] sm:$0xff] }
 0x308   :  { %1381 = vmatpush.msra.mxu0 %v5692_v5  ;;  %8551 = vst [vmem:[#allocation72_spill] sm:$0xff] %v5698_v51  ;;  %1421 = vmatpush.msra.mxu2 %v5698_v51  ;;  %v5716_v5 = vld [vmem:[%s7568_s1 + $0x180] sm:$0xff]  ;;  %v5722_v51 = vld [vmem:[%s7568_s1 + $0x190] sm:$0xff] }
 0x309   :  { %8552 = vst [vmem:[#allocation65_spill] sm:$0xff] %v5704_v46  ;;  %1413 = vmatpush.msra.mxu1 %v5704_v46  ;;  %1453 = vmatpush.msra.mxu3 %v5710_v6  ;;  %v5728_v46 = vld [vmem:[%s7568_s1 + $0x8] sm:$0xff] }
 0x30a   :  { %8553 = vst [vmem:[#allocation68_spill] sm:$0xff] %v5710_v6  ;;  %1382 = vmatpush.msra.mxu0 %v5716_v5  ;;  %1422 = vmatpush.msra.mxu2 %v5722_v51  ;;  %v5734_v6 = vld [vmem:[%s7568_s1 + $0x18] sm:$0xff] }
 0x30b   :  { %8554 = vst [vmem:[#allocation6_spill] sm:$0xff] %v5716_v5  ;;  %1414 = vmatpush.msra.mxu1 %v5728_v46  ;;  %1454 = vmatpush.msra.mxu3 %v5734_v6  ;;  %v5749_v5 = vld [vmem:[%s7568_s1 + $0x170] sm:$0xff] }
 0x30c   :  { %8555 = vst [vmem:[#allocation7_spill] sm:$0xff] %v5722_v51  ;;  %1292 = vmatmul.f32.vlgmr.msrb.gmra.mxu0 %v5625_v40  ;;  %1332 = vmatmul.f32.vlgmr.msrb.gmra.mxu2 %v5625_v40  ;;  %v5742_v51 = vld [vmem:[%s7568_s1 + $0x160] sm:$0xff] }
 0x30d   :  { %8556 = vst [vmem:[#allocation76_spill] sm:$0xff] %v5728_v46  ;;  %1383 = vmatpush.msra.mxu0 %v5742_v51  ;;  %1415 = vmatmul.f32.vlgmr.msra.gmra.mxu1 %v5625_v40  ;;  %v5759_v46 = vld [vmem:[#allocation2 + $0x3e0] sm:$0xff] }
 0x30e   :  { %8557 = vst [vmem:[#allocation5_spill] sm:$0xff] %v5734_v6  ;;  %1423 = vmatpush.msra.mxu2 %v5749_v5  ;;  %1455 = vmatmul.f32.vlgmr.msra.gmra.mxu3 %v5625_v40  ;;  %v5756_v6 = vld [vmem:[%s7568_s1 + $0x140] sm:$0xff] }
 0x30f   :  { %8558 = vst [vmem:[#allocation74_spill] sm:$0xff] %v5742_v51  ;;  %1384 = vmatpush.msra.mxu0 %v5756_v6  ;;  %1501 = vmatpush.msrb.mxu1 %v5759_v46  ;;  %v5765_v51 = vld [vmem:[%s7568_s1 + $0x150] sm:$0xff] }
 0x310   :  { %8559 = vst [vmem:[#allocation8_spill] sm:$0xff] %v5749_v5  ;;  %1424 = vmatpush.msra.mxu2 %v5765_v51  ;;  %v5768_v5 = vld [vmem:[#allocation2 + $0x3e8] sm:$0xff] }
 0x311   :  { %8560 = vst [vmem:[#allocation81_spill] sm:$0xff] %v5756_v6  ;;  %1541 = vmatpush.msrb.mxu3 %v5768_v5  ;;  %1385 = vmatpush.msra.mxu0 %v5774_v39  ;;  %v5777_v6 = vld [vmem:[#allocation2 + $0x3c0] sm:$0xff] }
 0x312   :  { %8561 = vst [vmem:[#allocation9_spill] sm:$0xff] %v5759_v46  ;;  %1502 = vmatpush.msrb.mxu1 %v5777_v6  ;;  %v5783_v46 = vld [vmem:[%s7568_s1 + $0x130] sm:$0xff]  ;;  %v5795_v39 = vld [vmem:[#allocation2 + $0x3a0] sm:$0xff] }
 0x313   :  { %8562 = vst [vmem:[#allocation78_spill] sm:$0xff] %v5765_v51  ;;  %1425 = vmatpush.msra.mxu2 %v5783_v46  ;;  %v5786_v51 = vld [vmem:[#allocation2 + $0x3c8] sm:$0xff] }
 0x314   :  { %8563 = vst [vmem:[#allocation10_spill] sm:$0xff] %v5768_v5  ;;  %1542 = vmatpush.msrb.mxu3 %v5786_v51  ;;  %v5792_v5 = vld [vmem:[%s7568_s1 + $0x100] sm:$0xff]  ;;  %1503 = vmatpush.msrb.mxu1 %v5795_v39 }
 0x315   :  { %8565 = vst [vmem:[#allocation11_spill] sm:$0xff] %v5777_v6  ;;  %1386 = vmatpush.msra.mxu0 %v5792_v5  ;;  %v5801_v6 = vld [vmem:[%s7568_s1 + $0x110] sm:$0xff] }
 0x316   :  { %8566 = vst [vmem:[#allocation82_spill] sm:$0xff] %v5783_v46  ;;  %1426 = vmatpush.msra.mxu2 %v5801_v6  ;;  %v5804_v46 = vld [vmem:[#allocation2 + $0x3a8] sm:$0xff] }
 0x317   :  { %8567 = vst [vmem:[#allocation12_spill] sm:$0xff] %v5786_v51  ;;  %1543 = vmatpush.msrb.mxu3 %v5804_v46  ;;  %v5810_v51 = vld [vmem:[%s7568_s1 + $0xe0] sm:$0xff] }
 0x318   :  { %8568 = vst [vmem:[#allocation13_spill] sm:$0xff] %v5792_v5  ;;  %1387 = vmatpush.msra.mxu0 %v5810_v51  ;;  %v5813_v5 = vld [vmem:[#allocation2 + $0x380] sm:$0xff] }
 0x319   :  { %8569 = vst [vmem:[#allocation14_spill] sm:$0xff] %v5795_v39  ;;  %1504 = vmatpush.msrb.mxu1 %v5813_v5  ;;  %v5819_v39 = vld [vmem:[%s7568_s1 + $0xf0] sm:$0xff] }
 0x31a   :  { %8570 = vst [vmem:[#allocation15_spill] sm:$0xff] %v5801_v6  ;;  %1427 = vmatpush.msra.mxu2 %v5819_v39  ;;  %v5822_v6 = vld [vmem:[#allocation2 + $0x388] sm:$0xff] }
 0x31b   :  { %8571 = vst [vmem:[#allocation85_spill] sm:$0xff] %v5804_v46  ;;  %1544 = vmatpush.msrb.mxu3 %v5822_v6  ;;  %v5828_v46 = vld [vmem:[%s7568_s1 + $0xc0] sm:$0xff] }
 0x31c   :  { %8572 = vst [vmem:[#allocation16_spill] sm:$0xff] %v5810_v51  ;;  %1388 = vmatpush.msra.mxu0 %v5828_v46  ;;  %v5831_v51 = vld [vmem:[#allocation2 + $0x360] sm:$0xff] }
 0x31d   :  { %8573 = vst [vmem:[#allocation89_spill] sm:$0xff] %v5813_v5  ;;  %1505 = vmatpush.msrb.mxu1 %v5831_v51  ;;  %v5837_v5 = vld [vmem:[%s7568_s1 + $0xd0] sm:$0xff] }
 0x31e   :  { %8574 = vst [vmem:[#allocation17_spill] sm:$0xff] %v5819_v39  ;;  %1428 = vmatpush.msra.mxu2 %v5837_v5  ;;  %v5840_v39 = vld [vmem:[#allocation2 + $0x368] sm:$0xff] }
 0x31f   :  { %8575 = vst [vmem:[#allocation87_spill] sm:$0xff] %v5822_v6  ;;  %1545 = vmatpush.msrb.mxu3 %v5840_v39  ;;  %v5846_v6 = vld [vmem:[%s7568_s1 + $0xa0] sm:$0xff] }
 0x320   :  { %8576 = vst [vmem:[#allocation18_spill] sm:$0xff] %v5828_v46  ;;  %1389 = vmatpush.msra.mxu0 %v5846_v6  ;;  %v5849_v46 = vld [vmem:[#allocation2 + $0x340] sm:$0xff] }
 0x321   :  { %8577 = vst [vmem:[#allocation91_spill] sm:$0xff] %v5831_v51  ;;  %1506 = vmatpush.msrb.mxu1 %v5849_v46  ;;  %v5855_v51 = vld [vmem:[%s7568_s1 + $0xb0] sm:$0xff] }
 0x322   :  { %8578 = vst [vmem:[#allocation19_spill] sm:$0xff] %v5837_v5  ;;  %1429 = vmatpush.msra.mxu2 %v5855_v51  ;;  %v5858_v5 = vld [vmem:[#allocation2 + $0x348] sm:$0xff] }
 0x323   :  { %8579 = vst [vmem:[#allocation90_spill] sm:$0xff] %v5840_v39  ;;  %1546 = vmatpush.msrb.mxu3 %v5858_v5  ;;  %v5864_v39 = vld [vmem:[%s7568_s1 + $0x80] sm:$0xff] }
 0x324   :  { %8580 = vst [vmem:[#allocation20_spill] sm:$0xff] %v5846_v6  ;;  %1390 = vmatpush.msra.mxu0 %v5864_v39  ;;  %v5867_v6 = vld [vmem:[#allocation2 + $0x320] sm:$0xff] }
 0x325   :  { %8581 = vst [vmem:[#allocation93_spill] sm:$0xff] %v5849_v46  ;;  %1507 = vmatpush.msrb.mxu1 %v5867_v6  ;;  %v5873_v46 = vld [vmem:[%s7568_s1 + $0x90] sm:$0xff] }
 0x326   :  { %8582 = vst [vmem:[#allocation21_spill] sm:$0xff] %v5855_v51  ;;  %1430 = vmatpush.msra.mxu2 %v5873_v46  ;;  %v5876_v51 = vld [vmem:[#allocation2 + $0x328] sm:$0xff] }
 0x327   :  { %8583 = vst [vmem:[#allocation92_spill] sm:$0xff] %v5858_v5  ;;  %1547 = vmatpush.msrb.mxu3 %v5876_v51  ;;  %v5882_v5 = vld [vmem:[%s7568_s1 + $0x60] sm:$0xff] }
 0x328   :  { %8584 = vst [vmem:[#allocation22_spill] sm:$0xff] %v5864_v39  ;;  %1391 = vmatpush.msra.mxu0 %v5882_v5  ;;  %v5885_v39 = vld [vmem:[#allocation2 + $0x300] sm:$0xff] }
 0x329   :  { %8585 = vst [vmem:[#allocation95_spill] sm:$0xff] %v5867_v6  ;;  %1508 = vmatpush.msrb.mxu1 %v5885_v39  ;;  %v5891_v6 = vld [vmem:[%s7568_s1 + $0x70] sm:$0xff] }
 0x32a   :  { %8586 = vst [vmem:[#allocation23_spill] sm:$0xff] %v5873_v46  ;;  %1431 = vmatpush.msra.mxu2 %v5891_v6  ;;  %v5894_v46 = vld [vmem:[#allocation2 + $0x308] sm:$0xff] }
 0x32b   :  { %8587 = vst [vmem:[#allocation94_spill] sm:$0xff] %v5876_v51  ;;  %1548 = vmatpush.msrb.mxu3 %v5894_v46  ;;  %v5900_v51 = vld [vmem:[%s7568_s1 + $0x40] sm:$0xff] }
 0x32c   :  { %8588 = vst [vmem:[#allocation24_spill] sm:$0xff] %v5882_v5  ;;  %1392 = vmatpush.msra.mxu0 %v5900_v51  ;;  %v5903_v5 = vld [vmem:[#allocation2 + $0x2e0] sm:$0xff] }
 0x32d   :  { %8589 = vst [vmem:[#allocation97_spill] sm:$0xff] %v5885_v39  ;;  %1509 = vmatpush.msrb.mxu1 %v5903_v5  ;;  %v5909_v39 = vld [vmem:[%s7568_s1 + $0x50] sm:$0xff] }
 0x32e   :  { %8590 = vst [vmem:[#allocation25_spill] sm:$0xff] %v5891_v6  ;;  %1432 = vmatpush.msra.mxu2 %v5909_v39  ;;  %v5912_v6 = vld [vmem:[#allocation2 + $0x2e8] sm:$0xff] }
 0x32f   :  { %8591 = vst [vmem:[#allocation96_spill] sm:$0xff] %v5894_v46  ;;  %1549 = vmatpush.msrb.mxu3 %v5912_v6  ;;  %v5918_v46 = vld [vmem:[%s7568_s1 + $0x20] sm:$0xff] }
 0x330   :  { %8592 = vst [vmem:[#allocation26_spill] sm:$0xff] %v5900_v51  ;;  %1393 = vmatpush.msra.mxu0 %v5918_v46  ;;  %v5921_v51 = vld [vmem:[#allocation2 + $0x2c0] sm:$0xff] }
 0x331   :  { %8593 = vst [vmem:[#allocation99_spill] sm:$0xff] %v5903_v5  ;;  %1510 = vmatpush.msrb.mxu1 %v5921_v51  ;;  %v5927_v5 = vld [vmem:[%s7568_s1 + $0x30] sm:$0xff] }
 0x332   :  { %8594 = vst [vmem:[#allocation27_spill] sm:$0xff] %v5909_v39  ;;  %1433 = vmatpush.msra.mxu2 %v5927_v5  ;;  %v5930_v39 = vld [vmem:[#allocation2 + $0x2c8] sm:$0xff] }
 0x333   :  { %8595 = vst [vmem:[#allocation98_spill] sm:$0xff] %v5912_v6  ;;  %1550 = vmatpush.msrb.mxu3 %v5930_v39  ;;  %v5936_v6 = vld [vmem:[%s7568_s1] sm:$0xff] }
 0x334   :  { %8596 = vst [vmem:[#allocation28_spill] sm:$0xff] %v5918_v46  ;;  %1394 = vmatpush.msra.mxu0 %v5936_v6  ;;  %v5939_v46 = vld [vmem:[#allocation2 + $0x2a0] sm:$0xff] }
 0x335   :  { %8597 = vst [vmem:[#allocation101_spill] sm:$0xff] %v5921_v51  ;;  %1511 = vmatpush.msrb.mxu1 %v5939_v46  ;;  %v5945_v51 = vld [vmem:[%s7568_s1 + $0x10] sm:$0xff]  ;;  %1395 = vmatmul.f32.vlgmr.msra.gmra.mxu0 %v5625_v40 }
 0x336   :  { %8598 = vst [vmem:[#allocation29_spill] sm:$0xff] %v5927_v5  ;;  %1434 = vmatpush.msra.mxu2 %v5945_v51  ;;  %v5959_v5 = vld [vmem:[#allocation2 + $0x288] sm:$0xff] }
 0x337   :  { %8599 = vst [vmem:[#allocation100_spill] sm:$0xff] %v5930_v39  ;;  %1435 = vmatmul.f32.vlgmr.msra.gmra.mxu2 %v5625_v40  ;;  %v5950_v39 = vld [vmem:[#allocation2 + $0x2a8] sm:$0xff]  ;;  %v5965_v40 = vld [vmem:[#allocation2 + $0x260] sm:$0xff] }
 0x338   :  { %8600 = vst [vmem:[#allocation30_spill] sm:$0xff] %v5936_v6  ;;  %1551 = vmatpush.msrb.mxu3 %v5950_v39  ;;  %v5953_v6 = vld [vmem:[#allocation2 + $0x280] sm:$0xff] }
 0x339   :  { %8601 = vst [vmem:[#allocation31_spill] sm:$0xff] %v5939_v46  ;;  %1512 = vmatpush.msrb.mxu1 %v5953_v6  ;;  %v5956_v46 = vld [vmem:[#allocation2 + $0x1e0] sm:$0xff] }
 0x33a   :  { %8602 = vst [vmem:[#allocation102_spill] sm:$0xff] %v5945_v51  ;;  %1481 = vmatpush.msrb.mxu0 %v5956_v46  ;;  %1552 = vmatpush.msrb.mxu3 %v5959_v5  ;;  %v5962_v51 = vld [vmem:[#allocation2 + $0x1e8] sm:$0xff] }
 0x33b   :  { %8603 = vst [vmem:[#allocation32_spill] sm:$0xff] %v5950_v39  ;;  %1521 = vmatpush.msrb.mxu2 %v5962_v51  ;;  %1513 = vmatpush.msrb.mxu1 %v5965_v40  ;;  %v5968_v39 = vld [vmem:[#allocation2 + $0x1c0] sm:$0xff] }
 0x33c   :  { %8604 = vst [vmem:[#allocation33_spill] sm:$0xff] %v5953_v6  ;;  %1482 = vmatpush.msrb.mxu0 %v5968_v39  ;;  %v5971_v6 = vld [vmem:[#allocation2 + $0x268] sm:$0xff] }
 0x33d   :  { %8605 = vst [vmem:[#allocation103_spill] sm:$0xff] %v5956_v46  ;;  %1553 = vmatpush.msrb.mxu3 %v5971_v6  ;;  %v5974_v46 = vld [vmem:[#allocation2 + $0x1c8] sm:$0xff] }
 0x33e   :  { %8606 = vst [vmem:[#allocation34_spill] sm:$0xff] %v5959_v5  ;;  %1522 = vmatpush.msrb.mxu2 %v5974_v46  ;;  %v5977_v5 = vld [vmem:[#allocation2 + $0x240] sm:$0xff] }
 0x33f   :  { %8607 = vst [vmem:[#allocation35_spill] sm:$0xff] %v5962_v51  ;;  %1514 = vmatpush.msrb.mxu1 %v5977_v5  ;;  %v5980_v51 = vld [vmem:[#allocation2 + $0x1a0] sm:$0xff] }
 0x340   :  { %8608 = vst [vmem:[#allocation36_spill] sm:$0xff] %v5965_v40  ;;  %1483 = vmatpush.msrb.mxu0 %v5980_v51  ;;  %v5983_v40 = vld [vmem:[#allocation2 + $0x248] sm:$0xff] }
 0x341   :  { %8609 = vst [vmem:[#allocation37_spill] sm:$0xff] %v5968_v39  ;;  %1554 = vmatpush.msrb.mxu3 %v5983_v40  ;;  %v5986_v39 = vld [vmem:[#allocation2 + $0x1a8] sm:$0xff] }
 0x342   :  { %8610 = vst [vmem:[#allocation38_spill] sm:$0xff] %v5971_v6  ;;  %1523 = vmatpush.msrb.mxu2 %v5986_v39  ;;  %v5989_v6 = vld [vmem:[#allocation2 + $0x220] sm:$0xff] }
 0x343   :  { %8611 = vst [vmem:[#allocation39_spill] sm:$0xff] %v5974_v46  ;;  %1515 = vmatpush.msrb.mxu1 %v5989_v6  ;;  %v5992_v46 = vld [vmem:[#allocation2 + $0x180] sm:$0xff] }
 0x344   :  { %8612 = vst [vmem:[#allocation40_spill] sm:$0xff] %v5977_v5  ;;  %1484 = vmatpush.msrb.mxu0 %v5992_v46  ;;  %v5995_v5 = vld [vmem:[#allocation2 + $0x228] sm:$0xff] }
 0x345   :  { %8613 = vst [vmem:[#allocation41_spill] sm:$0xff] %v5980_v51  ;;  %1555 = vmatpush.msrb.mxu3 %v5995_v5  ;;  %v5998_v51 = vld [vmem:[#allocation2 + $0x188] sm:$0xff] }
 0x346   :  { %8614 = vst [vmem:[#allocation42_spill] sm:$0xff] %v5983_v40  ;;  %1524 = vmatpush.msrb.mxu2 %v5998_v51  ;;  %v6001_v40 = vld [vmem:[#allocation2 + $0x200] sm:$0xff] }
 0x347   :  { %8615 = vst [vmem:[#allocation43_spill] sm:$0xff] %v5986_v39  ;;  %1516 = vmatpush.msrb.mxu1 %v6001_v40  ;;  %v6004_v39 = vld [vmem:[#allocation2 + $0x160] sm:$0xff] }
 0x348   :  { %8616 = vst [vmem:[#allocation44_spill] sm:$0xff] %v5989_v6  ;;  %1485 = vmatpush.msrb.mxu0 %v6004_v39  ;;  %v6007_v6 = vld [vmem:[#allocation2 + $0x208] sm:$0xff] }
 0x349   :  { %8617 = vst [vmem:[#allocation45_spill] sm:$0xff] %v5992_v46  ;;  %1556 = vmatpush.msrb.mxu3 %v6007_v6  ;;  %v6010_v46 = vld [vmem:[#allocation2 + $0x168] sm:$0xff] }
 0x34a   :  { %8618 = vst [vmem:[#allocation46_spill] sm:$0xff] %v5995_v5  ;;  %1525 = vmatpush.msrb.mxu2 %v6010_v46  ;;  %v6013_v5 = vld [vmem:[#allocation2 + $0x3f0] sm:$0xff] }
 0x34b   :  { %8619 = vst [vmem:[#allocation47_spill] sm:$0xff] %v5998_v51  ;;  %1581 = vmatpush.msra.mxu1 %v6013_v5  ;;  %v6016_v51 = vld [vmem:[#allocation2 + $0x3f8] sm:$0xff] }
 0x34c   :  { %8620 = vst [vmem:[#allocation48_spill] sm:$0xff] %v6001_v40  ;;  %1621 = vmatpush.msra.mxu3 %v6016_v51  ;;  %v6019_v40 = vld [vmem:[#allocation2 + $0x140] sm:$0xff] }
 0x34d   :  { %8621 = vst [vmem:[#allocation49_spill] sm:$0xff] %v6004_v39  ;;  %1486 = vmatpush.msrb.mxu0 %v6019_v40  ;;  %v6022_v39 = vld [vmem:[#allocation2 + $0x148] sm:$0xff] }
 0x34e   :  { %8622 = vst [vmem:[#allocation50_spill] sm:$0xff] %v6007_v6  ;;  %1526 = vmatpush.msrb.mxu2 %v6022_v39  ;;  %v6025_v6 = vld [vmem:[#allocation2 + $0x3d0] sm:$0xff] }
 0x34f   :  { %8623 = vst [vmem:[#allocation51_spill] sm:$0xff] %v6010_v46  ;;  %1582 = vmatpush.msra.mxu1 %v6025_v6  ;;  %v6028_v46 = vld [vmem:[#allocation2 + $0x3d8] sm:$0xff] }
 0x350   :  { %8624 = vst [vmem:[#allocation52_spill] sm:$0xff] %v6013_v5  ;;  %1622 = vmatpush.msra.mxu3 %v6028_v46  ;;  %v6031_v5 = vld [vmem:[#allocation2 + $0x120] sm:$0xff] }
 0x351   :  { %8625 = vst [vmem:[#allocation54_spill] sm:$0xff] %v6016_v51  ;;  %1487 = vmatpush.msrb.mxu0 %v6031_v5  ;;  %v6034_v51 = vld [vmem:[#allocation2 + $0x128] sm:$0xff] }
 0x352   :  { %8626 = vst [vmem:[#allocation55_spill] sm:$0xff] %v6019_v40  ;;  %1527 = vmatpush.msrb.mxu2 %v6034_v51  ;;  %v6037_v40 = vld [vmem:[#allocation2 + $0x3b0] sm:$0xff] }
 0x353   :  { %8627 = vst [vmem:[#allocation58_spill] sm:$0xff] %v6022_v39  ;;  %1583 = vmatpush.msra.mxu1 %v6037_v40  ;;  %v6040_v39 = vld [vmem:[#allocation2 + $0x3b8] sm:$0xff] }
 0x354   :  { %8628 = vst [vmem:[#allocation59_spill] sm:$0xff] %v6025_v6  ;;  %1623 = vmatpush.msra.mxu3 %v6040_v39  ;;  %v6043_v6 = vld [vmem:[#allocation2 + $0x100] sm:$0xff] }
 0x355   :  { %8629 = vst [vmem:[#allocation62_spill] sm:$0xff] %v6028_v46  ;;  %1488 = vmatpush.msrb.mxu0 %v6043_v6  ;;  %v6046_v46 = vld [vmem:[#allocation2 + $0x108] sm:$0xff] }
 0x356   :  { %8630 = vst [vmem:[#allocation63_spill] sm:$0xff] %v6031_v5  ;;  %1528 = vmatpush.msrb.mxu2 %v6046_v46  ;;  %v6049_v5 = vld [vmem:[#allocation2 + $0x390] sm:$0xff] }
 0x357   :  { %8631 = vst [vmem:[#allocation66_spill] sm:$0xff] %v6034_v51  ;;  %1584 = vmatpush.msra.mxu1 %v6049_v5  ;;  %v6052_v51 = vld [vmem:[#allocation2 + $0x398] sm:$0xff] }
 0x358   :  { %8632 = vst [vmem:[#allocation67_spill] sm:$0xff] %v6037_v40  ;;  %1624 = vmatpush.msra.mxu3 %v6052_v51  ;;  %v6055_v40 = vld [vmem:[#allocation2 + $0xe0] sm:$0xff] }
 0x359   :  { %8633 = vst [vmem:[#allocation70_spill] sm:$0xff] %v6040_v39  ;;  %1489 = vmatpush.msrb.mxu0 %v6055_v40  ;;  %v6058_v39 = vld [vmem:[#allocation2 + $0xe8] sm:$0xff] }
 0x35a   :  { %8634 = vst [vmem:[#allocation71_spill] sm:$0xff] %v6043_v6  ;;  %1529 = vmatpush.msrb.mxu2 %v6058_v39  ;;  %v6061_v6 = vld [vmem:[#allocation2 + $0x370] sm:$0xff] }
 0x35b   :  { %8635 = vst [vmem:[#allocation73_spill] sm:$0xff] %v6046_v46  ;;  %1585 = vmatpush.msra.mxu1 %v6061_v6  ;;  %v6064_v46 = vld [vmem:[#allocation2 + $0x378] sm:$0xff] }
 0x35c   :  { %8636 = vst [vmem:[#allocation75_spill] sm:$0xff] %v6049_v5  ;;  %1625 = vmatpush.msra.mxu3 %v6064_v46  ;;  %v6067_v5 = vld [vmem:[#allocation2 + $0xc0] sm:$0xff] }
 0x35d   :  { %8637 = vst [vmem:[#allocation77_spill] sm:$0xff] %v6052_v51  ;;  %1490 = vmatpush.msrb.mxu0 %v6067_v5  ;;  %v6070_v51 = vld [vmem:[#allocation2 + $0xc8] sm:$0xff] }
 0x35e   :  { %8638 = vst [vmem:[#allocation79_spill] sm:$0xff] %v6055_v40  ;;  %1530 = vmatpush.msrb.mxu2 %v6070_v51  ;;  %v6073_v40 = vld [vmem:[#allocation2 + $0x350] sm:$0xff] }
 0x35f   :  { %8639 = vst [vmem:[#allocation80_spill] sm:$0xff] %v6058_v39  ;;  %1586 = vmatpush.msra.mxu1 %v6073_v40  ;;  %v6076_v39 = vld [vmem:[#allocation2 + $0x358] sm:$0xff] }
 0x360   :  { %8640 = vst [vmem:[#allocation83_spill] sm:$0xff] %v6061_v6  ;;  %1626 = vmatpush.msra.mxu3 %v6076_v39  ;;  %v6079_v6 = vld [vmem:[#allocation2 + $0xa0] sm:$0xff] }
 0x361   :  { %8641 = vst [vmem:[#allocation86_spill] sm:$0xff] %v6064_v46  ;;  %1491 = vmatpush.msrb.mxu0 %v6079_v6  ;;  %v6082_v46 = vld [vmem:[#allocation2 + $0xa8] sm:$0xff] }
 0x362   :  { %8642 = vst [vmem:[#allocation88_spill] sm:$0xff] %v6067_v5  ;;  %1531 = vmatpush.msrb.mxu2 %v6082_v46  ;;  %v6085_v5 = vld [vmem:[#allocation2 + $0x330] sm:$0xff] }
 0x363   :  { %8643 = vst [vmem:[#allocation104_spill] sm:$0xff] %v6070_v51  ;;  %1587 = vmatpush.msra.mxu1 %v6085_v5  ;;  %v6088_v51 = vld [vmem:[#allocation2 + $0x338] sm:$0xff] }
 0x364   :  { %8644 = vst [vmem:[#allocation105_spill] sm:$0xff] %v6073_v40  ;;  %1627 = vmatpush.msra.mxu3 %v6088_v51  ;;  %v6091_v40 = vld [vmem:[#allocation2 + $0x80] sm:$0xff] }
 0x365   :  { %8645 = vst [vmem:[#allocation106_spill] sm:$0xff] %v6076_v39  ;;  %1492 = vmatpush.msrb.mxu0 %v6091_v40  ;;  %v6094_v39 = vld [vmem:[#allocation2 + $0x88] sm:$0xff] }
 0x366   :  { %8646 = vst [vmem:[#allocation107_spill] sm:$0xff] %v6079_v6  ;;  %1532 = vmatpush.msrb.mxu2 %v6094_v39  ;;  %v6097_v6 = vld [vmem:[#allocation2 + $0x310] sm:$0xff] }
 0x367   :  { %8647 = vst [vmem:[#allocation108_spill] sm:$0xff] %v6082_v46  ;;  %1588 = vmatpush.msra.mxu1 %v6097_v6  ;;  %v6100_v46 = vld [vmem:[#allocation2 + $0x318] sm:$0xff] }
 0x368   :  { %8648 = vst [vmem:[#allocation109_spill] sm:$0xff] %v6085_v5  ;;  %1628 = vmatpush.msra.mxu3 %v6100_v46  ;;  %v6103_v5 = vld [vmem:[#allocation2 + $0x60] sm:$0xff] }
 0x369   :  { %8649 = vst [vmem:[#allocation110_spill] sm:$0xff] %v6088_v51  ;;  %1493 = vmatpush.msrb.mxu0 %v6103_v5  ;;  %v6106_v51 = vld [vmem:[#allocation2 + $0x68] sm:$0xff] }
 0x36a   :  { %8650 = vst [vmem:[#allocation111_spill] sm:$0xff] %v6091_v40  ;;  %1533 = vmatpush.msrb.mxu2 %v6106_v51  ;;  %v6109_v40 = vld [vmem:[#allocation2 + $0x2f0] sm:$0xff] }
 0x36b   :  { %8651 = vst [vmem:[#allocation112_spill] sm:$0xff] %v6094_v39  ;;  %1589 = vmatpush.msra.mxu1 %v6109_v40  ;;  %v6112_v39 = vld [vmem:[#allocation2 + $0x2f8] sm:$0xff] }
 0x36c   :  { %8652 = vst [vmem:[#allocation113_spill] sm:$0xff] %v6097_v6  ;;  %1629 = vmatpush.msra.mxu3 %v6112_v39  ;;  %v6115_v6 = vld [vmem:[#allocation2 + $0x40] sm:$0xff] }
 0x36d   :  { %8653 = vst [vmem:[#allocation114_spill] sm:$0xff] %v6100_v46  ;;  %1494 = vmatpush.msrb.mxu0 %v6115_v6  ;;  %v6118_v46 = vld [vmem:[#allocation2 + $0x48] sm:$0xff] }
 0x36e   :  { %8654 = vst [vmem:[#allocation115_spill] sm:$0xff] %v6103_v5  ;;  %1534 = vmatpush.msrb.mxu2 %v6118_v46  ;;  %v6121_v5 = vld [vmem:[#allocation2 + $0x2d0] sm:$0xff] }
 0x36f   :  { %8655 = vst [vmem:[#allocation116_spill] sm:$0xff] %v6106_v51  ;;  %1590 = vmatpush.msra.mxu1 %v6121_v5  ;;  %v6124_v51 = vld [vmem:[#allocation2 + $0x2d8] sm:$0xff] }
 0x370   :  { %8656 = vst [vmem:[#allocation117_spill] sm:$0xff] %v6109_v40  ;;  %1630 = vmatpush.msra.mxu3 %v6124_v51  ;;  %v6127_v40 = vld [vmem:[#allocation2 + $0x20] sm:$0xff] }
 0x371   :  { %8657 = vst [vmem:[#allocation118_spill] sm:$0xff] %v6112_v39  ;;  %1495 = vmatpush.msrb.mxu0 %v6127_v40  ;;  %v6130_v39 = vld [vmem:[#allocation2 + $0x28] sm:$0xff] }
 0x372   :  { %8658 = vst [vmem:[#allocation119_spill] sm:$0xff] %v6115_v6  ;;  %1535 = vmatpush.msrb.mxu2 %v6130_v39  ;;  %v6133_v6 = vld [vmem:[#allocation2 + $0x2b0] sm:$0xff] }
 0x373   :  { %8659 = vst [vmem:[#allocation120_spill] sm:$0xff] %v6118_v46  ;;  %1591 = vmatpush.msra.mxu1 %v6133_v6  ;;  %v6136_v46 = vld [vmem:[#allocation2 + $0x2b8] sm:$0xff] }
 0x374   :  { %8660 = vst [vmem:[#allocation121_spill] sm:$0xff] %v6121_v5  ;;  %1631 = vmatpush.msra.mxu3 %v6136_v46  ;;  %v6139_v5 = vld [vmem:[#allocation2] sm:$0xff] }
 0x375   :  { %8661 = vst [vmem:[#allocation122_spill] sm:$0xff] %v6124_v51  ;;  %1496 = vmatpush.msrb.mxu0 %v6139_v5  ;;  %v6142_v51 = vld [vmem:[#allocation2 + $0x8] sm:$0xff] }
 0x376   :  { %8662 = vst [vmem:[#allocation123_spill] sm:$0xff] %v6127_v40  ;;  %1536 = vmatpush.msrb.mxu2 %v6142_v51  ;;  %v6145_v40 = vld [vmem:[#allocation2 + $0x290] sm:$0xff] }
 0x377   :  { %8663 = vst [vmem:[#allocation124_spill] sm:$0xff] %v6130_v39  ;;  %1592 = vmatpush.msra.mxu1 %v6145_v40  ;;  %v6148_v39 = vld [vmem:[#allocation2 + $0x298] sm:$0xff] }
 0x378   :  { %8664 = vst [vmem:[#allocation125_spill] sm:$0xff] %v6133_v6  ;;  %1632 = vmatpush.msra.mxu3 %v6148_v39  ;;  %v6151_v6 = vld [vmem:[#allocation2 + $0x1f0] sm:$0xff] }
 0x379   :  { %8665 = vst [vmem:[#allocation126_spill] sm:$0xff] %v6136_v46  ;;  %1561 = vmatpush.msra.mxu0 %v6151_v6  ;;  %v6154_v46 = vld [vmem:[#allocation2 + $0x1f8] sm:$0xff] }
 0x37a   :  { %8666 = vst [vmem:[#allocation127_spill] sm:$0xff] %v6139_v5  ;;  %1601 = vmatpush.msra.mxu2 %v6154_v46  ;;  %v6157_v5 = vld [vmem:[#allocation2 + $0x270] sm:$0xff] }
 0x37b   :  { %8667 = vst [vmem:[#allocation128_spill] sm:$0xff] %v6142_v51  ;;  %1593 = vmatpush.msra.mxu1 %v6157_v5  ;;  %v6160_v51 = vld [vmem:[#allocation2 + $0x278] sm:$0xff] }
 0x37c   :  { %8668 = vst [vmem:[#allocation129_spill] sm:$0xff] %v6145_v40  ;;  %1633 = vmatpush.msra.mxu3 %v6160_v51  ;;  %v6163_v40 = vld [vmem:[#allocation2 + $0x1d0] sm:$0xff] }
 0x37d   :  { %8669 = vst [vmem:[#allocation130_spill] sm:$0xff] %v6148_v39  ;;  %1562 = vmatpush.msra.mxu0 %v6163_v40  ;;  %v6166_v39 = vld [vmem:[#allocation2 + $0x1d8] sm:$0xff] }
 0x37e   :  { %8670 = vst [vmem:[#allocation131_spill] sm:$0xff] %v6151_v6  ;;  %1602 = vmatpush.msra.mxu2 %v6166_v39  ;;  %v6169_v6 = vld [vmem:[#allocation2 + $0x250] sm:$0xff] }
 0x37f   :  { %8671 = vst [vmem:[#allocation132_spill] sm:$0xff] %v6154_v46  ;;  %1594 = vmatpush.msra.mxu1 %v6169_v6  ;;  %v6172_v46 = vld [vmem:[#allocation2 + $0x258] sm:$0xff] }
 0x380   :  { %8672 = vst [vmem:[#allocation133_spill] sm:$0xff] %v6157_v5  ;;  %1634 = vmatpush.msra.mxu3 %v6172_v46  ;;  %v6175_v5 = vld [vmem:[#allocation2 + $0x1b0] sm:$0xff] }
 0x381   :  { %8673 = vst [vmem:[#allocation134_spill] sm:$0xff] %v6160_v51  ;;  %1563 = vmatpush.msra.mxu0 %v6175_v5  ;;  %v6178_v51 = vld [vmem:[#allocation2 + $0x1b8] sm:$0xff] }
 0x382   :  { %8674 = vst [vmem:[#allocation135_spill] sm:$0xff] %v6163_v40  ;;  %1603 = vmatpush.msra.mxu2 %v6178_v51  ;;  %v6181_v40 = vld [vmem:[#allocation2 + $0x230] sm:$0xff] }
 0x383   :  { %8675 = vst [vmem:[#allocation136_spill] sm:$0xff] %v6166_v39  ;;  %1595 = vmatpush.msra.mxu1 %v6181_v40  ;;  %v6184_v39 = vld [vmem:[#allocation2 + $0x238] sm:$0xff]  ;;  %1564 = vmatpush.msra.mxu0 %v5369_v45  ;;  %v1213_v45 = vpop.f32.mrf.mxu0 }
 0x384   :  { %8676 = vst [vmem:[#allocation137_spill] sm:$0xff] %v6172_v46  ;;  %1635 = vmatpush.msra.mxu3 %v6184_v39  ;;  %1604 = vmatpush.msra.mxu2 %v5372_v11  ;;  %v6189_v46 = vld [vmem:[#allocation2 + $0x210] sm:$0xff]  ;;  %v1233_v11 = vpop.f32.mrf.mxu1 }
 0x385   :  { %8677 = vst [vmem:[#allocation138_spill] sm:$0xff] %v6175_v5  ;;  %1596 = vmatpush.msra.mxu1 %v6189_v46  ;;  %v6192_v5 = vld [vmem:[#allocation2 + $0x218] sm:$0xff]  ;;  %1565 = vmatpush.msra.mxu0 %v5377_v29  ;;  %v1214_v29 = vadd.f32 %v5452_v23, %v1213_v45  ;;  %v2573_v23 = vld [vmem:[%s7567_s0 + $0x88] sm:$0xff] }
 0x386   :  { %1636 = vmatpush.msra.mxu3 %v6192_v5  ;;  %1605 = vmatpush.msra.mxu2 %v5380_v52 }
 0x387   :  { %1566 = vmatpush.msra.mxu0 %v5383_v4  ;;  %v1234_v52 = vadd.f32 %v1233_v11, %v1214_v29 }
 0x388   :  { %1606 = vmatpush.msra.mxu2 %v5386_v61  ;;  %v1253_v61 = vpop.f32.mrf.mxu2 }
 0x389   :  { %1567 = vmatpush.msra.mxu0 %v5389_v12  ;;  %v1356_v4 = vmul.f32 0.5, %v1234_v52  ;;  %v1273_v12 = vpop.f32.mrf.mxu3 }
 0x38a   :  { %1607 = vmatpush.msra.mxu2 %v5392_v25  ;;  %v1254_v25 = vadd.f32 %v5458_v59, %v1253_v61  ;;  %v2572_v61 = vld [vmem:[%s7567_s0 + $0x80] sm:$0xff] }
 0x38b   :  { %1568 = vmatpush.msra.mxu0 %v5395_v60  ;;  %2663 = vtanh.f32 %v1356_v4 }
 0x38c   :  { %1608 = vmatpush.msra.mxu2 %v5398_v14  ;;  %v1274_v60 = vadd.f32 %v1273_v12, %v1254_v25  ;;  %v1293_v14 = vpop.f32.mrf.mxu0 }
 0x38d   :  { %1569 = vmatpush.msra.mxu0 %v5401_v16  ;;  %v1294_v16 = vadd.f32 %v5464_v7, %v1293_v14 }
 0x38e   :  { %1609 = vmatpush.msra.mxu2 %v5404_v18  ;;  %v1313_v18 = vpop.f32.mrf.mxu1 }
 0x38f   :  { %1570 = vmatpush.msra.mxu0 %v5407_v20  ;;  %v1360_v20 = vmul.f32 0.5, %v1274_v60 }
 0x390   :  { %1610 = vmatpush.msra.mxu2 %v5410_v22  ;;  %v1314_v22 = vadd.f32 %v1313_v18, %v1294_v16 }
 0x391   :  { %1571 = vmatpush.msra.mxu0 %v5413_v24  ;;  %2665 = vtanh.f32 %v1360_v20  ;;  %v2664_v24 = vpop.eup %2663 }
 0x392   :  { %1611 = vmatpush.msra.mxu2 %v5416_v26  ;;  %2667 = vtanh.f32 %v1314_v22  ;;  %v1333_v26 = vpop.f32.mrf.mxu2 }
 0x393   :  { %1572 = vmatpush.msra.mxu0 %v5419_v28  ;;  %v1334_v28 = vadd.f32 %v5470_v8, %v1333_v26 }
 0x394   :  { %1612 = vmatpush.msra.mxu2 %v5422_v10  ;;  %v1353_v10 = vpop.f32.mrf.mxu3 }
 0x395   :  { %1573 = vmatpush.msra.mxu0 %v5425_v30  ;;  %v1358_v30 = vmul.f32 0.5, %v2664_v24  ;;  %v2574_v24 = vld [vmem:[%s7567_s0 + $0x90] sm:$0xff] }
 0x396   :  { %1613 = vmatpush.msra.mxu2 %v5428_v32  ;;  %v1354_v32 = vadd.f32 %v1353_v10, %v1334_v28  ;;  %v1416_v59 = vpop.f32.mrf.mxu1 }
 0x397   :  { %1574 = vmatpush.msra.mxu0 %v5431_v34  ;;  %v2666_v34 = vpop.eup %2665  ;;  %v1460_v11 = vadd.f32 %v2573_v23, %v1416_v59  ;;  %v8698_v23 = vld [vmem:[#allocation84_spill] sm:$0xff]  ;;  %v8699_v59 = vld [vmem:[#allocation11_spill] sm:$0xff] }
 0x398   :  { %1614 = vmatpush.msra.mxu2 %v5434_v36  ;;  %v1362_v36 = vmul.f32 0.5, %v2666_v34 }
 0x399   :  { %1575 = vmatpush.msra.mxu0 %v5437_v37  ;;  %v1365_v37 = vmul.f32 0.5, %v1354_v32  ;;  %v1467_v52 = vmul.f32 0.5, %v1460_v11  ;;  %v8702_v11 = vld [vmem:[#allocation13_spill] sm:$0xff] }
 0x39a   :  { %1615 = vmatpush.msra.mxu2 %v5440_v33  ;;  %v2668_v33 = vpop.eup %2667 }
 0x39b   :  { %1576 = vmatpush.msra.mxu0 %v5443_v31  ;;  %v1359_v31 = vadd.f32 0.5, %v1358_v30  ;;  %2669 = vtanh.f32 %v1365_v37  ;;  %v8694_v37 = vld [vmem:[#allocation81_spill] sm:$0xff] }
 0x39c   :  { %1616 = vmatpush.msra.mxu2 %v5446_v38  ;;  %v1363_v38 = vadd.f32 0.5, %v1362_v36  ;;  %v1456_v16 = vpop.f32.mrf.mxu3  ;;  %v8693_v36 = vld [vmem:[#allocation8_spill] sm:$0xff] }
 0x39d   :  { %v1370_v45 = vmul.f32 %v2668_v33, %v1359_v31  ;;  %v8695_v33 = vld [vmem:[#allocation9_spill] sm:$0xff]  ;;  %v8696_v31 = vld [vmem:[#allocation78_spill] sm:$0xff] }
 0x39e   :  { %v1369_v7 = vmul.f32 %v1363_v38, %v5477_v43  ;;  %v2575_v43 = vld [vmem:[%s7567_s0 + $0x98] sm:$0xff]  ;;  %v8697_v38 = vld [vmem:[#allocation10_spill] sm:$0xff] }
 0x39f   :  { %v1462_v22 = vadd.f32 %v2575_v43, %v1456_v16  ;;  %v8711_v43 = vld [vmem:[#allocation91_spill] sm:$0xff] }
 0x3a0   :  { %v6227_v8 = vadd.f32 %v1370_v45, %v1369_v7  ;;  %v8700_v7 = vld [vmem:[#allocation82_spill] sm:$0xff]  ;;  %v8701_v45 = vld [vmem:[#allocation12_spill] sm:$0xff]  ;;  %v8712_v16 = vld [vmem:[#allocation19_spill] sm:$0xff] }
 0x3a1   :  { %v2670_v29 = vpop.eup %2669  ;;  %v1472_v32 = vmul.f32 0.5, %v1462_v22  ;;  %v8715_v22 = vld [vmem:[#allocation93_spill] sm:$0xff] }
 0x3a2   :  { %2671 = vtanh.f32 %v6227_v8  ;;  %v1367_v4 = vmul.f32 0.5, %v2670_v29  ;;  %v8703_v29 = vld [vmem:[#allocation14_spill] sm:$0xff] }
 0x3a3   :  { %2673 = vtanh.f32 %v1467_v52  ;;  %v8704_v52 = vld [vmem:[#allocation15_spill] sm:$0xff] }
 0x3a4   :  { %v1368_v12 = vadd.f32 0.5, %v1367_v4  ;;  %v8705_v4 = vld [vmem:[#allocation85_spill] sm:$0xff] }
 0x3a8   :  { %v2672_v60 = vpop.eup %2671 }
 0x3a9   :  { %v1373_v18 = vmul.f32 %v2672_v60, %v1368_v12  ;;  %v2674_v26 = vpop.eup %2673  ;;  %v8707_v12 = vld [vmem:[#allocation89_spill] sm:$0xff]  ;;  %v8709_v60 = vld [vmem:[#allocation87_spill] sm:$0xff] }
 0x3aa   :  { %v1469_v30 = vmul.f32 0.5, %v2674_v26  ;;  %v8717_v26 = vld [vmem:[#allocation92_spill] sm:$0xff] }
 0x3ab   :  { %1517 = vmatmul.f32.vlgmr.msrb.gmra.mxu1 %v1373_v18  ;;  %1557 = vmatmul.f32.vlgmr.msrb.gmra.mxu3 %v1373_v18 }
 0x3ac   :  { %1684 = vmatpush.msrb.mxu1 %v5492_v47  ;;  %1724 = vmatpush.msrb.mxu3 %v5498_v48  ;;  %v1470_v48 = vadd.f32 0.5, %v1469_v30  ;;  %v8720_v30 = vld [vmem:[#allocation23_spill] sm:$0xff] }
 0x3ae   :  { %1685 = vmatpush.msrb.mxu1 %v5504_v55  ;;  %1725 = vmatpush.msrb.mxu3 %v5510_v56 }
 0x3b0   :  { %1686 = vmatpush.msrb.mxu1 %v5516_v17  ;;  %1726 = vmatpush.msrb.mxu3 %v5522_v9  ;;  %v1476_v17 = vmul.f32 %v1470_v48, %v5574_v19  ;;  %v8680_v19 = vld [vmem:[#allocation57_spill] sm:$0xff] }
 0x3b1   :  { %v8724_v48 = vld [vmem:[#allocation25_spill] sm:$0xff] }
 0x3b2   :  { %v1396_v25 = vpop.f32.mrf.mxu0  ;;  %1687 = vmatpush.msrb.mxu1 %v5528_v41  ;;  %1727 = vmatpush.msrb.mxu3 %v5534_v42 }
 0x3b3   :  { %v1459_v14 = vadd.f32 %v2572_v61, %v1396_v25  ;;  %1597 = vmatmul.f32.vlgmr.msra.gmra.mxu1 %v1373_v18  ;;  %1637 = vmatmul.f32.vlgmr.msra.gmra.mxu3 %v1373_v18  ;;  %v8706_v61 = vld [vmem:[#allocation16_spill] sm:$0xff]  ;;  %v8708_v25 = vld [vmem:[#allocation17_spill] sm:$0xff]  ;;  %v8713_v18 = vld [vmem:[#allocation90_spill] sm:$0xff] }
 0x3b4   :  { %1688 = vmatpush.msrb.mxu1 %v5540_v1  ;;  %1728 = vmatpush.msrb.mxu3 %v5546_v27 }
 0x3b5   :  { %v1463_v20 = vmul.f32 0.5, %v1459_v14  ;;  %v8710_v14 = vld [vmem:[#allocation18_spill] sm:$0xff] }
 0x3b6   :  { %1689 = vmatpush.msrb.mxu1 %v5552_v50  ;;  %1729 = vmatpush.msrb.mxu3 %v5558_v0 }
 0x3b7   :  { %2675 = vtanh.f32 %v1463_v20  ;;  %v8714_v20 = vld [vmem:[#allocation20_spill] sm:$0xff] }
 0x3b8   :  { %1690 = vmatpush.msrb.mxu1 %v5565_v57  ;;  %1730 = vmatpush.msrb.mxu3 %v5571_v21  ;;  %v8678_v57 = vld [vmem:[#allocation53_spill] sm:$0xff]  ;;  %v8679_v21 = vld [vmem:[#allocation56_spill] sm:$0xff] }
 0x3ba   :  { %v1436_v28 = vpop.f32.mrf.mxu2  ;;  %1691 = vmatpush.msrb.mxu1 %v5579_v62  ;;  %1731 = vmatpush.msrb.mxu3 %v5585_v15  ;;  %v8681_v62 = vld [vmem:[#allocation60_spill] sm:$0xff]  ;;  %v8682_v15 = vld [vmem:[#allocation61_spill] sm:$0xff] }
 0x3bb   :  { %v1461_v10 = vadd.f32 %v2574_v24, %v1436_v28  ;;  %v8716_v24 = vld [vmem:[#allocation21_spill] sm:$0xff]  ;;  %v8718_v28 = vld [vmem:[#allocation22_spill] sm:$0xff] }
 0x3bc   :  { %1692 = vmatpush.msrb.mxu1 %v5592_v58  ;;  %1732 = vmatpush.msrb.mxu3 %v5598_v3  ;;  %v8683_v58 = vld [vmem:[#allocation64_spill] sm:$0xff]  ;;  %v8684_v3 = vld [vmem:[#allocation65_spill] sm:$0xff] }
 0x3bd   :  { %2677 = vtanh.f32 %v1461_v10  ;;  %v2676_v34 = vpop.eup %2675  ;;  %v8719_v10 = vld [vmem:[#allocation95_spill] sm:$0xff] }
 0x3be   :  { %v1465_v47 = vmul.f32 0.5, %v2676_v34  ;;  %2679 = vtanh.f32 %v1472_v32  ;;  %1693 = vmatpush.msrb.mxu1 %v5604_v53  ;;  %1733 = vmatpush.msrb.mxu3 %v5610_v49  ;;  %v8685_v53 = vld [vmem:[#allocation68_spill] sm:$0xff]  ;;  %v8686_v49 = vld [vmem:[#allocation69_spill] sm:$0xff]  ;;  %v8721_v32 = vld [vmem:[#allocation94_spill] sm:$0xff] }
 0x3bf   :  { %v8722_v34 = vld [vmem:[#allocation24_spill] sm:$0xff] }
 0x3c0   :  { %v1466_v55 = vadd.f32 0.5, %v1465_v47  ;;  %1694 = vmatpush.msrb.mxu1 %v5616_v63  ;;  %1734 = vmatpush.msrb.mxu3 %v5622_v13  ;;  %v8687_v63 = vld [vmem:[#allocation72_spill] sm:$0xff]  ;;  %v8723_v47 = vld [vmem:[#allocation97_spill] sm:$0xff] }
 0x3c1   :  { %v8688_v13 = vld [vmem:[#allocation76_spill] sm:$0xff] }
 0x3c2   :  { %1695 = vmatpush.msrb.mxu1 %v5630_v44  ;;  %1735 = vmatpush.msrb.mxu3 %v5636_v35  ;;  %v8689_v44 = vld [vmem:[#allocation5_spill] sm:$0xff]  ;;  %v8690_v35 = vld [vmem:[#allocation6_spill] sm:$0xff] }
 0x3c3   :  { %v2678_v56 = vpop.eup %2677 }
 0x3c4   :  { %v1477_v9 = vmul.f32 %v2678_v56, %v1466_v55  ;;  %v2680_v41 = vpop.eup %2679  ;;  %1696 = vmatpush.msrb.mxu1 %v5656_v54  ;;  %1736 = vmatpush.msrb.mxu3 %v5662_v2  ;;  %v8691_v54 = vld [vmem:[#allocation7_spill] sm:$0xff]  ;;  %v8692_v2 = vld [vmem:[#allocation74_spill] sm:$0xff]  ;;  %v8725_v55 = vld [vmem:[#allocation96_spill] sm:$0xff] }
 0x3c5   :  { %v1474_v1 = vmul.f32 0.5, %v2680_v41  ;;  %v8726_v56 = vld [vmem:[#allocation26_spill] sm:$0xff] }
 0x3c6   :  { %v6254_v42 = vadd.f32 %v1477_v9, %v1476_v17  ;;  %1697 = vmatpush.msrb.mxu1 %v8680_v19  ;;  %1737 = vmatpush.msrb.mxu3 %v8681_v62  ;;  %v8727_v17 = vld [vmem:[#allocation99_spill] sm:$0xff]  ;;  %v8729_v41 = vld [vmem:[#allocation98_spill] sm:$0xff] }
 0x3c7   :  { %v1475_v27 = vadd.f32 0.5, %v1474_v1  ;;  %v8728_v9 = vld [vmem:[#allocation27_spill] sm:$0xff]  ;;  %v8730_v1 = vld [vmem:[#allocation28_spill] sm:$0xff]  ;;  %v8736_v62 = vld [vmem:[#allocation102_spill] sm:$0xff] }
 0x3c8   :  { %2681 = vtanh.f32 %v6254_v42  ;;  %1698 = vmatpush.msrb.mxu1 %v8684_v3  ;;  %1738 = vmatpush.msrb.mxu3 %v8685_v53  ;;  %v8735_v19 = vld [vmem:[#allocation31_spill] sm:$0xff]  ;;  %v8740_v53 = vld [vmem:[#allocation34_spill] sm:$0xff] }
 0x3c9   :  { %v8739_v3 = vld [vmem:[#allocation103_spill] sm:$0xff] }
 0x3ca   :  { %1699 = vmatpush.msrb.mxu1 %v8688_v13  ;;  %1739 = vmatpush.msrb.mxu3 %v8689_v44  ;;  %v8743_v13 = vld [vmem:[#allocation37_spill] sm:$0xff]  ;;  %v8744_v44 = vld [vmem:[#allocation38_spill] sm:$0xff] }
 0x3cc   :  { %1786 = vmatpush.msra.mxu1 %v8695_v33  ;;  %1826 = vmatpush.msra.mxu3 %v8697_v38  ;;  %v8751_v33 = vld [vmem:[#allocation45_spill] sm:$0xff]  ;;  %v8753_v38 = vld [vmem:[#allocation47_spill] sm:$0xff] }
 0x3ce   :  { %v2682_v50 = vpop.eup %2681  ;;  %1787 = vmatpush.msra.mxu1 %v8699_v59  ;;  %1827 = vmatpush.msra.mxu3 %v8701_v45  ;;  %v8755_v59 = vld [vmem:[#allocation49_spill] sm:$0xff]  ;;  %v8757_v45 = vld [vmem:[#allocation51_spill] sm:$0xff] }
 0x3cf   :  { %v6267_v0 = vmul.f32 %v2682_v50, %v1475_v27  ;;  %v8731_v27 = vld [vmem:[#allocation101_spill] sm:$0xff] }
 0x3d0   :  { %1788 = vmatpush.msra.mxu1 %v8703_v29  ;;  %1828 = vmatpush.msra.mxu3 %v8705_v4  ;;  %v8732_v50 = vld [vmem:[#allocation29_spill] sm:$0xff]  ;;  %v8759_v29 = vld [vmem:[#allocation54_spill] sm:$0xff] }
 0x3d1   :  { %1497 = vmatmul.f32.vlgmr.msrb.gmra.mxu0 %v6267_v0  ;;  %1537 = vmatmul.f32.vlgmr.msrb.gmra.mxu2 %v6267_v0  ;;  %v8761_v4 = vld [vmem:[#allocation58_spill] sm:$0xff] }
 0x3d2   :  { %1664 = vmatpush.msrb.mxu0 %v8678_v57  ;;  %1704 = vmatpush.msrb.mxu2 %v8679_v21  ;;  %v8733_v57 = vld [vmem:[#allocation100_spill] sm:$0xff]  ;;  %v8734_v21 = vld [vmem:[#allocation30_spill] sm:$0xff] }
 0x3d3   :  { %1700 = vmatmul.f32.vlgmr.msrb.gmra.mxu1 %v6267_v0  ;;  %1740 = vmatmul.f32.vlgmr.msrb.gmra.mxu3 %v6267_v0 }
 0x3d4   :  { %1665 = vmatpush.msrb.mxu0 %v8682_v15  ;;  %1705 = vmatpush.msrb.mxu2 %v8683_v58  ;;  %v8737_v15 = vld [vmem:[#allocation32_spill] sm:$0xff]  ;;  %v8738_v58 = vld [vmem:[#allocation33_spill] sm:$0xff] }
 0x3d5   :  { %1789 = vmatpush.msra.mxu1 %v8707_v12  ;;  %1829 = vmatpush.msra.mxu3 %v8709_v60  ;;  %v8763_v12 = vld [vmem:[#allocation62_spill] sm:$0xff] }
 0x3d6   :  { %1666 = vmatpush.msrb.mxu0 %v8686_v49  ;;  %1706 = vmatpush.msrb.mxu2 %v8687_v63  ;;  %v8741_v49 = vld [vmem:[#allocation35_spill] sm:$0xff]  ;;  %v8742_v63 = vld [vmem:[#allocation36_spill] sm:$0xff]  ;;  %v8765_v60 = vld [vmem:[#allocation66_spill] sm:$0xff] }
 0x3d7   :  { %1790 = vmatpush.msra.mxu1 %v8711_v43  ;;  %1830 = vmatpush.msra.mxu3 %v8713_v18  ;;  %v8767_v43 = vld [vmem:[#allocation70_spill] sm:$0xff]  ;;  %v8769_v18 = vld [vmem:[#allocation73_spill] sm:$0xff] }
 0x3d8   :  { %1667 = vmatpush.msrb.mxu0 %v8690_v35  ;;  %1707 = vmatpush.msrb.mxu2 %v8691_v54  ;;  %v8745_v35 = vld [vmem:[#allocation39_spill] sm:$0xff]  ;;  %v8746_v54 = vld [vmem:[#allocation40_spill] sm:$0xff] }
 0x3d9   :  { %1577 = vmatmul.f32.vlgmr.msra.gmra.mxu0 %v6267_v0  ;;  %1617 = vmatmul.f32.vlgmr.msra.gmra.mxu2 %v6267_v0 }
 0x3da   :  { %1668 = vmatpush.msrb.mxu0 %v8692_v2  ;;  %1708 = vmatpush.msrb.mxu2 %v8693_v36  ;;  %v8748_v2 = vld [vmem:[#allocation42_spill] sm:$0xff]  ;;  %v8749_v36 = vld [vmem:[#allocation43_spill] sm:$0xff] }
 0x3db   :  { %1791 = vmatpush.msra.mxu1 %v8715_v22  ;;  %1831 = vmatpush.msra.mxu3 %v8717_v26  ;;  %v8771_v22 = vld [vmem:[#allocation77_spill] sm:$0xff]  ;;  %v8773_v26 = vld [vmem:[#allocation80_spill] sm:$0xff] }
 0x3dc   :  { %1669 = vmatpush.msrb.mxu0 %v8694_v37  ;;  %1709 = vmatpush.msrb.mxu2 %v8696_v31  ;;  %v8750_v37 = vld [vmem:[#allocation44_spill] sm:$0xff]  ;;  %v8752_v31 = vld [vmem:[#allocation46_spill] sm:$0xff] }
 0x3dd   :  { %1792 = vmatpush.msra.mxu1 %v8719_v10  ;;  %1832 = vmatpush.msra.mxu3 %v8721_v32  ;;  %v8775_v10 = vld [vmem:[#allocation86_spill] sm:$0xff]  ;;  %v8777_v32 = vld [vmem:[#allocation104_spill] sm:$0xff] }
 0x3de   :  { %1670 = vmatpush.msrb.mxu0 %v8698_v23  ;;  %1710 = vmatpush.msrb.mxu2 %v8700_v7  ;;  %v8754_v23 = vld [vmem:[#allocation48_spill] sm:$0xff]  ;;  %v8756_v7 = vld [vmem:[#allocation50_spill] sm:$0xff] }
 0x3df   :  { %1793 = vmatpush.msra.mxu1 %v8723_v47  ;;  %1833 = vmatpush.msra.mxu3 %v8725_v55  ;;  %v8779_v47 = vld [vmem:[#allocation106_spill] sm:$0xff]  ;;  %v8781_v55 = vld [vmem:[#allocation108_spill] sm:$0xff] }
 0x3e0   :  { %1671 = vmatpush.msrb.mxu0 %v8702_v11  ;;  %1711 = vmatpush.msrb.mxu2 %v8704_v52  ;;  %v8758_v11 = vld [vmem:[#allocation52_spill] sm:$0xff]  ;;  %v8760_v52 = vld [vmem:[#allocation55_spill] sm:$0xff] }
 0x3e1   :  { %1794 = vmatpush.msra.mxu1 %v8727_v17  ;;  %1834 = vmatpush.msra.mxu3 %v8729_v41  ;;  %v8783_v17 = vld [vmem:[#allocation110_spill] sm:$0xff]  ;;  %v8785_v41 = vld [vmem:[#allocation112_spill] sm:$0xff] }
 0x3e2   :  { %1672 = vmatpush.msrb.mxu0 %v8706_v61  ;;  %1712 = vmatpush.msrb.mxu2 %v8708_v25  ;;  %v8762_v61 = vld [vmem:[#allocation59_spill] sm:$0xff] }
 0x3e3   :  { %1795 = vmatpush.msra.mxu1 %v8731_v27  ;;  %1835 = vmatpush.msra.mxu3 %v8733_v57  ;;  %v8764_v25 = vld [vmem:[#allocation63_spill] sm:$0xff]  ;;  %v8787_v27 = vld [vmem:[#allocation114_spill] sm:$0xff]  ;;  %v8789_v57 = vld [vmem:[#allocation116_spill] sm:$0xff] }
 0x3e4   :  { %1673 = vmatpush.msrb.mxu0 %v8710_v14  ;;  %1713 = vmatpush.msrb.mxu2 %v8712_v16  ;;  %v8766_v14 = vld [vmem:[#allocation67_spill] sm:$0xff] }
 0x3e5   :  { %1796 = vmatpush.msra.mxu1 %v8735_v19  ;;  %1836 = vmatpush.msra.mxu3 %v8737_v15  ;;  %v8768_v16 = vld [vmem:[#allocation71_spill] sm:$0xff]  ;;  %v8791_v19 = vld [vmem:[#allocation118_spill] sm:$0xff]  ;;  %v8793_v15 = vld [vmem:[#allocation120_spill] sm:$0xff] }
 0x3e6   :  { %1674 = vmatpush.msrb.mxu0 %v8714_v20  ;;  %1714 = vmatpush.msrb.mxu2 %v8716_v24  ;;  %v8770_v20 = vld [vmem:[#allocation75_spill] sm:$0xff] }
 0x3e7   :  { %1797 = vmatpush.msra.mxu1 %v8738_v58  ;;  %1837 = vmatpush.msra.mxu3 %v8740_v53  ;;  %v8772_v24 = vld [vmem:[#allocation79_spill] sm:$0xff]  ;;  %v8794_v58 = vld [vmem:[#allocation121_spill] sm:$0xff] }
 0x3e8   :  { %1675 = vmatpush.msrb.mxu0 %v8718_v28  ;;  %1715 = vmatpush.msrb.mxu2 %v8720_v30  ;;  %v8774_v28 = vld [vmem:[#allocation83_spill] sm:$0xff]  ;;  %v8776_v30 = vld [vmem:[#allocation88_spill] sm:$0xff] }
 0x3e9   :  { %1798 = vmatpush.msra.mxu1 %v8742_v63  ;;  %1838 = vmatpush.msra.mxu3 %v8744_v44  ;;  %v8796_v53 = vld [vmem:[#allocation123_spill] sm:$0xff]  ;;  %v8798_v63 = vld [vmem:[#allocation125_spill] sm:$0xff] }
 0x3ea   :  { %1676 = vmatpush.msrb.mxu0 %v8722_v34  ;;  %1716 = vmatpush.msrb.mxu2 %v8724_v48  ;;  %v8778_v34 = vld [vmem:[#allocation105_spill] sm:$0xff]  ;;  %v8780_v48 = vld [vmem:[#allocation107_spill] sm:$0xff] }
 0x3eb   :  { %1799 = vmatpush.msra.mxu1 %v8746_v54  ;;  %1839 = vmatpush.msra.mxu3 %v8748_v2  ;;  %v8800_v44 = vld [vmem:[#allocation127_spill] sm:$0xff]  ;;  %v8802_v54 = vld [vmem:[#allocation129_spill] sm:$0xff] }
 0x3ec   :  { %1677 = vmatpush.msrb.mxu0 %v8726_v56  ;;  %1717 = vmatpush.msrb.mxu2 %v8728_v9  ;;  %v8782_v56 = vld [vmem:[#allocation109_spill] sm:$0xff]  ;;  %v8784_v9 = vld [vmem:[#allocation111_spill] sm:$0xff] }
 0x3ed   :  { %1800 = vmatpush.msra.mxu1 %v8750_v37  ;;  %1840 = vmatpush.msra.mxu3 %v8752_v31  ;;  %v8804_v2 = vld [vmem:[#allocation131_spill] sm:$0xff]  ;;  %v8806_v37 = vld [vmem:[#allocation133_spill] sm:$0xff] }
 0x3ee   :  { %1678 = vmatpush.msrb.mxu0 %v8730_v1  ;;  %1718 = vmatpush.msrb.mxu2 %v8732_v50  ;;  %v8786_v1 = vld [vmem:[#allocation113_spill] sm:$0xff]  ;;  %v8788_v50 = vld [vmem:[#allocation115_spill] sm:$0xff] }
 0x3ef   :  { %1801 = vmatpush.msra.mxu1 %v8754_v23  ;;  %1841 = vmatpush.msra.mxu3 %v8756_v7  ;;  %v8808_v31 = vld [vmem:[#allocation135_spill] sm:$0xff]  ;;  %v8810_v23 = vld [vmem:[#allocation137_spill] sm:$0xff] }
 0x3f0   :  { %1679 = vmatpush.msrb.mxu0 %v8734_v21  ;;  %1719 = vmatpush.msrb.mxu2 %v8736_v62  ;;  %v8790_v21 = vld [vmem:[#allocation117_spill] sm:$0xff]  ;;  %v8792_v62 = vld [vmem:[#allocation119_spill] sm:$0xff] }
 0x3f1   :  { %1680 = vmatmul.f32.vlgmr.msrb.gmra.mxu0 %v6267_v0  ;;  %1720 = vmatmul.f32.vlgmr.msrb.gmra.mxu2 %v6267_v0  ;;  %v8747_v0 = vld [vmem:[#allocation41_spill] sm:$0xff]  ;;  %v6417_v7 = vld [vmem:[#allocation2 + $0x190] sm:$0xff] }
 0x3f2   :  { %1766 = vmatpush.msra.mxu0 %v8739_v3  ;;  %1806 = vmatpush.msra.mxu2 %v8741_v49  ;;  %v8795_v3 = vld [vmem:[#allocation122_spill] sm:$0xff]  ;;  %v8797_v49 = vld [vmem:[#allocation124_spill] sm:$0xff] }
 0x3f3   :  { %1866 = vmatpush.msrb.mxu1 %v8758_v11  ;;  %1906 = vmatpush.msrb.mxu3 %v8759_v29  ;;  %v6437_v11 = vld [vmem:[#allocation2 + $0x130] sm:$0xff]  ;;  %v6446_v29 = vld [vmem:[#allocation2 + $0x118] sm:$0xff] }
 0x3f4   :  { %1767 = vmatpush.msra.mxu0 %v8743_v13  ;;  %1807 = vmatpush.msra.mxu2 %v8745_v35  ;;  %v8799_v13 = vld [vmem:[#allocation126_spill] sm:$0xff]  ;;  %v8801_v35 = vld [vmem:[#allocation128_spill] sm:$0xff] }
 0x3f5   :  { %1867 = vmatpush.msrb.mxu1 %v8762_v61  ;;  %1907 = vmatpush.msrb.mxu3 %v8763_v12  ;;  %v6455_v61 = vld [vmem:[#allocation2 + $0xd0] sm:$0xff]  ;;  %v6458_v12 = vld [vmem:[#allocation2 + $0xd8] sm:$0xff] }
 0x3f6   :  { %1768 = vmatpush.msra.mxu0 %v8747_v0  ;;  %1808 = vmatpush.msra.mxu2 %v8749_v36  ;;  %v8803_v0 = vld [vmem:[#allocation130_spill] sm:$0xff]  ;;  %v8805_v36 = vld [vmem:[#allocation132_spill] sm:$0xff] }
 0x3f7   :  { %1868 = vmatpush.msrb.mxu1 %v8766_v14  ;;  %1908 = vmatpush.msrb.mxu3 %v8767_v43  ;;  %v6467_v14 = vld [vmem:[#allocation2 + $0x90] sm:$0xff]  ;;  %v6470_v43 = vld [vmem:[#allocation2 + $0x98] sm:$0xff] }
 0x3f8   :  { %1769 = vmatpush.msra.mxu0 %v8751_v33  ;;  %1809 = vmatpush.msra.mxu2 %v8753_v38  ;;  %v8807_v33 = vld [vmem:[#allocation134_spill] sm:$0xff]  ;;  %v8809_v38 = vld [vmem:[#allocation136_spill] sm:$0xff] }
 0x3f9   :  { %1869 = vmatpush.msrb.mxu1 %v8770_v20  ;;  %1909 = vmatpush.msrb.mxu3 %v8771_v22  ;;  %v6479_v20 = vld [vmem:[#allocation2 + $0x50] sm:$0xff]  ;;  %v6482_v22 = vld [vmem:[#allocation2 + $0x58] sm:$0xff] }
 0x3fa   :  { %1770 = vmatpush.msra.mxu0 %v8755_v59  ;;  %1810 = vmatpush.msra.mxu2 %v8757_v45  ;;  %v8811_v59 = vld [vmem:[#allocation138_spill] sm:$0xff]  ;;  %v6420_v45 = vld [vmem:[#allocation2 + $0x198] sm:$0xff] }
 0x3fb   :  { %1870 = vmatpush.msrb.mxu1 %v8774_v28  ;;  %1910 = vmatpush.msrb.mxu3 %v8775_v10  ;;  %v6491_v28 = vld [vmem:[#allocation2 + $0x10] sm:$0xff]  ;;  %v6494_v10 = vld [vmem:[#allocation2 + $0x18] sm:$0xff] }
 0x3fc   :  { %1771 = vmatpush.msra.mxu0 %v8760_v52  ;;  %1811 = vmatpush.msra.mxu2 %v8761_v4  ;;  %v6449_v52 = vld [vmem:[#allocation2 + $0xf0] sm:$0xff]  ;;  %v6452_v4 = vld [vmem:[#allocation2 + $0xf8] sm:$0xff] }
 0x3fd   :  { %1871 = vmatpush.msrb.mxu1 %v8778_v34  ;;  %1911 = vmatpush.msrb.mxu3 %v8779_v47  ;;  %v6500_v34 = vld [vmem:[%s7570_s3] sm:$0xff] }
 0x3fe   :  { %1772 = vmatpush.msra.mxu0 %v8764_v25  ;;  %1812 = vmatpush.msra.mxu2 %v8765_v60  ;;  %v6461_v25 = vld [vmem:[#allocation2 + $0xb0] sm:$0xff]  ;;  %v6464_v60 = vld [vmem:[#allocation2 + $0xb8] sm:$0xff] }
 0x3ff   :  { %1872 = vmatpush.msrb.mxu1 %v8782_v56  ;;  %1912 = vmatpush.msrb.mxu3 %v8783_v17 }
 0x400   :  { %1773 = vmatpush.msra.mxu0 %v8768_v16  ;;  %1813 = vmatpush.msra.mxu2 %v8769_v18  ;;  %v6473_v16 = vld [vmem:[#allocation2 + $0x70] sm:$0xff]  ;;  %v6476_v18 = vld [vmem:[#allocation2 + $0x78] sm:$0xff] }
 0x401   :  { %1873 = vmatpush.msrb.mxu1 %v8786_v1  ;;  %1913 = vmatpush.msrb.mxu3 %v8787_v27 }
 0x402   :  { %1774 = vmatpush.msra.mxu0 %v8772_v24  ;;  %1814 = vmatpush.msra.mxu2 %v8773_v26  ;;  %v6485_v24 = vld [vmem:[#allocation2 + $0x30] sm:$0xff]  ;;  %v6488_v26 = vld [vmem:[#allocation2 + $0x38] sm:$0xff] }
 0x403   :  { %1874 = vmatpush.msrb.mxu1 %v8790_v21  ;;  %1914 = vmatpush.msrb.mxu3 %v8791_v19 }
 0x404   :  { %1775 = vmatpush.msra.mxu0 %v8776_v30  ;;  %1815 = vmatpush.msra.mxu2 %v8777_v32 }
 0x405   :  { %1875 = vmatpush.msrb.mxu1 %v8794_v58  ;;  %1915 = vmatpush.msrb.mxu3 %v8795_v3  ;;  %v6518_v3 = vld [vmem:[%s7570_s3 + $0x18] sm:$0xff] }
 0x406   :  { %1776 = vmatpush.msra.mxu0 %v8780_v48  ;;  %1816 = vmatpush.msra.mxu2 %v8781_v55 }
 0x407   :  { %1876 = vmatpush.msrb.mxu1 %v8798_v63  ;;  %1916 = vmatpush.msrb.mxu3 %v8799_v13 }
 0x408   :  { %1777 = vmatpush.msra.mxu0 %v8784_v9  ;;  %1817 = vmatpush.msra.mxu2 %v8785_v41  ;;  %v6506_v9 = vld [vmem:[%s7570_s3 + $0x8] sm:$0xff] }
 0x409   :  { %1877 = vmatpush.msrb.mxu1 %v8802_v54  ;;  %1917 = vmatpush.msrb.mxu3 %v8803_v0 }
 0x40a   :  { %1778 = vmatpush.msra.mxu0 %v8788_v50  ;;  %1818 = vmatpush.msra.mxu2 %v8789_v57  ;;  %v6512_v50 = vld [vmem:[%s7570_s3 + $0x10] sm:$0xff] }
 0x40b   :  { %1878 = vmatpush.msrb.mxu1 %v8806_v37  ;;  %1918 = vmatpush.msrb.mxu3 %v8807_v33 }
 0x40c   :  { %1779 = vmatpush.msra.mxu0 %v8792_v62  ;;  %1819 = vmatpush.msra.mxu2 %v8793_v15 }
 0x40d   :  { %1879 = vmatpush.msrb.mxu1 %v6169_v6  ;;  %1919 = vmatpush.msrb.mxu3 %v8810_v23  ;;  %v6425_v6 = vld [vmem:[#allocation2 + $0x170] sm:$0xff] }
 0x40e   :  { %1780 = vmatpush.msra.mxu0 %v8796_v53  ;;  %1820 = vmatpush.msra.mxu2 %v8797_v49 }
 0x40f   :  { %1880 = vmatpush.msrb.mxu1 %v6181_v40  ;;  %1920 = vmatpush.msrb.mxu3 %v6184_v39  ;;  %v6431_v39 = vld [vmem:[#allocation2 + $0x150] sm:$0xff]  ;;  %v6434_v40 = vld [vmem:[#allocation2 + $0x158] sm:$0xff] }
 0x410   :  { %1781 = vmatpush.msra.mxu0 %v8800_v44  ;;  %1821 = vmatpush.msra.mxu2 %v8801_v35 }
 0x411   :  { %1881 = vmatpush.msrb.mxu1 %v6189_v46  ;;  %1921 = vmatpush.msrb.mxu3 %v6192_v5  ;;  %v6440_v5 = vld [vmem:[#allocation2 + $0x138] sm:$0xff]  ;;  %v6443_v46 = vld [vmem:[#allocation2 + $0x110] sm:$0xff] }
 0x412   :  { %1846 = vmatpush.msrb.mxu0 %v8804_v2  ;;  %1886 = vmatpush.msrb.mxu2 %v8805_v36  ;;  %v2577_v2 = vld [vmem:[%s7567_s0 + $0xa8] sm:$0xff] }
 0x414   :  { %1847 = vmatpush.msrb.mxu0 %v8808_v31  ;;  %1887 = vmatpush.msrb.mxu2 %v8809_v38 }
 0x416   :  { %1848 = vmatpush.msrb.mxu0 %v8811_v59  ;;  %1888 = vmatpush.msrb.mxu2 %v6178_v51  ;;  %v6428_v51 = vld [vmem:[#allocation2 + $0x178] sm:$0xff] }
 0x418   :  { %1849 = vmatpush.msrb.mxu0 %v6417_v7  ;;  %1889 = vmatpush.msrb.mxu2 %v6420_v45 }
 0x41a   :  { %1850 = vmatpush.msrb.mxu0 %v6425_v6  ;;  %1890 = vmatpush.msrb.mxu2 %v6428_v51 }
 0x41c   :  { %1851 = vmatpush.msrb.mxu0 %v6431_v39  ;;  %1891 = vmatpush.msrb.mxu2 %v6434_v40 }
 0x41e   :  { %1852 = vmatpush.msrb.mxu0 %v6437_v11  ;;  %1892 = vmatpush.msrb.mxu2 %v6440_v5 }
 0x420   :  { %1853 = vmatpush.msrb.mxu0 %v6443_v46  ;;  %1893 = vmatpush.msrb.mxu2 %v6446_v29 }
 0x422   :  { %1854 = vmatpush.msrb.mxu0 %v6449_v52  ;;  %1894 = vmatpush.msrb.mxu2 %v6452_v4 }
 0x424   :  { %1855 = vmatpush.msrb.mxu0 %v6455_v61  ;;  %1895 = vmatpush.msrb.mxu2 %v6458_v12 }
 0x426   :  { %1856 = vmatpush.msrb.mxu0 %v6461_v25  ;;  %1896 = vmatpush.msrb.mxu2 %v6464_v60 }
 0x428   :  { %1857 = vmatpush.msrb.mxu0 %v6467_v14  ;;  %1897 = vmatpush.msrb.mxu2 %v6470_v43  ;;  %v1518_v30 = vpop.f32.mrf.mxu1 }
 0x42a   :  { %1858 = vmatpush.msrb.mxu0 %v6473_v16  ;;  %1898 = vmatpush.msrb.mxu2 %v6476_v18 }
 0x42c   :  { %1859 = vmatpush.msrb.mxu0 %v6479_v20  ;;  %1899 = vmatpush.msrb.mxu2 %v6482_v22 }
 0x42e   :  { %1860 = vmatpush.msrb.mxu0 %v6485_v24  ;;  %1900 = vmatpush.msrb.mxu2 %v6488_v26  ;;  %v1558_v56 = vpop.f32.mrf.mxu3 }
 0x430   :  { %1861 = vmatpush.msrb.mxu0 %v6491_v28  ;;  %1901 = vmatpush.msrb.mxu2 %v6494_v10  ;;  %v1598_v21 = vpop.f32.mrf.mxu1 }
 0x436   :  { %v1638_v49 = vpop.f32.mrf.mxu3 }
 0x44e   :  { %v1498_v32 = vpop.f32.mrf.mxu0 }
 0x44f   :  { %v1499_v47 = vadd.f32 %v6500_v34, %v1498_v32 }
 0x450   :  { %v1701_v36 = vpop.f32.mrf.mxu1 }
 0x451   :  { %v1519_v48 = vadd.f32 %v1518_v30, %v1499_v47  ;;  %v1745_v23 = vadd.f32 %v2577_v2, %v1701_v36 }
 0x453   :  { %v1641_v55 = vmul.f32 0.5, %v1519_v48  ;;  %v1752_v32 = vmul.f32 0.5, %v1745_v23  ;;  %v2576_v48 = vld [vmem:[%s7567_s0 + $0xa0] sm:$0xff]  ;;  %v6588_v23 = vld [vmem:[%s7568_s1 + $0x168] sm:$0xff] }
 0x454   :  { %v1538_v17 = vpop.f32.mrf.mxu2 }
 0x455   :  { %v1539_v41 = vadd.f32 %v6506_v9, %v1538_v17  ;;  %2683 = vtanh.f32 %v1641_v55 }
 0x456   :  { %v1578_v1 = vpop.f32.mrf.mxu0 }
 0x457   :  { %v1559_v27 = vadd.f32 %v1558_v56, %v1539_v41  ;;  %v1579_v57 = vadd.f32 %v6512_v50, %v1578_v1  ;;  %v1741_v1 = vpop.f32.mrf.mxu3 }
 0x459   :  { %v1645_v19 = vmul.f32 0.5, %v1559_v27  ;;  %v1599_v62 = vadd.f32 %v1598_v21, %v1579_v57 }
 0x45b   :  { %2685 = vtanh.f32 %v1645_v19  ;;  %v2684_v58 = vpop.eup %2683  ;;  %v2578_v19 = vld [vmem:[%s7567_s0 + $0xb0] sm:$0xff] }
 0x45c   :  { %v1618_v15 = vpop.f32.mrf.mxu2  ;;  %2687 = vtanh.f32 %v1599_v62  ;;  %v1643_v13 = vmul.f32 0.5, %v2684_v58  ;;  %v6546_v58 = vld [vmem:[%s7568_s1 + $0x1f8] sm:$0xff] }
 0x45d   :  { %v1619_v53 = vadd.f32 %v6518_v3, %v1618_v15  ;;  %v6540_v15 = vld [vmem:[%s7568_s1 + $0x1e8] sm:$0xff] }
 0x45e   :  { %v1644_v37 = vadd.f32 0.5, %v1643_v13  ;;  %v6558_v13 = vld [vmem:[%s7568_s1 + $0x1d8] sm:$0xff] }
 0x45f   :  { %v1639_v63 = vadd.f32 %v1638_v49, %v1619_v53 }
 0x461   :  { %v2686_v44 = vpop.eup %2685  ;;  %v1650_v35 = vmul.f32 0.5, %v1639_v63  ;;  %v6552_v63 = vld [vmem:[%s7568_s1 + $0x1c8] sm:$0xff] }
 0x462   :  { %v1647_v54 = vmul.f32 0.5, %v2686_v44  ;;  %v2688_v0 = vpop.eup %2687 }
 0x463   :  { %2689 = vtanh.f32 %v1650_v35  ;;  %v1655_v38 = vmul.f32 %v2688_v0, %v1644_v37  ;;  %v6570_v0 = vld [vmem:[%s7568_s1 + $0x1b8] sm:$0xff]  ;;  %v6576_v37 = vld [vmem:[%s7568_s1 + $0x188] sm:$0xff] }
 0x464   :  { %v1648_v33 = vadd.f32 0.5, %v1647_v54  ;;  %v6564_v54 = vld [vmem:[%s7568_s1 + $0x1a8] sm:$0xff] }
 0x466   :  { %v1654_v31 = vmul.f32 %v1648_v33, %v6227_v8  ;;  %v2579_v8 = vld [vmem:[%s7567_s0 + $0xb8] sm:$0xff] }
 0x467   :  { %v1747_v21 = vadd.f32 %v2579_v8, %v1741_v1  ;;  %v6582_v33 = vld [vmem:[%s7568_s1 + $0x198] sm:$0xff] }
 0x468   :  { %v6525_v59 = vadd.f32 %v1655_v38, %v1654_v31 }
 0x469   :  { %v2690_v30 = vpop.eup %2689  ;;  %v1757_v35 = vmul.f32 0.5, %v1747_v21  ;;  %v6640_v21 = vld [vmem:[%s7568_s1 + $0xe8] sm:$0xff] }
 0x46a   :  { %2691 = vtanh.f32 %v6525_v59  ;;  %v1652_v47 = vmul.f32 0.5, %v2690_v30  ;;  %v6594_v30 = vld [vmem:[%s7568_s1 + $0x178] sm:$0xff] }
 0x46b   :  { %2693 = vtanh.f32 %v1752_v32 }
 0x46c   :  { %v1653_v56 = vadd.f32 0.5, %v1652_v47  ;;  %v6600_v47 = vld [vmem:[%s7568_s1 + $0x148] sm:$0xff] }
 0x46e   :  { %v1681_v55 = vpop.f32.mrf.mxu0 }
 0x46f   :  { %v1744_v17 = vadd.f32 %v2576_v48, %v1681_v55  ;;  %v6606_v48 = vld [vmem:[%s7568_s1 + $0x158] sm:$0xff] }
 0x470   :  { %v2692_v41 = vpop.eup %2691 }
 0x471   :  { %v1748_v27 = vmul.f32 0.5, %v1744_v17  ;;  %v1658_v57 = vmul.f32 %v2692_v41, %v1653_v56  ;;  %v2694_v62 = vpop.eup %2693  ;;  %v6613_v17 = vld [vmem:[%s7568_s1 + $0x128] sm:$0xff]  ;;  %v6619_v41 = vld [vmem:[%s7568_s1 + $0x138] sm:$0xff] }
 0x472   :  { %v1754_v44 = vmul.f32 0.5, %v2694_v62  ;;  %v6652_v62 = vld [vmem:[%s7568_s1 + $0xc8] sm:$0xff] }
 0x473   :  { %2695 = vtanh.f32 %v1748_v27  ;;  %1802 = vmatmul.f32.vlgmr.msra.gmra.mxu1 %v1658_v57  ;;  %1842 = vmatmul.f32.vlgmr.msra.gmra.mxu3 %v1658_v57  ;;  %v6633_v27 = vld [vmem:[%s7568_s1 + $0x118] sm:$0xff] }
 0x474   :  { %1969 = vmatpush.msra.mxu1 %v6540_v15  ;;  %2009 = vmatpush.msra.mxu3 %v6546_v58  ;;  %v1721_v53 = vpop.f32.mrf.mxu2  ;;  %v1755_v31 = vadd.f32 0.5, %v1754_v44  ;;  %v6664_v44 = vld [vmem:[%s7568_s1 + $0xa8] sm:$0xff] }
 0x475   :  { %v1746_v49 = vadd.f32 %v2578_v19, %v1721_v53  ;;  %v6646_v19 = vld [vmem:[%s7568_s1 + $0xf8] sm:$0xff] }
 0x476   :  { %1970 = vmatpush.msra.mxu1 %v6552_v63  ;;  %2010 = vmatpush.msra.mxu3 %v6558_v13  ;;  %v1761_v55 = vmul.f32 %v1755_v31, %v6254_v42  ;;  %v6627_v42 = vld [vmem:[%s7568_s1 + $0x108] sm:$0xff]  ;;  %v6658_v53 = vld [vmem:[%s7568_s1 + $0xd8] sm:$0xff] }
 0x477   :  { %2697 = vtanh.f32 %v1746_v49  ;;  %v6678_v31 = vld [vmem:[%s7568_s1 + $0x88] sm:$0xff] }
 0x478   :  { %1971 = vmatpush.msra.mxu1 %v6564_v54  ;;  %2011 = vmatpush.msra.mxu3 %v6570_v0  ;;  %2699 = vtanh.f32 %v1757_v35  ;;  %v6670_v35 = vld [vmem:[%s7568_s1 + $0xb8] sm:$0xff] }
 0x479   :  { %v2696_v2 = vpop.eup %2695 }
 0x47a   :  { %v1750_v36 = vmul.f32 0.5, %v2696_v2  ;;  %1972 = vmatpush.msra.mxu1 %v6576_v37  ;;  %2012 = vmatpush.msra.mxu3 %v6582_v33 }
 0x47b   :  { %1882 = vmatmul.f32.vlgmr.msrb.gmra.mxu1 %v1658_v57  ;;  %1922 = vmatmul.f32.vlgmr.msrb.gmra.mxu3 %v1658_v57 }
 0x47c   :  { %v1751_v38 = vadd.f32 0.5, %v1750_v36  ;;  %1973 = vmatpush.msra.mxu1 %v6588_v23  ;;  %2013 = vmatpush.msra.mxu3 %v6594_v30 }
 0x47d   :  { %v2698_v32 = vpop.eup %2697 }
 0x47e   :  { %1974 = vmatpush.msra.mxu1 %v6600_v47  ;;  %2014 = vmatpush.msra.mxu3 %v6606_v48  ;;  %v1762_v56 = vmul.f32 %v2698_v32, %v1751_v38  ;;  %v2700_v8 = vpop.eup %2699  ;;  %v6684_v38 = vld [vmem:[%s7568_s1 + $0x98] sm:$0xff]  ;;  %v6692_v32 = vld [vmem:[%s7568_s1 + $0x1e0] sm:$0xff] }
 0x47f   :  { %v1759_v57 = vmul.f32 0.5, %v2700_v8  ;;  %8812 = vst [vmem:[#allocation53_spill] sm:$0xff] %v6692_v32  ;;  %v6710_v8 = vld [vmem:[%s7568_s1 + $0x78] sm:$0xff] }
 0x480   :  { %1975 = vmatpush.msra.mxu1 %v6613_v17  ;;  %2015 = vmatpush.msra.mxu3 %v6619_v41  ;;  %v6622_v1 = vadd.f32 %v1762_v56, %v1761_v55  ;;  %v6698_v55 = vld [vmem:[%s7568_s1 + $0x1f0] sm:$0xff]  ;;  %v6704_v56 = vld [vmem:[%s7568_s1 + $0x68] sm:$0xff] }
 0x481   :  { %v1760_v49 = vadd.f32 0.5, %v1759_v57  ;;  %8813 = vst [vmem:[#allocation56_spill] sm:$0xff] %v6698_v55  ;;  %v6716_v57 = vld [vmem:[%s7568_s1 + $0x1c0] sm:$0xff] }
 0x482   :  { %1976 = vmatpush.msra.mxu1 %v6627_v42  ;;  %2016 = vmatpush.msra.mxu3 %v6633_v27  ;;  %2701 = vtanh.f32 %v6622_v1  ;;  %8814 = vst [vmem:[#allocation57_spill] sm:$0xff] %v6716_v57 }
 0x484   :  { %1977 = vmatpush.msra.mxu1 %v6640_v21  ;;  %2017 = vmatpush.msra.mxu3 %v6646_v19 }
 0x486   :  { %1978 = vmatpush.msra.mxu1 %v6652_v62  ;;  %2018 = vmatpush.msra.mxu3 %v6658_v53 }
 0x488   :  { %1979 = vmatpush.msra.mxu1 %v6664_v44  ;;  %2019 = vmatpush.msra.mxu3 %v6670_v35  ;;  %v2702_v2 = vpop.eup %2701 }
 0x489   :  { %v6673_v36 = vmul.f32 %v2702_v2, %v1760_v49  ;;  %v6722_v49 = vld [vmem:[%s7568_s1 + $0x1d0] sm:$0xff]  ;;  %v6728_v2 = vld [vmem:[%s7568_s1 + $0x48] sm:$0xff] }
 0x48a   :  { %1980 = vmatpush.msra.mxu1 %v6678_v31  ;;  %2020 = vmatpush.msra.mxu3 %v6684_v38  ;;  %8815 = vst [vmem:[#allocation60_spill] sm:$0xff] %v6722_v49 }
 0x48b   :  { %1782 = vmatmul.f32.vlgmr.msra.gmra.mxu0 %v6673_v36  ;;  %1822 = vmatmul.f32.vlgmr.msra.gmra.mxu2 %v6673_v36  ;;  %8816 = vst [vmem:[#allocation61_spill] sm:$0xff] %v6728_v2 }
 0x48c   :  { %1949 = vmatpush.msra.mxu0 %v6692_v32  ;;  %1989 = vmatpush.msra.mxu2 %v6698_v55  ;;  %v6734_v55 = vld [vmem:[%s7568_s1 + $0x58] sm:$0xff]  ;;  %v6822_v32 = vld [vmem:[%s7568_s1 + $0x120] sm:$0xff] }
 0x48d   :  { %1981 = vmatpush.msra.mxu1 %v6704_v56  ;;  %2021 = vmatpush.msra.mxu3 %v6710_v8  ;;  %8817 = vst [vmem:[#allocation64_spill] sm:$0xff] %v6734_v55 }
 0x48e   :  { %1950 = vmatpush.msra.mxu0 %v6716_v57  ;;  %1990 = vmatpush.msra.mxu2 %v6722_v49  ;;  %v6740_v57 = vld [vmem:[%s7568_s1 + $0x1a0] sm:$0xff]  ;;  %v6746_v49 = vld [vmem:[%s7568_s1 + $0x1b0] sm:$0xff]  ;;  %8832 = vst [vmem:[#allocation84_spill] sm:$0xff] %v6822_v32 }
 0x48f   :  { %1982 = vmatpush.msra.mxu1 %v6728_v2  ;;  %2022 = vmatpush.msra.mxu3 %v6734_v55  ;;  %8818 = vst [vmem:[#allocation65_spill] sm:$0xff] %v6740_v57  ;;  %v6752_v2 = vld [vmem:[%s7568_s1 + $0x28] sm:$0xff]  ;;  %v6758_v55 = vld [vmem:[%s7568_s1 + $0x38] sm:$0xff] }
 0x490   :  { %1951 = vmatpush.msra.mxu0 %v6740_v57  ;;  %8819 = vst [vmem:[#allocation68_spill] sm:$0xff] %v6746_v49  ;;  %1991 = vmatpush.msra.mxu2 %v6746_v49  ;;  %v6764_v57 = vld [vmem:[%s7568_s1 + $0x180] sm:$0xff]  ;;  %v6770_v49 = vld [vmem:[%s7568_s1 + $0x190] sm:$0xff] }
 0x491   :  { %8820 = vst [vmem:[#allocation69_spill] sm:$0xff] %v6752_v2  ;;  %1983 = vmatpush.msra.mxu1 %v6752_v2  ;;  %2023 = vmatpush.msra.mxu3 %v6758_v55  ;;  %v6776_v2 = vld [vmem:[%s7568_s1 + $0x8] sm:$0xff] }
 0x492   :  { %8821 = vst [vmem:[#allocation72_spill] sm:$0xff] %v6758_v55  ;;  %1952 = vmatpush.msra.mxu0 %v6764_v57  ;;  %1992 = vmatpush.msra.mxu2 %v6770_v49  ;;  %v6782_v55 = vld [vmem:[%s7568_s1 + $0x18] sm:$0xff] }
 0x493   :  { %8822 = vst [vmem:[#allocation76_spill] sm:$0xff] %v6764_v57  ;;  %1984 = vmatpush.msra.mxu1 %v6776_v2  ;;  %2024 = vmatpush.msra.mxu3 %v6782_v55  ;;  %v6797_v57 = vld [vmem:[%s7568_s1 + $0x170] sm:$0xff] }
 0x494   :  { %8823 = vst [vmem:[#allocation5_spill] sm:$0xff] %v6770_v49  ;;  %1862 = vmatmul.f32.vlgmr.msrb.gmra.mxu0 %v6673_v36  ;;  %1902 = vmatmul.f32.vlgmr.msrb.gmra.mxu2 %v6673_v36  ;;  %v6790_v49 = vld [vmem:[%s7568_s1 + $0x160] sm:$0xff] }
 0x495   :  { %8824 = vst [vmem:[#allocation6_spill] sm:$0xff] %v6776_v2  ;;  %1953 = vmatpush.msra.mxu0 %v6790_v49  ;;  %1985 = vmatmul.f32.vlgmr.msra.gmra.mxu1 %v6673_v36  ;;  %v6807_v2 = vld [vmem:[#allocation2 + $0x3e0] sm:$0xff] }
 0x496   :  { %8825 = vst [vmem:[#allocation7_spill] sm:$0xff] %v6782_v55  ;;  %1993 = vmatpush.msra.mxu2 %v6797_v57  ;;  %2025 = vmatmul.f32.vlgmr.msra.gmra.mxu3 %v6673_v36  ;;  %v6804_v55 = vld [vmem:[%s7568_s1 + $0x140] sm:$0xff] }
 0x497   :  { %8826 = vst [vmem:[#allocation74_spill] sm:$0xff] %v6790_v49  ;;  %1954 = vmatpush.msra.mxu0 %v6804_v55  ;;  %2071 = vmatpush.msrb.mxu1 %v6807_v2  ;;  %v6813_v49 = vld [vmem:[%s7568_s1 + $0x150] sm:$0xff] }
 0x498   :  { %8827 = vst [vmem:[#allocation8_spill] sm:$0xff] %v6797_v57  ;;  %1994 = vmatpush.msra.mxu2 %v6813_v49  ;;  %v6816_v57 = vld [vmem:[#allocation2 + $0x3e8] sm:$0xff] }
 0x499   :  { %8828 = vst [vmem:[#allocation81_spill] sm:$0xff] %v6804_v55  ;;  %2111 = vmatpush.msrb.mxu3 %v6816_v57  ;;  %1955 = vmatpush.msra.mxu0 %v6822_v32  ;;  %v6825_v55 = vld [vmem:[#allocation2 + $0x3c0] sm:$0xff] }
 0x49a   :  { %8829 = vst [vmem:[#allocation9_spill] sm:$0xff] %v6807_v2  ;;  %2072 = vmatpush.msrb.mxu1 %v6825_v55  ;;  %v6831_v2 = vld [vmem:[%s7568_s1 + $0x130] sm:$0xff]  ;;  %v6843_v32 = vld [vmem:[#allocation2 + $0x3a0] sm:$0xff] }
 0x49b   :  { %8830 = vst [vmem:[#allocation78_spill] sm:$0xff] %v6813_v49  ;;  %1995 = vmatpush.msra.mxu2 %v6831_v2  ;;  %v6834_v49 = vld [vmem:[#allocation2 + $0x3c8] sm:$0xff] }
 0x49c   :  { %8831 = vst [vmem:[#allocation10_spill] sm:$0xff] %v6816_v57  ;;  %2112 = vmatpush.msrb.mxu3 %v6834_v49  ;;  %v6840_v57 = vld [vmem:[%s7568_s1 + $0x100] sm:$0xff]  ;;  %2073 = vmatpush.msrb.mxu1 %v6843_v32 }
 0x49d   :  { %8833 = vst [vmem:[#allocation11_spill] sm:$0xff] %v6825_v55  ;;  %1956 = vmatpush.msra.mxu0 %v6840_v57  ;;  %v6849_v55 = vld [vmem:[%s7568_s1 + $0x110] sm:$0xff] }
 0x49e   :  { %8834 = vst [vmem:[#allocation82_spill] sm:$0xff] %v6831_v2  ;;  %1996 = vmatpush.msra.mxu2 %v6849_v55  ;;  %v6852_v2 = vld [vmem:[#allocation2 + $0x3a8] sm:$0xff] }
 0x49f   :  { %8835 = vst [vmem:[#allocation12_spill] sm:$0xff] %v6834_v49  ;;  %2113 = vmatpush.msrb.mxu3 %v6852_v2  ;;  %v6858_v49 = vld [vmem:[%s7568_s1 + $0xe0] sm:$0xff] }
 0x4a0   :  { %8836 = vst [vmem:[#allocation13_spill] sm:$0xff] %v6840_v57  ;;  %1957 = vmatpush.msra.mxu0 %v6858_v49  ;;  %v6861_v57 = vld [vmem:[#allocation2 + $0x380] sm:$0xff] }
 0x4a1   :  { %8837 = vst [vmem:[#allocation14_spill] sm:$0xff] %v6843_v32  ;;  %2074 = vmatpush.msrb.mxu1 %v6861_v57  ;;  %v6867_v32 = vld [vmem:[%s7568_s1 + $0xf0] sm:$0xff] }
 0x4a2   :  { %8838 = vst [vmem:[#allocation15_spill] sm:$0xff] %v6849_v55  ;;  %1997 = vmatpush.msra.mxu2 %v6867_v32  ;;  %v6870_v55 = vld [vmem:[#allocation2 + $0x388] sm:$0xff] }
 0x4a3   :  { %8839 = vst [vmem:[#allocation85_spill] sm:$0xff] %v6852_v2  ;;  %2114 = vmatpush.msrb.mxu3 %v6870_v55  ;;  %v6876_v2 = vld [vmem:[%s7568_s1 + $0xc0] sm:$0xff] }
 0x4a4   :  { %8840 = vst [vmem:[#allocation16_spill] sm:$0xff] %v6858_v49  ;;  %1958 = vmatpush.msra.mxu0 %v6876_v2  ;;  %v6879_v49 = vld [vmem:[#allocation2 + $0x360] sm:$0xff] }
 0x4a5   :  { %8841 = vst [vmem:[#allocation89_spill] sm:$0xff] %v6861_v57  ;;  %2075 = vmatpush.msrb.mxu1 %v6879_v49  ;;  %v6885_v57 = vld [vmem:[%s7568_s1 + $0xd0] sm:$0xff] }
 0x4a6   :  { %8842 = vst [vmem:[#allocation17_spill] sm:$0xff] %v6867_v32  ;;  %1998 = vmatpush.msra.mxu2 %v6885_v57  ;;  %v6888_v32 = vld [vmem:[#allocation2 + $0x368] sm:$0xff] }
 0x4a7   :  { %8843 = vst [vmem:[#allocation87_spill] sm:$0xff] %v6870_v55  ;;  %2115 = vmatpush.msrb.mxu3 %v6888_v32  ;;  %v6894_v55 = vld [vmem:[%s7568_s1 + $0xa0] sm:$0xff] }
 0x4a8   :  { %8844 = vst [vmem:[#allocation18_spill] sm:$0xff] %v6876_v2  ;;  %1959 = vmatpush.msra.mxu0 %v6894_v55  ;;  %v6897_v2 = vld [vmem:[#allocation2 + $0x340] sm:$0xff] }
 0x4a9   :  { %8845 = vst [vmem:[#allocation91_spill] sm:$0xff] %v6879_v49  ;;  %2076 = vmatpush.msrb.mxu1 %v6897_v2  ;;  %v6903_v49 = vld [vmem:[%s7568_s1 + $0xb0] sm:$0xff] }
 0x4aa   :  { %8846 = vst [vmem:[#allocation19_spill] sm:$0xff] %v6885_v57  ;;  %1999 = vmatpush.msra.mxu2 %v6903_v49  ;;  %v6906_v57 = vld [vmem:[#allocation2 + $0x348] sm:$0xff] }
 0x4ab   :  { %8847 = vst [vmem:[#allocation90_spill] sm:$0xff] %v6888_v32  ;;  %2116 = vmatpush.msrb.mxu3 %v6906_v57  ;;  %v6912_v32 = vld [vmem:[%s7568_s1 + $0x80] sm:$0xff] }
 0x4ac   :  { %8848 = vst [vmem:[#allocation20_spill] sm:$0xff] %v6894_v55  ;;  %1960 = vmatpush.msra.mxu0 %v6912_v32  ;;  %v6915_v55 = vld [vmem:[#allocation2 + $0x320] sm:$0xff] }
 0x4ad   :  { %8849 = vst [vmem:[#allocation93_spill] sm:$0xff] %v6897_v2  ;;  %2077 = vmatpush.msrb.mxu1 %v6915_v55  ;;  %v6921_v2 = vld [vmem:[%s7568_s1 + $0x90] sm:$0xff] }
 0x4ae   :  { %8850 = vst [vmem:[#allocation21_spill] sm:$0xff] %v6903_v49  ;;  %2000 = vmatpush.msra.mxu2 %v6921_v2  ;;  %v6924_v49 = vld [vmem:[#allocation2 + $0x328] sm:$0xff] }
 0x4af   :  { %8851 = vst [vmem:[#allocation92_spill] sm:$0xff] %v6906_v57  ;;  %2117 = vmatpush.msrb.mxu3 %v6924_v49  ;;  %v6930_v57 = vld [vmem:[%s7568_s1 + $0x60] sm:$0xff] }
 0x4b0   :  { %8852 = vst [vmem:[#allocation22_spill] sm:$0xff] %v6912_v32  ;;  %1961 = vmatpush.msra.mxu0 %v6930_v57  ;;  %v6933_v32 = vld [vmem:[#allocation2 + $0x300] sm:$0xff] }
 0x4b1   :  { %8853 = vst [vmem:[#allocation95_spill] sm:$0xff] %v6915_v55  ;;  %2078 = vmatpush.msrb.mxu1 %v6933_v32  ;;  %v6939_v55 = vld [vmem:[%s7568_s1 + $0x70] sm:$0xff] }
 0x4b2   :  { %8854 = vst [vmem:[#allocation23_spill] sm:$0xff] %v6921_v2  ;;  %2001 = vmatpush.msra.mxu2 %v6939_v55  ;;  %v6942_v2 = vld [vmem:[#allocation2 + $0x308] sm:$0xff] }
 0x4b3   :  { %8855 = vst [vmem:[#allocation94_spill] sm:$0xff] %v6924_v49  ;;  %2118 = vmatpush.msrb.mxu3 %v6942_v2  ;;  %v6948_v49 = vld [vmem:[%s7568_s1 + $0x40] sm:$0xff] }
 0x4b4   :  { %8856 = vst [vmem:[#allocation24_spill] sm:$0xff] %v6930_v57  ;;  %1962 = vmatpush.msra.mxu0 %v6948_v49  ;;  %v6951_v57 = vld [vmem:[#allocation2 + $0x2e0] sm:$0xff] }
 0x4b5   :  { %8857 = vst [vmem:[#allocation97_spill] sm:$0xff] %v6933_v32  ;;  %2079 = vmatpush.msrb.mxu1 %v6951_v57  ;;  %v6957_v32 = vld [vmem:[%s7568_s1 + $0x50] sm:$0xff] }
 0x4b6   :  { %8858 = vst [vmem:[#allocation25_spill] sm:$0xff] %v6939_v55  ;;  %2002 = vmatpush.msra.mxu2 %v6957_v32  ;;  %v6960_v55 = vld [vmem:[#allocation2 + $0x2e8] sm:$0xff] }
 0x4b7   :  { %8859 = vst [vmem:[#allocation96_spill] sm:$0xff] %v6942_v2  ;;  %2119 = vmatpush.msrb.mxu3 %v6960_v55  ;;  %v6966_v2 = vld [vmem:[%s7568_s1 + $0x20] sm:$0xff] }
 0x4b8   :  { %8860 = vst [vmem:[#allocation26_spill] sm:$0xff] %v6948_v49  ;;  %1963 = vmatpush.msra.mxu0 %v6966_v2  ;;  %v6969_v49 = vld [vmem:[#allocation2 + $0x2c0] sm:$0xff] }
 0x4b9   :  { %8861 = vst [vmem:[#allocation99_spill] sm:$0xff] %v6951_v57  ;;  %2080 = vmatpush.msrb.mxu1 %v6969_v49  ;;  %v6975_v57 = vld [vmem:[%s7568_s1 + $0x30] sm:$0xff] }
 0x4ba   :  { %8862 = vst [vmem:[#allocation27_spill] sm:$0xff] %v6957_v32  ;;  %2003 = vmatpush.msra.mxu2 %v6975_v57  ;;  %v6978_v32 = vld [vmem:[#allocation2 + $0x2c8] sm:$0xff] }
 0x4bb   :  { %8863 = vst [vmem:[#allocation98_spill] sm:$0xff] %v6960_v55  ;;  %2120 = vmatpush.msrb.mxu3 %v6978_v32  ;;  %v6984_v55 = vld [vmem:[%s7568_s1] sm:$0xff] }
 0x4bc   :  { %8864 = vst [vmem:[#allocation28_spill] sm:$0xff] %v6966_v2  ;;  %1964 = vmatpush.msra.mxu0 %v6984_v55  ;;  %v6987_v2 = vld [vmem:[#allocation2 + $0x2a0] sm:$0xff] }
 0x4bd   :  { %8865 = vst [vmem:[#allocation101_spill] sm:$0xff] %v6969_v49  ;;  %2081 = vmatpush.msrb.mxu1 %v6987_v2  ;;  %v6993_v49 = vld [vmem:[%s7568_s1 + $0x10] sm:$0xff]  ;;  %1965 = vmatmul.f32.vlgmr.msra.gmra.mxu0 %v6673_v36 }
 0x4be   :  { %8866 = vst [vmem:[#allocation29_spill] sm:$0xff] %v6975_v57  ;;  %2004 = vmatpush.msra.mxu2 %v6993_v49  ;;  %v7007_v57 = vld [vmem:[#allocation2 + $0x288] sm:$0xff] }
 0x4bf   :  { %8867 = vst [vmem:[#allocation100_spill] sm:$0xff] %v6978_v32  ;;  %2005 = vmatmul.f32.vlgmr.msra.gmra.mxu2 %v6673_v36  ;;  %v6998_v32 = vld [vmem:[#allocation2 + $0x2a8] sm:$0xff]  ;;  %v7013_v36 = vld [vmem:[#allocation2 + $0x260] sm:$0xff] }
 0x4c0   :  { %8868 = vst [vmem:[#allocation30_spill] sm:$0xff] %v6984_v55  ;;  %2121 = vmatpush.msrb.mxu3 %v6998_v32  ;;  %v7001_v55 = vld [vmem:[#allocation2 + $0x280] sm:$0xff] }
 0x4c1   :  { %8869 = vst [vmem:[#allocation31_spill] sm:$0xff] %v6987_v2  ;;  %2082 = vmatpush.msrb.mxu1 %v7001_v55  ;;  %v7004_v2 = vld [vmem:[#allocation2 + $0x1e0] sm:$0xff] }
 0x4c2   :  { %8870 = vst [vmem:[#allocation102_spill] sm:$0xff] %v6993_v49  ;;  %2051 = vmatpush.msrb.mxu0 %v7004_v2  ;;  %2122 = vmatpush.msrb.mxu3 %v7007_v57  ;;  %v7010_v49 = vld [vmem:[#allocation2 + $0x1e8] sm:$0xff] }
 0x4c3   :  { %8871 = vst [vmem:[#allocation32_spill] sm:$0xff] %v6998_v32  ;;  %2091 = vmatpush.msrb.mxu2 %v7010_v49  ;;  %2083 = vmatpush.msrb.mxu1 %v7013_v36  ;;  %v7016_v32 = vld [vmem:[#allocation2 + $0x1c0] sm:$0xff] }
 0x4c4   :  { %8872 = vst [vmem:[#allocation33_spill] sm:$0xff] %v7001_v55  ;;  %2052 = vmatpush.msrb.mxu0 %v7016_v32  ;;  %v7019_v55 = vld [vmem:[#allocation2 + $0x268] sm:$0xff] }
 0x4c5   :  { %8873 = vst [vmem:[#allocation103_spill] sm:$0xff] %v7004_v2  ;;  %2123 = vmatpush.msrb.mxu3 %v7019_v55  ;;  %v7022_v2 = vld [vmem:[#allocation2 + $0x1c8] sm:$0xff] }
 0x4c6   :  { %8874 = vst [vmem:[#allocation34_spill] sm:$0xff] %v7007_v57  ;;  %2092 = vmatpush.msrb.mxu2 %v7022_v2  ;;  %v7025_v57 = vld [vmem:[#allocation2 + $0x240] sm:$0xff] }
 0x4c7   :  { %8875 = vst [vmem:[#allocation35_spill] sm:$0xff] %v7010_v49  ;;  %2084 = vmatpush.msrb.mxu1 %v7025_v57  ;;  %v7028_v49 = vld [vmem:[#allocation2 + $0x1a0] sm:$0xff] }
 0x4c8   :  { %8876 = vst [vmem:[#allocation36_spill] sm:$0xff] %v7013_v36  ;;  %2053 = vmatpush.msrb.mxu0 %v7028_v49  ;;  %v7031_v36 = vld [vmem:[#allocation2 + $0x248] sm:$0xff] }
 0x4c9   :  { %8877 = vst [vmem:[#allocation37_spill] sm:$0xff] %v7016_v32  ;;  %2124 = vmatpush.msrb.mxu3 %v7031_v36  ;;  %v7034_v32 = vld [vmem:[#allocation2 + $0x1a8] sm:$0xff] }
 0x4ca   :  { %8878 = vst [vmem:[#allocation38_spill] sm:$0xff] %v7019_v55  ;;  %2093 = vmatpush.msrb.mxu2 %v7034_v32  ;;  %v7037_v55 = vld [vmem:[#allocation2 + $0x220] sm:$0xff] }
 0x4cb   :  { %8879 = vst [vmem:[#allocation39_spill] sm:$0xff] %v7022_v2  ;;  %2085 = vmatpush.msrb.mxu1 %v7037_v55  ;;  %v7040_v2 = vld [vmem:[#allocation2 + $0x180] sm:$0xff] }
 0x4cc   :  { %8880 = vst [vmem:[#allocation40_spill] sm:$0xff] %v7025_v57  ;;  %2054 = vmatpush.msrb.mxu0 %v7040_v2  ;;  %v7043_v57 = vld [vmem:[#allocation2 + $0x228] sm:$0xff] }
 0x4cd   :  { %8881 = vst [vmem:[#allocation41_spill] sm:$0xff] %v7028_v49  ;;  %2125 = vmatpush.msrb.mxu3 %v7043_v57  ;;  %v7046_v49 = vld [vmem:[#allocation2 + $0x188] sm:$0xff] }
 0x4ce   :  { %8882 = vst [vmem:[#allocation42_spill] sm:$0xff] %v7031_v36  ;;  %2094 = vmatpush.msrb.mxu2 %v7046_v49  ;;  %v7049_v36 = vld [vmem:[#allocation2 + $0x200] sm:$0xff] }
 0x4cf   :  { %8883 = vst [vmem:[#allocation43_spill] sm:$0xff] %v7034_v32  ;;  %2086 = vmatpush.msrb.mxu1 %v7049_v36  ;;  %v7052_v32 = vld [vmem:[#allocation2 + $0x160] sm:$0xff] }
 0x4d0   :  { %8884 = vst [vmem:[#allocation44_spill] sm:$0xff] %v7037_v55  ;;  %2055 = vmatpush.msrb.mxu0 %v7052_v32  ;;  %v7055_v55 = vld [vmem:[#allocation2 + $0x208] sm:$0xff] }
 0x4d1   :  { %8885 = vst [vmem:[#allocation45_spill] sm:$0xff] %v7040_v2  ;;  %2126 = vmatpush.msrb.mxu3 %v7055_v55  ;;  %v7058_v2 = vld [vmem:[#allocation2 + $0x168] sm:$0xff] }
 0x4d2   :  { %8886 = vst [vmem:[#allocation46_spill] sm:$0xff] %v7043_v57  ;;  %2095 = vmatpush.msrb.mxu2 %v7058_v2  ;;  %v7061_v57 = vld [vmem:[#allocation2 + $0x3f0] sm:$0xff] }
 0x4d3   :  { %8887 = vst [vmem:[#allocation47_spill] sm:$0xff] %v7046_v49  ;;  %2151 = vmatpush.msra.mxu1 %v7061_v57  ;;  %v7064_v49 = vld [vmem:[#allocation2 + $0x3f8] sm:$0xff] }
 0x4d4   :  { %8888 = vst [vmem:[#allocation48_spill] sm:$0xff] %v7049_v36  ;;  %2191 = vmatpush.msra.mxu3 %v7064_v49  ;;  %v7067_v36 = vld [vmem:[#allocation2 + $0x140] sm:$0xff] }
 0x4d5   :  { %8889 = vst [vmem:[#allocation49_spill] sm:$0xff] %v7052_v32  ;;  %2056 = vmatpush.msrb.mxu0 %v7067_v36  ;;  %v7070_v32 = vld [vmem:[#allocation2 + $0x148] sm:$0xff] }
 0x4d6   :  { %8890 = vst [vmem:[#allocation50_spill] sm:$0xff] %v7055_v55  ;;  %2096 = vmatpush.msrb.mxu2 %v7070_v32  ;;  %v7073_v55 = vld [vmem:[#allocation2 + $0x3d0] sm:$0xff] }
 0x4d7   :  { %8891 = vst [vmem:[#allocation51_spill] sm:$0xff] %v7058_v2  ;;  %2152 = vmatpush.msra.mxu1 %v7073_v55  ;;  %v7076_v2 = vld [vmem:[#allocation2 + $0x3d8] sm:$0xff] }
 0x4d8   :  { %8892 = vst [vmem:[#allocation52_spill] sm:$0xff] %v7061_v57  ;;  %2192 = vmatpush.msra.mxu3 %v7076_v2  ;;  %v7079_v57 = vld [vmem:[#allocation2 + $0x120] sm:$0xff] }
 0x4d9   :  { %8893 = vst [vmem:[#allocation54_spill] sm:$0xff] %v7064_v49  ;;  %2057 = vmatpush.msrb.mxu0 %v7079_v57  ;;  %v7082_v49 = vld [vmem:[#allocation2 + $0x128] sm:$0xff] }
 0x4da   :  { %8894 = vst [vmem:[#allocation55_spill] sm:$0xff] %v7067_v36  ;;  %2097 = vmatpush.msrb.mxu2 %v7082_v49  ;;  %v7085_v36 = vld [vmem:[#allocation2 + $0x3b0] sm:$0xff] }
 0x4db   :  { %8895 = vst [vmem:[#allocation58_spill] sm:$0xff] %v7070_v32  ;;  %2153 = vmatpush.msra.mxu1 %v7085_v36  ;;  %v7088_v32 = vld [vmem:[#allocation2 + $0x3b8] sm:$0xff] }
 0x4dc   :  { %8896 = vst [vmem:[#allocation59_spill] sm:$0xff] %v7073_v55  ;;  %2193 = vmatpush.msra.mxu3 %v7088_v32  ;;  %v7091_v55 = vld [vmem:[#allocation2 + $0x100] sm:$0xff] }
 0x4dd   :  { %8897 = vst [vmem:[#allocation62_spill] sm:$0xff] %v7076_v2  ;;  %2058 = vmatpush.msrb.mxu0 %v7091_v55  ;;  %v7094_v2 = vld [vmem:[#allocation2 + $0x108] sm:$0xff] }
 0x4de   :  { %8898 = vst [vmem:[#allocation63_spill] sm:$0xff] %v7079_v57  ;;  %2098 = vmatpush.msrb.mxu2 %v7094_v2  ;;  %v7097_v57 = vld [vmem:[#allocation2 + $0x390] sm:$0xff] }
 0x4df   :  { %8899 = vst [vmem:[#allocation66_spill] sm:$0xff] %v7082_v49  ;;  %2154 = vmatpush.msra.mxu1 %v7097_v57  ;;  %v7100_v49 = vld [vmem:[#allocation2 + $0x398] sm:$0xff] }
 0x4e0   :  { %8900 = vst [vmem:[#allocation67_spill] sm:$0xff] %v7085_v36  ;;  %2194 = vmatpush.msra.mxu3 %v7100_v49  ;;  %v7103_v36 = vld [vmem:[#allocation2 + $0xe0] sm:$0xff] }
 0x4e1   :  { %8901 = vst [vmem:[#allocation70_spill] sm:$0xff] %v7088_v32  ;;  %2059 = vmatpush.msrb.mxu0 %v7103_v36  ;;  %v7106_v32 = vld [vmem:[#allocation2 + $0xe8] sm:$0xff] }
 0x4e2   :  { %8902 = vst [vmem:[#allocation71_spill] sm:$0xff] %v7091_v55  ;;  %2099 = vmatpush.msrb.mxu2 %v7106_v32  ;;  %v7109_v55 = vld [vmem:[#allocation2 + $0x370] sm:$0xff] }
 0x4e3   :  { %8903 = vst [vmem:[#allocation73_spill] sm:$0xff] %v7094_v2  ;;  %2155 = vmatpush.msra.mxu1 %v7109_v55  ;;  %v7112_v2 = vld [vmem:[#allocation2 + $0x378] sm:$0xff] }
 0x4e4   :  { %8904 = vst [vmem:[#allocation75_spill] sm:$0xff] %v7097_v57  ;;  %2195 = vmatpush.msra.mxu3 %v7112_v2  ;;  %v7115_v57 = vld [vmem:[#allocation2 + $0xc0] sm:$0xff] }
 0x4e5   :  { %8905 = vst [vmem:[#allocation77_spill] sm:$0xff] %v7100_v49  ;;  %2060 = vmatpush.msrb.mxu0 %v7115_v57  ;;  %v7118_v49 = vld [vmem:[#allocation2 + $0xc8] sm:$0xff] }
 0x4e6   :  { %8906 = vst [vmem:[#allocation79_spill] sm:$0xff] %v7103_v36  ;;  %2100 = vmatpush.msrb.mxu2 %v7118_v49  ;;  %v7121_v36 = vld [vmem:[#allocation2 + $0x350] sm:$0xff] }
 0x4e7   :  { %8907 = vst [vmem:[#allocation80_spill] sm:$0xff] %v7106_v32  ;;  %2156 = vmatpush.msra.mxu1 %v7121_v36  ;;  %v7124_v32 = vld [vmem:[#allocation2 + $0x358] sm:$0xff] }
 0x4e8   :  { %8908 = vst [vmem:[#allocation83_spill] sm:$0xff] %v7109_v55  ;;  %2196 = vmatpush.msra.mxu3 %v7124_v32  ;;  %v7127_v55 = vld [vmem:[#allocation2 + $0xa0] sm:$0xff] }
 0x4e9   :  { %8909 = vst [vmem:[#allocation86_spill] sm:$0xff] %v7112_v2  ;;  %2061 = vmatpush.msrb.mxu0 %v7127_v55  ;;  %v7130_v2 = vld [vmem:[#allocation2 + $0xa8] sm:$0xff] }
 0x4ea   :  { %8910 = vst [vmem:[#allocation88_spill] sm:$0xff] %v7115_v57  ;;  %2101 = vmatpush.msrb.mxu2 %v7130_v2  ;;  %v7133_v57 = vld [vmem:[#allocation2 + $0x330] sm:$0xff] }
 0x4eb   :  { %8911 = vst [vmem:[#allocation104_spill] sm:$0xff] %v7118_v49  ;;  %2157 = vmatpush.msra.mxu1 %v7133_v57  ;;  %v7136_v49 = vld [vmem:[#allocation2 + $0x338] sm:$0xff] }
 0x4ec   :  { %8912 = vst [vmem:[#allocation105_spill] sm:$0xff] %v7121_v36  ;;  %2197 = vmatpush.msra.mxu3 %v7136_v49  ;;  %v7139_v36 = vld [vmem:[#allocation2 + $0x80] sm:$0xff] }
 0x4ed   :  { %8913 = vst [vmem:[#allocation106_spill] sm:$0xff] %v7124_v32  ;;  %2062 = vmatpush.msrb.mxu0 %v7139_v36  ;;  %v7142_v32 = vld [vmem:[#allocation2 + $0x88] sm:$0xff] }
 0x4ee   :  { %8914 = vst [vmem:[#allocation107_spill] sm:$0xff] %v7127_v55  ;;  %2102 = vmatpush.msrb.mxu2 %v7142_v32  ;;  %v7145_v55 = vld [vmem:[#allocation2 + $0x310] sm:$0xff] }
 0x4ef   :  { %8915 = vst [vmem:[#allocation108_spill] sm:$0xff] %v7130_v2  ;;  %2158 = vmatpush.msra.mxu1 %v7145_v55  ;;  %v7148_v2 = vld [vmem:[#allocation2 + $0x318] sm:$0xff] }
 0x4f0   :  { %8916 = vst [vmem:[#allocation109_spill] sm:$0xff] %v7133_v57  ;;  %2198 = vmatpush.msra.mxu3 %v7148_v2  ;;  %v7151_v57 = vld [vmem:[#allocation2 + $0x60] sm:$0xff] }
 0x4f1   :  { %8917 = vst [vmem:[#allocation110_spill] sm:$0xff] %v7136_v49  ;;  %2063 = vmatpush.msrb.mxu0 %v7151_v57  ;;  %v7154_v49 = vld [vmem:[#allocation2 + $0x68] sm:$0xff] }
 0x4f2   :  { %8918 = vst [vmem:[#allocation111_spill] sm:$0xff] %v7139_v36  ;;  %2103 = vmatpush.msrb.mxu2 %v7154_v49  ;;  %v7157_v36 = vld [vmem:[#allocation2 + $0x2f0] sm:$0xff] }
 0x4f3   :  { %8919 = vst [vmem:[#allocation112_spill] sm:$0xff] %v7142_v32  ;;  %2159 = vmatpush.msra.mxu1 %v7157_v36  ;;  %v7160_v32 = vld [vmem:[#allocation2 + $0x2f8] sm:$0xff] }
 0x4f4   :  { %8920 = vst [vmem:[#allocation113_spill] sm:$0xff] %v7145_v55  ;;  %2199 = vmatpush.msra.mxu3 %v7160_v32  ;;  %v7163_v55 = vld [vmem:[#allocation2 + $0x40] sm:$0xff] }
 0x4f5   :  { %8921 = vst [vmem:[#allocation114_spill] sm:$0xff] %v7148_v2  ;;  %2064 = vmatpush.msrb.mxu0 %v7163_v55  ;;  %v7166_v2 = vld [vmem:[#allocation2 + $0x48] sm:$0xff] }
 0x4f6   :  { %8922 = vst [vmem:[#allocation115_spill] sm:$0xff] %v7151_v57  ;;  %2104 = vmatpush.msrb.mxu2 %v7166_v2  ;;  %v7169_v57 = vld [vmem:[#allocation2 + $0x2d0] sm:$0xff] }
 0x4f7   :  { %8923 = vst [vmem:[#allocation116_spill] sm:$0xff] %v7154_v49  ;;  %2160 = vmatpush.msra.mxu1 %v7169_v57  ;;  %v7172_v49 = vld [vmem:[#allocation2 + $0x2d8] sm:$0xff] }
 0x4f8   :  { %8924 = vst [vmem:[#allocation117_spill] sm:$0xff] %v7157_v36  ;;  %2200 = vmatpush.msra.mxu3 %v7172_v49  ;;  %v7175_v36 = vld [vmem:[#allocation2 + $0x20] sm:$0xff] }
 0x4f9   :  { %8925 = vst [vmem:[#allocation118_spill] sm:$0xff] %v7160_v32  ;;  %2065 = vmatpush.msrb.mxu0 %v7175_v36  ;;  %v7178_v32 = vld [vmem:[#allocation2 + $0x28] sm:$0xff] }
 0x4fa   :  { %8926 = vst [vmem:[#allocation119_spill] sm:$0xff] %v7163_v55  ;;  %2105 = vmatpush.msrb.mxu2 %v7178_v32  ;;  %v7181_v55 = vld [vmem:[#allocation2 + $0x2b0] sm:$0xff] }
 0x4fb   :  { %8927 = vst [vmem:[#allocation120_spill] sm:$0xff] %v7166_v2  ;;  %2161 = vmatpush.msra.mxu1 %v7181_v55  ;;  %v7184_v2 = vld [vmem:[#allocation2 + $0x2b8] sm:$0xff] }
 0x4fc   :  { %8928 = vst [vmem:[#allocation121_spill] sm:$0xff] %v7169_v57  ;;  %2201 = vmatpush.msra.mxu3 %v7184_v2  ;;  %v7187_v57 = vld [vmem:[#allocation2] sm:$0xff] }
 0x4fd   :  { %8929 = vst [vmem:[#allocation122_spill] sm:$0xff] %v7172_v49  ;;  %2066 = vmatpush.msrb.mxu0 %v7187_v57  ;;  %v7190_v49 = vld [vmem:[#allocation2 + $0x8] sm:$0xff] }
 0x4fe   :  { %8930 = vst [vmem:[#allocation123_spill] sm:$0xff] %v7175_v36  ;;  %2106 = vmatpush.msrb.mxu2 %v7190_v49  ;;  %v7193_v36 = vld [vmem:[#allocation2 + $0x290] sm:$0xff] }
 0x4ff   :  { %8931 = vst [vmem:[#allocation124_spill] sm:$0xff] %v7178_v32  ;;  %2162 = vmatpush.msra.mxu1 %v7193_v36  ;;  %v7196_v32 = vld [vmem:[#allocation2 + $0x298] sm:$0xff] }
 0x500   :  { %8932 = vst [vmem:[#allocation125_spill] sm:$0xff] %v7181_v55  ;;  %2202 = vmatpush.msra.mxu3 %v7196_v32  ;;  %v7199_v55 = vld [vmem:[#allocation2 + $0x1f0] sm:$0xff] }
 0x501   :  { %8933 = vst [vmem:[#allocation126_spill] sm:$0xff] %v7184_v2  ;;  %2131 = vmatpush.msra.mxu0 %v7199_v55  ;;  %v7202_v2 = vld [vmem:[#allocation2 + $0x1f8] sm:$0xff] }
 0x502   :  { %8934 = vst [vmem:[#allocation127_spill] sm:$0xff] %v7187_v57  ;;  %2171 = vmatpush.msra.mxu2 %v7202_v2  ;;  %v7205_v57 = vld [vmem:[#allocation2 + $0x270] sm:$0xff] }
 0x503   :  { %8935 = vst [vmem:[#allocation128_spill] sm:$0xff] %v7190_v49  ;;  %2163 = vmatpush.msra.mxu1 %v7205_v57  ;;  %v7208_v49 = vld [vmem:[#allocation2 + $0x278] sm:$0xff] }
 0x504   :  { %8936 = vst [vmem:[#allocation129_spill] sm:$0xff] %v7193_v36  ;;  %2203 = vmatpush.msra.mxu3 %v7208_v49  ;;  %v7211_v36 = vld [vmem:[#allocation2 + $0x1d0] sm:$0xff] }
 0x505   :  { %8937 = vst [vmem:[#allocation130_spill] sm:$0xff] %v7196_v32  ;;  %2132 = vmatpush.msra.mxu0 %v7211_v36  ;;  %v7214_v32 = vld [vmem:[#allocation2 + $0x1d8] sm:$0xff] }
 0x506   :  { %8938 = vst [vmem:[#allocation131_spill] sm:$0xff] %v7199_v55  ;;  %2172 = vmatpush.msra.mxu2 %v7214_v32  ;;  %v7217_v55 = vld [vmem:[#allocation2 + $0x250] sm:$0xff] }
 0x507   :  { %8939 = vst [vmem:[#allocation132_spill] sm:$0xff] %v7202_v2  ;;  %2164 = vmatpush.msra.mxu1 %v7217_v55  ;;  %v7220_v2 = vld [vmem:[#allocation2 + $0x258] sm:$0xff] }
 0x508   :  { %8940 = vst [vmem:[#allocation133_spill] sm:$0xff] %v7205_v57  ;;  %2204 = vmatpush.msra.mxu3 %v7220_v2  ;;  %v7223_v57 = vld [vmem:[#allocation2 + $0x1b0] sm:$0xff] }
 0x509   :  { %8941 = vst [vmem:[#allocation134_spill] sm:$0xff] %v7208_v49  ;;  %2133 = vmatpush.msra.mxu0 %v7223_v57  ;;  %v7226_v49 = vld [vmem:[#allocation2 + $0x1b8] sm:$0xff] }
 0x50a   :  { %8942 = vst [vmem:[#allocation135_spill] sm:$0xff] %v7211_v36  ;;  %2173 = vmatpush.msra.mxu2 %v7226_v49  ;;  %v7229_v36 = vld [vmem:[#allocation2 + $0x230] sm:$0xff] }
 0x50b   :  { %8943 = vst [vmem:[#allocation136_spill] sm:$0xff] %v7214_v32  ;;  %2165 = vmatpush.msra.mxu1 %v7229_v36  ;;  %v7232_v32 = vld [vmem:[#allocation2 + $0x238] sm:$0xff]  ;;  %2134 = vmatpush.msra.mxu0 %v6417_v7  ;;  %v1783_v7 = vpop.f32.mrf.mxu0 }
 0x50c   :  { %8944 = vst [vmem:[#allocation137_spill] sm:$0xff] %v7220_v2  ;;  %2205 = vmatpush.msra.mxu3 %v7232_v32  ;;  %2174 = vmatpush.msra.mxu2 %v6420_v45  ;;  %v7237_v2 = vld [vmem:[#allocation2 + $0x210] sm:$0xff]  ;;  %v1803_v45 = vpop.f32.mrf.mxu1 }
 0x50d   :  { %8945 = vst [vmem:[#allocation138_spill] sm:$0xff] %v7223_v57  ;;  %2166 = vmatpush.msra.mxu1 %v7237_v2  ;;  %v7240_v57 = vld [vmem:[#allocation2 + $0x218] sm:$0xff]  ;;  %2135 = vmatpush.msra.mxu0 %v6425_v6  ;;  %v1784_v6 = vadd.f32 %v6500_v34, %v1783_v7  ;;  %v2581_v34 = vld [vmem:[%s7567_s0 + $0xc8] sm:$0xff] }
 0x50e   :  { %2206 = vmatpush.msra.mxu3 %v7240_v57  ;;  %2175 = vmatpush.msra.mxu2 %v6428_v51 }
 0x50f   :  { %2136 = vmatpush.msra.mxu0 %v6431_v39  ;;  %v1804_v51 = vadd.f32 %v1803_v45, %v1784_v6 }
 0x510   :  { %2176 = vmatpush.msra.mxu2 %v6434_v40  ;;  %v1823_v40 = vpop.f32.mrf.mxu2 }
 0x511   :  { %2137 = vmatpush.msra.mxu0 %v6437_v11  ;;  %v1926_v39 = vmul.f32 0.5, %v1804_v51  ;;  %v1843_v11 = vpop.f32.mrf.mxu3 }
 0x512   :  { %2177 = vmatpush.msra.mxu2 %v6440_v5  ;;  %v1824_v5 = vadd.f32 %v6506_v9, %v1823_v40  ;;  %v2580_v40 = vld [vmem:[%s7567_s0 + $0xc0] sm:$0xff] }
 0x513   :  { %2138 = vmatpush.msra.mxu0 %v6443_v46  ;;  %2703 = vtanh.f32 %v1926_v39 }
 0x514   :  { %2178 = vmatpush.msra.mxu2 %v6446_v29  ;;  %v1844_v46 = vadd.f32 %v1843_v11, %v1824_v5  ;;  %v1863_v29 = vpop.f32.mrf.mxu0 }
 0x515   :  { %2139 = vmatpush.msra.mxu0 %v6449_v52  ;;  %v1864_v52 = vadd.f32 %v6512_v50, %v1863_v29 }
 0x516   :  { %2179 = vmatpush.msra.mxu2 %v6452_v4  ;;  %v1883_v4 = vpop.f32.mrf.mxu1 }
 0x517   :  { %2140 = vmatpush.msra.mxu0 %v6455_v61  ;;  %v1930_v61 = vmul.f32 0.5, %v1844_v46 }
 0x518   :  { %2180 = vmatpush.msra.mxu2 %v6458_v12  ;;  %v1884_v12 = vadd.f32 %v1883_v4, %v1864_v52 }
 0x519   :  { %2141 = vmatpush.msra.mxu0 %v6461_v25  ;;  %2705 = vtanh.f32 %v1930_v61  ;;  %v2704_v25 = vpop.eup %2703 }
 0x51a   :  { %2181 = vmatpush.msra.mxu2 %v6464_v60  ;;  %2707 = vtanh.f32 %v1884_v12  ;;  %v1903_v60 = vpop.f32.mrf.mxu2 }
 0x51b   :  { %2142 = vmatpush.msra.mxu0 %v6467_v14  ;;  %v1904_v14 = vadd.f32 %v6518_v3, %v1903_v60 }
 0x51c   :  { %2182 = vmatpush.msra.mxu2 %v6470_v43  ;;  %v1923_v43 = vpop.f32.mrf.mxu3 }
 0x51d   :  { %2143 = vmatpush.msra.mxu0 %v6473_v16  ;;  %v1928_v16 = vmul.f32 0.5, %v2704_v25  ;;  %v2582_v25 = vld [vmem:[%s7567_s0 + $0xd0] sm:$0xff] }
 0x51e   :  { %2183 = vmatpush.msra.mxu2 %v6476_v18  ;;  %v1924_v18 = vadd.f32 %v1923_v43, %v1904_v14  ;;  %v1986_v9 = vpop.f32.mrf.mxu1 }
 0x51f   :  { %2144 = vmatpush.msra.mxu0 %v6479_v20  ;;  %v2706_v20 = vpop.eup %2705  ;;  %v2030_v45 = vadd.f32 %v2581_v34, %v1986_v9  ;;  %v8966_v34 = vld [vmem:[#allocation84_spill] sm:$0xff]  ;;  %v8967_v9 = vld [vmem:[#allocation11_spill] sm:$0xff] }
 0x520   :  { %2184 = vmatpush.msra.mxu2 %v6482_v22  ;;  %v1932_v22 = vmul.f32 0.5, %v2706_v20 }
 0x521   :  { %2145 = vmatpush.msra.mxu0 %v6485_v24  ;;  %v1935_v24 = vmul.f32 0.5, %v1924_v18  ;;  %v2037_v51 = vmul.f32 0.5, %v2030_v45  ;;  %v8970_v45 = vld [vmem:[#allocation13_spill] sm:$0xff] }
 0x522   :  { %2185 = vmatpush.msra.mxu2 %v6488_v26  ;;  %v2708_v26 = vpop.eup %2707 }
 0x523   :  { %2146 = vmatpush.msra.mxu0 %v6491_v28  ;;  %v1929_v28 = vadd.f32 0.5, %v1928_v16  ;;  %2709 = vtanh.f32 %v1935_v24  ;;  %v8962_v24 = vld [vmem:[#allocation81_spill] sm:$0xff] }
 0x524   :  { %2186 = vmatpush.msra.mxu2 %v6494_v10  ;;  %v1933_v10 = vadd.f32 0.5, %v1932_v22  ;;  %v2026_v52 = vpop.f32.mrf.mxu3  ;;  %v8961_v22 = vld [vmem:[#allocation8_spill] sm:$0xff] }
 0x525   :  { %v1940_v7 = vmul.f32 %v2708_v26, %v1929_v28  ;;  %v8963_v26 = vld [vmem:[#allocation9_spill] sm:$0xff]  ;;  %v8964_v28 = vld [vmem:[#allocation78_spill] sm:$0xff] }
 0x526   :  { %v1939_v50 = vmul.f32 %v1933_v10, %v6525_v59  ;;  %v2583_v59 = vld [vmem:[%s7567_s0 + $0xd8] sm:$0xff]  ;;  %v8965_v10 = vld [vmem:[#allocation10_spill] sm:$0xff] }
 0x527   :  { %v2032_v12 = vadd.f32 %v2583_v59, %v2026_v52  ;;  %v8979_v59 = vld [vmem:[#allocation91_spill] sm:$0xff] }
 0x528   :  { %v7275_v3 = vadd.f32 %v1940_v7, %v1939_v50  ;;  %v8968_v50 = vld [vmem:[#allocation82_spill] sm:$0xff]  ;;  %v8969_v7 = vld [vmem:[#allocation12_spill] sm:$0xff]  ;;  %v8980_v52 = vld [vmem:[#allocation19_spill] sm:$0xff] }
 0x529   :  { %v2710_v6 = vpop.eup %2709  ;;  %v2042_v18 = vmul.f32 0.5, %v2032_v12  ;;  %v8983_v12 = vld [vmem:[#allocation93_spill] sm:$0xff] }
 0x52a   :  { %2711 = vtanh.f32 %v7275_v3  ;;  %v1937_v39 = vmul.f32 0.5, %v2710_v6  ;;  %v8971_v6 = vld [vmem:[#allocation14_spill] sm:$0xff] }
 0x52b   :  { %2713 = vtanh.f32 %v2037_v51  ;;  %v8972_v51 = vld [vmem:[#allocation15_spill] sm:$0xff] }
 0x52c   :  { %v1938_v11 = vadd.f32 0.5, %v1937_v39  ;;  %v8973_v39 = vld [vmem:[#allocation85_spill] sm:$0xff] }
 0x530   :  { %v2712_v46 = vpop.eup %2711 }
 0x531   :  { %v1943_v4 = vmul.f32 %v2712_v46, %v1938_v11  ;;  %v2714_v60 = vpop.eup %2713  ;;  %v8975_v11 = vld [vmem:[#allocation89_spill] sm:$0xff]  ;;  %v8977_v46 = vld [vmem:[#allocation87_spill] sm:$0xff] }
 0x532   :  { %v2039_v16 = vmul.f32 0.5, %v2714_v60  ;;  %v8985_v60 = vld [vmem:[#allocation92_spill] sm:$0xff] }
 0x533   :  { %2087 = vmatmul.f32.vlgmr.msrb.gmra.mxu1 %v1943_v4  ;;  %2127 = vmatmul.f32.vlgmr.msrb.gmra.mxu3 %v1943_v4 }
 0x534   :  { %2254 = vmatpush.msrb.mxu1 %v6540_v15  ;;  %2294 = vmatpush.msrb.mxu3 %v6546_v58  ;;  %v2040_v58 = vadd.f32 0.5, %v2039_v16  ;;  %v8988_v16 = vld [vmem:[#allocation23_spill] sm:$0xff] }
 0x536   :  { %2255 = vmatpush.msrb.mxu1 %v6552_v63  ;;  %2295 = vmatpush.msrb.mxu3 %v6558_v13 }
 0x538   :  { %2256 = vmatpush.msrb.mxu1 %v6564_v54  ;;  %2296 = vmatpush.msrb.mxu3 %v6570_v0  ;;  %v2046_v54 = vmul.f32 %v2040_v58, %v6622_v1  ;;  %v8948_v1 = vld [vmem:[#allocation61_spill] sm:$0xff] }
 0x539   :  { %v8992_v58 = vld [vmem:[#allocation25_spill] sm:$0xff] }
 0x53a   :  { %v1966_v5 = vpop.f32.mrf.mxu0  ;;  %2257 = vmatpush.msrb.mxu1 %v6576_v37  ;;  %2297 = vmatpush.msrb.mxu3 %v6582_v33 }
 0x53b   :  { %v2029_v29 = vadd.f32 %v2580_v40, %v1966_v5  ;;  %2167 = vmatmul.f32.vlgmr.msra.gmra.mxu1 %v1943_v4  ;;  %2207 = vmatmul.f32.vlgmr.msra.gmra.mxu3 %v1943_v4  ;;  %v8974_v40 = vld [vmem:[#allocation16_spill] sm:$0xff]  ;;  %v8976_v5 = vld [vmem:[#allocation17_spill] sm:$0xff]  ;;  %v8981_v4 = vld [vmem:[#allocation90_spill] sm:$0xff] }
 0x53c   :  { %2258 = vmatpush.msrb.mxu1 %v6588_v23  ;;  %2298 = vmatpush.msrb.mxu3 %v6594_v30 }
 0x53d   :  { %v2033_v61 = vmul.f32 0.5, %v2029_v29  ;;  %v8978_v29 = vld [vmem:[#allocation18_spill] sm:$0xff] }
 0x53e   :  { %2259 = vmatpush.msrb.mxu1 %v6600_v47  ;;  %2299 = vmatpush.msrb.mxu3 %v6606_v48 }
 0x53f   :  { %2715 = vtanh.f32 %v2033_v61  ;;  %v8982_v61 = vld [vmem:[#allocation20_spill] sm:$0xff] }
 0x540   :  { %2260 = vmatpush.msrb.mxu1 %v6613_v17  ;;  %2300 = vmatpush.msrb.mxu3 %v6619_v41  ;;  %v8946_v17 = vld [vmem:[#allocation53_spill] sm:$0xff]  ;;  %v8947_v41 = vld [vmem:[#allocation56_spill] sm:$0xff] }
 0x542   :  { %v2006_v14 = vpop.f32.mrf.mxu2  ;;  %2261 = vmatpush.msrb.mxu1 %v6627_v42  ;;  %2301 = vmatpush.msrb.mxu3 %v6633_v27  ;;  %v8949_v42 = vld [vmem:[#allocation64_spill] sm:$0xff]  ;;  %v8950_v27 = vld [vmem:[#allocation57_spill] sm:$0xff] }
 0x543   :  { %v2031_v43 = vadd.f32 %v2582_v25, %v2006_v14  ;;  %v8984_v25 = vld [vmem:[#allocation21_spill] sm:$0xff]  ;;  %v8986_v14 = vld [vmem:[#allocation22_spill] sm:$0xff] }
 0x544   :  { %2262 = vmatpush.msrb.mxu1 %v6640_v21  ;;  %2302 = vmatpush.msrb.mxu3 %v6646_v19  ;;  %v8951_v21 = vld [vmem:[#allocation60_spill] sm:$0xff]  ;;  %v8952_v19 = vld [vmem:[#allocation69_spill] sm:$0xff] }
 0x545   :  { %2717 = vtanh.f32 %v2031_v43  ;;  %v2716_v20 = vpop.eup %2715  ;;  %v8987_v43 = vld [vmem:[#allocation95_spill] sm:$0xff] }
 0x546   :  { %v2035_v15 = vmul.f32 0.5, %v2716_v20  ;;  %2719 = vtanh.f32 %v2042_v18  ;;  %2263 = vmatpush.msrb.mxu1 %v6652_v62  ;;  %2303 = vmatpush.msrb.mxu3 %v6658_v53  ;;  %v8953_v62 = vld [vmem:[#allocation72_spill] sm:$0xff]  ;;  %v8954_v53 = vld [vmem:[#allocation65_spill] sm:$0xff]  ;;  %v8989_v18 = vld [vmem:[#allocation94_spill] sm:$0xff] }
 0x547   :  { %v8990_v20 = vld [vmem:[#allocation24_spill] sm:$0xff] }
 0x548   :  { %v2036_v63 = vadd.f32 0.5, %v2035_v15  ;;  %2264 = vmatpush.msrb.mxu1 %v6664_v44  ;;  %2304 = vmatpush.msrb.mxu3 %v6670_v35  ;;  %v8955_v44 = vld [vmem:[#allocation68_spill] sm:$0xff]  ;;  %v8956_v35 = vld [vmem:[#allocation6_spill] sm:$0xff]  ;;  %v8991_v15 = vld [vmem:[#allocation97_spill] sm:$0xff] }
 0x54a   :  { %2265 = vmatpush.msrb.mxu1 %v6678_v31  ;;  %2305 = vmatpush.msrb.mxu3 %v6684_v38  ;;  %v8957_v31 = vld [vmem:[#allocation7_spill] sm:$0xff]  ;;  %v8958_v38 = vld [vmem:[#allocation76_spill] sm:$0xff] }
 0x54b   :  { %v2718_v13 = vpop.eup %2717 }
 0x54c   :  { %v2047_v0 = vmul.f32 %v2718_v13, %v2036_v63  ;;  %v2720_v37 = vpop.eup %2719  ;;  %2266 = vmatpush.msrb.mxu1 %v6704_v56  ;;  %2306 = vmatpush.msrb.mxu3 %v6710_v8  ;;  %v8959_v56 = vld [vmem:[#allocation5_spill] sm:$0xff]  ;;  %v8960_v8 = vld [vmem:[#allocation74_spill] sm:$0xff]  ;;  %v8993_v63 = vld [vmem:[#allocation96_spill] sm:$0xff] }
 0x54d   :  { %v2044_v23 = vmul.f32 0.5, %v2720_v37  ;;  %v8994_v13 = vld [vmem:[#allocation26_spill] sm:$0xff] }
 0x54e   :  { %v7302_v33 = vadd.f32 %v2047_v0, %v2046_v54  ;;  %2267 = vmatpush.msrb.mxu1 %v8948_v1  ;;  %2307 = vmatpush.msrb.mxu3 %v8949_v42  ;;  %v8995_v54 = vld [vmem:[#allocation99_spill] sm:$0xff]  ;;  %v8997_v37 = vld [vmem:[#allocation98_spill] sm:$0xff] }
 0x54f   :  { %v2045_v30 = vadd.f32 0.5, %v2044_v23  ;;  %v8996_v0 = vld [vmem:[#allocation27_spill] sm:$0xff]  ;;  %v8998_v23 = vld [vmem:[#allocation28_spill] sm:$0xff]  ;;  %v9004_v42 = vld [vmem:[#allocation102_spill] sm:$0xff] }
 0x550   :  { %2721 = vtanh.f32 %v7302_v33  ;;  %2268 = vmatpush.msrb.mxu1 %v8952_v19  ;;  %2308 = vmatpush.msrb.mxu3 %v8953_v62  ;;  %v9003_v1 = vld [vmem:[#allocation31_spill] sm:$0xff]  ;;  %v9008_v62 = vld [vmem:[#allocation34_spill] sm:$0xff] }
 0x551   :  { %v9007_v19 = vld [vmem:[#allocation103_spill] sm:$0xff] }
 0x552   :  { %2269 = vmatpush.msrb.mxu1 %v8956_v35  ;;  %2309 = vmatpush.msrb.mxu3 %v8957_v31  ;;  %v9011_v35 = vld [vmem:[#allocation37_spill] sm:$0xff]  ;;  %v9012_v31 = vld [vmem:[#allocation38_spill] sm:$0xff] }
 0x554   :  { %2356 = vmatpush.msra.mxu1 %v8963_v26  ;;  %2396 = vmatpush.msra.mxu3 %v8965_v10  ;;  %v9019_v26 = vld [vmem:[#allocation45_spill] sm:$0xff]  ;;  %v9021_v10 = vld [vmem:[#allocation47_spill] sm:$0xff] }
 0x556   :  { %v2722_v47 = vpop.eup %2721  ;;  %2357 = vmatpush.msra.mxu1 %v8967_v9  ;;  %2397 = vmatpush.msra.mxu3 %v8969_v7  ;;  %v9023_v9 = vld [vmem:[#allocation49_spill] sm:$0xff]  ;;  %v9025_v7 = vld [vmem:[#allocation51_spill] sm:$0xff] }
 0x557   :  { %v7315_v48 = vmul.f32 %v2722_v47, %v2045_v30  ;;  %v8999_v30 = vld [vmem:[#allocation101_spill] sm:$0xff] }
 0x558   :  { %2358 = vmatpush.msra.mxu1 %v8971_v6  ;;  %2398 = vmatpush.msra.mxu3 %v8973_v39  ;;  %v9000_v47 = vld [vmem:[#allocation29_spill] sm:$0xff]  ;;  %v9027_v6 = vld [vmem:[#allocation54_spill] sm:$0xff] }
 0x559   :  { %2067 = vmatmul.f32.vlgmr.msrb.gmra.mxu0 %v7315_v48  ;;  %2107 = vmatmul.f32.vlgmr.msrb.gmra.mxu2 %v7315_v48  ;;  %v9029_v39 = vld [vmem:[#allocation58_spill] sm:$0xff] }
 0x55a   :  { %2234 = vmatpush.msrb.mxu0 %v8946_v17  ;;  %2274 = vmatpush.msrb.mxu2 %v8947_v41  ;;  %v9001_v17 = vld [vmem:[#allocation100_spill] sm:$0xff]  ;;  %v9002_v41 = vld [vmem:[#allocation30_spill] sm:$0xff] }
 0x55b   :  { %2270 = vmatmul.f32.vlgmr.msrb.gmra.mxu1 %v7315_v48  ;;  %2310 = vmatmul.f32.vlgmr.msrb.gmra.mxu3 %v7315_v48 }
 0x55c   :  { %2235 = vmatpush.msrb.mxu0 %v8950_v27  ;;  %2275 = vmatpush.msrb.mxu2 %v8951_v21  ;;  %v9005_v27 = vld [vmem:[#allocation32_spill] sm:$0xff]  ;;  %v9006_v21 = vld [vmem:[#allocation33_spill] sm:$0xff] }
 0x55d   :  { %2359 = vmatpush.msra.mxu1 %v8975_v11  ;;  %2399 = vmatpush.msra.mxu3 %v8977_v46  ;;  %v9031_v11 = vld [vmem:[#allocation62_spill] sm:$0xff] }
 0x55e   :  { %2236 = vmatpush.msrb.mxu0 %v8954_v53  ;;  %2276 = vmatpush.msrb.mxu2 %v8955_v44  ;;  %v9009_v53 = vld [vmem:[#allocation35_spill] sm:$0xff]  ;;  %v9010_v44 = vld [vmem:[#allocation36_spill] sm:$0xff]  ;;  %v9033_v46 = vld [vmem:[#allocation66_spill] sm:$0xff] }
 0x55f   :  { %2360 = vmatpush.msra.mxu1 %v8979_v59  ;;  %2400 = vmatpush.msra.mxu3 %v8981_v4  ;;  %v9035_v59 = vld [vmem:[#allocation70_spill] sm:$0xff]  ;;  %v9037_v4 = vld [vmem:[#allocation73_spill] sm:$0xff] }
 0x560   :  { %2237 = vmatpush.msrb.mxu0 %v8958_v38  ;;  %2277 = vmatpush.msrb.mxu2 %v8959_v56  ;;  %v9013_v38 = vld [vmem:[#allocation39_spill] sm:$0xff]  ;;  %v9014_v56 = vld [vmem:[#allocation40_spill] sm:$0xff] }
 0x561   :  { %2147 = vmatmul.f32.vlgmr.msra.gmra.mxu0 %v7315_v48  ;;  %2187 = vmatmul.f32.vlgmr.msra.gmra.mxu2 %v7315_v48 }
 0x562   :  { %2238 = vmatpush.msrb.mxu0 %v8960_v8  ;;  %2278 = vmatpush.msrb.mxu2 %v8961_v22  ;;  %v9016_v8 = vld [vmem:[#allocation42_spill] sm:$0xff]  ;;  %v9017_v22 = vld [vmem:[#allocation43_spill] sm:$0xff] }
 0x563   :  { %2361 = vmatpush.msra.mxu1 %v8983_v12  ;;  %2401 = vmatpush.msra.mxu3 %v8985_v60  ;;  %v9039_v12 = vld [vmem:[#allocation77_spill] sm:$0xff]  ;;  %v9041_v60 = vld [vmem:[#allocation80_spill] sm:$0xff] }
 0x564   :  { %2239 = vmatpush.msrb.mxu0 %v8962_v24  ;;  %2279 = vmatpush.msrb.mxu2 %v8964_v28  ;;  %v9018_v24 = vld [vmem:[#allocation44_spill] sm:$0xff]  ;;  %v9020_v28 = vld [vmem:[#allocation46_spill] sm:$0xff] }
 0x565   :  { %2362 = vmatpush.msra.mxu1 %v8987_v43  ;;  %2402 = vmatpush.msra.mxu3 %v8989_v18  ;;  %v9043_v43 = vld [vmem:[#allocation86_spill] sm:$0xff]  ;;  %v9045_v18 = vld [vmem:[#allocation104_spill] sm:$0xff] }
 0x566   :  { %2240 = vmatpush.msrb.mxu0 %v8966_v34  ;;  %2280 = vmatpush.msrb.mxu2 %v8968_v50  ;;  %v9022_v34 = vld [vmem:[#allocation48_spill] sm:$0xff]  ;;  %v9024_v50 = vld [vmem:[#allocation50_spill] sm:$0xff] }
 0x567   :  { %2363 = vmatpush.msra.mxu1 %v8991_v15  ;;  %2403 = vmatpush.msra.mxu3 %v8993_v63  ;;  %v9047_v15 = vld [vmem:[#allocation106_spill] sm:$0xff]  ;;  %v9049_v63 = vld [vmem:[#allocation108_spill] sm:$0xff] }
 0x568   :  { %2241 = vmatpush.msrb.mxu0 %v8970_v45  ;;  %2281 = vmatpush.msrb.mxu2 %v8972_v51  ;;  %v9026_v45 = vld [vmem:[#allocation52_spill] sm:$0xff]  ;;  %v9028_v51 = vld [vmem:[#allocation55_spill] sm:$0xff] }
 0x569   :  { %2364 = vmatpush.msra.mxu1 %v8995_v54  ;;  %2404 = vmatpush.msra.mxu3 %v8997_v37  ;;  %v9051_v54 = vld [vmem:[#allocation110_spill] sm:$0xff]  ;;  %v9053_v37 = vld [vmem:[#allocation112_spill] sm:$0xff] }
 0x56a   :  { %2242 = vmatpush.msrb.mxu0 %v8974_v40  ;;  %2282 = vmatpush.msrb.mxu2 %v8976_v5  ;;  %v9030_v40 = vld [vmem:[#allocation59_spill] sm:$0xff] }
 0x56b   :  { %2365 = vmatpush.msra.mxu1 %v8999_v30  ;;  %2405 = vmatpush.msra.mxu3 %v9001_v17  ;;  %v9032_v5 = vld [vmem:[#allocation63_spill] sm:$0xff]  ;;  %v9055_v30 = vld [vmem:[#allocation114_spill] sm:$0xff]  ;;  %v9057_v17 = vld [vmem:[#allocation116_spill] sm:$0xff] }
 0x56c   :  { %2243 = vmatpush.msrb.mxu0 %v8978_v29  ;;  %2283 = vmatpush.msrb.mxu2 %v8980_v52  ;;  %v9034_v29 = vld [vmem:[#allocation67_spill] sm:$0xff] }
 0x56d   :  { %2366 = vmatpush.msra.mxu1 %v9003_v1  ;;  %2406 = vmatpush.msra.mxu3 %v9005_v27  ;;  %v9036_v52 = vld [vmem:[#allocation71_spill] sm:$0xff]  ;;  %v9059_v1 = vld [vmem:[#allocation118_spill] sm:$0xff]  ;;  %v9061_v27 = vld [vmem:[#allocation120_spill] sm:$0xff] }
 0x56e   :  { %2244 = vmatpush.msrb.mxu0 %v8982_v61  ;;  %2284 = vmatpush.msrb.mxu2 %v8984_v25  ;;  %v9038_v61 = vld [vmem:[#allocation75_spill] sm:$0xff] }
 0x56f   :  { %2367 = vmatpush.msra.mxu1 %v9006_v21  ;;  %2407 = vmatpush.msra.mxu3 %v9008_v62  ;;  %v9040_v25 = vld [vmem:[#allocation79_spill] sm:$0xff]  ;;  %v9062_v21 = vld [vmem:[#allocation121_spill] sm:$0xff] }
 0x570   :  { %2245 = vmatpush.msrb.mxu0 %v8986_v14  ;;  %2285 = vmatpush.msrb.mxu2 %v8988_v16  ;;  %v9042_v14 = vld [vmem:[#allocation83_spill] sm:$0xff]  ;;  %v9044_v16 = vld [vmem:[#allocation88_spill] sm:$0xff] }
 0x571   :  { %2368 = vmatpush.msra.mxu1 %v9010_v44  ;;  %2408 = vmatpush.msra.mxu3 %v9012_v31  ;;  %v9064_v62 = vld [vmem:[#allocation123_spill] sm:$0xff]  ;;  %v9066_v44 = vld [vmem:[#allocation125_spill] sm:$0xff] }
 0x572   :  { %2246 = vmatpush.msrb.mxu0 %v8990_v20  ;;  %2286 = vmatpush.msrb.mxu2 %v8992_v58  ;;  %v9046_v20 = vld [vmem:[#allocation105_spill] sm:$0xff]  ;;  %v9048_v58 = vld [vmem:[#allocation107_spill] sm:$0xff] }
 0x573   :  { %2369 = vmatpush.msra.mxu1 %v9014_v56  ;;  %2409 = vmatpush.msra.mxu3 %v9016_v8  ;;  %v9068_v31 = vld [vmem:[#allocation127_spill] sm:$0xff]  ;;  %v9070_v56 = vld [vmem:[#allocation129_spill] sm:$0xff] }
 0x574   :  { %2247 = vmatpush.msrb.mxu0 %v8994_v13  ;;  %2287 = vmatpush.msrb.mxu2 %v8996_v0  ;;  %v9050_v13 = vld [vmem:[#allocation109_spill] sm:$0xff]  ;;  %v9052_v0 = vld [vmem:[#allocation111_spill] sm:$0xff] }
 0x575   :  { %2370 = vmatpush.msra.mxu1 %v9018_v24  ;;  %2410 = vmatpush.msra.mxu3 %v9020_v28  ;;  %v9072_v8 = vld [vmem:[#allocation131_spill] sm:$0xff]  ;;  %v9074_v24 = vld [vmem:[#allocation133_spill] sm:$0xff] }
 0x576   :  { %2248 = vmatpush.msrb.mxu0 %v8998_v23  ;;  %2288 = vmatpush.msrb.mxu2 %v9000_v47  ;;  %v9054_v23 = vld [vmem:[#allocation113_spill] sm:$0xff]  ;;  %v9056_v47 = vld [vmem:[#allocation115_spill] sm:$0xff] }
 0x577   :  { %2371 = vmatpush.msra.mxu1 %v9022_v34  ;;  %2411 = vmatpush.msra.mxu3 %v9024_v50  ;;  %v9076_v28 = vld [vmem:[#allocation135_spill] sm:$0xff]  ;;  %v9078_v34 = vld [vmem:[#allocation137_spill] sm:$0xff] }
 0x578   :  { %2249 = vmatpush.msrb.mxu0 %v9002_v41  ;;  %2289 = vmatpush.msrb.mxu2 %v9004_v42  ;;  %v9058_v41 = vld [vmem:[#allocation117_spill] sm:$0xff]  ;;  %v9060_v42 = vld [vmem:[#allocation119_spill] sm:$0xff] }
 0x579   :  { %2250 = vmatmul.f32.vlgmr.msrb.gmra.mxu0 %v7315_v48  ;;  %2290 = vmatmul.f32.vlgmr.msrb.gmra.mxu2 %v7315_v48  ;;  %v9015_v48 = vld [vmem:[#allocation41_spill] sm:$0xff]  ;;  %v3311_v50 = vld [vmem:[#allocation2 + $0x190] sm:$0xff] }
 0x57a   :  { %2336 = vmatpush.msra.mxu0 %v9007_v19  ;;  %2376 = vmatpush.msra.mxu2 %v9009_v53  ;;  %v9063_v19 = vld [vmem:[#allocation122_spill] sm:$0xff]  ;;  %v9065_v53 = vld [vmem:[#allocation124_spill] sm:$0xff] }
 0x57b   :  { %2436 = vmatpush.msrb.mxu1 %v9026_v45  ;;  %2476 = vmatpush.msrb.mxu3 %v9027_v6  ;;  %v3313_v45 = vld [vmem:[#allocation2 + $0x170] sm:$0xff] }
 0x57c   :  { %2337 = vmatpush.msra.mxu0 %v9011_v35  ;;  %2377 = vmatpush.msra.mxu2 %v9013_v38  ;;  %v9067_v35 = vld [vmem:[#allocation126_spill] sm:$0xff]  ;;  %v9069_v38 = vld [vmem:[#allocation128_spill] sm:$0xff]  ;;  %v3315_v6 = vld [vmem:[#allocation2 + $0x150] sm:$0xff] }
 0x57d   :  { %2437 = vmatpush.msrb.mxu1 %v9030_v40  ;;  %2477 = vmatpush.msrb.mxu3 %v9031_v11  ;;  %v3321_v40 = vld [vmem:[#allocation2 + $0xf0] sm:$0xff]  ;;  %v3324_v11 = vld [vmem:[#allocation2 + $0xd8] sm:$0xff] }
 0x57e   :  { %2338 = vmatpush.msra.mxu0 %v9015_v48  ;;  %2378 = vmatpush.msra.mxu2 %v9017_v22  ;;  %v9071_v48 = vld [vmem:[#allocation130_spill] sm:$0xff]  ;;  %v9073_v22 = vld [vmem:[#allocation132_spill] sm:$0xff] }
 0x57f   :  { %2438 = vmatpush.msrb.mxu1 %v9034_v29  ;;  %2478 = vmatpush.msrb.mxu3 %v9035_v59  ;;  %v3327_v29 = vld [vmem:[#allocation2 + $0x90] sm:$0xff]  ;;  %v3328_v59 = vld [vmem:[#allocation2 + $0x98] sm:$0xff] }
 0x580   :  { %2339 = vmatpush.msra.mxu0 %v9019_v26  ;;  %2379 = vmatpush.msra.mxu2 %v9021_v10  ;;  %v9075_v26 = vld [vmem:[#allocation134_spill] sm:$0xff]  ;;  %v9077_v10 = vld [vmem:[#allocation136_spill] sm:$0xff] }
 0x581   :  { %2439 = vmatpush.msrb.mxu1 %v9038_v61  ;;  %2479 = vmatpush.msrb.mxu3 %v9039_v12  ;;  %v3331_v61 = vld [vmem:[#allocation2 + $0x50] sm:$0xff]  ;;  %v3332_v12 = vld [vmem:[#allocation2 + $0x58] sm:$0xff] }
 0x582   :  { %2340 = vmatpush.msra.mxu0 %v9023_v9  ;;  %2380 = vmatpush.msra.mxu2 %v9025_v7  ;;  %v9079_v9 = vld [vmem:[#allocation138_spill] sm:$0xff]  ;;  %v3312_v7 = vld [vmem:[#allocation2 + $0x198] sm:$0xff] }
 0x583   :  { %2440 = vmatpush.msrb.mxu1 %v9042_v14  ;;  %2480 = vmatpush.msrb.mxu3 %v9043_v43  ;;  %v3335_v14 = vld [vmem:[#allocation2 + $0x10] sm:$0xff]  ;;  %v3336_v43 = vld [vmem:[#allocation2 + $0x18] sm:$0xff] }
 0x584   :  { %2341 = vmatpush.msra.mxu0 %v9028_v51  ;;  %2381 = vmatpush.msra.mxu2 %v9029_v39  ;;  %v3316_v51 = vld [vmem:[#allocation2 + $0x158] sm:$0xff] }
 0x585   :  { %2441 = vmatpush.msrb.mxu1 %v9046_v20  ;;  %2481 = vmatpush.msrb.mxu3 %v9047_v15  ;;  %v3320_v39 = vld [vmem:[#allocation2 + $0x118] sm:$0xff]  ;;  %v7470_v20 = vld [vmem:[%s7570_s3] sm:$0xff] }
 0x586   :  { %2342 = vmatpush.msra.mxu0 %v9032_v5  ;;  %2382 = vmatpush.msra.mxu2 %v9033_v46  ;;  %v3325_v5 = vld [vmem:[#allocation2 + $0xb0] sm:$0xff]  ;;  %v3326_v46 = vld [vmem:[#allocation2 + $0xb8] sm:$0xff] }
 0x587   :  { %2442 = vmatpush.msrb.mxu1 %v9050_v13  ;;  %2482 = vmatpush.msrb.mxu3 %v9051_v54 }
 0x588   :  { %2343 = vmatpush.msra.mxu0 %v9036_v52  ;;  %2383 = vmatpush.msra.mxu2 %v9037_v4  ;;  %v3329_v52 = vld [vmem:[#allocation2 + $0x70] sm:$0xff]  ;;  %v3330_v4 = vld [vmem:[#allocation2 + $0x78] sm:$0xff] }
 0x589   :  { %2443 = vmatpush.msrb.mxu1 %v9054_v23  ;;  %2483 = vmatpush.msrb.mxu3 %v9055_v30 }
 0x58a   :  { %2344 = vmatpush.msra.mxu0 %v9040_v25  ;;  %2384 = vmatpush.msra.mxu2 %v9041_v60  ;;  %v3333_v25 = vld [vmem:[#allocation2 + $0x30] sm:$0xff]  ;;  %v3334_v60 = vld [vmem:[#allocation2 + $0x38] sm:$0xff] }
 0x58b   :  { %2444 = vmatpush.msrb.mxu1 %v9058_v41  ;;  %2484 = vmatpush.msrb.mxu3 %v9059_v1 }
 0x58c   :  { %2345 = vmatpush.msra.mxu0 %v9044_v16  ;;  %2385 = vmatpush.msra.mxu2 %v9045_v18 }
 0x58d   :  { %2445 = vmatpush.msrb.mxu1 %v9062_v21  ;;  %2485 = vmatpush.msrb.mxu3 %v9063_v19  ;;  %v7488_v19 = vld [vmem:[%s7570_s3 + $0x18] sm:$0xff] }
 0x58e   :  { %2346 = vmatpush.msra.mxu0 %v9048_v58  ;;  %2386 = vmatpush.msra.mxu2 %v9049_v63 }
 0x58f   :  { %2446 = vmatpush.msrb.mxu1 %v9066_v44  ;;  %2486 = vmatpush.msrb.mxu3 %v9067_v35 }
 0x590   :  { %2347 = vmatpush.msra.mxu0 %v9052_v0  ;;  %2387 = vmatpush.msra.mxu2 %v9053_v37  ;;  %v7476_v0 = vld [vmem:[%s7570_s3 + $0x8] sm:$0xff] }
 0x591   :  { %2447 = vmatpush.msrb.mxu1 %v9070_v56  ;;  %2487 = vmatpush.msrb.mxu3 %v9071_v48 }
 0x592   :  { %2348 = vmatpush.msra.mxu0 %v9056_v47  ;;  %2388 = vmatpush.msra.mxu2 %v9057_v17  ;;  %v7482_v47 = vld [vmem:[%s7570_s3 + $0x10] sm:$0xff] }
 0x593   :  { %2448 = vmatpush.msrb.mxu1 %v9074_v24  ;;  %2488 = vmatpush.msrb.mxu3 %v9075_v26 }
 0x594   :  { %2349 = vmatpush.msra.mxu0 %v9060_v42  ;;  %2389 = vmatpush.msra.mxu2 %v9061_v27 }
 0x595   :  { %2449 = vmatpush.msrb.mxu1 %v7217_v55  ;;  %2489 = vmatpush.msrb.mxu3 %v9078_v34  ;;  %v3314_v55 = vld [vmem:[#allocation2 + $0x178] sm:$0xff] }
 0x596   :  { %2350 = vmatpush.msra.mxu0 %v9064_v62  ;;  %2390 = vmatpush.msra.mxu2 %v9065_v53 }
 0x597   :  { %2450 = vmatpush.msrb.mxu1 %v7229_v36  ;;  %2490 = vmatpush.msrb.mxu3 %v7232_v32  ;;  %v3318_v36 = vld [vmem:[#allocation2 + $0x138] sm:$0xff]  ;;  %v3319_v32 = vld [vmem:[#allocation2 + $0x110] sm:$0xff] }
 0x598   :  { %2351 = vmatpush.msra.mxu0 %v9068_v31  ;;  %2391 = vmatpush.msra.mxu2 %v9069_v38 }
 0x599   :  { %2451 = vmatpush.msrb.mxu1 %v7237_v2  ;;  %2491 = vmatpush.msrb.mxu3 %v7240_v57  ;;  %v3322_v2 = vld [vmem:[#allocation2 + $0xf8] sm:$0xff]  ;;  %v3323_v57 = vld [vmem:[#allocation2 + $0xd0] sm:$0xff] }
 0x59a   :  { %2416 = vmatpush.msrb.mxu0 %v9072_v8  ;;  %2456 = vmatpush.msrb.mxu2 %v9073_v22  ;;  %v2585_v8 = vld [vmem:[%s7567_s0 + $0xe8] sm:$0xff] }
 0x59c   :  { %2417 = vmatpush.msrb.mxu0 %v9076_v28  ;;  %2457 = vmatpush.msrb.mxu2 %v9077_v10 }
 0x59e   :  { %2418 = vmatpush.msrb.mxu0 %v9079_v9  ;;  %2458 = vmatpush.msrb.mxu2 %v7226_v49  ;;  %v3317_v49 = vld [vmem:[#allocation2 + $0x130] sm:$0xff] }
 0x5a0   :  { %2419 = vmatpush.msrb.mxu0 %v3311_v50  ;;  %2459 = vmatpush.msrb.mxu2 %v3312_v7 }
 0x5a2   :  { %2420 = vmatpush.msrb.mxu0 %v3313_v45  ;;  %2460 = vmatpush.msrb.mxu2 %v3314_v55  ;;  %v2584_v55 = vld [vmem:[%s7567_s0 + $0xe0] sm:$0xff] }
 0x5a4   :  { %2421 = vmatpush.msrb.mxu0 %v3315_v6  ;;  %2461 = vmatpush.msrb.mxu2 %v3316_v51 }
 0x5a6   :  { %2422 = vmatpush.msrb.mxu0 %v3317_v49  ;;  %2462 = vmatpush.msrb.mxu2 %v3318_v36 }
 0x5a8   :  { %2423 = vmatpush.msrb.mxu0 %v3319_v32  ;;  %2463 = vmatpush.msrb.mxu2 %v3320_v39 }
 0x5aa   :  { %2424 = vmatpush.msrb.mxu0 %v3321_v40  ;;  %2464 = vmatpush.msrb.mxu2 %v3322_v2 }
 0x5ac   :  { %2425 = vmatpush.msrb.mxu0 %v3323_v57  ;;  %2465 = vmatpush.msrb.mxu2 %v3324_v11  ;;  %v2586_v57 = vld [vmem:[%s7567_s0 + $0xf0] sm:$0xff] }
 0x5ae   :  { %2426 = vmatpush.msrb.mxu0 %v3325_v5  ;;  %2466 = vmatpush.msrb.mxu2 %v3326_v46 }
 0x5b0   :  { %2427 = vmatpush.msrb.mxu0 %v3327_v29  ;;  %2467 = vmatpush.msrb.mxu2 %v3328_v59  ;;  %v2088_v16 = vpop.f32.mrf.mxu1 }
 0x5b2   :  { %2428 = vmatpush.msrb.mxu0 %v3329_v52  ;;  %2468 = vmatpush.msrb.mxu2 %v3330_v4 }
 0x5b4   :  { %2429 = vmatpush.msrb.mxu0 %v3331_v61  ;;  %2469 = vmatpush.msrb.mxu2 %v3332_v12 }
 0x5b6   :  { %2430 = vmatpush.msrb.mxu0 %v3333_v25  ;;  %2470 = vmatpush.msrb.mxu2 %v3334_v60  ;;  %v2128_v13 = vpop.f32.mrf.mxu3 }
 0x5b8   :  { %2431 = vmatpush.msrb.mxu0 %v3335_v14  ;;  %2471 = vmatpush.msrb.mxu2 %v3336_v43  ;;  %v2168_v41 = vpop.f32.mrf.mxu1 }
 0x5be   :  { %v2208_v53 = vpop.f32.mrf.mxu3 }
 0x5d6   :  { %v2068_v18 = vpop.f32.mrf.mxu0 }
 0x5d7   :  { %v2069_v15 = vadd.f32 %v7470_v20, %v2068_v18 }
 0x5d8   :  { %v2271_v22 = vpop.f32.mrf.mxu1 }
 0x5d9   :  { %v2089_v58 = vadd.f32 %v2088_v16, %v2069_v15  ;;  %v2315_v34 = vadd.f32 %v2585_v8, %v2271_v22 }
 0x5db   :  { %v2211_v63 = vmul.f32 0.5, %v2089_v58  ;;  %v2322_v7 = vmul.f32 0.5, %v2315_v34 }
 0x5dc   :  { %v2108_v54 = vpop.f32.mrf.mxu2 }
 0x5dd   :  { %v2109_v37 = vadd.f32 %v7476_v0, %v2108_v54  ;;  %2723 = vtanh.f32 %v2211_v63  ;;  %v2527_v54 = vld [vmem:[%s7571_s4 + $0x68] sm:$0xff] }
 0x5de   :  { %v2148_v23 = vpop.f32.mrf.mxu0  ;;  %v2311_v32 = vpop.f32.mrf.mxu3 }
 0x5df   :  { %v2129_v30 = vadd.f32 %v2128_v13, %v2109_v37  ;;  %v2149_v17 = vadd.f32 %v7482_v47, %v2148_v23  ;;  %v2529_v13 = vld [vmem:[%s7571_s4 + $0x78] sm:$0xff]  ;;  %v2526_v37 = vld [vmem:[%s7571_s4 + $0x60] sm:$0xff] }
 0x5e0   :  { %v2525_v23 = vld [vmem:[%s7571_s4 + $0x58] sm:$0xff] }
 0x5e1   :  { %v2215_v1 = vmul.f32 0.5, %v2129_v30  ;;  %v2169_v42 = vadd.f32 %v2168_v41, %v2149_v17  ;;  %v2524_v30 = vld [vmem:[%s7571_s4 + $0x50] sm:$0xff]  ;;  %v2523_v17 = vld [vmem:[%s7571_s4 + $0x48] sm:$0xff]  ;;  %v2522_v41 = vld [vmem:[%s7571_s4 + $0x40] sm:$0xff] }
 0x5e3   :  { %2725 = vtanh.f32 %v2215_v1  ;;  %v2724_v21 = vpop.eup %2723  ;;  %v2521_v1 = vld [vmem:[%s7571_s4 + $0x38] sm:$0xff] }
 0x5e4   :  { %v2188_v27 = vpop.f32.mrf.mxu2  ;;  %2727 = vtanh.f32 %v2169_v42  ;;  %v2213_v35 = vmul.f32 0.5, %v2724_v21  ;;  %v2520_v42 = vld [vmem:[%s7571_s4 + $0x30] sm:$0xff]  ;;  %v2518_v21 = vld [vmem:[%s7571_s4 + $0x20] sm:$0xff] }
 0x5e5   :  { %v2189_v62 = vadd.f32 %v7488_v19, %v2188_v27  ;;  %v2519_v27 = vld [vmem:[%s7571_s4 + $0x28] sm:$0xff] }
 0x5e6   :  { %v2214_v24 = vadd.f32 0.5, %v2213_v35  ;;  %v2516_v35 = vld [vmem:[%s7571_s4 + $0x10] sm:$0xff] }
 0x5e7   :  { %v2209_v44 = vadd.f32 %v2208_v53, %v2189_v62  ;;  %v2517_v62 = vld [vmem:[%s7571_s4 + $0x18] sm:$0xff] }
 0x5e9   :  { %v2726_v31 = vpop.eup %2725  ;;  %v2220_v38 = vmul.f32 0.5, %v2209_v44 }
 0x5ea   :  { %v2217_v56 = vmul.f32 0.5, %v2726_v31  ;;  %v2728_v48 = vpop.eup %2727 }
 0x5eb   :  { %2729 = vtanh.f32 %v2220_v38  ;;  %v2225_v10 = vmul.f32 %v2728_v48, %v2214_v24  ;;  %v2515_v38 = vld [vmem:[%s7571_s4 + $0x8] sm:$0xff]  ;;  %v2514_v48 = vld [vmem:[%s7571_s4] sm:$0xff] }
 0x5ec   :  { %v2218_v26 = vadd.f32 0.5, %v2217_v56 }
 0x5ee   :  { %v2224_v28 = vmul.f32 %v2218_v26, %v7275_v3  ;;  %v2587_v3 = vld [vmem:[%s7567_s0 + $0xf8] sm:$0xff] }
 0x5ef   :  { %v2317_v2 = vadd.f32 %v2587_v3, %v2311_v32 }
 0x5f0   :  { %v7495_v9 = vadd.f32 %v2225_v10, %v2224_v28 }
 0x5f1   :  { %v2730_v50 = vpop.eup %2729  ;;  %v2327_v59 = vmul.f32 0.5, %v2317_v2 }
 0x5f2   :  { %2731 = vtanh.f32 %v7495_v9  ;;  %v2222_v45 = vmul.f32 0.5, %v2730_v50 }
 0x5f3   :  { %2733 = vtanh.f32 %v2322_v7 }
 0x5f4   :  { %v2223_v51 = vadd.f32 0.5, %v2222_v45 }
 0x5f6   :  { %v2251_v6 = vpop.f32.mrf.mxu0 }
 0x5f7   :  { %v2314_v49 = vadd.f32 %v2584_v55, %v2251_v6 }
 0x5f8   :  { %v2732_v36 = vpop.eup %2731 }
 0x5f9   :  { %v2318_v39 = vmul.f32 0.5, %v2314_v49  ;;  %v2228_v40 = vmul.f32 %v2732_v36, %v2223_v51  ;;  %v2734_v11 = vpop.eup %2733 }
 0x5fa   :  { %v2324_v29 = vmul.f32 0.5, %v2734_v11 }
 0x5fb   :  { %2735 = vtanh.f32 %v2318_v39  ;;  %2372 = vmatmul.f32.vlgmr.msra.gmra.mxu1 %v2228_v40  ;;  %2412 = vmatmul.f32.vlgmr.msra.gmra.mxu3 %v2228_v40 }
 0x5fc   :  { %v2291_v5 = vpop.f32.mrf.mxu2  ;;  %v2325_v61 = vadd.f32 0.5, %v2324_v29 }
 0x5fd   :  { %v2316_v46 = vadd.f32 %v2586_v57, %v2291_v5 }
 0x5fe   :  { %v2331_v60 = vmul.f32 %v2325_v61, %v7302_v33  ;;  %v2528_v33 = vld [vmem:[%s7571_s4 + $0x70] sm:$0xff] }
 0x5ff   :  { %2737 = vtanh.f32 %v2316_v46 }
 0x600   :  { %2739 = vtanh.f32 %v2327_v59 }
 0x601   :  { %v2736_v52 = vpop.eup %2735 }
 0x602   :  { %v2320_v4 = vmul.f32 0.5, %v2736_v52  ;;  %v2592_v52 = vld [vmem:[%s7572_s5] ss:$0 sm:$0xff] }
 0x603   :  { %2452 = vmatmul.f32.vlgmr.msrb.gmra.mxu1 %v2228_v40  ;;  %2492 = vmatmul.f32.vlgmr.msrb.gmra.mxu3 %v2228_v40 }
 0x604   :  { %v2321_v12 = vadd.f32 0.5, %v2320_v4 }
 0x605   :  { %v2738_v25 = vpop.eup %2737 }
 0x606   :  { %v2332_v14 = vmul.f32 %v2738_v25, %v2321_v12  ;;  %v2740_v43 = vpop.eup %2739 }
 0x607   :  { %v2329_v18 = vmul.f32 0.5, %v2740_v43 }
 0x608   :  { %v2333_v16 = vadd.f32 %v2332_v14, %v2331_v60 }
 0x609   :  { %v2330_v15 = vadd.f32 0.5, %v2329_v18 }
 0x60a   :  { %2741 = vtanh.f32 %v2333_v16 }
 0x610   :  { %v2742_v58 = vpop.eup %2741 }
 0x611   :  { %v2335_v63 = vmul.f32 %v2742_v58, %v2330_v15 }
 0x613   :  { %2352 = vmatmul.f32.vlgmr.msra.gmra.mxu0 %v2335_v63  ;;  %2392 = vmatmul.f32.vlgmr.msra.gmra.mxu2 %v2335_v63 }
 0x614   :  { %2534 = vmatpush.msra.mxu0 %v2529_v13 }
 0x616   :  { %2535 = vmatpush.msra.mxu0 %v2528_v33 }
 0x618   :  { %2536 = vmatpush.msra.mxu0 %v2527_v54 }
 0x61a   :  { %2537 = vmatpush.msra.mxu0 %v2526_v37 }
 0x61b   :  { %2432 = vmatmul.f32.vlgmr.msrb.gmra.mxu0 %v2335_v63  ;;  %2472 = vmatmul.f32.vlgmr.msrb.gmra.mxu2 %v2335_v63 }
 0x61c   :  { %2538 = vmatpush.msra.mxu0 %v2525_v23 }
 0x61e   :  { %2539 = vmatpush.msra.mxu0 %v2524_v30 }
 0x620   :  { %2540 = vmatpush.msra.mxu0 %v2523_v17 }
 0x622   :  { %2541 = vmatpush.msra.mxu0 %v2522_v41 }
 0x624   :  { %2542 = vmatpush.msra.mxu0 %v2521_v1 }
 0x626   :  { %2543 = vmatpush.msra.mxu0 %v2520_v42 }
 0x628   :  { %2544 = vmatpush.msra.mxu0 %v2519_v27 }
 0x62a   :  { %2545 = vmatpush.msra.mxu0 %v2518_v21 }
 0x62c   :  { %2546 = vmatpush.msra.mxu0 %v2517_v62 }
 0x62e   :  { %2547 = vmatpush.msra.mxu0 %v2516_v35 }
 0x630   :  { %2548 = vmatpush.msra.mxu0 %v2515_v38 }
 0x632   :  { %2549 = vmatpush.msra.mxu0 %v2514_v48 }
 0x678   :  { %v2373_v53 = vpop.f32.mrf.mxu1 }
 0x67e   :  { %v2413_v22 = vpop.f32.mrf.mxu3 }
 0x680   :  { %v2453_v34 = vpop.f32.mrf.mxu1 }
 0x686   :  { %v2493_v51 = vpop.f32.mrf.mxu3 }
 0x690   :  { %v2353_v44 = vpop.f32.mrf.mxu0 }
 0x691   :  { %v2354_v31 = vadd.f32 %v7470_v20, %v2353_v44 }
 0x693   :  { %v2374_v56 = vadd.f32 %v2373_v53, %v2354_v31 }
 0x695   :  { %v2496_v8 = vmul.f32 0.5, %v2374_v56 }
 0x696   :  { %v2393_v24 = vpop.f32.mrf.mxu2 }
 0x697   :  { %v2394_v26 = vadd.f32 %v7476_v0, %v2393_v24  ;;  %2743 = vtanh.f32 %v2496_v8 }
 0x698   :  { %v2433_v28 = vpop.f32.mrf.mxu0 }
 0x699   :  { %v2414_v20 = vadd.f32 %v2413_v22, %v2394_v26  ;;  %v2434_v10 = vadd.f32 %v7482_v47, %v2433_v28 }
 0x69b   :  { %v2500_v50 = vmul.f32 0.5, %v2414_v20  ;;  %v2454_v7 = vadd.f32 %v2453_v34, %v2434_v10 }
 0x69d   :  { %2745 = vtanh.f32 %v2500_v50  ;;  %v2744_v55 = vpop.eup %2743 }
 0x69e   :  { %v2473_v45 = vpop.f32.mrf.mxu2  ;;  %2747 = vtanh.f32 %v2454_v7  ;;  %v2498_v36 = vmul.f32 0.5, %v2744_v55 }
 0x69f   :  { %v2474_v6 = vadd.f32 %v7488_v19, %v2473_v45 }
 0x6a0   :  { %v2499_v40 = vadd.f32 0.5, %v2498_v36 }
 0x6a1   :  { %v2494_v49 = vadd.f32 %v2493_v51, %v2474_v6 }
 0x6a3   :  { %v2746_v3 = vpop.eup %2745  ;;  %v2505_v32 = vmul.f32 0.5, %v2494_v49 }
 0x6a4   :  { %v2502_v0 = vmul.f32 0.5, %v2746_v3  ;;  %v2748_v39 = vpop.eup %2747 }
 0x6a5   :  { %2749 = vtanh.f32 %v2505_v32  ;;  %v2510_v57 = vmul.f32 %v2748_v39, %v2499_v40 }
 0x6a6   :  { %v2503_v2 = vadd.f32 0.5, %v2502_v0 }
 0x6a8   :  { %v2509_v47 = vmul.f32 %v2503_v2, %v7495_v9 }
 0x6aa   :  { %v2511_v11 = vadd.f32 %v2510_v57, %v2509_v47 }
 0x6ab   :  { %v2750_v5 = vpop.eup %2749 }
 0x6ac   :  { %2751 = vtanh.f32 %v2511_v11  ;;  %v2507_v46 = vmul.f32 0.5, %v2750_v5 }
 0x6ae   :  { %v2508_v29 = vadd.f32 0.5, %v2507_v46 }
 0x6b2   :  { %v2752_v59 = vpop.eup %2751 }
 0x6b3   :  { %v2513_v19 = vmul.f32 %v2752_v59, %v2508_v29 }
 0x6b5   :  { %2550 = vmatmul.f32.vlgmr.msra.gmra.mxu0 %v2513_v19 }
 0x732   :  { %v2551_v4 = vpop.f32.mrf.mxu0 }
 0x733   :  { %v2552_v61 = vadd.f32 %v2592_v52, %v2551_v4 }
 0x735   :  { %2554 = vst [vmem:[%s7573_s6] sm:$0xff] %v2552_v61 }
 0x736   :  { %2559 = vsyncpa [#allocation3], 1 }

</bundles_post_ra>
